<compile_context>
chip_gen: v6e
topology: v6e:2x2x1
jax: 0.10.0
libtpu: 0.0.40
codegen_flags: <defaults>
</compile_context>

<pallas_src>
import functools

import jax
import jax.numpy as jnp
from jax.experimental import pallas as pl
from jax.experimental.pallas import tpu as pltpu

_EPS = 1e-5


def _round_up(x, m):
    return (x + m - 1) // m * m


# ----------------------------------------------------------------------------
# Fused InceptionBlock kernel (one grid step = one batch element x TH rows)
# ----------------------------------------------------------------------------
def _inception_kernel(
    xp_ref,                       # (H+4, Win, Cin)  zero-padded input (one batch elem)
    w1_ref, b1_ref,               # (Cin, C1) bf16, (1, C1) f32
    w2r_ref, b2r_ref,             # (Cin, R3),      (1, R3)
    w2_ref, b2_ref,               # (9*R3, C3),     (1, C3)
    w3r_ref, b3r_ref,             # (Cin, R5),      (1, R5)
    w3_ref, b3_ref,               # (25*R5, C5),    (1, C5)
    w4_ref, b4_ref,               # (Cin, C4),      (1, C4)
    o_ref,                        # (TH, W, Ctot)
    *, H, W, Wp, Win, TH, Cin, C1, R3, C3, R5, C5, C4, cdt,
):
    j = pl.program_id(1)
    row0 = j * TH                                  # first output row of this tile

    # ---- single VMEM->vreg load of the row window (full padded width) ------
    # padded coords: row = original + 2, col = original + 4
    xb = xp_ref[pl.ds(row0, TH + 4), :, :]         # original rows [row0-2, row0+TH+2)
    xa = xb[1:1 + TH + 2, :, :]                    # original rows [row0-1, row0+TH+1)

    # ---- validity masks: conv halo must be exactly 0, pool halo exactly -inf
    def valid_mask(rows, row_off):
        r = jax.lax.broadcasted_iota(jnp.int32, (rows, Win, 1), 0) + (row0 + row_off)
        c = jax.lax.broadcasted_iota(jnp.int32, (rows, Win, 1), 1) - 4
        return (r >= 0) & (r < H) & (c >= 0) & (c < W)

    valid_a = valid_mask(TH + 2, -1)               # matches xa
    valid_b = valid_mask(TH + 4, -2)               # matches xb

    def dense(x2d, w_ref, b_ref):
        """MXU matmul (bf16 in, f32 acc) + folded-BN bias + ReLU (f32)."""
        y = jnp.dot(x2d.astype(cdt), w_ref[...],
                    preferred_element_type=jnp.float32)
        return jnp.maximum(y + b_ref[...], 0.0)

    M = TH * Wp

    # ---------------- branch 1: 1x1 conv ------------------------------------
    x_c = xb[2:2 + TH, 4:4 + Wp, :]                              # (TH, Wp, Cin)
    y1 = dense(x_c.reshape(M, Cin), w1_ref, b1_ref)              # (M, C1)

    # ---------------- branch 2: 1x1 reduce -> 3x3 conv ----------------------
    r3 = dense(xa.reshape((TH + 2) * Win, Cin), w2r_ref, b2r_ref)
    r3 = jnp.where(valid_a, r3.reshape(TH + 2, Win, R3), 0.0).astype(cdt)
    # im2col: fold all 9 taps into one K = 9*R3 matmul (fills the MXU K dim).
    slab3 = jnp.concatenate(
        [r3[kh:kh + TH, 3 + kw:3 + kw + Wp, :]
         for kh in range(3) for kw in range(3)], axis=-1)        # (TH, Wp, 9*R3)
    y2 = dense(slab3.reshape(M, 9 * R3), w2_ref, b2_ref)         # (M, C3)

    # ---------------- branch 3: 1x1 reduce -> 5x5 conv ----------------------
    r5 = dense(xb.reshape((TH + 4) * Win, Cin), w3r_ref, b3r_ref)
    r5 = jnp.where(valid_b, r5.reshape(TH + 4, Win, R5), 0.0).astype(cdt)
    slab5 = jnp.concatenate(
        [r5[kh:kh + TH, 2 + kw:2 + kw + Wp, :]
         for kh in range(5) for kw in range(5)], axis=-1)        # (TH, Wp, 25*R5)
    y3 = dense(slab5.reshape(M, 25 * R5), w3_ref, b3_ref)        # (M, C5)

    # ---------------- branch 4: 3x3/1/1 maxpool -> 1x1 conv -----------------
    xm = jnp.where(valid_a, xa.astype(jnp.float32), -jnp.inf)
    pooled = xm[0:TH, 3:3 + Wp, :]
    for kh in range(3):
        for kw in range(3):
            if kh == 0 and kw == 0:
                continue
            pooled = jnp.maximum(pooled, xm[kh:kh + TH, 3 + kw:3 + kw + Wp, :])
    # columns >= W are lane-padding junk (all -inf); zero them before the MXU.
    col = jax.lax.broadcasted_iota(jnp.int32, (TH, Wp, 1), 1)
    pooled = jnp.where(col < W, pooled, 0.0)
    y4 = dense(pooled.reshape(M, Cin), w4_ref, b4_ref)           # (M, C4)

    # ---------------- fused channel concat + single store -------------------
    out = jnp.concatenate([y1, y2, y3, y4], axis=-1)             # (M, Ctot)
    out = out.reshape(TH, Wp, C1 + C3 + C5 + C4)
    o_ref[...] = out[:, :W, :].astype(o_ref.dtype)


# ----------------------------------------------------------------------------
# Wrapper: BN folding, padding, tiling, pallas_call plumbing
# ----------------------------------------------------------------------------
def _fold_bn(p, cdt):
    """Fold conv bias + BatchNorm (eval / running stats) into weight + bias."""
    scale = p["gamma"] / jnp.sqrt(p["var"] + _EPS)               # (Cout,)
    w = (p["w"] * scale).astype(cdt)                             # scale into weight
    bias = (p["beta"] + (p["b"] - p["mean"]) * scale).astype(jnp.float32)
    kh, kw, cin, cout = p["w"].shape
    return w.reshape(kh * kw * cin, cout), bias.reshape(1, cout)


def _auto_row_tile(H, W, Wp, Win, Cin, R3, R5, Ctot, budget=20 * 1024 * 1024):
    """Largest divisor of H whose per-step VMEM footprint fits `budget`
    (sized so the kernel also fits v7x's 64 MiB VMEM with headroom)."""
    def est(th):
        b = 2 * (H + 4) * Win * max(Cin, 8) * 4      # input block, double-buffered
        b += 2 * th * W * Ctot * 4                   # output block, double-buffered
        b += (th + 4) * Win * (Cin + R3 + R5) * 4    # window + reduced activations
        b += th * Wp * (9 * R3 + 25 * R5) * 2        # im2col slabs (bf16)
        b += 4 * th * Wp * Ctot                      # branch outputs
        return b
    best = None
    for th in range(1, H + 1):
        if H % th == 0 and est(th) <= budget:
            best = th
    return best if best is not None else 1


def inception_block(x_nchw, params, *, row_tile=None,
                    compute_dtype=jnp.bfloat16, interpret=False):
    """Forward of InceptionBlock. x_nchw: (N, Cin, H, W) -> (N, Ctot, H, W)."""
    N, Cin, H, W = x_nchw.shape
    x = jnp.transpose(x_nchw, (0, 2, 3, 1))                      # NHWC

    w1, b1 = _fold_bn(params["branch1"], compute_dtype)
    w2r, b2r = _fold_bn(params["branch2_red"], compute_dtype)
    w2, b2 = _fold_bn(params["branch2"], compute_dtype)
    w3r, b3r = _fold_bn(params["branch3_red"], compute_dtype)
    w3, b3 = _fold_bn(params["branch3"], compute_dtype)
    w4, b4 = _fold_bn(params["branch4"], compute_dtype)

    C1, C3, C5, C4 = w1.shape[1], w2.shape[1], w3.shape[1], w4.shape[1]
    R3, R5 = w2r.shape[1], w3r.shape[1]
    Ctot = C1 + C3 + C5 + C4

    # Padded width rounded so every in-kernel (rows, width, C) -> (rows*width, C)
    # reshape collapses an 8-aligned sublane dim; output cols start at pad 4.
    Wp = _round_up(max(W, 8), 8)
    Win = Wp + 8
    xp = jnp.pad(x, ((0, 0), (2, 2), (4, Win - 4 - W), (0, 0)))  # single pad pass

    if row_tile is None:
        row_tile = _auto_row_tile(H, W, Wp, Win, Cin, R3, R5, Ctot)
    assert H % row_tile == 0, f"row_tile {row_tile} must divide H {H}"
    TH = row_tile
    grid = (N, H // TH)

    def _const_index_map(ndim):
        def im(n, j):
            return (0,) * ndim
        return im

    small = (w1, b1, w2r, b2r, w2, b2, w3r, b3r, w3, b3, w4, b4)
    in_specs = [
        # whole padded activation of one batch element; constant over the row
        # axis -> fetched once per batch element by the pipeline.
        pl.BlockSpec((None, H + 4, Win, Cin), lambda n, j: (n, 0, 0, 0)),
    ] + [pl.BlockSpec(a.shape, _const_index_map(a.ndim)) for a in small]

    out_specs = pl.BlockSpec((None, TH, W, Ctot), lambda n, j: (n, j, 0, 0))

    kernel = functools.partial(
        _inception_kernel, H=H, W=W, Wp=Wp, Win=Win, TH=TH, Cin=Cin,
        C1=C1, R3=R3, C3=C3, R5=R5, C5=C5, C4=C4, cdt=compute_dtype)

    out = pl.pallas_call(
        kernel,
        out_shape=jax.ShapeDtypeStruct((N, H, W, Ctot), x.dtype),
        grid=grid,
        in_specs=in_specs,
        out_specs=out_specs,
        compiler_params=pltpu.CompilerParams(
            dimension_semantics=("parallel", "parallel"),   # v7x: 2 TCs
            vmem_limit_bytes=48 * 1024 * 1024),             # < 64 MiB (v7x physical)
        interpret=interpret,
    )(xp, *small)

    return jnp.transpose(out, (0, 3, 1, 2))                      # back to NCHW


# ----------------------------------------------------------------------------
# Deterministic parameter construction
# ----------------------------------------------------------------------------
def make_convblock_params(key, cin, cout, ksize):
    kw_, kb, kg, kbe, km, kv = jax.random.split(key, 6)
    return {
        "w": 0.1 * jax.random.normal(kw_, (ksize, ksize, cin, cout), jnp.float32),
        "b": 0.1 * jax.random.normal(kb, (cout,), jnp.float32),
        "gamma": 1.0 + 0.1 * jax.random.normal(kg, (cout,), jnp.float32),
        "beta": 0.1 * jax.random.normal(kbe, (cout,), jnp.float32),
        "mean": 0.1 * jax.random.normal(km, (cout,), jnp.float32),
        "var": jnp.abs(1.0 + 0.1 * jax.random.normal(kv, (cout,), jnp.float32)),
    }


def make_inception_params(key, in_channels, out_1x1, red_3x3, out_3x3,
                          red_5x5, out_5x5, out_1x1_pool):
    keys = jax.random.split(key, 6)
    return {
        "branch1": make_convblock_params(keys[0], in_channels, out_1x1, 1),
        "branch2_red": make_convblock_params(keys[1], in_channels, red_3x3, 1),
        "branch2": make_convblock_params(keys[2], red_3x3, out_3x3, 3),
        "branch3_red": make_convblock_params(keys[3], in_channels, red_5x5, 1),
        "branch3": make_convblock_params(keys[4], red_5x5, out_5x5, 5),
        "branch4": make_convblock_params(keys[5], in_channels, out_1x1_pool, 1),
    }


# ----------------------------------------------------------------------------
# Pure-JAX reference (f32) for a correctness cross-check
# ----------------------------------------------------------------------------
def _ref_convblock(x, p, ksize):
    scale = p["gamma"] / jnp.sqrt(p["var"] + _EPS)
    bias = p["beta"] + (p["b"] - p["mean"]) * scale
    pad = (ksize - 1) // 2
    y = jax.lax.conv_general_dilated(
        x, p["w"], window_strides=(1, 1),
        padding=((pad, pad), (pad, pad)),
        dimension_numbers=("NHWC", "HWIO", "NHWC"))
    return jnp.maximum(y * scale + bias, 0.0)


def _reference_inception(x_nchw, params):
    x = jnp.transpose(x_nchw, (0, 2, 3, 1))
    b1 = _ref_convblock(x, params["branch1"], 1)
    b2 = _ref_convblock(_ref_convblock(x, params["branch2_red"], 1),
                        params["branch2"], 3)
    b3 = _ref_convblock(_ref_convblock(x, params["branch3_red"], 1),
                        params["branch3"], 5)
    pooled = jax.lax.reduce_window(
        x, -jnp.inf, jax.lax.max, (1, 3, 3, 1), (1, 1, 1, 1),
        padding=((0, 0), (1, 1), (1, 1), (0, 0)))
    b4 = _ref_convblock(pooled, params["branch4"], 1)
    out = jnp.concatenate([b1, b2, b3, b4], axis=-1)
    return jnp.transpose(out, (0, 3, 1, 2))


# ----------------------------------------------------------------------------
if __name__ == "__main__":
    key = jax.random.PRNGKey(0)
    k_x, k_p = jax.random.split(key)

    # Small shapes: batch=2, in_channels=4, spatial=16x16
    N, Cin, H, W = 2, 4, 16, 16
    out_1x1, red_3x3, out_3x3, red_5x5, out_5x5, out_1x1_pool = 8, 4, 8, 4, 8, 8

    x = jax.random.normal(k_x, (N, Cin, H, W), jnp.float32)
    params = make_inception_params(k_p, Cin, out_1x1, red_3x3, out_3x3,
                                   red_5x5, out_5x5, out_1x1_pool)

    fwd = jax.jit(lambda xx, pp: inception_block(xx, pp, row_tile=8))
    out = jax.block_until_ready(fwd(x, params))   # grid = (batch=2, row tiles=2)

    expected_c = out_1x1 + out_3x3 + out_5x5 + out_1x1_pool
    assert out.shape == (N, expected_c, H, W), out.shape
    assert out.dtype == jnp.float32
    assert bool(jnp.all(out >= 0.0))              # ReLU on every branch
    assert bool(jnp.all(jnp.isfinite(out)))

    ref = _reference_inception(x, params)
    err = float(jnp.max(jnp.abs(out - ref)))
    assert err < 5e-2, f"max abs error vs f32 reference: {err}"

    print("KERNEL_OK")
</pallas_src>

<mosaic_0001>
module attributes {stable_mosaic.version = 11 : i64} {
  func.func @_inception_kernel(%arg0: i32, %arg1: i32, %arg2: memref<1x20x24x4xf32, #tpu.memory_space<vmem>>, %arg3: memref<4x8xbf16, #tpu.memory_space<vmem>>, %arg4: memref<1x8xf32, #tpu.memory_space<vmem>>, %arg5: memref<4x4xbf16, #tpu.memory_space<vmem>>, %arg6: memref<1x4xf32, #tpu.memory_space<vmem>>, %arg7: memref<36x8xbf16, #tpu.memory_space<vmem>>, %arg8: memref<1x8xf32, #tpu.memory_space<vmem>>, %arg9: memref<4x4xbf16, #tpu.memory_space<vmem>>, %arg10: memref<1x4xf32, #tpu.memory_space<vmem>>, %arg11: memref<100x8xbf16, #tpu.memory_space<vmem>>, %arg12: memref<1x8xf32, #tpu.memory_space<vmem>>, %arg13: memref<4x8xbf16, #tpu.memory_space<vmem>>, %arg14: memref<1x8xf32, #tpu.memory_space<vmem>>, %arg15: memref<1x8x16x32xf32, #tpu.memory_space<vmem>>) attributes {dimension_semantics = [#tpu.dimension_semantics<parallel>, #tpu.dimension_semantics<parallel>], iteration_bounds = array<i64: 2, 2>, scalar_prefetch = 0 : i64, scratch_operands = 0 : i64, tpu.core_type = #tpu.core_type<tc>, window_params = [{transform_indices = @transform_0, window_bounds = array<i64: 1, 20, 24, 4>}, {pipeline_mode = #tpu.pipeline_mode<synchronous>, transform_indices = @transform_1, window_bounds = array<i64: 4, 8>}, {pipeline_mode = #tpu.pipeline_mode<synchronous>, transform_indices = @transform_2, window_bounds = array<i64: 1, 8>}, {pipeline_mode = #tpu.pipeline_mode<synchronous>, transform_indices = @transform_3, window_bounds = array<i64: 4, 4>}, {pipeline_mode = #tpu.pipeline_mode<synchronous>, transform_indices = @transform_4, window_bounds = array<i64: 1, 4>}, {pipeline_mode = #tpu.pipeline_mode<synchronous>, transform_indices = @transform_5, window_bounds = array<i64: 36, 8>}, {pipeline_mode = #tpu.pipeline_mode<synchronous>, transform_indices = @transform_6, window_bounds = array<i64: 1, 8>}, {pipeline_mode = #tpu.pipeline_mode<synchronous>, transform_indices = @transform_7, window_bounds = array<i64: 4, 4>}, {pipeline_mode = #tpu.pipeline_mode<synchronous>, transform_indices = @transform_8, window_bounds = array<i64: 1, 4>}, {pipeline_mode = #tpu.pipeline_mode<synchronous>, transform_indices = @transform_9, window_bounds = array<i64: 100, 8>}, {pipeline_mode = #tpu.pipeline_mode<synchronous>, transform_indices = @transform_10, window_bounds = array<i64: 1, 8>}, {pipeline_mode = #tpu.pipeline_mode<synchronous>, transform_indices = @transform_11, window_bounds = array<i64: 4, 8>}, {pipeline_mode = #tpu.pipeline_mode<synchronous>, transform_indices = @transform_12, window_bounds = array<i64: 1, 8>}, {transform_indices = @transform_13, window_bounds = array<i64: 1, 8, 16, 32>}]} {
    %c8_i32 = arith.constant 8 : i32
    %0 = arith.muli %arg1, %c8_i32 : i32
    %c0 = arith.constant 0 : index
    %1 = arith.index_cast %0 : i32 to index
    %c0_0 = arith.constant 0 : index
    %c0_1 = arith.constant 0 : index
    %2 = vector.load %arg2[%c0, %1, %c0_0, %c0_1] : memref<1x20x24x4xf32, #tpu.memory_space<vmem>>, vector<1x12x24x4xf32>
    %3 = vector.shape_cast %2 : vector<1x12x24x4xf32> to vector<12x24x4xf32>
    %4 = vector.extract_strided_slice %3 {offsets = [1, 0, 0], sizes = [10, 24, 4], strides = [1, 1, 1]} : vector<12x24x4xf32> to vector<10x24x4xf32>
    %5 = tpu.iota {dimensions = array<i32: 0>} : vector<10x24x1xi32>
    %c-1_i32 = arith.constant -1 : i32
    %6 = arith.addi %0, %c-1_i32 : i32
    %7 = vector.broadcast %6 : i32 to vector<10x24x1xi32>
    %8 = arith.addi %5, %7 : vector<10x24x1xi32>
    %9 = tpu.iota {dimensions = array<i32: 1>} : vector<10x24x1xi32>
    %c4_i32 = arith.constant 4 : i32
    %10 = vector.broadcast %c4_i32 : i32 to vector<10x24x1xi32>
    %11 = arith.subi %9, %10 : vector<10x24x1xi32>
    %c0_i32 = arith.constant 0 : i32
    %12 = vector.broadcast %c0_i32 : i32 to vector<10x24x1xi32>
    %13 = arith.cmpi sge, %8, %12 : vector<10x24x1xi32>
    %c16_i32 = arith.constant 16 : i32
    %14 = vector.broadcast %c16_i32 : i32 to vector<10x24x1xi32>
    %15 = arith.cmpi slt, %8, %14 : vector<10x24x1xi32>
    %16 = arith.andi %13, %15 : vector<10x24x1xi1>
    %c0_i32_2 = arith.constant 0 : i32
    %17 = vector.broadcast %c0_i32_2 : i32 to vector<10x24x1xi32>
    %18 = arith.cmpi sge, %11, %17 : vector<10x24x1xi32>
    %19 = arith.andi %16, %18 : vector<10x24x1xi1>
    %c16_i32_3 = arith.constant 16 : i32
    %20 = vector.broadcast %c16_i32_3 : i32 to vector<10x24x1xi32>
    %21 = arith.cmpi slt, %11, %20 : vector<10x24x1xi32>
    %22 = arith.andi %19, %21 : vector<10x24x1xi1>
    %23 = tpu.iota {dimensions = array<i32: 0>} : vector<12x24x1xi32>
    %c-2_i32 = arith.constant -2 : i32
    %24 = arith.addi %0, %c-2_i32 : i32
    %25 = vector.broadcast %24 : i32 to vector<12x24x1xi32>
    %26 = arith.addi %23, %25 : vector<12x24x1xi32>
    %27 = tpu.iota {dimensions = array<i32: 1>} : vector<12x24x1xi32>
    %c4_i32_4 = arith.constant 4 : i32
    %28 = vector.broadcast %c4_i32_4 : i32 to vector<12x24x1xi32>
    %29 = arith.subi %27, %28 : vector<12x24x1xi32>
    %c0_i32_5 = arith.constant 0 : i32
    %30 = vector.broadcast %c0_i32_5 : i32 to vector<12x24x1xi32>
    %31 = arith.cmpi sge, %26, %30 : vector<12x24x1xi32>
    %c16_i32_6 = arith.constant 16 : i32
    %32 = vector.broadcast %c16_i32_6 : i32 to vector<12x24x1xi32>
    %33 = arith.cmpi slt, %26, %32 : vector<12x24x1xi32>
    %34 = arith.andi %31, %33 : vector<12x24x1xi1>
    %c0_i32_7 = arith.constant 0 : i32
    %35 = vector.broadcast %c0_i32_7 : i32 to vector<12x24x1xi32>
    %36 = arith.cmpi sge, %29, %35 : vector<12x24x1xi32>
    %37 = arith.andi %34, %36 : vector<12x24x1xi1>
    %c16_i32_8 = arith.constant 16 : i32
    %38 = vector.broadcast %c16_i32_8 : i32 to vector<12x24x1xi32>
    %39 = arith.cmpi slt, %29, %38 : vector<12x24x1xi32>
    %40 = arith.andi %37, %39 : vector<12x24x1xi1>
    %41 = vector.extract_strided_slice %3 {offsets = [2, 4, 0], sizes = [8, 16, 4], strides = [1, 1, 1]} : vector<12x24x4xf32> to vector<8x16x4xf32>
    %42 = vector.shape_cast %41 : vector<8x16x4xf32> to vector<128x4xf32>
    %43 = arith.truncf %42 : vector<128x4xf32> to vector<128x4xbf16>
    %c0_9 = arith.constant 0 : index
    %c0_10 = arith.constant 0 : index
    %44 = vector.load %arg3[%c0_9, %c0_10] : memref<4x8xbf16, #tpu.memory_space<vmem>>, vector<4x8xbf16>
    %cst = arith.constant dense<0.000000e+00> : vector<128x8xf32>
    %45 = tpu.matmul %43, %44, %cst {dimension_numbers = #tpu.dot_dimension_numbers<[1], [0], [0], [1], [0, 0, 1, 1], [], []>} : vector<128x4xbf16>, vector<4x8xbf16>, vector<128x8xf32> -> vector<128x8xf32>
    %c0_11 = arith.constant 0 : index
    %c0_12 = arith.constant 0 : index
    %46 = vector.load %arg4[%c0_11, %c0_12] : memref<1x8xf32, #tpu.memory_space<vmem>>, vector<1x8xf32>
    %47 = vector.broadcast %46 : vector<1x8xf32> to vector<128x8xf32>
    %48 = arith.addf %45, %47 : vector<128x8xf32>
    %cst_13 = arith.constant 0.000000e+00 : f32
    %49 = vector.broadcast %cst_13 : f32 to vector<128x8xf32>
    %50 = arith.maximumf %48, %49 : vector<128x8xf32>
    %51 = vector.shape_cast %4 : vector<10x24x4xf32> to vector<240x4xf32>
    %52 = arith.truncf %51 : vector<240x4xf32> to vector<240x4xbf16>
    %c0_14 = arith.constant 0 : index
    %c0_15 = arith.constant 0 : index
    %53 = vector.load %arg5[%c0_14, %c0_15] : memref<4x4xbf16, #tpu.memory_space<vmem>>, vector<4x4xbf16>
    %cst_16 = arith.constant dense<0.000000e+00> : vector<240x4xf32>
    %54 = tpu.matmul %52, %53, %cst_16 {dimension_numbers = #tpu.dot_dimension_numbers<[1], [0], [0], [1], [0, 0, 1, 1], [], []>} : vector<240x4xbf16>, vector<4x4xbf16>, vector<240x4xf32> -> vector<240x4xf32>
    %c0_17 = arith.constant 0 : index
    %c0_18 = arith.constant 0 : index
    %55 = vector.load %arg6[%c0_17, %c0_18] : memref<1x4xf32, #tpu.memory_space<vmem>>, vector<1x4xf32>
    %56 = vector.broadcast %55 : vector<1x4xf32> to vector<240x4xf32>
    %57 = arith.addf %54, %56 : vector<240x4xf32>
    %cst_19 = arith.constant 0.000000e+00 : f32
    %58 = vector.broadcast %cst_19 : f32 to vector<240x4xf32>
    %59 = arith.maximumf %57, %58 : vector<240x4xf32>
    %60 = vector.shape_cast %59 : vector<240x4xf32> to vector<10x24x4xf32>
    %cst_20 = arith.constant 0.000000e+00 : f32
    %61 = vector.shape_cast %22 : vector<10x24x1xi1> to vector<10x24x1xi1>
    %62 = vector.broadcast %61 : vector<10x24x1xi1> to vector<10x24x4xi1>
    %63 = vector.broadcast %cst_20 : f32 to vector<10x24x4xf32>
    %64 = arith.select %62, %60, %63 : vector<10x24x4xi1>, vector<10x24x4xf32>
    %65 = arith.truncf %64 : vector<10x24x4xf32> to vector<10x24x4xbf16>
    %66 = vector.extract_strided_slice %65 {offsets = [0, 3, 0], sizes = [8, 16, 4], strides = [1, 1, 1]} : vector<10x24x4xbf16> to vector<8x16x4xbf16>
    %67 = vector.extract_strided_slice %65 {offsets = [0, 4, 0], sizes = [8, 16, 4], strides = [1, 1, 1]} : vector<10x24x4xbf16> to vector<8x16x4xbf16>
    %68 = vector.extract_strided_slice %65 {offsets = [0, 5, 0], sizes = [8, 16, 4], strides = [1, 1, 1]} : vector<10x24x4xbf16> to vector<8x16x4xbf16>
    %69 = vector.extract_strided_slice %65 {offsets = [1, 3, 0], sizes = [8, 16, 4], strides = [1, 1, 1]} : vector<10x24x4xbf16> to vector<8x16x4xbf16>
    %70 = vector.extract_strided_slice %65 {offsets = [1, 4, 0], sizes = [8, 16, 4], strides = [1, 1, 1]} : vector<10x24x4xbf16> to vector<8x16x4xbf16>
    %71 = vector.extract_strided_slice %65 {offsets = [1, 5, 0], sizes = [8, 16, 4], strides = [1, 1, 1]} : vector<10x24x4xbf16> to vector<8x16x4xbf16>
    %72 = vector.extract_strided_slice %65 {offsets = [2, 3, 0], sizes = [8, 16, 4], strides = [1, 1, 1]} : vector<10x24x4xbf16> to vector<8x16x4xbf16>
    %73 = vector.extract_strided_slice %65 {offsets = [2, 4, 0], sizes = [8, 16, 4], strides = [1, 1, 1]} : vector<10x24x4xbf16> to vector<8x16x4xbf16>
    %74 = vector.extract_strided_slice %65 {offsets = [2, 5, 0], sizes = [8, 16, 4], strides = [1, 1, 1]} : vector<10x24x4xbf16> to vector<8x16x4xbf16>
    %75 = tpu.concatenate %66, %67, %68, %69, %70, %71, %72, %73, %74 in 2 : vector<8x16x4xbf16>, vector<8x16x4xbf16>, vector<8x16x4xbf16>, vector<8x16x4xbf16>, vector<8x16x4xbf16>, vector<8x16x4xbf16>, vector<8x16x4xbf16>, vector<8x16x4xbf16>, vector<8x16x4xbf16> -> vector<8x16x36xbf16>
    %76 = vector.shape_cast %75 : vector<8x16x36xbf16> to vector<128x36xbf16>
    %c0_21 = arith.constant 0 : index
    %c0_22 = arith.constant 0 : index
    %77 = vector.load %arg7[%c0_21, %c0_22] : memref<36x8xbf16, #tpu.memory_space<vmem>>, vector<36x8xbf16>
    %cst_23 = arith.constant dense<0.000000e+00> : vector<128x8xf32>
    %78 = tpu.matmul %76, %77, %cst_23 {dimension_numbers = #tpu.dot_dimension_numbers<[1], [0], [0], [1], [0, 0, 1, 1], [], []>} : vector<128x36xbf16>, vector<36x8xbf16>, vector<128x8xf32> -> vector<128x8xf32>
    %c0_24 = arith.constant 0 : index
    %c0_25 = arith.constant 0 : index
    %79 = vector.load %arg8[%c0_24, %c0_25] : memref<1x8xf32, #tpu.memory_space<vmem>>, vector<1x8xf32>
    %80 = vector.broadcast %79 : vector<1x8xf32> to vector<128x8xf32>
    %81 = arith.addf %78, %80 : vector<128x8xf32>
    %cst_26 = arith.constant 0.000000e+00 : f32
    %82 = vector.broadcast %cst_26 : f32 to vector<128x8xf32>
    %83 = arith.maximumf %81, %82 : vector<128x8xf32>
    %84 = vector.shape_cast %3 : vector<12x24x4xf32> to vector<288x4xf32>
    %85 = arith.truncf %84 : vector<288x4xf32> to vector<288x4xbf16>
    %c0_27 = arith.constant 0 : index
    %c0_28 = arith.constant 0 : index
    %86 = vector.load %arg9[%c0_27, %c0_28] : memref<4x4xbf16, #tpu.memory_space<vmem>>, vector<4x4xbf16>
    %cst_29 = arith.constant dense<0.000000e+00> : vector<288x4xf32>
    %87 = tpu.matmul %85, %86, %cst_29 {dimension_numbers = #tpu.dot_dimension_numbers<[1], [0], [0], [1], [0, 0, 1, 1], [], []>} : vector<288x4xbf16>, vector<4x4xbf16>, vector<288x4xf32> -> vector<288x4xf32>
    %c0_30 = arith.constant 0 : index
    %c0_31 = arith.constant 0 : index
    %88 = vector.load %arg10[%c0_30, %c0_31] : memref<1x4xf32, #tpu.memory_space<vmem>>, vector<1x4xf32>
    %89 = vector.broadcast %88 : vector<1x4xf32> to vector<288x4xf32>
    %90 = arith.addf %87, %89 : vector<288x4xf32>
    %cst_32 = arith.constant 0.000000e+00 : f32
    %91 = vector.broadcast %cst_32 : f32 to vector<288x4xf32>
    %92 = arith.maximumf %90, %91 : vector<288x4xf32>
    %93 = vector.shape_cast %92 : vector<288x4xf32> to vector<12x24x4xf32>
    %cst_33 = arith.constant 0.000000e+00 : f32
    %94 = vector.shape_cast %40 : vector<12x24x1xi1> to vector<12x24x1xi1>
    %95 = vector.broadcast %94 : vector<12x24x1xi1> to vector<12x24x4xi1>
    %96 = vector.broadcast %cst_33 : f32 to vector<12x24x4xf32>
    %97 = arith.select %95, %93, %96 : vector<12x24x4xi1>, vector<12x24x4xf32>
    %98 = arith.truncf %97 : vector<12x24x4xf32> to vector<12x24x4xbf16>
    %99 = vector.extract_strided_slice %98 {offsets = [0, 2, 0], sizes = [8, 16, 4], strides = [1, 1, 1]} : vector<12x24x4xbf16> to vector<8x16x4xbf16>
    %100 = vector.extract_strided_slice %98 {offsets = [0, 3, 0], sizes = [8, 16, 4], strides = [1, 1, 1]} : vector<12x24x4xbf16> to vector<8x16x4xbf16>
    %101 = vector.extract_strided_slice %98 {offsets = [0, 4, 0], sizes = [8, 16, 4], strides = [1, 1, 1]} : vector<12x24x4xbf16> to vector<8x16x4xbf16>
    %102 = vector.extract_strided_slice %98 {offsets = [0, 5, 0], sizes = [8, 16, 4], strides = [1, 1, 1]} : vector<12x24x4xbf16> to vector<8x16x4xbf16>
    %103 = vector.extract_strided_slice %98 {offsets = [0, 6, 0], sizes = [8, 16, 4], strides = [1, 1, 1]} : vector<12x24x4xbf16> to vector<8x16x4xbf16>
    %104 = vector.extract_strided_slice %98 {offsets = [1, 2, 0], sizes = [8, 16, 4], strides = [1, 1, 1]} : vector<12x24x4xbf16> to vector<8x16x4xbf16>
    %105 = vector.extract_strided_slice %98 {offsets = [1, 3, 0], sizes = [8, 16, 4], strides = [1, 1, 1]} : vector<12x24x4xbf16> to vector<8x16x4xbf16>
    %106 = vector.extract_strided_slice %98 {offsets = [1, 4, 0], sizes = [8, 16, 4], strides = [1, 1, 1]} : vector<12x24x4xbf16> to vector<8x16x4xbf16>
    %107 = vector.extract_strided_slice %98 {offsets = [1, 5, 0], sizes = [8, 16, 4], strides = [1, 1, 1]} : vector<12x24x4xbf16> to vector<8x16x4xbf16>
    %108 = vector.extract_strided_slice %98 {offsets = [1, 6, 0], sizes = [8, 16, 4], strides = [1, 1, 1]} : vector<12x24x4xbf16> to vector<8x16x4xbf16>
    %109 = vector.extract_strided_slice %98 {offsets = [2, 2, 0], sizes = [8, 16, 4], strides = [1, 1, 1]} : vector<12x24x4xbf16> to vector<8x16x4xbf16>
    %110 = vector.extract_strided_slice %98 {offsets = [2, 3, 0], sizes = [8, 16, 4], strides = [1, 1, 1]} : vector<12x24x4xbf16> to vector<8x16x4xbf16>
    %111 = vector.extract_strided_slice %98 {offsets = [2, 4, 0], sizes = [8, 16, 4], strides = [1, 1, 1]} : vector<12x24x4xbf16> to vector<8x16x4xbf16>
    %112 = vector.extract_strided_slice %98 {offsets = [2, 5, 0], sizes = [8, 16, 4], strides = [1, 1, 1]} : vector<12x24x4xbf16> to vector<8x16x4xbf16>
    %113 = vector.extract_strided_slice %98 {offsets = [2, 6, 0], sizes = [8, 16, 4], strides = [1, 1, 1]} : vector<12x24x4xbf16> to vector<8x16x4xbf16>
    %114 = vector.extract_strided_slice %98 {offsets = [3, 2, 0], sizes = [8, 16, 4], strides = [1, 1, 1]} : vector<12x24x4xbf16> to vector<8x16x4xbf16>
    %115 = vector.extract_strided_slice %98 {offsets = [3, 3, 0], sizes = [8, 16, 4], strides = [1, 1, 1]} : vector<12x24x4xbf16> to vector<8x16x4xbf16>
    %116 = vector.extract_strided_slice %98 {offsets = [3, 4, 0], sizes = [8, 16, 4], strides = [1, 1, 1]} : vector<12x24x4xbf16> to vector<8x16x4xbf16>
    %117 = vector.extract_strided_slice %98 {offsets = [3, 5, 0], sizes = [8, 16, 4], strides = [1, 1, 1]} : vector<12x24x4xbf16> to vector<8x16x4xbf16>
    %118 = vector.extract_strided_slice %98 {offsets = [3, 6, 0], sizes = [8, 16, 4], strides = [1, 1, 1]} : vector<12x24x4xbf16> to vector<8x16x4xbf16>
    %119 = vector.extract_strided_slice %98 {offsets = [4, 2, 0], sizes = [8, 16, 4], strides = [1, 1, 1]} : vector<12x24x4xbf16> to vector<8x16x4xbf16>
    %120 = vector.extract_strided_slice %98 {offsets = [4, 3, 0], sizes = [8, 16, 4], strides = [1, 1, 1]} : vector<12x24x4xbf16> to vector<8x16x4xbf16>
    %121 = vector.extract_strided_slice %98 {offsets = [4, 4, 0], sizes = [8, 16, 4], strides = [1, 1, 1]} : vector<12x24x4xbf16> to vector<8x16x4xbf16>
    %122 = vector.extract_strided_slice %98 {offsets = [4, 5, 0], sizes = [8, 16, 4], strides = [1, 1, 1]} : vector<12x24x4xbf16> to vector<8x16x4xbf16>
    %123 = vector.extract_strided_slice %98 {offsets = [4, 6, 0], sizes = [8, 16, 4], strides = [1, 1, 1]} : vector<12x24x4xbf16> to vector<8x16x4xbf16>
    %124 = tpu.concatenate %99, %100, %101, %102, %103, %104, %105, %106, %107, %108, %109, %110, %111, %112, %113, %114 in 2 : vector<8x16x4xbf16>, vector<8x16x4xbf16>, vector<8x16x4xbf16>, vector<8x16x4xbf16>, vector<8x16x4xbf16>, vector<8x16x4xbf16>, vector<8x16x4xbf16>, vector<8x16x4xbf16>, vector<8x16x4xbf16>, vector<8x16x4xbf16>, vector<8x16x4xbf16>, vector<8x16x4xbf16>, vector<8x16x4xbf16>, vector<8x16x4xbf16>, vector<8x16x4xbf16>, vector<8x16x4xbf16> -> vector<8x16x64xbf16>
    %125 = tpu.concatenate %115, %116, %117, %118, %119, %120, %121, %122, %123 in 2 : vector<8x16x4xbf16>, vector<8x16x4xbf16>, vector<8x16x4xbf16>, vector<8x16x4xbf16>, vector<8x16x4xbf16>, vector<8x16x4xbf16>, vector<8x16x4xbf16>, vector<8x16x4xbf16>, vector<8x16x4xbf16> -> vector<8x16x36xbf16>
    %126 = tpu.concatenate %124, %125 in 2 : vector<8x16x64xbf16>, vector<8x16x36xbf16> -> vector<8x16x100xbf16>
    %127 = vector.shape_cast %126 : vector<8x16x100xbf16> to vector<128x100xbf16>
    %c0_34 = arith.constant 0 : index
    %c0_35 = arith.constant 0 : index
    %128 = vector.load %arg11[%c0_34, %c0_35] : memref<100x8xbf16, #tpu.memory_space<vmem>>, vector<100x8xbf16>
    %cst_36 = arith.constant dense<0.000000e+00> : vector<128x8xf32>
    %129 = tpu.matmul %127, %128, %cst_36 {dimension_numbers = #tpu.dot_dimension_numbers<[1], [0], [0], [1], [0, 0, 1, 1], [], []>} : vector<128x100xbf16>, vector<100x8xbf16>, vector<128x8xf32> -> vector<128x8xf32>
    %c0_37 = arith.constant 0 : index
    %c0_38 = arith.constant 0 : index
    %130 = vector.load %arg12[%c0_37, %c0_38] : memref<1x8xf32, #tpu.memory_space<vmem>>, vector<1x8xf32>
    %131 = vector.broadcast %130 : vector<1x8xf32> to vector<128x8xf32>
    %132 = arith.addf %129, %131 : vector<128x8xf32>
    %cst_39 = arith.constant 0.000000e+00 : f32
    %133 = vector.broadcast %cst_39 : f32 to vector<128x8xf32>
    %134 = arith.maximumf %132, %133 : vector<128x8xf32>
    %cst_40 = arith.constant 0xFF800000 : f32
    %135 = vector.shape_cast %22 : vector<10x24x1xi1> to vector<10x24x1xi1>
    %136 = vector.broadcast %135 : vector<10x24x1xi1> to vector<10x24x4xi1>
    %137 = vector.broadcast %cst_40 : f32 to vector<10x24x4xf32>
    %138 = arith.select %136, %4, %137 : vector<10x24x4xi1>, vector<10x24x4xf32>
    %139 = vector.extract_strided_slice %138 {offsets = [0, 3, 0], sizes = [8, 16, 4], strides = [1, 1, 1]} : vector<10x24x4xf32> to vector<8x16x4xf32>
    %140 = vector.extract_strided_slice %138 {offsets = [0, 4, 0], sizes = [8, 16, 4], strides = [1, 1, 1]} : vector<10x24x4xf32> to vector<8x16x4xf32>
    %141 = arith.maximumf %139, %140 : vector<8x16x4xf32>
    %142 = vector.extract_strided_slice %138 {offsets = [0, 5, 0], sizes = [8, 16, 4], strides = [1, 1, 1]} : vector<10x24x4xf32> to vector<8x16x4xf32>
    %143 = arith.maximumf %141, %142 : vector<8x16x4xf32>
    %144 = vector.extract_strided_slice %138 {offsets = [1, 3, 0], sizes = [8, 16, 4], strides = [1, 1, 1]} : vector<10x24x4xf32> to vector<8x16x4xf32>
    %145 = arith.maximumf %143, %144 : vector<8x16x4xf32>
    %146 = vector.extract_strided_slice %138 {offsets = [1, 4, 0], sizes = [8, 16, 4], strides = [1, 1, 1]} : vector<10x24x4xf32> to vector<8x16x4xf32>
    %147 = arith.maximumf %145, %146 : vector<8x16x4xf32>
    %148 = vector.extract_strided_slice %138 {offsets = [1, 5, 0], sizes = [8, 16, 4], strides = [1, 1, 1]} : vector<10x24x4xf32> to vector<8x16x4xf32>
    %149 = arith.maximumf %147, %148 : vector<8x16x4xf32>
    %150 = vector.extract_strided_slice %138 {offsets = [2, 3, 0], sizes = [8, 16, 4], strides = [1, 1, 1]} : vector<10x24x4xf32> to vector<8x16x4xf32>
    %151 = arith.maximumf %149, %150 : vector<8x16x4xf32>
    %152 = vector.extract_strided_slice %138 {offsets = [2, 4, 0], sizes = [8, 16, 4], strides = [1, 1, 1]} : vector<10x24x4xf32> to vector<8x16x4xf32>
    %153 = arith.maximumf %151, %152 : vector<8x16x4xf32>
    %154 = vector.extract_strided_slice %138 {offsets = [2, 5, 0], sizes = [8, 16, 4], strides = [1, 1, 1]} : vector<10x24x4xf32> to vector<8x16x4xf32>
    %155 = arith.maximumf %153, %154 : vector<8x16x4xf32>
    %156 = tpu.iota {dimensions = array<i32: 1>} : vector<8x16x1xi32>
    %c16_i32_41 = arith.constant 16 : i32
    %157 = vector.broadcast %c16_i32_41 : i32 to vector<8x16x1xi32>
    %158 = arith.cmpi slt, %156, %157 : vector<8x16x1xi32>
    %cst_42 = arith.constant 0.000000e+00 : f32
    %159 = vector.shape_cast %158 : vector<8x16x1xi1> to vector<8x16x1xi1>
    %160 = vector.broadcast %159 : vector<8x16x1xi1> to vector<8x16x4xi1>
    %161 = vector.broadcast %cst_42 : f32 to vector<8x16x4xf32>
    %162 = arith.select %160, %155, %161 : vector<8x16x4xi1>, vector<8x16x4xf32>
    %163 = vector.shape_cast %162 : vector<8x16x4xf32> to vector<128x4xf32>
    %164 = arith.truncf %163 : vector<128x4xf32> to vector<128x4xbf16>
    %c0_43 = arith.constant 0 : index
    %c0_44 = arith.constant 0 : index
    %165 = vector.load %arg13[%c0_43, %c0_44] : memref<4x8xbf16, #tpu.memory_space<vmem>>, vector<4x8xbf16>
    %cst_45 = arith.constant dense<0.000000e+00> : vector<128x8xf32>
    %166 = tpu.matmul %164, %165, %cst_45 {dimension_numbers = #tpu.dot_dimension_numbers<[1], [0], [0], [1], [0, 0, 1, 1], [], []>} : vector<128x4xbf16>, vector<4x8xbf16>, vector<128x8xf32> -> vector<128x8xf32>
    %c0_46 = arith.constant 0 : index
    %c0_47 = arith.constant 0 : index
    %167 = vector.load %arg14[%c0_46, %c0_47] : memref<1x8xf32, #tpu.memory_space<vmem>>, vector<1x8xf32>
    %168 = vector.broadcast %167 : vector<1x8xf32> to vector<128x8xf32>
    %169 = arith.addf %166, %168 : vector<128x8xf32>
    %cst_48 = arith.constant 0.000000e+00 : f32
    %170 = vector.broadcast %cst_48 : f32 to vector<128x8xf32>
    %171 = arith.maximumf %169, %170 : vector<128x8xf32>
    %172 = tpu.concatenate %50, %83, %134, %171 in 1 : vector<128x8xf32>, vector<128x8xf32>, vector<128x8xf32>, vector<128x8xf32> -> vector<128x32xf32>
    %173 = vector.shape_cast %172 : vector<128x32xf32> to vector<8x16x32xf32>
    %c0_49 = arith.constant 0 : index
    %c0_50 = arith.constant 0 : index
    %c0_51 = arith.constant 0 : index
    %c0_52 = arith.constant 0 : index
    %174 = vector.load %arg15[%c0_49, %c0_50, %c0_51, %c0_52] : memref<1x8x16x32xf32, #tpu.memory_space<vmem>>, vector<1x8x16x32xf32>
    %175 = vector.shape_cast %174 : vector<1x8x16x32xf32> to vector<8x16x32xf32>
    %176 = vector.shape_cast %173 : vector<8x16x32xf32> to vector<1x8x16x32xf32>
    tpu.vector_store %arg15[%c0_49, %c0_50, %c0_51, %c0_52], %176 {strides = array<i32>} : memref<1x8x16x32xf32, #tpu.memory_space<vmem>>, vector<1x8x16x32xf32>,
    return
  }
  func.func @transform_0(%arg0: i32, %arg1: i32) -> (i32, i32, i32, i32) {
    %c0_i32 = arith.constant 0 : i32
    %c0_i32_0 = arith.constant 0 : i32
    %c0_i32_1 = arith.constant 0 : i32
    %c0_i32_2 = arith.constant 0 : i32
    return %arg0, %c0_i32, %c0_i32_0, %c0_i32_1 : i32, i32, i32, i32
  }
  func.func @transform_1(%arg0: i32, %arg1: i32) -> (i32, i32) {
    %c0_i32 = arith.constant 0 : i32
    %c0_i32_0 = arith.constant 0 : i32
    %c0_i32_1 = arith.constant 0 : i32
    return %c0_i32, %c0_i32_0 : i32, i32
  }
  func.func @transform_2(%arg0: i32, %arg1: i32) -> (i32, i32) {
    %c0_i32 = arith.constant 0 : i32
    %c0_i32_0 = arith.constant 0 : i32
    %c0_i32_1 = arith.constant 0 : i32
    return %c0_i32, %c0_i32_0 : i32, i32
  }
  func.func @transform_3(%arg0: i32, %arg1: i32) -> (i32, i32) {
    %c0_i32 = arith.constant 0 : i32
    %c0_i32_0 = arith.constant 0 : i32
    %c0_i32_1 = arith.constant 0 : i32
    return %c0_i32, %c0_i32_0 : i32, i32
  }
  func.func @transform_4(%arg0: i32, %arg1: i32) -> (i32, i32) {
    %c0_i32 = arith.constant 0 : i32
    %c0_i32_0 = arith.constant 0 : i32
    %c0_i32_1 = arith.constant 0 : i32
    return %c0_i32, %c0_i32_0 : i32, i32
  }
  func.func @transform_5(%arg0: i32, %arg1: i32) -> (i32, i32) {
    %c0_i32 = arith.constant 0 : i32
    %c0_i32_0 = arith.constant 0 : i32
    %c0_i32_1 = arith.constant 0 : i32
    return %c0_i32, %c0_i32_0 : i32, i32
  }
  func.func @transform_6(%arg0: i32, %arg1: i32) -> (i32, i32) {
    %c0_i32 = arith.constant 0 : i32
    %c0_i32_0 = arith.constant 0 : i32
    %c0_i32_1 = arith.constant 0 : i32
    return %c0_i32, %c0_i32_0 : i32, i32
  }
  func.func @transform_7(%arg0: i32, %arg1: i32) -> (i32, i32) {
    %c0_i32 = arith.constant 0 : i32
    %c0_i32_0 = arith.constant 0 : i32
    %c0_i32_1 = arith.constant 0 : i32
    return %c0_i32, %c0_i32_0 : i32, i32
  }
  func.func @transform_8(%arg0: i32, %arg1: i32) -> (i32, i32) {
    %c0_i32 = arith.constant 0 : i32
    %c0_i32_0 = arith.constant 0 : i32
    %c0_i32_1 = arith.constant 0 : i32
    return %c0_i32, %c0_i32_0 : i32, i32
  }
  func.func @transform_9(%arg0: i32, %arg1: i32) -> (i32, i32) {
    %c0_i32 = arith.constant 0 : i32
    %c0_i32_0 = arith.constant 0 : i32
    %c0_i32_1 = arith.constant 0 : i32
    return %c0_i32, %c0_i32_0 : i32, i32
  }
  func.func @transform_10(%arg0: i32, %arg1: i32) -> (i32, i32) {
    %c0_i32 = arith.constant 0 : i32
    %c0_i32_0 = arith.constant 0 : i32
    %c0_i32_1 = arith.constant 0 : i32
    return %c0_i32, %c0_i32_0 : i32, i32
  }
  func.func @transform_11(%arg0: i32, %arg1: i32) -> (i32, i32) {
    %c0_i32 = arith.constant 0 : i32
    %c0_i32_0 = arith.constant 0 : i32
    %c0_i32_1 = arith.constant 0 : i32
    return %c0_i32, %c0_i32_0 : i32, i32
  }
  func.func @transform_12(%arg0: i32, %arg1: i32) -> (i32, i32) {
    %c0_i32 = arith.constant 0 : i32
    %c0_i32_0 = arith.constant 0 : i32
    %c0_i32_1 = arith.constant 0 : i32
    return %c0_i32, %c0_i32_0 : i32, i32
  }
  func.func @transform_13(%arg0: i32, %arg1: i32) -> (i32, i32, i32, i32) {
    %c0_i32 = arith.constant 0 : i32
    %c0_i32_0 = arith.constant 0 : i32
    %c0_i32_1 = arith.constant 0 : i32
    return %arg0, %arg1, %c0_i32, %c0_i32_0 : i32, i32, i32, i32
  }
}

</mosaic_0001>

<bundles_post_ra>
// kernel: _lambda_.1
= control target key start
LH: loop header
LB: loop body
LE: loop exit
PB: predicated region body
PF: predicated region fallthrough
CT: control target
= control target key end

     0   :  { %s11532_s0 = inlined_call_operand.vmem [shape: f32[2,20,24,4], index: 0, kind: input, shape index: {}]   ;;  %s11533_s1 = inlined_call_operand.vmem [shape: bf16[4,8], index: 1, kind: input, shape index: {}]   ;;  %s11534_s2 = inlined_call_operand.vmem [shape: f32[1,8], index: 2, kind: input, shape index: {}]   ;;  %s11535_s3 = inlined_call_operand.vmem [shape: bf16[4,4], index: 3, kind: input, shape index: {}]   ;;  %s11536_s4 = inlined_call_operand.vmem [shape: f32[1,4], index: 4, kind: input, shape index: {}]   ;;  %s11537_s5 = inlined_call_operand.vmem [shape: bf16[36,8], index: 5, kind: input, shape index: {}]   ;;  %s11538_s6 = inlined_call_operand.vmem [shape: f32[1,8], index: 6, kind: input, shape index: {}]   ;;  %s11539_s7 = inlined_call_operand.vmem [shape: bf16[4,4], index: 7, kind: input, shape index: {}]   ;;  %s11540_s8 = inlined_call_operand.vmem [shape: f32[1,4], index: 8, kind: input, shape index: {}]   ;;  %s11541_s9 = inlined_call_operand.vmem [shape: bf16[100,8], index: 9, kind: input, shape index: {}]   ;;  %s11542_s10 = inlined_call_operand.vmem [shape: f32[1,8], index: 10, kind: input, shape index: {}]   ;;  %s11543_s11 = inlined_call_operand.vmem [shape: bf16[4,8], index: 11, kind: input, shape index: {}]   ;;  %s11544_s12 = inlined_call_operand.vmem [shape: f32[1,8], index: 12, kind: input, shape index: {}]   ;;  %s11545_s13 = inlined_call_operand.hbm [shape: f32[2,16,16,32], index: 13, kind: output, shape index: {}]  }
   0x1   :  { %11782 = sst [smem:[#allocation312_spill]] %s11532_s0 }
   0x2   :  { %11783 = sst [smem:[#allocation313_spill]] %s11533_s1 }
   0x3   :  { %11784 = sst [smem:[#allocation314_spill]] %s11535_s3 }
   0x4   :  { %11785 = sst [smem:[#allocation315_spill]] %s11536_s4 }
   0x5   :  { %11786 = sst [smem:[#allocation316_spill]] %s11537_s5 }
   0x6   :  { %11787 = sst [smem:[#allocation317_spill]] %s11539_s7 }
   0x7   :  { %18 = vsyncpa [#allocation3], 0 }
   0x8   :  { %20 = vsyncpa [#allocation3 + $0x1], 0  ;;  %s6544_s25 = smov 0   ;;  %s6546_s26 = smov 0  }
   0x9   :  { %s6548_s27 = smov 0   ;;  %s6550_s28 = smov 0  }
   0xa   :  { %s6552_s29 = smov 0   ;;  %s6554_s30 = smov 0  }
   0xb   :  { %s6556_s14 = smov 0   ;;  %s6558_s15 = smov 0  }
   0xc LB: > { %11788 = sst [smem:[#allocation5_spill]] %s6424_s25  ;;  %s5837_s16 = sadd.s32 4294967295, %s6452_s15   ;;  %s6452_s15 = sphi %s6558_s15, %s26_s15   ;;  %s6448_s14 = sphi %s6556_s14, %s13091_s14   ;;  %s6444_s30 = sphi %s6554_s30, %s13090_s30   ;;  %s6440_s29 = sphi %s6552_s29, %s13089_s29   ;;  %s6436_s28 = sphi %s6550_s28, %s13088_s28   ;;  %s6432_s27 = sphi %s6548_s27, %s13087_s27   ;;  %s6428_s26 = sphi %s6546_s26, %s13093_s26   ;;  %s6424_s25 = sphi %s6544_s25, %s13092_s25  }
   0xd   : > { %11789 = sst [smem:[#allocation6_spill]] %s6432_s27  ;;  %s5838_s17 = sadd.s32 4294967294, %s6452_s15  }
   0xe   : > { %11790 = sst [smem:[#allocation7_spill]] %s6444_s30  ;;  %s35_s18 = sadd.s32 1, %s6444_s30 }
   0xf   : > { %11791 = sst [smem:[#allocation8_spill]] %s6448_s14  ;;  %p36_p0 = scmp.ge.s32.totalorder %s35_s18, 2 }
  0x10   : > { %s38_s19 = sadd.s32 1, %s6448_s14  ;;  %p335_p1 = scmp.ne.s32.totalorder %s6432_s27, %s6428_s26 }
  0x11   : > { %p336_p2 = scmp.eq.s32.totalorder %s5837_s16, 3  ;;  %s13095_s18 = smov (%p36_p0, %s35_s18), 0 }
  0x12   : > { %11792 = sst [smem:[#allocation9_spill]] %s13095_s18  ;;  %s13097_s19 = smov (!%p36_p0, %s38_s19), %s6448_s14 }
  0x13   : > { %s321_s20 = ssub.s32 %s6444_s30, %s13095_s18  ;;  %p6595_p3 = por %p336_p2, %p335_p1 }
  0x14   : > { %p40_p4 = scmp.ge.s32.totalorder %s13097_s19, 2  ;;  %p341_p5 = scmp.ne.s32.totalorder %s6428_s26, %s6424_s25 }
  0x15   : > { %p342_p6 = scmp.eq.s32.totalorder %s5838_s17, 3  ;;  %p5841_p7 = scmp.ge.s32.totalorder %s6452_s15, 1 }
  0x16   : > { %s13099_s19 = smov (%p40_p4, %s13097_s19), 0  ;;  %p404_p9 = scmp.lt.s32.totalorder %s6452_s15, 5 }
  0x17   : > { %11794 = sst [smem:[#allocation10_spill]] %s13099_s19  ;;  %p6604_p8 = por %p342_p6, %p341_p5 }
  0x18   : > { %s320_s23 = ssub.s32 %s6448_s14, %s13099_s19  ;;  %s325_s24 = sadd.s32 1, %s6432_s27 }
  0x19   : > { %s322_s16 = sor.u32 %s321_s20, %s320_s23  ;;  %p405_p10 = pnand %p5841_p7, %p404_p9 }
  0x1a   : > { %p323_p11 = scmp.eq.s32.totalorder %s322_s16, 0 }
  0x1b   : > { %408 = sbr.rel (%p405_p10) target bundleno = 1963 (0x7ab), region = 72 }
  0x1c   : > { %s6613_s18 = scalar_select %p323_p11, %s6432_s27, %s325_s24  }
  0x1e   : > { %11796 = sst [smem:[#allocation11_spill]] %s6613_s18 }
  0x20   : > { %s11797_s1 = sld [smem:[#allocation313_spill]]  ;;  %vm11551_vm0 = vcmask 1041408   ;;  %p448_p12 = scmp.lt.s32.totalorder %s6440_s29, 1  ;;  %v6454_v2 = vmov 0.0   ;;  %vm11560_vm1 = vcmask 1043456   ;;  %vm11552_vm2 = vcmask 31744  }
  0x21   : > { %s5845_s17 = smul.u32 192, %s6436_s28  ;;  %s11798_s0 = sld [smem:[#allocation312_spill]]  ;;  %vm6455_vm3 = vmmov 0   ;;  %v505_v62 = vlaneseq  ;;  %vm11562_vm15 = vcmask 1046528  }
  0x22   : > { %s449_s20 = scalar_select %p448_p12, %s6440_s29, 1 }
  0x23   : > { %s11799_s3 = sld [smem:[#allocation314_spill]]  ;;  %s11634_s23 = smov 20  }
  0x24   : > { %s6213_s25 = smul.u32 480, %s449_s20  ;;  %s11810_s4 = sld [smem:[#allocation315_spill]] }
  0x25   : > { %s11632_s20 = smov 4   ;;  %s11953_s5 = sld [smem:[#allocation316_spill]] }
  0x26   : > { %v818_v0 = vld [vmem:[%s11797_s1] sm:$0x3]  ;;  %s12025_s7 = sld [smem:[#allocation317_spill]]  ;;  %s12126_s19 = smov 44  }
  0x27   : > { %6208 = vmatprep.subr.msk.bf16.mxu1 %vm11551_vm0, %v818_v0  ;;  %v853_v1 = vsel %vm11551_vm0, %v818_v0, 0  ;;  %6207 = vmatprep.subr.msk.bf16.mxu0 %vm11551_vm0, %v818_v0  ;;  %s452_s24 = scalar_lea.vmem %s11798_s0, %s6213_s25  ;;  %s11606_s25 = sshll.u32 %s6436_s28, 3 }
  0x28   : > { %6206 = vmatpush3.bf16.msra.mxu1 %v853_v1  ;;  %6018 = vmatpush3.bf16.msra.mxu0 %v853_v1  ;;  %s6628_s16 = scalar_lea.vmem %s452_s24, %s5845_s17  ;;  %s494_s30 = sadd.s32 4294967295, %s11606_s25  ;;  %v506_v1 = vshrl.u32 %v505_v62, 7  ;;  %v11826_v62 = vmov 0 }
  0x29   : > { %6035 = vmatprep.subr.bf16.mxu1 %v6454_v2  ;;  %v6631_v3 = vld [vmem:[%s6628_s16 + $0xc0] sm:$0xff]  ;;  %v6634_v4 = vld [vmem:[%s6628_s16 + $0xc8] sm:$0xff]  ;;  %v6637_v5 = vld [vmem:[%s6628_s16 + $0xd0] sm:$0xff]  ;;  %v6805_v63 = vstv %s494_s30  ;;  %s11636_s17 = smov 8   ;;  %s11614_s30 = smov 12  }
  0x2a   : > { %v784_v6 = vrot.slane %v6631_v3, 4  ;;  %v785_v7 = vrot.slane %v6634_v4, 4  ;;  %v787_v8 = vrot.slane %v6637_v5, 4  ;;  %v6643_v9 = vld [vmem:[%s6628_s16 + $0xd8] sm:$0xff]  ;;  %v6646_v10 = vld [vmem:[%s6628_s16 + $0xe0] sm:$0xff]  ;;  %v6649_v11 = vld [vmem:[%s6628_s16 + $0xe8] sm:$0xff]  ;;  %v979_v55 = vpack.c.bf16 %v6637_v5, %v6634_v4 }
  0x2b   : > { %v789_v12 = vrot.slane %v6643_v9, 4  ;;  %v790_v13 = vrot.slane %v6646_v10, 4  ;;  %v792_v14 = vrot.slane %v6649_v11, 4  ;;  %v983_v15 = vld [vmem:[%s11799_s3] sm:$0x3]  ;;  %v461_v23 = vld [vmem:[%s6628_s16 + $0x18] sm:$0xff]  ;;  %v980_v56 = vpack.c.bf16 %v6646_v10, %v6643_v9 }
  0x2c   : > { %v786_v16 = vsel %vm11560_vm1, %v784_v6, %v785_v7  ;;  %v788_v17 = vsel %vm11560_vm1, %v785_v7, %v787_v8  ;;  %v1037_v22 = vsel %vm11551_vm0, %v983_v15, 0  ;;  %v462_v24 = vld [vmem:[%s6628_s16 + $0x20] sm:$0xff]  ;;  %v463_v26 = vld [vmem:[%s6628_s16 + $0x28] sm:$0xff]  ;;  %v6673_v27 = vld [vmem:[%s6628_s16 + $0x30] sm:$0xff]  ;;  %v499_v0 = vadd.s32 4, %v6805_v63  ;;  %s11642_s24 = smov 16  }
  0x2d   : > { %v816_v18 = vpack.c.bf16 %v788_v17, %v786_v16  ;;  %v791_v19 = vsel %vm11560_vm1, %v789_v12, %v790_v13  ;;  %v793_v20 = vsel %vm11560_vm1, %v790_v13, %v792_v14  ;;  %v968_v25 = vpack.c.bf16 %v462_v24, %v461_v23  ;;  %v6680_v29 = vld [vmem:[%s6628_s16 + $0x38] sm:$0xff]  ;;  %v6683_v30 = vld [vmem:[%s6628_s16 + $0x40] sm:$0xff]  ;;  %v6691_v32 = vld [vmem:[%s6628_s16 + $0x48] sm:$0xff]  ;;  %s11638_s25 = smov 24   ;;  %s11998_s3 = smov 32  }
  0x2e   : > { %v817_v21 = vpack.c.bf16 %v793_v20, %v791_v19  ;;  %v969_v28 = vpack.c.bf16 %v6673_v27, %v463_v26  ;;  %v970_v31 = vpack.c.bf16 %v6683_v30, %v6680_v29  ;;  %v6694_v33 = vld [vmem:[%s6628_s16 + $0x50] sm:$0xff]  ;;  %v6702_v35 = vld [vmem:[%s6628_s16 + $0x58] sm:$0xff]  ;;  %v6705_v36 = vld [vmem:[%s6628_s16 + $0x60] sm:$0xff]  ;;  %vm516_vm4 = vcmp.ge.s32.totalorder %v499_v0, 0  ;;  %s12001_s0 = smov 8   ;;  %s12133_s14 = smov 60  }
  0x2f   : > { %6031 = vmatprep.mubr.msk.bf16.mxu1 %vm11552_vm2, %v816_v18  ;;  %v971_v34 = vpack.c.bf16 %v6694_v33, %v6691_v32  ;;  %v972_v37 = vpack.c.bf16 %v6705_v36, %v6702_v35  ;;  %v6713_v38 = vld [vmem:[%s6628_s16 + $0x68] sm:$0xff]  ;;  %v6716_v39 = vld [vmem:[%s6628_s16 + $0x70] sm:$0xff]  ;;  %v6724_v41 = vld [vmem:[%s6628_s16 + $0x78] sm:$0xff]  ;;  %vm526_vm5 = vcmp.lt.s32.totalorder %v499_v0, 16  ;;  %v6812_v7 = vadd.s32 4294967292, %v506_v1  ;;  %s12160_s18 = smov 48  }
  0x30   : > { %6032 = vmatmul.mubr.msk.bf16.vlgmr.msra.gmra.mxu1 %vm11552_vm2, %v817_v21  ;;  %v973_v40 = vpack.c.bf16 %v6716_v39, %v6713_v38  ;;  %v6727_v42 = vld [vmem:[%s6628_s16 + $0x80] sm:$0xff]  ;;  %v6735_v44 = vld [vmem:[%s6628_s16 + $0x88] sm:$0xff]  ;;  %v6738_v45 = vld [vmem:[%s6628_s16 + $0x90] sm:$0xff]  ;;  %v508_v14 = vadd.s32 16, %v506_v1  ;;  %vm512_vm8 = vcmp.ge.s32.totalorder %v6805_v63, 0  ;;  %vm522_vm9 = vcmp.lt.s32.totalorder %v6805_v63, 16 }
  0x31   : > { %6036 = vmatpush3.bf16.msra.mxu1 %v1037_v22  ;;  %6037 = vmatprep.mubr.msk.bf16.mxu1 %vm6455_vm3, %v6454_v2  ;;  %v974_v43 = vpack.c.bf16 %v6727_v42, %v6724_v41  ;;  %v975_v46 = vpack.c.bf16 %v6738_v45, %v6735_v44  ;;  %v6746_v47 = vld [vmem:[%s6628_s16 + $0x98] sm:$0xff]  ;;  %v6749_v48 = vld [vmem:[%s6628_s16 + $0xa0] sm:$0xff]  ;;  %v6757_v50 = vld [vmem:[%s6628_s16 + $0xa8] sm:$0xff]  ;;  %vm11563_vm7 = vcmp.ge.s32.totalorder %v6812_v7, 0  ;;  %v11811_v16 = vmov 0  ;;  %s12233_s27 = smov 52  }
  0x32   : > { %v976_v49 = vpack.c.bf16 %v6749_v48, %v6746_v47  ;;  %v6760_v51 = vld [vmem:[%s6628_s16 + $0xb0] sm:$0xff]  ;;  %v6768_v53 = vld [vmem:[%s6628_s16 + $0xb8] sm:$0xff]  ;;  %v6797_v60 = vld [vmem:[%s6628_s16 + $0x100] sm:$0xff]  ;;  %v500_v20 = vadd.s32 5, %v6805_v63  ;;  %v11816_v22 = vmov 0  ;;  %v6854_v23 = vadd.s32 4294967292, %v508_v14 }
  0x33   : > { %v977_v52 = vpack.c.bf16 %v6760_v51, %v6757_v50  ;;  %v978_v54 = vpack.c.bf16 %v6631_v3, %v6768_v53  ;;  %v6786_v57 = vld [vmem:[%s6628_s16 + $0xf0] sm:$0xff]  ;;  %v6794_v59 = vld [vmem:[%s6628_s16 + $0xf8] sm:$0xff]  ;;  %11802 = vst [vmem:[#allocation14_spill] sm:$0xff] %v6797_v60  ;;  %vm6816_vm6 = vmand %vm516_vm4, %vm526_vm5  ;;  %v496_v1 = vadd.s32 1, %v6805_v63 }
  0x34   : > { %11800 = vst [vmem:[#allocation12_spill] sm:$0xff] %v6786_v57  ;;  %v981_v58 = vpack.c.bf16 %v6786_v57, %v6649_v11  ;;  %11801 = vst [vmem:[#allocation13_spill] sm:$0xff] %v6794_v59  ;;  %v982_v61 = vpack.c.bf16 %v6797_v60, %v6794_v59  ;;  %v11806_v11 = vmov 0  ;;  %v6825_v13 = vld [vmem:[%s11810_s4] ss:$0 sm:$0xff]  ;;  %v6847_v19 = vsel %vm6816_vm6, %v6727_v42, -inf }
  0x35   : > { %v11807_v11 = vsel %vm6816_vm6, 4294967295, %v11806_v11  ;;  %vm6834_vm10 = vmand %vm6816_vm6, %vm11563_vm7  ;;  %11815 = vst [vmem:[#allocation22_spill] sm:$0xff] %v6847_v19  ;;  %v11550_v26 = vrot.slane %v6847_v19, 1  ;;  %vm517_vm12 = vcmp.ge.s32.totalorder %v500_v20, 0  ;;  %vm527_vm13 = vcmp.lt.s32.totalorder %v500_v20, 16 }
  0x36   : > { %11808 = vst [vmem:[#allocation18_spill] sm:$0xff] %v11807_v11  ;;  %v11812_v16 = vsel %vm6834_vm10, 4294967295, %v11811_v16  ;;  %v6842_v18 = vsel %vm6834_vm10, %v6724_v41, -inf  ;;  %vm6850_vm11 = vmand %vm512_vm8, %vm522_vm9  ;;  %vm11564_vm8 = vcmask 1045504   ;;  %v757_v57 = vrot.slane %v6683_v30, 4 }
  0x37   : > { %11813 = vst [vmem:[#allocation20_spill] sm:$0xff] %v11812_v16  ;;  %11814 = vst [vmem:[#allocation21_spill] sm:$0xff] %v6842_v18  ;;  %v11817_v22 = vsel %vm6850_vm11, 4294967295, %v11816_v22  ;;  %v759_v11 = vrot.slane %v6691_v32, 4  ;;  %v760_v16 = vrot.slane %v6694_v33, 4 }
  0x38   : > { %6038 = vmatmul.mubr.msk.bf16.vlgmr.msra.gmra.mxu1 %vm11552_vm2, %v968_v25  ;;  %11818 = vst [vmem:[#allocation23_spill] sm:$0xff] %v11817_v22  ;;  %v4888_v25 = vrot.slane %v6842_v18, 1  ;;  %vm6863_vm14 = vmand %vm6850_vm11, %vm11563_vm7 }
  0x39   : > { %6041 = vmatprep.mubr.msk.bf16.mxu1 %vm6455_vm3, %v6454_v2  ;;  %vm6875_vm4 = vmand %vm517_vm12, %vm527_vm13  ;;  %vm513_vm12 = vcmp.ge.s32.totalorder %v496_v1, 0  ;;  %vm523_vm13 = vcmp.lt.s32.totalorder %v496_v1, 16  ;;  %v11835_v1 = vmov 0 }
  0x3a   : > { %vm6901_vm9 = vmand %vm6875_vm4, %vm11563_vm7 }
  0x3b   : > { %vm6933_vm0 = vmand %vm513_vm12, %vm523_vm13 }
  0x3c   : > { %v11836_v1 = vsel %vm6933_vm0, 4294967295, %v11835_v1  ;;  %vm6951_vm12 = vmand %vm6933_vm0, %vm11563_vm7 }
  0x3d   : > { %11837 = vst [vmem:[#allocation32_spill] sm:$0xff] %v11836_v1 }
  0x40   : > { %6042 = vmatmul.mubr.msk.bf16.gmra.mxu1 %vm11552_vm2, %v969_v28 }
  0x41   : > { %6045 = vmatprep.mubr.msk.bf16.mxu1 %vm6455_vm3, %v6454_v2 }
  0x48   : > { %6046 = vmatmul.mubr.msk.bf16.gmra.mxu1 %vm11552_vm2, %v970_v31 }
  0x49   : > { %6049 = vmatprep.mubr.msk.bf16.mxu1 %vm6455_vm3, %v6454_v2 }
  0x50   : > { %6050 = vmatmul.mubr.msk.bf16.gmra.mxu1 %vm11552_vm2, %v971_v34  ;;  %v11819_v34 = vmov 0 }
  0x51   : > { %6053 = vmatprep.mubr.msk.bf16.mxu1 %vm6455_vm3, %v6454_v2  ;;  %v11820_v34 = vsel %vm6863_vm14, 4294967295, %v11819_v34 }
  0x52   : > { %11821 = vst [vmem:[#allocation24_spill] sm:$0xff] %v11820_v34 }
  0x58   : > { %6054 = vmatmul.mubr.msk.bf16.gmra.mxu1 %vm11552_vm2, %v972_v37 }
  0x59   : > { %6057 = vmatprep.mubr.msk.bf16.mxu1 %vm6455_vm3, %v6454_v2 }
  0x60   : > { %6058 = vmatmul.mubr.msk.bf16.gmra.mxu1 %vm11552_vm2, %v973_v40 }
  0x61   : > { %6061 = vmatprep.mubr.msk.bf16.mxu1 %vm6455_vm3, %v6454_v2 }
  0x68   : > { %6062 = vmatmul.mubr.msk.bf16.gmra.mxu1 %vm11552_vm2, %v974_v43 }
  0x69   : > { %6065 = vmatprep.mubr.msk.bf16.mxu1 %vm6455_vm3, %v6454_v2 }
  0x70   : > { %6066 = vmatmul.mubr.msk.bf16.gmra.mxu1 %vm11552_vm2, %v975_v46  ;;  %v6871_v46 = vsel %vm11562_vm15, %v4888_v25, %v11550_v26  ;;  %v6914_v25 = vsel %vm6875_vm4, %v6746_v47, -inf }
  0x71   : > { %6069 = vmatprep.mubr.msk.bf16.mxu1 %vm6455_vm3, %v6454_v2  ;;  %11822 = vst [vmem:[#allocation25_spill] sm:$0xff] %v6871_v46  ;;  %11832 = vst [vmem:[#allocation29_spill] sm:$0xff] %v6914_v25 }
  0x78   : > { %6070 = vmatmul.mubr.msk.bf16.gmra.mxu1 %vm11552_vm2, %v976_v49  ;;  %v4977_v49 = vrot.slane %v6842_v18, 2 }
  0x79   : > { %6073 = vmatprep.mubr.msk.bf16.mxu1 %vm6455_vm3, %v6454_v2 }
  0x80   : > { %6074 = vmatmul.mubr.msk.bf16.gmra.mxu1 %vm11552_vm2, %v977_v52  ;;  %v11549_v52 = vrot.slane %v6847_v19, 2 }
  0x81   : > { %6077 = vmatprep.mubr.msk.bf16.mxu1 %vm6455_vm3, %v6454_v2 }
  0x88   : > { %6078 = vmatmul.mubr.msk.bf16.gmra.mxu1 %vm11552_vm2, %v978_v54  ;;  %v775_v54 = vrot.slane %v6746_v47, 4 }
  0x89   : > { %6081 = vmatprep.mubr.msk.bf16.mxu1 %vm6455_vm3, %v6454_v2 }
  0x90   : > { %6082 = vmatmul.mubr.msk.bf16.gmra.mxu1 %vm11552_vm2, %v979_v55 }
  0x91   : > { %6085 = vmatprep.mubr.msk.bf16.mxu1 %vm6455_vm3, %v6454_v2 }
  0x98   : > { %6086 = vmatmul.mubr.msk.bf16.gmra.mxu1 %vm11552_vm2, %v980_v56 }
  0x99   : > { %6089 = vmatprep.mubr.msk.bf16.mxu1 %vm6455_vm3, %v6454_v2 }
  0xa0   : > { %6090 = vmatmul.mubr.msk.bf16.gmra.mxu1 %vm11552_vm2, %v981_v58 }
  0xa1   : > { %6093 = vmatprep.mubr.msk.bf16.mxu1 %vm6455_vm3, %v6454_v2  ;;  %vm11589_vm3 = vcmp.lt.s32.totalorder %v6854_v23, 16 }
  0xa2   : > { %vm6890_vm5 = vmand %vm6850_vm11, %vm11589_vm3 }
  0xa3   : > { %v11827_v62 = vsel %vm6890_vm5, 4294967295, %v11826_v62  ;;  %vm6964_vm13 = vmand %vm6933_vm0, %vm11589_vm3 }
  0xa4   : > { %11828 = vst [vmem:[#allocation27_spill] sm:$0xff] %v11827_v62  ;;  %vm6993_vm1 = vmand %vm6875_vm4, %vm11589_vm3 }
  0xa8   : > { %6094 = vmatmul.mubr.msk.bf16.gmra.mxu1 %vm11552_vm2, %v982_v61  ;;  %vm11561_vm2 = vsmask.f32 7424 }
  0xf0   : > { %v6808_v6 = vpop.f32.mrf.mxu1 }
  0xf1   : > { %11803 = vst [vmem:[#allocation15_spill] sm:$0xff] %v6808_v6 }
  0xf2   : > { %v6810_v2 = vpop.f32.mrf.mxu1 }
  0xf3   : > { %11804 = vst [vmem:[#allocation16_spill] sm:$0xff] %v6810_v2  ;;  %v11838_v2 = vrot.slane %v6914_v25, 1 }
  0xf4   : > { %v6814_v8 = vpop.f32.mrf.mxu1 }
  0xf5   : > { %11805 = vst [vmem:[#allocation17_spill] sm:$0xff] %v6814_v8 }
  0xf6   : > { %v6820_v12 = vpop.f32.mrf.mxu1 }
  0xf7   : > { %11809 = vst [vmem:[#allocation19_spill] sm:$0xff] %v6820_v12 }
  0xf8   : > { %v1073_v15 = vpop.f32.mrf.mxu1 }
  0xf9   : > { %v1074_v17 = vadd.f32 %v6825_v13, %v1073_v15  ;;  %v4944_v15 = vmax.f32 %v6842_v18, %v6871_v46 }
  0xfa   : > { %v6039_v21 = vpop.f32.mrf.mxu1 }
  0xfb   : > { %v1192_v28 = vmax.f32 %v1074_v17, 0.0 }
  0xfc   : > { %v1076_v24 = vpop.f32.mrf.mxu1 }
  0xfd   : > { %v1077_v31 = vadd.f32 %v6825_v13, %v1076_v24  ;;  %v1282_v55 = vsel %vm6863_vm14, %v1192_v28, 0.0  ;;  %v6909_v24 = vsel %vm6901_vm9, %v6738_v45, -inf  ;;  %v6919_v28 = vsel %vm11564_vm8, %v4977_v49, %v11549_v52 }
  0xfe   : > { %v6040_v37 = vpop.f32.mrf.mxu1  ;;  %11831 = vst [vmem:[#allocation28_spill] sm:$0xff] %v6909_v24  ;;  %11833 = vst [vmem:[#allocation30_spill] sm:$0xff] %v6919_v28  ;;  %vm11918_vm14 = vsmask.f32 7424 }
  0xff   : > { %v1193_v40 = vmax.f32 %v1077_v31, 0.0 }
 0x100   : > { %v1081_v43 = vpop.f32.mrf.mxu1 }
 0x101   : > { %v1283_v56 = vsel %vm6850_vm11, %v1193_v40, 0.0  ;;  %v1082_v58 = vadd.f32 %v6825_v13, %v1081_v43  ;;  %vm11891_vm11 = vcmask 1045504  }
 0x102   : > { %v6884_v61 = vpack.c.bf16 %v1283_v56, %v1282_v55  ;;  %v6043_v0 = vpop.f32.mrf.mxu1  ;;  %v4893_v55 = vrot.slane %v6909_v24, 1 }
 0x103   : > { %v1194_v14 = vmax.f32 %v1082_v58, 0.0  ;;  %v5033_v58 = vmax.f32 %v4944_v15, %v6919_v28 }
 0x104   : > { %11825 = vst [vmem:[#allocation26_spill] sm:$0xff] %v6884_v61  ;;  %v1084_v20 = vpop.f32.mrf.mxu1  ;;  %v1336_v21 = vshll.u32 %v6884_v61, 16  ;;  %v1502_v43 = vrot.slane %v6884_v61, 1  ;;  %v6944_v12 = vsel %vm11562_vm15, %v4893_v55, %v11838_v2  ;;  %v11843_v55 = vmov 0 }
 0x105   : > { %v1284_v31 = vsel %vm6890_vm5, %v1194_v14, 0.0  ;;  %v1085_v0 = vadd.f32 %v6825_v13, %v1084_v20  ;;  %v1334_v20 = vshrl.u32 %v6884_v61, 16  ;;  %11839 = vst [vmem:[#allocation33_spill] sm:$0xff] %v6944_v12  ;;  %v5057_v19 = vmax.f32 %v5033_v58, %v6909_v24 }
 0x106   : > { %v6923_v37 = vpack.c.bf16 %v1284_v31, %v1284_v31  ;;  %v6044_v40 = vpop.f32.mrf.mxu1  ;;  %v1338_v26 = vrot.slane %v1336_v21, 1  ;;  %v11844_v55 = vsel %vm6964_vm13, 4294967295, %v11843_v55 }
 0x107   : > { %v1195_v21 = vmax.f32 %v1085_v0, 0.0  ;;  %v4982_v0 = vrot.slane %v6909_v24, 2  ;;  %11845 = vst [vmem:[#allocation35_spill] sm:$0xff] %v11844_v55 }
 0x108   : > { %11834 = vst [vmem:[#allocation31_spill] sm:$0xff] %v6923_v37  ;;  %v1089_v49 = vpop.f32.mrf.mxu1  ;;  %v1503_v52 = vrot.slane %v6923_v37, 1  ;;  %v1341_v14 = vshll.u32 %v6923_v37, 16 }
 0x109   : > { %v1090_v31 = vadd.f32 %v6825_v13, %v1089_v49  ;;  %v1339_v49 = vor.u32 %v1338_v26, %v1334_v20  ;;  %v5092_v20 = vmax.f32 %v5057_v19, %v6944_v12  ;;  %v501_v26 = vadd.s32 6, %v6805_v63 }
 0x10a   : > { %1528 = vrot.lane.b32.xlu1 %v1503_v52, %s11636_s17  ;;  %v6047_v40 = vpop.f32.mrf.mxu1  ;;  %v1504_v15 = vsel %vm11562_vm15, %v1502_v43, %v1503_v52  ;;  %v1343_v56 = vrot.slane %v1341_v14, 1  ;;  %v11840_v52 = vmov 0  ;;  %v11850_v19 = vmov 0 }
 0x10b   : > { %v1196_v8 = vmax.f32 %v1090_v31, 0.0  ;;  %1526 = vrot.lane.b32.xlu0 %v1504_v15, %s11636_s17  ;;  %v11841_v52 = vsel %vm6951_vm12, 4294967295, %v11840_v52  ;;  %v1285_v40 = vsel %vm6951_vm12, %v1195_v21, 0.0  ;;  %v497_v21 = vadd.s32 2, %v6805_v63 }
 0x10c   : > { %v1092_v6 = vpop.f32.mrf.mxu1  ;;  %11842 = vst [vmem:[#allocation34_spill] sm:$0xff] %v11841_v52  ;;  %v1344_v14 = vsel %vm11561_vm2, %v1339_v49, %v1343_v56  ;;  %v11851_v19 = vsel %vm6993_vm1, 4294967295, %v11850_v19  ;;  %vm518_vm2 = vcmp.ge.s32.totalorder %v501_v26, 0  ;;  %vm528_vm15 = vcmp.lt.s32.totalorder %v501_v26, 16 }
 0x10d   : > { %v1093_v43 = vadd.f32 %v6825_v13, %v1092_v6  ;;  %v1286_v2 = vsel %vm6933_vm0, %v1196_v8, 0.0  ;;  %v1345_v6 = vshrl.u32 %v6923_v37, 16  ;;  %v4947_v8 = vmax.f32 %v6909_v24, %v6944_v12  ;;  %11852 = vst [vmem:[#allocation39_spill] sm:$0xff] %v11851_v19  ;;  %vm6998_vm7 = vmand %vm518_vm2, %vm528_vm15 }
 0x10e   : > { %v6048_v58 = vpop.f32.mrf.mxu1  ;;  %vm11861_vm15 = vcmask 1046528   ;;  %vm11869_vm5 = vcmp.ge.s32.totalorder %v497_v21, 0  ;;  %v11870_v37 = vmov 0 }
 0x10f   : > { %v1197_v31 = vmax.f32 %v1093_v43, 0.0  ;;  %1453 = vrot.lane.b32.xlu0 %v1344_v14, %s11632_s20  ;;  %v6977_v58 = vpack.c.bf16 %v1286_v2, %v1285_v40  ;;  %v1347_v43 = vor.u32 %v1345_v6, %v1343_v56  ;;  %v11847_v14 = vrot.slane %v6914_v25, 2 }
 0x110   : > { %v1097_v15 = vpop.f32.mrf.mxu1  ;;  %v7008_v2 = vsel %vm6993_vm1, %v6749_v48, -inf  ;;  %v7028_v40 = vsel %vm6998_vm7, %v6760_v51, -inf }
 0x111   : > { %11846 = vst [vmem:[#allocation36_spill] sm:$0xff] %v6977_v58  ;;  %v1287_v49 = vsel %vm6964_vm13, %v1197_v31, 0.0  ;;  %v6984_v28 = vsel %vm11564_vm8, %v4982_v0, %v11847_v14  ;;  %11855 = vst [vmem:[#allocation40_spill] sm:$0xff] %v7008_v2  ;;  %vm11856_vm8 = vcmp.ge.s32.totalorder %v6812_v7, 0  ;;  %v1351_v6 = vshll.u32 %v6977_v58, 16 }
 0x112   : > { %11848 = vst [vmem:[#allocation37_spill] sm:$0xff] %v6984_v28  ;;  %v6986_v24 = vpack.c.bf16 %v1287_v49, %v1287_v49  ;;  %v6051_v46 = vpop.f32.mrf.mxu1  ;;  %v5036_v0 = vmax.f32 %v4947_v8, %v6984_v28  ;;  %vm7014_vm2 = vmand %vm6998_vm7, %vm11856_vm8  ;;  %v5124_v31 = vmax.f32 %v5092_v20, %v6984_v28  ;;  %v4899_v20 = vrot.slane %v7028_v40, 1 }
 0x113   : > { %1455 = vrot.lane.b32.xlu0 %v1347_v43, %s11632_s20  ;;  %v7023_v8 = vsel %vm7014_vm2, %v6757_v50, -inf  ;;  %11859 = vst [vmem:[#allocation41_spill] sm:$0xff] %v7028_v40  ;;  %v7037_v25 = vrot.slane %v7008_v2, 1  ;;  %v1098_v18 = vadd.f32 %v6825_v13, %v1097_v15  ;;  %v1505_v55 = vrot.slane %v6977_v58, 1  ;;  %vm7059_vm8 = vmand %vm6998_vm7, %vm11589_vm3 }
 0x114   : > { %11849 = vst [vmem:[#allocation38_spill] sm:$0xff] %v6986_v24  ;;  %1562 = vrot.lane.b32.xlu1 %v6986_v24, %s11614_s30  ;;  %v1100_v46 = vpop.f32.mrf.mxu1  ;;  %v1506_v43 = vrot.slane %v6986_v24, 1  ;;  %v4898_v14 = vrot.slane %v7023_v8, 1  ;;  %v1356_v28 = vshll.u32 %v6986_v24, 16  ;;  %v5060_v12 = vmax.f32 %v5036_v0, %v7023_v8 }
 0x115   : > { %11860 = vst [vmem:[#allocation42_spill] sm:$0xff] %v7037_v25  ;;  %v7047_v1 = vmax.f32 %v5124_v31, %v7023_v8  ;;  %v1101_v52 = vadd.f32 %v6825_v13, %v1100_v46  ;;  %v1353_v22 = vrot.slane %v1351_v6, 1  ;;  %v11864_v15 = vmov 0 }
 0x116   : > { %v6052_v49 = vpop.f32.mrf.mxu1  ;;  %v7044_v62 = vsel %vm11861_vm15, %v4898_v14, %v4899_v20  ;;  %v11865_v15 = vsel %vm7059_vm8, 4294967295, %v11864_v15  ;;  %v1507_v31 = vsel %vm11861_vm15, %v1505_v55, %v1506_v43  ;;  %v4988_v46 = vrot.slane %v7028_v40, 2 }
 0x117   : > { %1560 = vrot.lane.b32.xlu0 %v6977_v58, %s11614_s30  ;;  %11862 = vst [vmem:[#allocation43_spill] sm:$0xff] %v7044_v62  ;;  %11863 = vst [vmem:[#allocation44_spill] sm:$0xff] %v7047_v1  ;;  %v4950_v34 = vmax.f32 %v7023_v8, %v7044_v62  ;;  %v7053_v0 = vmax.f32 %v5060_v12, %v7044_v62  ;;  %v7070_v12 = vsel %vm7059_vm8, %v6768_v53, -inf  ;;  %vm11868_vm13 = vcmp.lt.s32.totalorder %v497_v21, 16 }
 0x118   : > { %1532 = vrot.lane.b32.xlu1 %v1506_v43, %s11636_s17  ;;  %v1105_v49 = vpop.f32.mrf.mxu1  ;;  %11866 = vst [vmem:[#allocation45_spill] sm:$0xff] %v11865_v15  ;;  %11867 = vst [vmem:[#allocation46_spill] sm:$0xff] %v7070_v12  ;;  %v1349_v55 = vshrl.u32 %v6977_v58, 16  ;;  %v7081_v61 = vrot.slane %v7070_v12, 1  ;;  %v7084_v6 = vrot.slane %v7070_v12, 2  ;;  %v7090_v21 = vrot.slane %v7008_v2, 2 }
 0x119   : > { %vm7074_vm0 = vmand %vm11869_vm5, %vm11868_vm13  ;;  %v1198_v1 = vmax.f32 %v1098_v18, 0.0  ;;  %v4949_v58 = vmax.f32 %v7008_v2, %v7037_v25  ;;  %vm11878_vm13 = vcmp.ge.s32.totalorder %v6812_v7, 0  ;;  %v1199_v19 = vmax.f32 %v1101_v52, 0.0 }
 0x11a   : > { %v6055_v14 = vpop.f32.mrf.mxu1  ;;  %v11871_v37 = vsel %vm7074_vm0, 4294967295, %v11870_v37  ;;  %11873 = vst [vmem:[#allocation48_spill] sm:$0xff] %v7081_v61  ;;  %11874 = vst [vmem:[#allocation49_spill] sm:$0xff] %v7084_v6  ;;  %v1354_v15 = vor.u32 %v1353_v22, %v1349_v55  ;;  %v1106_v60 = vadd.f32 %v6825_v13, %v1105_v49  ;;  %vm11882_vm3 = vcmask 1045504  }
 0x11b   : > { %11872 = vst [vmem:[#allocation47_spill] sm:$0xff] %v11871_v37  ;;  %1530 = vrot.lane.b32.xlu0 %v1507_v31, %s11636_s17  ;;  %v1358_v14 = vrot.slane %v1356_v28, 1  ;;  %11875 = vst [vmem:[#allocation50_spill] sm:$0xff] %v7090_v21  ;;  %v7111_v55 = vsel %vm11882_vm3, %v4988_v46, %v7084_v6  ;;  %v1360_v25 = vshrl.u32 %v6986_v24, 16  ;;  %v4987_v2 = vrot.slane %v7023_v8, 2 }
 0x11c   : > { %1644 = vrot.lane.b32.xlu1 %v1506_v43, %s11634_s23  ;;  %v7087_v62 = vpop.f32.mrf.mxu1  ;;  %vm11876_vm5 = vmmov %vm11861_vm15  ;;  %v11879_v43 = vmov 0  ;;  %11883 = vst [vmem:[#allocation53_spill] sm:$0xff] %v7111_v55  ;;  %v502_v52 = vadd.s32 7, %v6805_v63  ;;  %vm11885_vm3 = vcmp.lt.s32.totalorder %v6854_v23, 16  ;;  %v1200_v8 = vmax.f32 %v1106_v60, 0.0 }
 0x11d   : > { %v7096_v28 = vsel %vm11876_vm5, %v4899_v20, %v7081_v61  ;;  %vm7102_vm15 = vmand %vm7074_vm0, %vm11878_vm13  ;;  %vm11884_vm5 = vsmask.f32 7424  ;;  %v755_v24 = vrot.slane %v6680_v29, 4 }
 0x11e   : > { %11877 = vst [vmem:[#allocation51_spill] sm:$0xff] %v7096_v28  ;;  %v11880_v43 = vsel %vm7102_vm15, 4294967295, %v11879_v43  ;;  %v6056_v18 = vpop.f32.mrf.mxu1  ;;  %v4951_v22 = vmax.f32 %v7028_v40, %v7096_v28  ;;  %v1359_v20 = vsel %vm11884_vm5, %v1354_v15, %v1358_v14  ;;  %v1362_v28 = vor.u32 %v1360_v25, %v1358_v14  ;;  %vm7129_vm13 = vmand %vm7074_vm0, %vm11885_vm3 }
 0x11f   : > { %11881 = vst [vmem:[#allocation52_spill] sm:$0xff] %v11880_v43  ;;  %1642 = vrot.lane.b32.xlu0 %v1507_v31, %s11634_s23  ;;  %v1288_v18 = vsel %vm7102_vm15, %v1198_v1, 0.0  ;;  %v1289_v40 = vsel %vm7074_vm0, %v1199_v19, 0.0  ;;  %v11886_v15 = vmov 0  ;;  %vm519_vm5 = vcmp.ge.s32.totalorder %v502_v52, 0 }
 0x120   : > { %1457 = vrot.lane.b32.xlu1 %v1359_v20, %s11632_s20  ;;  %v7119_v49 = vpop.f32.mrf.mxu1  ;;  %v11887_v15 = vsel %vm7129_vm13, 4294967295, %v11886_v15  ;;  %vm529_vm12 = vcmp.lt.s32.totalorder %v502_v52, 16  ;;  %v5038_v25 = vmax.f32 %v4949_v58, %v7090_v21  ;;  %v7140_v19 = vsel %vm11891_vm11, %v4987_v2, %v4988_v46 }
 0x121   : > { %11888 = vst [vmem:[#allocation54_spill] sm:$0xff] %v11887_v15  ;;  %vm7135_vm15 = vmand %vm519_vm5, %vm529_vm12  ;;  %v7143_v14 = vmax.f32 %v4951_v22, %v7111_v55  ;;  %vm11893_vm3 = vcmp.ge.s32.totalorder %v6812_v7, 0  ;;  %v7162_v46 = vmax.f32 %v4950_v34, %v7140_v19  ;;  %v7164_v22 = vpack.c.bf16 %v1289_v40, %v1288_v18 }
 0x122   : > { %v6059_v31 = vpop.f32.mrf.mxu1  ;;  %11892 = vst [vmem:[#allocation55_spill] sm:$0xff] %v7140_v19  ;;  %vm7152_vm0 = vmand %vm7135_vm15, %vm11893_vm3  ;;  %v7159_v2 = vsel %vm7135_vm15, %v6634_v4, -inf  ;;  %v5062_v4 = vmax.f32 %v5038_v25, %v7070_v12  ;;  %v5127_v40 = vmax.f32 %v7053_v0, %v7140_v19  ;;  %vm11898_vm11 = vcmask 1046528  }
 0x123   : > { %1607 = vrot.lane.b32.xlu0 %v1359_v20, %s11642_s24  ;;  %11896 = vst [vmem:[#allocation56_spill] sm:$0xff] %v7159_v2  ;;  %11897 = vst [vmem:[#allocation57_spill] sm:$0xff] %v7164_v22  ;;  %v7169_v20 = vsel %vm7152_vm0, %v6631_v3, -inf  ;;  %v4904_v52 = vrot.slane %v7159_v2, 1  ;;  %v1290_v31 = vsel %vm7129_vm13, %v1200_v8, 0.0  ;;  %vm11901_vm12 = vcmp.lt.s32.totalorder %v6854_v23, 16 }
 0x124   : > { %1459 = vrot.lane.b32.xlu1 %v1362_v28, %s11632_s20  ;;  %v7146_v60 = vpop.f32.mrf.mxu1  ;;  %v4903_v21 = vrot.slane %v7169_v20, 1  ;;  %v7190_v8 = vpack.c.bf16 %v1290_v31, %v1290_v31  ;;  %v7195_v34 = vmax.f32 %v5127_v40, %v7169_v20  ;;  %vm7201_vm5 = vmand %vm7135_vm15, %vm11901_vm12  ;;  %v11902_v0 = vmov 0 }
 0x125   : > { %v11903_v0 = vsel %vm7201_vm5, 4294967295, %v11902_v0  ;;  %v7211_v3 = vsel %vm7201_vm5, %v6637_v5, -inf  ;;  %v5097_v40 = vmax.f32 %v5062_v4, %v7081_v61  ;;  %vm11907_vm3 = vmmov %vm11898_vm11  ;;  %v1508_v25 = vrot.slane %v7164_v22, 1 }
 0x126   : > { %v6060_v55 = vpop.f32.mrf.mxu1  ;;  %11900 = vst [vmem:[#allocation59_spill] sm:$0xff] %v7195_v34  ;;  %11904 = vst [vmem:[#allocation60_spill] sm:$0xff] %v11903_v0  ;;  %v7222_v19 = vrot.slane %v7211_v3, 2  ;;  %v1509_v31 = vrot.slane %v7190_v8, 1  ;;  %vm11913_vm12 = vcmask 1043456  }
 0x127   : > { %1564 = vrot.lane.b32.xlu0 %v7164_v22, %s11614_s30  ;;  %v7188_v55 = vsel %vm11898_vm11, %v4903_v21, %v4904_v52  ;;  %v4952_v21 = vmax.f32 %v7070_v12, %v7081_v61  ;;  %v1366_v12 = vshll.u32 %v7164_v22, 16  ;;  %v11909_v61 = vrot.slane %v7159_v2, 2 }
 0x128   : > { %1609 = vrot.lane.b32.xlu1 %v1362_v28, %s11642_s24  ;;  %v7185_v18 = vpop.f32.mrf.mxu1  ;;  %11899 = vst [vmem:[#allocation58_spill] sm:$0xff] %v7188_v55  ;;  %11906 = vst [vmem:[#allocation62_spill] sm:$0xff] %v7222_v19  ;;  %vm11910_vm11 = vcmask 1045504   ;;  %v5129_v43 = vmax.f32 %v5097_v40, %v7084_v6  ;;  %v1371_v40 = vshll.u32 %v7190_v8, 16  ;;  %v11946_v58 = vmax.f32 %v7169_v20, %v7188_v55 }
 0x129   : > { %v7239_v15 = vsel %vm11910_vm11, %v11909_v61, %v7222_v19  ;;  %v7242_v37 = vmax.f32 %v4952_v21, %v7084_v6  ;;  %v1364_v61 = vshrl.u32 %v7164_v22, 16  ;;  %v1368_v59 = vrot.slane %v1366_v12, 1  ;;  %vm11914_vm11 = vmmov %vm11913_vm12 }
 0x12a   : > { %v6063_v28 = vpop.f32.mrf.mxu1  ;;  %11911 = vst [vmem:[#allocation64_spill] sm:$0xff] %v7239_v15  ;;  %v1510_v6 = vsel %vm11907_vm3, %v1508_v25, %v1509_v31  ;;  %vm11917_vm13 = vmmov %vm11914_vm11  ;;  %v1122_v26 = vadd.f32 %v6825_v13, %v7185_v18 }
 0x12b   : > { %1676 = vrot.lane.b32.xlu0 %v7164_v22, %s11638_s25  ;;  %v7219_v28 = vrot.slane %v7211_v3, 1  ;;  %v758_v22 = vsel %vm11914_vm11, %v755_v24, %v757_v57  ;;  %v1369_v33 = vor.u32 %v1368_v59, %v1364_v61  ;;  %v1373_v57 = vrot.slane %v1371_v40, 1 }
 0x12c   : > { %1566 = vrot.lane.b32.xlu1 %v7190_v8, %s11614_s30  ;;  %v7226_v5 = vpop.f32.mrf.mxu1  ;;  %s11644_s30 = smov 32   ;;  %v1375_v59 = vshrl.u32 %v7190_v8, 16  ;;  %v1204_v18 = vmax.f32 %v1122_v26, 0.0 }
 0x12d   : > { %11905 = vst [vmem:[#allocation61_spill] sm:$0xff] %v7219_v28  ;;  %v7232_v4 = vsel %vm11907_vm3, %v4904_v52, %v7219_v28  ;;  %v754_v52 = vrot.slane %v6673_v27, 4  ;;  %v7259_v27 = vmax.f32 %v5129_v43, %v7211_v3  ;;  %v762_v43 = vrot.slane %v6702_v35, 4 }
 0x12e   : > { %11908 = vst [vmem:[#allocation63_spill] sm:$0xff] %v7232_v4  ;;  %v6064_v34 = vpop.f32.mrf.mxu1  ;;  %vm11916_vm3 = vcmask 31744   ;;  %v764_v35 = vrot.slane %v6705_v36, 4  ;;  %v1374_v40 = vsel %vm11918_vm14, %v1369_v33, %v1373_v57 }
 0x12f   : > { %1760 = vrot.lane.b32.xlu0 %v1509_v31, %s11644_s30  ;;  %v498_v34 = vadd.s32 3, %v6805_v63  ;;  %11912 = vst [vmem:[#allocation65_spill] sm:$0xff] %v7259_v27  ;;  %v756_v29 = vsel %vm11913_vm12, %v754_v52, %v755_v24  ;;  %vm11915_vm12 = vmmov %vm11914_vm11  ;;  %v763_v32 = vsel %vm11914_vm11, %v760_v16, %v762_v43 }
 0x130   : > { %1678 = vrot.lane.b32.xlu1 %v7190_v8, %s11638_s25  ;;  %v7252_v0 = vpop.f32.mrf.mxu1  ;;  %v810_v12 = vpack.c.bf16 %v758_v22, %v756_v29  ;;  %v761_v25 = vsel %vm11915_vm12, %v759_v11, %v760_v16  ;;  %v765_v29 = vrot.slane %v6713_v38, 4  ;;  %v767_v11 = vrot.slane %v6716_v39, 4  ;;  %vm11923_vm14 = vmmov %vm11916_vm3 }
 0x131   : > { %v811_v21 = vpack.c.bf16 %v763_v32, %v761_v25  ;;  %vm525_vm12 = vcmp.lt.s32.totalorder %v498_v34, 16  ;;  %v1114_v16 = vadd.f32 %v6825_v13, %v7119_v49  ;;  %vm11919_vm5 = vcmp.ge.s32.totalorder %v498_v34, 0 }
 0x132   : > { %v6067_v19 = vpop.f32.mrf.mxu1  ;;  %6019 = vmatprep.mubr.msk.bf16.mxu0 %vm11916_vm3, %v810_v12  ;;  %v1109_v12 = vadd.f32 %v6825_v13, %v7087_v62  ;;  %v766_v38 = vsel %vm11914_vm11, %v764_v35, %v765_v29  ;;  %v768_v39 = vsel %vm11917_vm13, %v765_v29, %v767_v11  ;;  %vm7292_vm8 = vmand %vm11919_vm5, %vm525_vm12  ;;  %v11920_v49 = vmov 0 }
 0x133   : > { %1534 = vrot.lane.b32.xlu0 %v1510_v6, %s11636_s17  ;;  %6020 = vmatmul.mubr.msk.bf16.vlgmr.msra.gmra.mxu0 %vm11916_vm3, %v811_v21  ;;  %v812_v62 = vpack.c.bf16 %v768_v39, %v766_v38  ;;  %v11921_v49 = vsel %vm7292_vm8, 4294967295, %v11920_v49  ;;  %v770_v25 = vrot.slane %v6727_v42, 4  ;;  %v1202_v33 = vmax.f32 %v1114_v16, 0.0 }
 0x134   : > { %1536 = vrot.lane.b32.xlu1 %v1509_v31, %s11636_s17  ;;  %v1132_v52 = vpop.f32.mrf.mxu1  ;;  %11922 = vst [vmem:[#allocation66_spill] sm:$0xff] %v11921_v49  ;;  %v1201_v32 = vmax.f32 %v1109_v12, 0.0  ;;  %vm11926_vm5 = vcmp.ge.s32.totalorder %v6812_v7, 0  ;;  %v777_v29 = vrot.slane %v6749_v48, 4  ;;  %v779_v11 = vrot.slane %v6757_v50, 4 }
 0x135   : > { %v1133_v19 = vadd.f32 %v6825_v13, %v1132_v52  ;;  %v769_v52 = vrot.slane %v6724_v41, 4  ;;  %v1377_v41 = vor.u32 %v1375_v59, %v1373_v57  ;;  %6023 = vmatprep.mubr.msk.bf16.mxu0 %vm11923_vm14, %v812_v62  ;;  %vm7315_vm12 = vmand %vm7292_vm8, %vm11926_vm5  ;;  %v780_v12 = vrot.slane %v6760_v51, 4 }
 0x136   : > { %v6068_v24 = vpop.f32.mrf.mxu1  ;;  %v1292_v48 = vsel %vm7292_vm8, %v1202_v33, 0.0  ;;  %v782_v38 = vrot.slane %v6768_v53, 4  ;;  %vm11932_vm14 = vcmp.lt.s32.totalorder %v6854_v23, 16  ;;  %v11933_v39 = vmov 0 }
 0x137   : > { %1646 = vrot.lane.b32.xlu0 %v1510_v6, %s11634_s23  ;;  %v1207_v22 = vmax.f32 %v1133_v19, 0.0  ;;  %v772_v19 = vrot.slane %v6735_v44, 4  ;;  %v1117_v24 = vadd.f32 %v6825_v13, %v7146_v60  ;;  %v774_v60 = vrot.slane %v6738_v45, 4 }
 0x138   : > { %1648 = vrot.lane.b32.xlu1 %v1509_v31, %s11634_s23  ;;  %v1137_v61 = vpop.f32.mrf.mxu1  ;;  %v1291_v45 = vsel %vm7315_vm12, %v1201_v32, 0.0  ;;  %s11939_s23 = smov 12  }
 0x139   : > { %v1138_v36 = vadd.f32 %v6825_v13, %v1137_v61  ;;  %v1297_v31 = vsel %vm6901_vm9, %v1207_v22, 0.0  ;;  %vm11924_vm9 = vmmov %vm11914_vm11  ;;  %v1203_v50 = vmax.f32 %v1117_v24, 0.0  ;;  %v7349_v53 = vpack.c.bf16 %v1292_v48, %v1291_v45 }
 0x13a   : > { %v6071_v43 = vpop.f32.mrf.mxu1  ;;  %v771_v22 = vsel %vm11924_vm9, %v769_v52, %v770_v25  ;;  %vm11925_vm13 = vmmov %vm11924_vm9  ;;  %v1125_v45 = vadd.f32 %v6825_v13, %v7226_v5 }
 0x13b   : > { %1461 = vrot.lane.b32.xlu0 %v1374_v40, %s11632_s20  ;;  %v1208_v21 = vmax.f32 %v1138_v36, 0.0  ;;  %v773_v42 = vsel %vm11925_vm13, %v770_v25, %v772_v19 }
 0x13c   : > { %1758 = vrot.lane.b32.xlu1 %v1510_v6, %s11644_s30  ;;  %v7302_v34 = vpop.f32.mrf.mxu1  ;;  %v813_v35 = vpack.c.bf16 %v773_v42, %v771_v22  ;;  %v1381_v22 = vshll.u32 %v7349_v53, 16 }
 0x13d   : > { %v1298_v17 = vsel %vm6875_vm4, %v1208_v21, 0.0  ;;  %vm11929_vm4 = vmmov %vm11916_vm3 }
 0x13e   : > { %v7319_v6 = vpack.c.bf16 %v1298_v17, %v1297_v31  ;;  %v6072_v57 = vpop.f32.mrf.mxu1  ;;  %6024 = vmatmul.mubr.msk.bf16.gmra.mxu0 %vm11929_vm4, %v813_v35  ;;  %vm11930_vm3 = vmmov %vm11924_vm9 }
 0x13f   : > { %1611 = vrot.lane.b32.xlu0 %v1374_v40, %s11642_s24  ;;  %v776_v59 = vsel %vm11930_vm3, %v774_v60, %v775_v54  ;;  %vm11931_vm11 = vmmov %vm11930_vm3 }
 0x140   : > { %1463 = vrot.lane.b32.xlu1 %v1377_v41, %s11632_s20  ;;  %v1145_v16 = vpop.f32.mrf.mxu1  ;;  %v778_v61 = vsel %vm11931_vm11, %v775_v54, %v777_v29  ;;  %vm7341_vm9 = vmand %vm7292_vm8, %vm11932_vm14  ;;  %s11640_s20 = smov 28   ;;  %v1379_v54 = vshrl.u32 %v7349_v53, 16  ;;  %v1383_v29 = vrot.slane %v1381_v22, 1 }
 0x141   : > { %v1146_v47 = vadd.f32 %v6825_v13, %v1145_v16  ;;  %v814_v51 = vpack.c.bf16 %v778_v61, %v776_v59  ;;  %v11934_v39 = vsel %vm7341_vm9, 4294967295, %v11933_v39  ;;  %vm11936_vm13 = vmmov %vm11930_vm3  ;;  %v1293_v25 = vsel %vm7341_vm9, %v1203_v50, 0.0 }
 0x142   : > { %v6075_v36 = vpop.f32.mrf.mxu1  ;;  %11935 = vst [vmem:[#allocation67_spill] sm:$0xff] %v11934_v39  ;;  %v781_v62 = vsel %vm11936_vm13, %v779_v11, %v780_v12  ;;  %vm11937_vm5 = vmmov %vm11929_vm4  ;;  %v7363_v17 = vpack.c.bf16 %v1293_v25, %v1293_v25  ;;  %v1511_v11 = vrot.slane %v7349_v53, 1  ;;  %v1384_v48 = vor.u32 %v1383_v29, %v1379_v54 }
 0x143   : > { %1723 = vrot.lane.b32.xlu0 %v1374_v40, %s11640_s20  ;;  %v1210_v43 = vmax.f32 %v1146_v47, 0.0  ;;  %6027 = vmatprep.mubr.msk.bf16.mxu0 %vm11937_vm5, %v814_v51  ;;  %vm11938_vm4 = vmmov %vm11930_vm3  ;;  %v503_v36 = vadd.s32 8, %v6805_v63  ;;  %v4954_v51 = vmax.f32 %v7159_v2, %v7232_v4  ;;  %vm11950_vm13 = vcmp.ge.s32.totalorder %v6812_v7, 0 }
 0x144   : > { %1613 = vrot.lane.b32.xlu1 %v1377_v41, %s11642_s24  ;;  %v1148_v52 = vpop.f32.mrf.mxu1  ;;  %v783_v21 = vsel %vm11938_vm4, %v780_v12, %v782_v38  ;;  %vm11940_vm3 = vmmov %vm11937_vm5  ;;  %v1512_v60 = vrot.slane %v7363_v17, 1  ;;  %v4992_v12 = vrot.slane %v7169_v20, 2  ;;  %v1386_v47 = vshll.u32 %v7363_v17, 16  ;;  %s11966_s24 = smov 4  }
 0x145   : > { %v1149_v31 = vadd.f32 %v6825_v13, %v1148_v52  ;;  %v815_v32 = vpack.c.bf16 %v783_v21, %v781_v62  ;;  %v1300_v40 = vsel %vm7014_vm2, %v1210_v43, 0.0  ;;  %v11942_v52 = vrot.slane %v7159_v2, 2 }
 0x146   : > { %v6076_v19 = vpop.f32.mrf.mxu1  ;;  %vm11943_vm2 = vcmask 1045504   ;;  %vm520_vm11 = vcmp.ge.s32.totalorder %v503_v36, 0  ;;  %vm530_vm14 = vcmp.lt.s32.totalorder %v503_v36, 16  ;;  %vm11957_vm4 = vcmask 1041408  }
 0x147   : > { %1568 = vrot.lane.b32.xlu0 %v7349_v53, %s11939_s23  ;;  %v1211_v33 = vmax.f32 %v1149_v31, 0.0  ;;  %6028 = vmatmul.mubr.msk.bf16.gmra.mxu0 %vm11940_vm3, %v815_v32  ;;  %v7397_v5 = vsel %vm11943_vm2, %v4992_v12, %v11942_v52  ;;  %v11945_v31 = vmax.f32 %v7162_v46, %v7169_v20  ;;  %v1205_v32 = vmax.f32 %v1125_v45, 0.0 }
 0x148   : > { %1725 = vrot.lane.b32.xlu1 %v1377_v41, %s11640_s20  ;;  %v7360_v24 = vpop.f32.mrf.mxu1  ;;  %11944 = vst [vmem:[#allocation68_spill] sm:$0xff] %v7397_v5  ;;  %v5042_v19 = vmax.f32 %v11946_v58, %v7397_v5  ;;  %v7416_v46 = vmax.f32 %v4954_v51, %v7239_v15  ;;  %v1130_v20 = vadd.f32 %v6825_v13, %v7252_v0  ;;  %s11954_s20 = smov 20   ;;  %v1390_v12 = vshrl.u32 %v7363_v17, 16 }
 0x149   : > { %v1301_v42 = vsel %vm6998_vm7, %v1211_v33, 0.0  ;;  %vm11941_vm7 = vcmask 1046528   ;;  %v5098_v21 = vmax.f32 %v11945_v31, %v7188_v55 }
 0x14a   : > { %v7368_v57 = vpack.c.bf16 %v1301_v42, %v1300_v40  ;;  %v6079_v35 = vpop.f32.mrf.mxu1  ;;  %v1513_v38 = vsel %vm11941_vm7, %v1511_v11, %v1512_v60  ;;  %v1388_v40 = vrot.slane %v1386_v47, 1  ;;  %v11949_v42 = vmax.f32 %v7143_v14, %v7159_v2  ;;  %vm11959_vm3 = vmmov %vm11941_vm7 }
 0x14b   : > { %1680 = vrot.lane.b32.xlu0 %v7349_v53, %s11638_s25  ;;  %v5130_v14 = vmax.f32 %v5098_v21, %v7397_v5  ;;  %v1294_v47 = vsel %vm6834_vm10, %v1204_v18, 0.0  ;;  %vm11960_vm10 = vmmov %vm11957_vm4  ;;  %v1206_v18 = vmax.f32 %v1130_v20, 0.0  ;;  %vm11962_vm7 = vcmp.lt.s32.totalorder %v6854_v23, 16  ;;  %v11986_v20 = vld [vmem:[#allocation13_spill] sm:$0xff]  ;;  %v12014_v5 = vld [vmem:[#allocation31_spill] sm:$0xff] }
 0x14c   : > { %1570 = vrot.lane.b32.xlu1 %v7363_v17, %s11939_s23  ;;  %v1156_v41 = vpop.f32.mrf.mxu1  ;;  %v5099_v35 = vmax.f32 %v11949_v42, %v7232_v4  ;;  %vm7490_vm2 = vmand %vm6816_vm6, %vm11962_vm7  ;;  %v1426_v55 = vshll.u32 %v7368_v57, 16 }
 0x14d   : > { %v1157_v56 = vadd.f32 %v6825_v13, %v1156_v41 }
 0x14e   : > { %v6080_v16 = vpop.f32.mrf.mxu1  ;;  %v5131_v36 = vmax.f32 %v5099_v35, %v7239_v15 }
 0x14f   : > { %1764 = vrot.lane.b32.xlu0 %v1512_v60, %s11644_s30  ;;  %v1213_v59 = vmax.f32 %v1157_v56, 0.0  ;;  %v4955_v16 = vmax.f32 %v7211_v3, %v7219_v28 }
 0x150   : > { %1682 = vrot.lane.b32.xlu1 %v7363_v17, %s11638_s25  ;;  %v1161_v61 = vpop.f32.mrf.mxu1  ;;  %s11977_s25 = smov 28  }
 0x151   : > { %v1162_v50 = vadd.f32 %v6825_v13, %v1161_v61  ;;  %v1303_v43 = vsel %vm7152_vm0, %v1213_v59, 0.0  ;;  %vm7411_vm0 = vmand %vm520_vm11, %vm530_vm14 }
 0x152   : > { %v6083_v62 = vpop.f32.mrf.mxu1  ;;  %vm7430_vm5 = vmand %vm7411_vm0, %vm11950_vm13  ;;  %v7437_v54 = vsel %vm7411_vm0, %v6646_v10, -inf  ;;  %v6304_v10 = vld [vmem:[%s11953_s5 + $0x10] ss:$0 sps:$4 sm:$0x33]   ;;  %vm11975_vm13 = vcmask 1045504  }
 0x153   : > { %1538 = vrot.lane.b32.xlu0 %v1513_v38, %s11636_s17  ;;  %v1214_v25 = vmax.f32 %v1162_v50, 0.0  ;;  %v7445_v1 = vsel %vm7430_vm5, %v6643_v9, -inf  ;;  %v5067_v56 = vmax.f32 %v7416_v46, %v7437_v54  ;;  %v5073_v11 = vrot.slane %v7437_v54, 1  ;;  %6209 = vmatprep.subr.msk.bf16.mxu0 %vm11957_vm4, %v6304_v10  ;;  %vm11967_vm11 = vmmov %vm11962_vm7 }
 0x154   : > { %1540 = vrot.lane.b32.xlu1 %v1512_v60, %s11636_s17  ;;  %v7409_v33 = vpop.f32.mrf.mxu1  ;;  %v5066_v59 = vmax.f32 %v5042_v19, %v7445_v1  ;;  %v5072_v9 = vrot.slane %v7445_v1, 1  ;;  %v7465_v51 = vmax.f32 %v5130_v14, %v7445_v1  ;;  %v1295_v62 = vsel %vm6816_vm6, %v1205_v32, 0.0  ;;  %v6305_v19 = vld [vmem:[%s11953_s5 + $0x8] sm:$0xff]   ;;  %vm7501_vm14 = vmand %vm7411_vm0, %vm11967_vm11  ;;  %s11993_s17 = smov 24  }
 0x155   : > { %v1304_v26 = vsel %vm7135_vm15, %v1214_v25, 0.0  ;;  %vm11956_vm15 = vsmask.f32 7424  ;;  %v7479_v21 = vmax.f32 %v5131_v36, %v7437_v54  ;;  %v11963_v32 = vmov 0  ;;  %vm11973_vm6 = vmmov %vm11959_vm3 }
 0x156   : > { %v7440_v29 = vpack.c.bf16 %v1304_v26, %v1303_v43  ;;  %v6084_v0 = vpop.f32.mrf.mxu1  ;;  %v1389_v61 = vsel %vm11956_vm15, %v1384_v48, %v1388_v40  ;;  %v7472_v31 = vsel %vm11959_vm3, %v5072_v9, %v5073_v11  ;;  %v11964_v32 = vsel %vm7490_vm2, 4294967295, %v11963_v32  ;;  %v11970_v26 = vld [vmem:[#allocation62_spill] sm:$0xff]  ;;  %v6314_v9 = vld [vmem:[%s6628_s16 + $0xe8] sm:$0xff] }
 0x157   : > { %1650 = vrot.lane.b32.xlu0 %v1513_v38, %s11954_s20  ;;  %v7476_v48 = vmax.f32 %v5066_v59, %v7472_v31  ;;  %11961 = vst [vmem:[#allocation20_spill] sm:$0xff] %v7479_v21  ;;  %v5189_v25 = vmax.f32 %v7465_v51, %v7472_v31  ;;  %11965 = vst [vmem:[#allocation18_spill] sm:$0xff] %v11964_v32  ;;  %v5105_v42 = vrot.slane %v7437_v54, 2  ;;  %v4839_v45 = vsel %vm7501_vm14, %v6314_v9, -inf }
 0x158   : > { %1652 = vrot.lane.b32.xlu1 %v1512_v60, %s11954_s20  ;;  %v1169_v50 = vpop.f32.mrf.mxu1  ;;  %v2227_v60 = vsel %vm11960_vm10, %v6304_v10, 0  ;;  %v5044_v14 = vmax.f32 %v4955_v16, %v11970_v26  ;;  %v11971_v0 = vmax.f32 %v7242_v37, %v7211_v3  ;;  %v1392_v54 = vor.u32 %v1390_v12, %v1388_v40  ;;  %v6306_v37 = vld [vmem:[%s11953_s5] sm:$0xff]   ;;  %s11672_s5 = smov 40  }
 0x159   : > { %v1170_v52 = vadd.f32 %v6825_v13, %v1169_v50  ;;  %6098 = vmatpush3.bf16.msra.mxu0 %v2227_v60  ;;  %v1296_v50 = vsel %vm7490_vm2, %v1206_v18, 0.0  ;;  %v5075_v51 = vrot.slane %v4839_v45, 1  ;;  %v7518_v43 = vrot.slane %v4839_v45, 2 }
 0x15a   : > { %v6087_v58 = vpop.f32.mrf.mxu1  ;;  %v5100_v10 = vmax.f32 %v11971_v0, %v7219_v28  ;;  %6099 = vmatprep.subr.bf16.mxu0 %v6305_v19  ;;  %v5068_v16 = vmax.f32 %v5044_v14, %v4839_v45  ;;  %v5104_v40 = vrot.slane %v7445_v1, 2  ;;  %v504_v0 = vadd.s32 9, %v6805_v63 }
 0x15b   : > { %1465 = vrot.lane.b32.xlu0 %v1389_v61, %s11966_s24  ;;  %v1216_v46 = vmax.f32 %v1170_v52, 0.0  ;;  %v7531_v31 = vsel %vm11973_vm6, %v5073_v11, %v5075_v51  ;;  %v7535_v18 = vsel %vm11975_vm13, %v5105_v42, %v7518_v43  ;;  %vm11983_vm3 = vcmp.ge.s32.totalorder %v6812_v7, 0 }
 0x15c   : > { %1762 = vrot.lane.b32.xlu1 %v1513_v38, %s11644_s30  ;;  %v1172_v35 = vpop.f32.mrf.mxu1  ;;  %v7510_v38 = vpack.c.bf16 %v1295_v62, %v1294_v47  ;;  %s11972_s30 = smov 16   ;;  %v5132_v47 = vmax.f32 %v5100_v10, %v11970_v26  ;;  %11974 = vst [vmem:[#allocation69_spill] sm:$0xff] %v7531_v31  ;;  %v5103_v60 = vmax.f32 %v5068_v16, %v5075_v51  ;;  %11976 = vst [vmem:[#allocation70_spill] sm:$0xff] %v7535_v18 }
 0x15d   : > { %v1173_v59 = vadd.f32 %v6825_v13, %v1172_v35  ;;  %6100 = vmatpush3.bf16.msra.mxu0 %v6305_v19  ;;  %v1306_v3 = vsel %vm7430_vm5, %v1216_v46, 0.0  ;;  %v5102_v58 = vmax.f32 %v5067_v56, %v7531_v31  ;;  %v7541_v46 = vpack.c.bf16 %v1296_v50, %v1296_v50 }
 0x15e   : > { %v6088_v36 = vpop.f32.mrf.mxu1  ;;  %v1514_v62 = vrot.slane %v7510_v38, 1  ;;  %6101 = vmatprep.subr.bf16.mxu0 %v6306_v37  ;;  %v5156_v19 = vmax.f32 %v5132_v47, %v4839_v45  ;;  %vm521_vm5 = vcmp.ge.s32.totalorder %v504_v0, 0  ;;  %vm531_vm15 = vcmp.lt.s32.totalorder %v504_v0, 16  ;;  %v11987_v47 = vld [vmem:[#allocation12_spill] sm:$0xff] }
 0x15f   : > { %1615 = vrot.lane.b32.xlu0 %v1389_v61, %s11972_s30  ;;  %v1217_v12 = vmax.f32 %v1173_v59, 0.0  ;;  %v5134_v10 = vmax.f32 %v5102_v58, %v7535_v18  ;;  %v1396_v63 = vshll.u32 %v7510_v38, 16  ;;  %vm7561_vm4 = vmand %vm521_vm5, %vm531_vm15  ;;  %v12009_v18 = vld [vmem:[#allocation45_spill] sm:$0xff] }
 0x160   : > { %1467 = vrot.lane.b32.xlu1 %v1392_v54, %s11966_s24  ;;  %v1177_v52 = vpop.f32.mrf.mxu1  ;;  %v5191_v59 = vmax.f32 %v5156_v19, %v5075_v51  ;;  %v7567_v51 = vrot.slane %v7541_v46, 1  ;;  %vm7575_vm10 = vmand %vm7561_vm4, %vm11983_vm3 }
 0x161   : > { %v1307_v41 = vsel %vm7411_vm0, %v1217_v12, 0.0  ;;  %v1178_v1 = vadd.f32 %v6825_v13, %v1177_v52  ;;  %6102 = vmatpush3.bf16.msra.mxu0 %v6306_v37  ;;  %vm11978_vm0 = vmmov %vm11975_vm13  ;;  %v4841_v37 = vsel %vm7561_vm4, %v11986_v20, -inf  ;;  %v4840_v52 = vsel %vm7575_vm10, %v11987_v47, -inf }
 0x162   : > { %v7543_v35 = vpack.c.bf16 %v1307_v41, %v1306_v3  ;;  %v6091_v14 = vpop.f32.mrf.mxu1  ;;  %v5106_v56 = vsel %vm11978_vm0, %v5104_v40, %v5105_v42  ;;  %v7559_v36 = vmax.f32 %v5191_v59, %v7518_v43  ;;  %v5135_v40 = vmax.f32 %v5103_v60, %v7518_v43  ;;  %vm7593_vm11 = vmand %vm7561_vm4, %vm11962_vm7  ;;  %v11990_v59 = vld [vmem:[#allocation14_spill] sm:$0xff] }
 0x163   : > { %1727 = vrot.lane.b32.xlu0 %v1389_v61, %s11977_s25  ;;  %v1218_v22 = vmax.f32 %v1178_v1, 0.0  ;;  %v5133_v45 = vmax.f32 %v7476_v48, %v5106_v56  ;;  %v7553_v50 = vmax.f32 %v5189_v25, %v5106_v56  ;;  %v5158_v41 = vmax.f32 %v5134_v10, %v4841_v37 }
 0x164   : > { %1617 = vrot.lane.b32.xlu1 %v1392_v54, %s11972_s30  ;;  %v1180_v9 = vpop.f32.mrf.mxu1  ;;  %11980 = vst [vmem:[#allocation72_spill] sm:$0xff] %v7559_v36  ;;  %v5164_v1 = vrot.slane %v4841_v37, 1  ;;  %v5163_v19 = vrot.slane %v4840_v52, 1  ;;  %v5195_v14 = vrot.slane %v4840_v52, 2  ;;  %v5196_v0 = vrot.slane %v4841_v37, 2 }
 0x165   : > { %11979 = vst [vmem:[#allocation71_spill] sm:$0xff] %v7553_v50  ;;  %v1308_v61 = vsel %vm7501_vm14, %v1218_v22, 0.0  ;;  %v1181_v42 = vadd.f32 %v6825_v13, %v1180_v9  ;;  %v5157_v58 = vmax.f32 %v5133_v45, %v4840_v52  ;;  %v1639_v56 = vrot.slane %v7543_v35, 1  ;;  %vm11991_vm14 = vmmov %vm11973_vm6 }
 0x166   : > { %v7569_v48 = vpack.c.bf16 %v1308_v61, %v1308_v61  ;;  %v6092_v3 = vpop.f32.mrf.mxu1  ;;  %v5165_v9 = vsel %vm11991_vm14, %v5163_v19, %v5164_v1  ;;  %vm11992_vm6 = vmmov %vm11978_vm0  ;;  %v1593_v19 = vshrl.u32 %v7543_v35, 16 }
 0x167   : > { %1572 = vrot.lane.b32.xlu0 %v7510_v38, %s11939_s23  ;;  %v1219_v12 = vmax.f32 %v1181_v42, 0.0  ;;  %v5197_v45 = vsel %vm11992_vm6, %v5195_v14, %v5196_v0  ;;  %v5192_v25 = vmax.f32 %v5157_v58, %v5165_v9  ;;  %vm11994_vm13 = vmmov %vm11991_vm14  ;;  %vm12010_vm14 = vnez %v12009_v18 }
 0x168   : > { %1729 = vrot.lane.b32.xlu1 %v1392_v54, %s11977_s25  ;;  %v1185_v22 = vpop.f32.mrf.mxu1  ;;  %v4842_v54 = vsel %vm7593_vm11, %v11990_v59, -inf  ;;  %vm11997_vm5 = vmmov %vm11994_vm13  ;;  %vm12012_vm6 = vcmask 31744  }
 0x169   : > { %v1309_v60 = vsel %vm7575_vm10, %v1219_v12, 0.0  ;;  %v1186_v10 = vadd.f32 %v6825_v13, %v1185_v22  ;;  %v5159_v42 = vmax.f32 %v5135_v40, %v4842_v54  ;;  %v5166_v20 = vrot.slane %v4842_v54, 1  ;;  %v7623_v22 = vld [vmem:[%s11810_s4] ss:$0 sm:$0xff]  ;;  %vm12000_vm15 = vmmov %vm11997_vm5  ;;  %s12068_s4 = sshll.u32 %s6436_s28, 3 }
 0x16a   : > { %v6095_v61 = vpop.f32.mrf.mxu1  ;;  %v5198_v3 = vrot.slane %v4842_v54, 2  ;;  %v7609_v13 = vrot.slane %v7569_v48, 1  ;;  %v1595_v40 = vshll.u32 %v7543_v35, 16  ;;  %v7616_v14 = vmax.f32 %v5192_v25, %v5197_v45  ;;  %vm12003_vm3 = vmmov %vm11997_vm5  ;;  %s608_s1 = sadd.s32 4294967294, %s12068_s4  ;;  %s11681_s4 = smov 48  }
 0x16b   : > { %1684 = vrot.lane.b32.xlu0 %v7510_v38, %s11993_s17  ;;  %v1220_v37 = vmax.f32 %v1186_v10, 0.0  ;;  %v5167_v47 = vsel %vm11994_vm13, %v5164_v1, %v5166_v20  ;;  %v5194_v52 = vmax.f32 %v5159_v42, %v5166_v20  ;;  %v1600_v25 = vshll.u32 %v7569_v48, 16 }
 0x16c   : > { %1574 = vrot.lane.b32.xlu1 %v7541_v46, %s11939_s23  ;;  %v1188_v12 = vpop.f32.mrf.mxu1  ;;  %11995 = vst [vmem:[#allocation13_spill] sm:$0xff] %v7616_v14  ;;  %v5193_v59 = vmax.f32 %v5158_v41, %v5167_v47  ;;  %v5199_v1 = vsel %vm11978_vm0, %v5196_v0, %v5198_v3  ;;  %v7633_v45 = vsel %vm11997_vm5, %v1639_v56, %v7609_v13  ;;  %v1597_v20 = vrot.slane %v1595_v40, 1 }
 0x16d   : > { %v1310_v58 = vsel %vm7561_vm4, %v1220_v37, 0.0  ;;  %v1189_v10 = vadd.f32 %v7623_v22, %v1188_v12  ;;  %v7629_v9 = vmax.f32 %v5194_v52, %v5198_v3  ;;  %v1394_v41 = vshrl.u32 %v7510_v38, 16 }
 0x16e   : > { %v7626_v54 = vpack.c.bf16 %v1310_v58, %v1309_v60  ;;  %v6096_v16 = vpop.f32.mrf.mxu1  ;;  %v7637_v42 = vmax.f32 %v5193_v59, %v5199_v1  ;;  %v1398_v0 = vrot.slane %v1396_v63, 1  ;;  %v1401_v60 = vshll.u32 %v7541_v46, 16 }
 0x16f   : > { %11996 = vst [vmem:[#allocation12_spill] sm:$0xff] %v7629_v9  ;;  %1768 = vrot.lane.b32.xlu0 %v7567_v51, %s11998_s3  ;;  %v1221_v61 = vmax.f32 %v1189_v10, 0.0  ;;  %v1598_v37 = vor.u32 %v1597_v20, %v1593_v19  ;;  %v1516_v47 = vsel %vm12000_vm15, %v1514_v62, %v7567_v51  ;;  %v7654_v63 = vrot.slane %v1600_v25, 1  ;;  %vm12015_vm15 = vmmov %vm12012_vm6 }
 0x170   : > { %11999 = vst [vmem:[#allocation14_spill] sm:$0xff] %v7637_v42  ;;  %1686 = vrot.lane.b32.xlu1 %v7541_v46, %s11993_s17  ;;  %v1709_v3 = vshrl.u32 %v7626_v54, 16  ;;  %v1711_v12 = vshll.u32 %v7626_v54, 16  ;;  %v1755_v40 = vrot.slane %v7626_v54, 1  ;;  %vm12002_vm4 = vsmask.f32 7424 }
 0x171   : > { %v1311_v56 = vsel %vm7593_vm11, %v1221_v61, 0.0  ;;  %v7662_v19 = vsel %vm12002_vm4, %v1598_v37, %v7654_v63  ;;  %v1399_v59 = vor.u32 %v1398_v0, %v1394_v41  ;;  %v1403_v1 = vrot.slane %v1401_v60, 1  ;;  %vm12004_vm10 = vmmov %vm12002_vm4 }
 0x172   : > { %v7652_v52 = vpack.c.bf16 %v1311_v56, %v1311_v56  ;;  %v1713_v43 = vrot.slane %v1711_v12, 1  ;;  %vm12005_vm7 = vmmov %vm12002_vm4  ;;  %v1405_v41 = vshrl.u32 %v7541_v46, 16  ;;  %v1141_v60 = vadd.f32 %v7623_v22, %v7302_v34 }
 0x173   : > { %1542 = vrot.lane.b32.xlu0 %v1516_v47, %s12001_s0  ;;  %v1404_v25 = vsel %vm12005_vm7, %v1399_v59, %v1403_v1  ;;  %vm12008_vm11 = vmmov %vm12002_vm4  ;;  %v1154_v31 = vadd.f32 %v7623_v22, %v7360_v24  ;;  %vm1822_vm13 = vcmask 64512   ;;  %vm11669_vm0 = vcmask 130048  }
 0x174   : > { %1544 = vrot.lane.b32.xlu1 %v7567_v51, %s12001_s0  ;;  %v11646_v58 = vrot.slane %v7652_v52, 1  ;;  %v1716_v62 = vshll.u32 %v7652_v52, 16  ;;  %v1714_v10 = vor.u32 %v1713_v43, %v1709_v3  ;;  %v1407_v56 = vor.u32 %v1405_v41, %v1403_v1 }
 0x175   : > { %v1209_v37 = vmax.f32 %v1141_v60, 0.0  ;;  %v1517_v41 = vrot.slane %v7319_v6, 1  ;;  %v1411_v60 = vshll.u32 %v7319_v6, 16  ;;  %v1212_v21 = vmax.f32 %v1154_v31, 0.0 }
 0x176   : > { %v7669_v16 = vsel %vm12003_vm3, %v1755_v40, %v11646_v58  ;;  %v7671_v61 = vrot.slane %v1716_v62, 1  ;;  %vm1855_vm4 = vcmask 97280   ;;  %vm11666_vm7 = vcmask 228352  }
 0x177   : > { %1654 = vrot.lane.b32.xlu0 %v1516_v47, %s11954_s20  ;;  %v1299_v40 = vsel %vm6993_vm1, %v1209_v37, 0.0  ;;  %vm12007_vm1 = vmmov %vm12003_vm3  ;;  %v1413_v11 = vrot.slane %v1411_v60, 1  ;;  %v1302_v28 = vsel %vm12010_vm14, %v1212_v21, 0.0  ;;  %v1520_v21 = vrot.slane %v7368_v57, 1 }
 0x178   : > { %1656 = vrot.lane.b32.xlu1 %v7567_v51, %s11954_s20  ;;  %v7678_v20 = vsel %vm12004_vm10, %v1714_v10, %v7671_v61  ;;  %v7705_v43 = vpack.c.bf16 %v1299_v40, %v1299_v40  ;;  %v1409_v40 = vshrl.u32 %v7319_v6, 16  ;;  %vm12013_vm5 = vmmov %vm12007_vm1  ;;  %vm11668_vm3 = vcmask 162816  }
 0x179   : > { %vm11667_vm10 = vcmask 195584   ;;  %vm2053_vm14 = vsmask.f32 6400 }
 0x17a   : > { %v1518_v1 = vrot.slane %v7705_v43, 1  ;;  %v1416_v30 = vshll.u32 %v7705_v43, 16  ;;  %v1414_v4 = vor.u32 %v1413_v11, %v1409_v40  ;;  %v1420_v36 = vshrl.u32 %v7705_v43, 16 }
 0x17b   : > { %1469 = vrot.lane.b32.xlu0 %v1404_v25, %s11966_s24 }
 0x17c   : > { %1766 = vrot.lane.b32.xlu1 %v1516_v47, %s11998_s3  ;;  %v7692_v3 = vpop.permute.xlu1 %1528  ;;  %v1519_v47 = vsel %vm12007_vm1, %v1517_v41, %v1518_v1  ;;  %v1418_v42 = vrot.slane %v1416_v30, 1  ;;  %vm11665_vm1 = vcmask 261120  }
 0x17d   : > { %v7684_v0 = vpop.permute.xlu0 %1526 }
 0x17e   : > { %v1419_v60 = vsel %vm12008_vm11, %v1414_v4, %v1418_v42  ;;  %v1422_v40 = vor.u32 %v1420_v36, %v1418_v42 }
 0x17f   : > { %1619 = vrot.lane.b32.xlu0 %v1404_v25, %s11972_s30 }
 0x180   : > { %1471 = vrot.lane.b32.xlu1 %v1407_v56, %s11966_s24 }
 0x181   : > { %v7690_v51 = vpop.permute.xlu0 %1453 }
 0x183   : > { %1731 = vrot.lane.b32.xlu0 %v1404_v25, %s11977_s25 }
 0x184   : > { %1621 = vrot.lane.b32.xlu1 %v1407_v56, %s11972_s30 }
 0x185   : > { %v7696_v12 = vpop.permute.xlu0 %1455 }
 0x186   : > { %v7700_v34 = vpop.permute.xlu1 %1562  ;;  %v1793_v9 = vsel %vm12015_vm15, %v12014_v5, %v7696_v12 }
 0x187   : > { %1576 = vrot.lane.b32.xlu0 %v7319_v6, %s11939_s23  ;;  %v1826_v5 = vsel %vm1822_vm13, %v1793_v9, %v7692_v3 }
 0x188   : > { %1733 = vrot.lane.b32.xlu1 %v1407_v56, %s11977_s25 }
 0x189   : > { %v7707_v62 = vpop.permute.xlu0 %1560 }
 0x18a   : > { %v7709_v10 = vpop.permute.xlu1 %1532 }
 0x18b   : > { %1688 = vrot.lane.b32.xlu0 %v7319_v6, %s11993_s17 }
 0x18c   : > { %1578 = vrot.lane.b32.xlu1 %v7705_v43, %s11939_s23 }
 0x18d   : > { %v7715_v59 = vpop.permute.xlu0 %1530 }
 0x18e   : > { %v7718_v25 = vpop.permute.xlu1 %1644 }
 0x18f   : > { %1772 = vrot.lane.b32.xlu0 %v1518_v1, %s11998_s3 }
 0x190   : > { %1690 = vrot.lane.b32.xlu1 %v7705_v43, %s11993_s17 }
 0x191   : > { %v7725_v56 = vpop.permute.xlu0 %1642 }
 0x192   : > { %v7727_v37 = vpop.permute.xlu1 %1457 }
 0x193   : > { %1546 = vrot.lane.b32.xlu0 %v1519_v47, %s12001_s0 }
 0x194   : > { %1548 = vrot.lane.b32.xlu1 %v1518_v1, %s12001_s0 }
 0x195   : > { %v1608_v58 = vpop.permute.xlu0 %1607 }
 0x196   : > { %v7734_v15 = vpop.permute.xlu1 %1459 }
 0x197   : > { %1658 = vrot.lane.b32.xlu0 %v1519_v47, %s11954_s20 }
 0x198   : > { %1660 = vrot.lane.b32.xlu1 %v1518_v1, %s11954_s20 }
 0x199   : > { %v7738_v2 = vpop.permute.xlu0 %1564 }
 0x19a   : > { %v1610_v41 = vpop.permute.xlu1 %1609 }
 0x19b   : > { %1473 = vrot.lane.b32.xlu0 %v1419_v60, %s11966_s24 }
 0x19c   : > { %1770 = vrot.lane.b32.xlu1 %v1519_v47, %s11998_s3  ;;  %v7758_v47 = vpack.c.bf16 %v1302_v28, %v1302_v28  ;;  %v12011_v28 = vld [vmem:[#allocation26_spill] sm:$0xff] }
 0x19d   : > { %v1677_v11 = vpop.permute.xlu0 %1676 }
 0x19e   : > { %v7746_v30 = vpop.permute.xlu1 %1566  ;;  %v1521_v18 = vrot.slane %v7758_v47, 1  ;;  %v1431_v50 = vshll.u32 %v7758_v47, 16 }
 0x19f   : > { %1623 = vrot.lane.b32.xlu0 %v1419_v60, %s11972_s30 }
 0x1a0   : > { %1475 = vrot.lane.b32.xlu1 %v1422_v40, %s11966_s24  ;;  %v1522_v26 = vsel %vm12013_vm5, %v1520_v21, %v1521_v18  ;;  %v1433_v39 = vrot.slane %v1431_v50, 1  ;;  %v1435_v50 = vshrl.u32 %v7758_v47, 16 }
 0x1a1   : > { %v7750_v1 = vpop.permute.xlu0 %1760 }
 0x1a2   : > { %v1679_v4 = vpop.permute.xlu1 %1678 }
 0x1a3   : > { %1735 = vrot.lane.b32.xlu0 %v1419_v60, %s11977_s25  ;;  %v1791_v60 = vsel %vm12012_vm6, %v12011_v28, %v7690_v51  ;;  %vm11664_vm6 = vcmask 293888  }
 0x1a4   : > { %1625 = vrot.lane.b32.xlu1 %v1422_v40, %s11972_s30  ;;  %v1824_v51 = vsel %vm1822_vm13, %v1791_v60, %v7684_v0  ;;  %v1424_v0 = vshrl.u32 %v7368_v57, 16  ;;  %v1428_v60 = vrot.slane %v1426_v55, 1 }
 0x1a5   : > { %v7756_v24 = vpop.permute.xlu0 %1534  ;;  %v1857_v28 = vsel %vm1855_vm4, %v1824_v51, %v7707_v62  ;;  %v1859_v62 = vsel %vm1855_vm4, %v1826_v5, %v7700_v34 }
 0x1a6   : > { %v7760_v36 = vpop.permute.xlu1 %1536  ;;  %v1890_v21 = vsel %vm11669_vm0, %v1857_v28, %v1608_v58  ;;  %v1892_v51 = vsel %vm11669_vm0, %v1859_v62, %v1610_v41  ;;  %v1429_v32 = vor.u32 %v1428_v60, %v1424_v0 }
 0x1a7   : > { %1580 = vrot.lane.b32.xlu0 %v7368_v57, %s11939_s23  ;;  %v1923_v58 = vsel %vm11668_vm3, %v1890_v21, %v7725_v56  ;;  %v1925_v34 = vsel %vm11668_vm3, %v1892_v51, %v7718_v25 }
 0x1a8   : > { %1737 = vrot.lane.b32.xlu1 %v1422_v40, %s11977_s25  ;;  %v1956_v9 = vsel %vm11667_vm10, %v1923_v58, %v1677_v11  ;;  %v1958_v41 = vsel %vm11667_vm10, %v1925_v34, %v1679_v4  ;;  %v1434_v58 = vsel %vm12008_vm11, %v1429_v32, %v1433_v39  ;;  %v12016_v34 = vld [vmem:[#allocation60_spill] sm:$0xff]  ;;  %vm12019_vm11 = vcmask 1046528  }
 0x1a9   : > { %v7765_v31 = vpop.permute.xlu0 %1646  ;;  %vm12017_vm5 = vnez %v12016_v34 }
 0x1aa   : > { %v7767_v42 = vpop.permute.xlu1 %1648 }
 0x1ab   : > { %1692 = vrot.lane.b32.xlu0 %v7368_v57, %s11993_s17 }
 0x1ac   : > { %1582 = vrot.lane.b32.xlu1 %v7758_v47, %s11939_s23 }
 0x1ad   : > { %v7778_v40 = vpop.permute.xlu0 %1461 }
 0x1ae   : > { %v1759_v27 = vpop.permute.xlu1 %1758 }
 0x1af   : > { %1550 = vrot.lane.b32.xlu0 %v1522_v26, %s12001_s0 }
 0x1b0   : > { %1694 = vrot.lane.b32.xlu1 %v7758_v47, %s11993_s17 }
 0x1b1   : > { %v7793_v14 = vpop.permute.xlu0 %1611 }
 0x1b2   : > { %v7797_v12 = vpop.permute.xlu1 %1463 }
 0x1b3   : > { %1662 = vrot.lane.b32.xlu0 %v1522_v26, %s11954_s20 }
 0x1b4   : > { %1552 = vrot.lane.b32.xlu1 %v1521_v18, %s12001_s0 }
 0x1b5   : > { %v1724_v3 = vpop.permute.xlu0 %1723 }
 0x1b6   : > { %v1989_v55 = vsel %vm11666_vm7, %v1956_v9, %v1724_v3  ;;  %v7810_v28 = vpop.permute.xlu1 %1613  ;;  %v1437_v9 = vor.u32 %v1435_v50, %v1433_v39 }
 0x1b7   : > { %v2022_v49 = vsel %vm11665_vm1, %v1989_v55, %v1759_v27  ;;  %1774 = vrot.lane.b32.xlu0 %v1522_v26, %s11998_s3  ;;  %v1165_v27 = vadd.f32 %v7623_v22, %v7409_v33 }
 0x1b8   : > { %1664 = vrot.lane.b32.xlu1 %v1521_v18, %s11954_s20  ;;  %v2054_v56 = vshrl.u32 %v2022_v49, 16  ;;  %v2057_v11 = vshll.u32 %v2022_v49, 16 }
 0x1b9   : > { %v7817_v21 = vpop.permute.xlu0 %1568  ;;  %v1215_v3 = vmax.f32 %v1165_v27, 0.0  ;;  %v1523_v27 = vrot.slane %v7440_v29, 1 }
 0x1ba   : > { %v1726_v5 = vpop.permute.xlu1 %1725  ;;  %v2056_v49 = vrot.slane %v2054_v56, 1  ;;  %v2059_v0 = vrot.slane %v2057_v11, 2 }
 0x1bb   : > { %v1991_v26 = vsel %vm11666_vm7, %v1958_v41, %v1726_v5  ;;  %1477 = vrot.lane.b32.xlu0 %v1434_v58, %s11966_s24  ;;  %v1305_v56 = vsel %vm12017_vm5, %v1215_v3, 0.0  ;;  %vm12021_vm5 = vmmov %vm12015_vm15 }
 0x1bc   : > { %v2024_v25 = vsel %vm11665_vm1, %v1991_v26, %v7750_v1  ;;  %1776 = vrot.lane.b32.xlu1 %v1521_v18, %s11998_s3  ;;  %v2060_v22 = vor.u32 %v2059_v0, %v2056_v49  ;;  %v7841_v41 = vpack.c.bf16 %v1305_v56, %v1305_v56 }
 0x1bd   : > { %v2061_v4 = vshrl.u32 %v2024_v25, 16  ;;  %v2064_v60 = vshll.u32 %v2024_v25, 16  ;;  %v1681_v62 = vpop.permute.xlu0 %1680  ;;  %v12018_v25 = vld [vmem:[#allocation36_spill] sm:$0xff] }
 0x1be   : > { %v7829_v32 = vpop.permute.xlu1 %1570  ;;  %v1524_v26 = vrot.slane %v7841_v41, 1  ;;  %v1795_v49 = vsel %vm12015_vm15, %v12018_v25, %v7727_v37  ;;  %v12020_v37 = vld [vmem:[#allocation38_spill] sm:$0xff]  ;;  %vm12022_vm15 = vsmask.f32 7424 }
 0x1bf   : > { %v2063_v51 = vrot.slane %v2061_v4, 1  ;;  %v2066_v33 = vrot.slane %v2064_v60, 2  ;;  %1627 = vrot.lane.b32.xlu0 %v1434_v58, %s11972_s30  ;;  %v1828_v3 = vsel %vm1822_vm13, %v1795_v49, %v7715_v59  ;;  %v1439_v59 = vshrl.u32 %v7440_v29, 16 }
 0x1c0   : > { %1479 = vrot.lane.b32.xlu1 %v1437_v9, %s11966_s24  ;;  %v1525_v60 = vsel %vm12019_vm11, %v1523_v27, %v1524_v26  ;;  %vm12024_vm11 = vmmov %vm12021_vm5 }
 0x1c1   : > { %v2067_v1 = vor.u32 %v2066_v33, %v2063_v51  ;;  %v1765_v55 = vpop.permute.xlu0 %1764  ;;  %v1861_v51 = vsel %vm1855_vm4, %v1828_v3, %v7738_v2  ;;  %v1797_v33 = vsel %vm12021_vm5, %v12020_v37, %v7734_v15 }
 0x1c2   : > { %v1683_v18 = vpop.permute.xlu1 %1682  ;;  %v1830_v2 = vsel %vm1822_vm13, %v1797_v33, %v7709_v10 }
 0x1c3   : > { %1739 = vrot.lane.b32.xlu0 %v1434_v58, %s11977_s25  ;;  %v2068_v39 = vsel %vm2053_vm14, %v2060_v22, %v2067_v1  ;;  %v1894_v22 = vsel %vm11669_vm0, %v1861_v51, %v7793_v14  ;;  %v1863_v14 = vsel %vm1855_vm4, %v1830_v2, %v7746_v30 }
 0x1c4   : > { %6103 = vmatprep.mubr.msk.bf16.mxu0 %vm11664_vm6, %v2068_v39  ;;  %1629 = vrot.lane.b32.xlu1 %v1437_v9, %s11972_s30  ;;  %v1446_v39 = vshll.u32 %v7841_v41, 16  ;;  %v1927_v15 = vsel %vm11668_vm3, %v1894_v22, %v7765_v31  ;;  %v1896_v49 = vsel %vm11669_vm0, %v1863_v14, %v7810_v28 }
 0x1c5   : > { %v7839_v11 = vpop.permute.xlu0 %1538  ;;  %v1960_v27 = vsel %vm11667_vm10, %v1927_v15, %v1681_v62  ;;  %v1929_v30 = vsel %vm11668_vm3, %v1896_v49, %v7767_v42 }
 0x1c6   : > { %v7843_v5 = vpop.permute.xlu1 %1540  ;;  %v1448_v10 = vrot.slane %v1446_v39, 1  ;;  %v1962_v28 = vsel %vm11667_vm10, %v1929_v30, %v1683_v18 }
 0x1c7   : > { %1584 = vrot.lane.b32.xlu0 %v7440_v29, %s11939_s23 }
 0x1c8   : > { %1741 = vrot.lane.b32.xlu1 %v1437_v9, %s11977_s25  ;;  %v1441_v9 = vshll.u32 %v7440_v29, 16 }
 0x1c9   : > { %v7848_v50 = vpop.permute.xlu0 %1650 }
 0x1ca   : > { %v7850_v58 = vpop.permute.xlu1 %1652  ;;  %v1443_v56 = vrot.slane %v1441_v9, 1 }
 0x1cb   : > { %1696 = vrot.lane.b32.xlu0 %v7440_v29, %s11993_s17 }
 0x1cc   : > { %1586 = vrot.lane.b32.xlu1 %v7841_v41, %s11939_s23  ;;  %v1444_v51 = vor.u32 %v1443_v56, %v1439_v59  ;;  %v1450_v59 = vshrl.u32 %v7841_v41, 16 }
 0x1cd   : > { %v7861_v0 = vpop.permute.xlu0 %1465 }
 0x1ce   : > { %v1763_v4 = vpop.permute.xlu1 %1762  ;;  %v1449_v2 = vsel %vm12022_vm15, %v1444_v51, %v1448_v10  ;;  %v1452_v18 = vor.u32 %v1450_v59, %v1448_v10  ;;  %vm12026_vm15 = vcmask 1041408  }
 0x1cf   : > { %1554 = vrot.lane.b32.xlu0 %v1525_v60, %s12001_s0 }
 0x1d0   : > { %1698 = vrot.lane.b32.xlu1 %v7841_v41, %s11993_s17 }
 0x1d1   : > { %v7877_v1 = vpop.permute.xlu0 %1615 }
 0x1d2   : > { %v7879_v34 = vpop.permute.xlu1 %1467 }
 0x1d3   : > { %1666 = vrot.lane.b32.xlu0 %v1525_v60, %s11954_s20 }
 0x1d4   : > { %1556 = vrot.lane.b32.xlu1 %v1524_v26, %s12001_s0 }
 0x1d5   : > { %v1728_v25 = vpop.permute.xlu0 %1727 }
 0x1d6   : > { %v1993_v9 = vsel %vm11666_vm7, %v1960_v27, %v1728_v25  ;;  %v7895_v3 = vpop.permute.xlu1 %1617 }
 0x1d7   : > { %v2026_v37 = vsel %vm11665_vm1, %v1993_v9, %v1763_v4  ;;  %1778 = vrot.lane.b32.xlu0 %v1525_v60, %s11998_s3 }
 0x1d8   : > { %1668 = vrot.lane.b32.xlu1 %v1524_v26, %s11954_s20  ;;  %v2069_v31 = vshrl.u32 %v2026_v37, 16  ;;  %v2072_v62 = vshll.u32 %v2026_v37, 16 }
 0x1d9   : > { %v7902_v33 = vpop.permute.xlu0 %1572 }
 0x1da   : > { %v1730_v22 = vpop.permute.xlu1 %1729  ;;  %v2071_v42 = vrot.slane %v2069_v31, 1  ;;  %v2074_v56 = vrot.slane %v2072_v62, 2 }
 0x1db   : > { %v1995_v4 = vsel %vm11666_vm7, %v1962_v28, %v1730_v22  ;;  %1481 = vrot.lane.b32.xlu0 %v1449_v2, %s11966_s24  ;;  %v12023_v28 = vld [vmem:[#allocation57_spill] sm:$0xff] }
 0x1dc   : > { %v2028_v60 = vsel %vm11665_vm1, %v1995_v4, %v1765_v55  ;;  %1780 = vrot.lane.b32.xlu1 %v1524_v26, %s11998_s3  ;;  %v2075_v9 = vor.u32 %v2074_v56, %v2071_v42  ;;  %v1799_v22 = vsel %vm12024_vm11, %v12023_v28, %v7778_v40  ;;  %vm12027_vm11 = vmmov %vm12026_vm15 }
 0x1dd   : > { %v2076_v39 = vshrl.u32 %v2028_v60, 16  ;;  %v2079_v15 = vshll.u32 %v2028_v60, 16  ;;  %v1685_v14 = vpop.permute.xlu0 %1684  ;;  %v1832_v4 = vsel %vm1822_vm13, %v1799_v22, %v7756_v24 }
 0x1de   : > { %v7911_v27 = vpop.permute.xlu1 %1574  ;;  %v1865_v60 = vsel %vm1855_vm4, %v1832_v4, %v7817_v21 }
 0x1df   : > { %v2078_v25 = vrot.slane %v2076_v39, 1  ;;  %v2081_v49 = vrot.slane %v2079_v15, 2  ;;  %1631 = vrot.lane.b32.xlu0 %v1449_v2, %s11972_s30  ;;  %v1898_v40 = vsel %vm11669_vm0, %v1865_v60, %v7877_v1 }
 0x1e0   : > { %1483 = vrot.lane.b32.xlu1 %v1452_v18, %s11966_s24  ;;  %v1931_v21 = vsel %vm11668_vm3, %v1898_v40, %v7848_v50 }
 0x1e1   : > { %v2082_v51 = vor.u32 %v2081_v49, %v2078_v25  ;;  %v1769_v37 = vpop.permute.xlu0 %1768  ;;  %v1964_v1 = vsel %vm11667_vm10, %v1931_v21, %v1685_v14 }
 0x1e2   : > { %v1687_v55 = vpop.permute.xlu1 %1686 }
 0x1e3   : > { %1743 = vrot.lane.b32.xlu0 %v1449_v2, %s11977_s25  ;;  %v2083_v26 = vsel %vm2053_vm14, %v2075_v9, %v2082_v51 }
 0x1e4   : > { %6104 = vmatmul.mubr.msk.bf16.vlgmr.msra.gmra.mxu0 %vm11664_vm6, %v2083_v26  ;;  %1633 = vrot.lane.b32.xlu1 %v1452_v18, %s11972_s30 }
 0x1e5   : > { %v7919_v30 = vpop.permute.xlu0 %1542 }
 0x1e6   : > { %v7921_v10 = vpop.permute.xlu1 %1544 }
 0x1e7   : > { %1588 = vrot.lane.b32.xlu0 %v7543_v35, %s11939_s23 }
 0x1e8   : > { %1745 = vrot.lane.b32.xlu1 %v1452_v18, %s11977_s25  ;;  %v1604_v18 = vshrl.u32 %v7569_v48, 16 }
 0x1e9   : > { %v7926_v31 = vpop.permute.xlu0 %1654 }
 0x1ea   : > { %v7928_v62 = vpop.permute.xlu1 %1656 }
 0x1eb   : > { %1700 = vrot.lane.b32.xlu0 %v7543_v35, %s11993_s17  ;;  %v1801_v35 = vsel %vm12021_vm5, %v7190_v8, %v7797_v12  ;;  %v2360_v8 = vld [vmem:[%s12025_s7] sm:$0x3]  ;;  %s11670_s7 = smov 36  }
 0x1ec   : > { %1590 = vrot.lane.b32.xlu1 %v7569_v48, %s11939_s23  ;;  %v1834_v24 = vsel %vm1822_vm13, %v1801_v35, %v7760_v36  ;;  %6210 = vmatprep.subr.msk.bf16.mxu0 %vm12026_vm15, %v2360_v8  ;;  %vm12029_vm15 = vmmov %vm12021_vm5 }
 0x1ed   : > { %v7937_v2 = vpop.permute.xlu0 %1469  ;;  %v1867_v12 = vsel %vm1855_vm4, %v1834_v24, %v7829_v32 }
 0x1ee   : > { %v1767_v59 = vpop.permute.xlu1 %1766  ;;  %v1900_v36 = vsel %vm11669_vm0, %v1867_v12, %v7895_v3  ;;  %v12028_v12 = vrot.slane %v7652_v52, 1 }
 0x1ef   : > { %1670 = vrot.lane.b32.xlu0 %v7633_v45, %s11954_s20  ;;  %v1933_v32 = vsel %vm11668_vm3, %v1900_v36, %v7850_v58 }
 0x1f0   : > { %1702 = vrot.lane.b32.xlu1 %v7569_v48, %s11993_s17  ;;  %v1966_v9 = vsel %vm11667_vm10, %v1933_v32, %v1687_v55  ;;  %v1606_v48 = vor.u32 %v1604_v18, %v7654_v63  ;;  %v1805_v18 = vsel %vm12029_vm15, %v7363_v17, %v7879_v34  ;;  %vm12031_vm15 = vmmov %vm12021_vm5 }
 0x1f1   : > { %v7952_v42 = vpop.permute.xlu0 %1619 }
 0x1f2   : > { %v7954_v56 = vpop.permute.xlu1 %1471 }
 0x1f3   : > { %1782 = vrot.lane.b32.xlu0 %v7633_v45, %s11998_s3  ;;  %v2423_v45 = vsel %vm12027_vm11, %v2360_v8, 0  ;;  %vm12030_vm11 = vmmov %vm12021_vm5 }
 0x1f4   : > { %1672 = vrot.lane.b32.xlu1 %v7609_v13, %s11954_s20  ;;  %6120 = vmatpush3.bf16.msra.mxu0 %v2423_v45  ;;  %v1803_v45 = vsel %vm12021_vm5, %v7349_v53, %v7861_v0  ;;  %v1838_v0 = vsel %vm1822_vm13, %v1805_v18, %v7843_v5 }
 0x1f5   : > { %v1732_v39 = vpop.permute.xlu0 %1731 }
 0x1f6   : > { %v1997_v50 = vsel %vm11666_vm7, %v1964_v1, %v1732_v39  ;;  %v1622_v15 = vpop.permute.xlu1 %1621 }
 0x1f7   : > { %v2030_v25 = vsel %vm11665_vm1, %v1997_v50, %v1767_v59  ;;  %1635 = vrot.lane.b32.xlu0 %v7662_v19, %s11972_s30 }
 0x1f8   : > { %1784 = vrot.lane.b32.xlu1 %v7609_v13, %s11998_s3  ;;  %v2084_v14 = vshrl.u32 %v2030_v25, 16  ;;  %v2087_v49 = vshll.u32 %v2030_v25, 16 }
 0x1f9   : > { %v7983_v3 = vpop.permute.xlu0 %1576 }
 0x1fa   : > { %v1734_v51 = vpop.permute.xlu1 %1733  ;;  %v2086_v13 = vrot.slane %v2084_v14, 1  ;;  %v2089_v58 = vrot.slane %v2087_v49, 2 }
 0x1fb   : > { %v1999_v26 = vsel %vm11666_vm7, %v1966_v9, %v1734_v51  ;;  %1747 = vrot.lane.b32.xlu0 %v7662_v19, %s11977_s25 }
 0x1fc   : > { %v2032_v28 = vsel %vm11665_vm1, %v1999_v26, %v1769_v37  ;;  %1637 = vrot.lane.b32.xlu1 %v1606_v48, %s11972_s30  ;;  %v2090_v63 = vor.u32 %v2089_v58, %v2086_v13 }
 0x1fd   : > { %v2091_v22 = vshrl.u32 %v2032_v28, 16  ;;  %v2094_v59 = vshll.u32 %v2032_v28, 16  ;;  %v1689_v4 = vpop.permute.xlu0 %1688 }
 0x1fe   : > { %v7992_v60 = vpop.permute.xlu1 %1578 }
 0x1ff   : > { %v2093_v55 = vrot.slane %v2091_v22, 1  ;;  %v2096_v35 = vrot.slane %v2094_v59, 2  ;;  %1704 = vrot.lane.b32.xlu0 %v7626_v54, %s11993_s17  ;;  %v1720_v54 = vshrl.u32 %v7652_v52, 16 }
 0x200   : > { %1749 = vrot.lane.b32.xlu1 %v1606_v48, %s11977_s25 }
 0x201   : > { %v2097_v19 = vor.u32 %v2096_v35, %v2093_v55  ;;  %v1773_v40 = vpop.permute.xlu0 %1772  ;;  %v1722_v39 = vor.u32 %v1720_v54, %v7671_v61 }
 0x202   : > { %v1691_v37 = vpop.permute.xlu1 %1690 }
 0x203   : > { %1786 = vrot.lane.b32.xlu0 %v7669_v16, %s11998_s3  ;;  %v2098_v24 = vsel %vm2053_vm14, %v2090_v63, %v2097_v19 }
 0x204   : > { %6107 = vmatprep.mubr.msk.bf16.mxu0 %vm11664_vm6, %v2098_v24  ;;  %1706 = vrot.lane.b32.xlu1 %v7652_v52, %s11993_s17 }
 0x205   : > { %v8003_v21 = vpop.permute.xlu0 %1546 }
 0x206   : > { %v8005_v8 = vpop.permute.xlu1 %1548 }
 0x207   : > { %1751 = vrot.lane.b32.xlu0 %v7678_v20, %s11977_s25  ;;  %v1836_v20 = vsel %vm1822_vm13, %v1803_v45, %v7839_v11  ;;  %v1871_v11 = vsel %vm1855_vm4, %v1838_v0, %v7911_v27  ;;  %v1807_v45 = vsel %vm12030_vm11, %v7510_v38, %v7937_v2  ;;  %vm12032_vm11 = vmmov %vm12021_vm5 }
 0x208   : > { %1788 = vrot.lane.b32.xlu1 %v12028_v12, %s11998_s3  ;;  %v1869_v52 = vsel %vm1855_vm4, %v1836_v20, %v7902_v33  ;;  %v1904_v17 = vsel %vm11669_vm0, %v1871_v11, %v1622_v15 }
 0x209   : > { %v1659_v16 = vpop.permute.xlu0 %1658  ;;  %v1902_v61 = vsel %vm11669_vm0, %v1869_v52, %v7952_v42  ;;  %v1937_v9 = vsel %vm11668_vm3, %v1904_v17, %v7928_v62  ;;  %v1840_v52 = vsel %vm1822_vm13, %v1807_v45, %v7919_v30 }
 0x20a   : > { %v8013_v1 = vpop.permute.xlu1 %1660  ;;  %v1935_v32 = vsel %vm11668_vm3, %v1902_v61, %v7926_v31  ;;  %v1970_v31 = vsel %vm11667_vm10, %v1937_v9, %v1691_v37  ;;  %v1873_v18 = vsel %vm1855_vm4, %v1840_v52, %v7983_v3  ;;  %v1809_v61 = vsel %vm12021_vm5, %v7541_v46, %v7954_v56 }
 0x20b   : > { %v1968_v33 = vsel %vm11667_vm10, %v1935_v32, %v1689_v4  ;;  %v1842_v38 = vsel %vm1822_vm13, %v1809_v61, %v7921_v10 }
 0x20c   : > { %1753 = vrot.lane.b32.xlu1 %v1722_v39, %s11977_s25  ;;  %v1875_v30 = vsel %vm1855_vm4, %v1842_v38, %v7992_v60 }
 0x20d   : > { %v8020_v36 = vpop.permute.xlu0 %1473 }
 0x20e   : > { %v1771_v50 = vpop.permute.xlu1 %1770 }
 0x211   : > { %v1624_v25 = vpop.permute.xlu0 %1623 }
 0x212   : > { %v8031_v53 = vpop.permute.xlu1 %1475  ;;  %v1906_v0 = vsel %vm11669_vm0, %v1873_v18, %v1624_v25 }
 0x213   : > { %v1939_v2 = vsel %vm11668_vm3, %v1906_v0, %v1659_v16  ;;  %v1813_v18 = vsel %vm12032_vm11, %v7705_v43, %v8031_v53  ;;  %vm12034_vm11 = vmmov %vm12021_vm5 }
 0x215   : > { %v1736_v14 = vpop.permute.xlu0 %1735 }
 0x216   : > { %v2001_v34 = vsel %vm11666_vm7, %v1968_v33, %v1736_v14  ;;  %v1626_v42 = vpop.permute.xlu1 %1625 }
 0x217   : > { %v2034_v49 = vsel %vm11665_vm1, %v2001_v34, %v1771_v50  ;;  %v1908_v14 = vsel %vm11669_vm0, %v1875_v30, %v1626_v42 }
 0x218   : > { %v2099_v5 = vshrl.u32 %v2034_v49, 16  ;;  %v2102_v51 = vshll.u32 %v2034_v49, 16  ;;  %v1941_v17 = vsel %vm11668_vm3, %v1908_v14, %v8013_v1 }
 0x219   : > { %v8045_v48 = vpop.permute.xlu0 %1580 }
 0x21a   : > { %v1738_v27 = vpop.permute.xlu1 %1737  ;;  %v2101_v15 = vrot.slane %v2099_v5, 1  ;;  %v2104_v13 = vrot.slane %v2102_v51, 2 }
 0x21b   : > { %v2003_v26 = vsel %vm11666_vm7, %v1970_v31, %v1738_v27 }
 0x21c   : > { %v2036_v28 = vsel %vm11665_vm1, %v2003_v26, %v1773_v40  ;;  %v2105_v35 = vor.u32 %v2104_v13, %v2101_v15 }
 0x21d   : > { %v2106_v58 = vshrl.u32 %v2036_v28, 16  ;;  %v2109_v22 = vshll.u32 %v2036_v28, 16  ;;  %v1693_v59 = vpop.permute.xlu0 %1692 }
 0x21e   : > { %v8050_v4 = vpop.permute.xlu1 %1582  ;;  %v1972_v33 = vsel %vm11667_vm10, %v1939_v2, %v1693_v59  ;;  %v1846_v2 = vsel %vm1822_vm13, %v1813_v18, %v8005_v8 }
 0x21f   : > { %v2108_v55 = vrot.slane %v2106_v58, 1  ;;  %v2111_v62 = vrot.slane %v2109_v22, 2 }
 0x221   : > { %v2112_v63 = vor.u32 %v2111_v62, %v2108_v55  ;;  %v8052_v19 = vpop.permute.xlu0 %1550 }
 0x222   : > { %v1695_v24 = vpop.permute.xlu1 %1694 }
 0x223   : > { %v2113_v37 = vsel %vm2053_vm14, %v2105_v35, %v2112_v63  ;;  %v1974_v16 = vsel %vm11667_vm10, %v1941_v17, %v1695_v24 }
 0x224   : > { %6108 = vmatmul.mubr.msk.bf16.gmra.mxu0 %vm11664_vm6, %v2113_v37  ;;  %v1811_v37 = vsel %vm12031_vm15, %v7319_v6, %v8020_v36  ;;  %v1879_v36 = vsel %vm1855_vm4, %v1846_v2, %v8050_v4  ;;  %vm12033_vm15 = vmmov %vm12021_vm5 }
 0x225   : > { %v1663_v54 = vpop.permute.xlu0 %1662 }
 0x226   : > { %v8056_v40 = vpop.permute.xlu1 %1552 }
 0x229   : > { %v1775_v12 = vpop.permute.xlu0 %1774 }
 0x22a   : > { %v8058_v39 = vpop.permute.xlu1 %1664 }
 0x22d   : > { %v8063_v50 = vpop.permute.xlu0 %1477 }
 0x22e   : > { %v1777_v20 = vpop.permute.xlu1 %1776 }
 0x231   : > { %v1628_v32 = vpop.permute.xlu0 %1627 }
 0x232   : > { %v8073_v11 = vpop.permute.xlu1 %1479 }
 0x235   : > { %v1740_v3 = vpop.permute.xlu0 %1739 }
 0x236   : > { %v2005_v46 = vsel %vm11666_vm7, %v1972_v33, %v1740_v3  ;;  %v1630_v56 = vpop.permute.xlu1 %1629 }
 0x237   : > { %v2038_v25 = vsel %vm11665_vm1, %v2005_v46, %v1775_v12 }
 0x238   : > { %v2114_v34 = vshrl.u32 %v2038_v25, 16  ;;  %v2117_v10 = vshll.u32 %v2038_v25, 16 }
 0x239   : > { %v8086_v49 = vpop.permute.xlu0 %1584 }
 0x23a   : > { %v1742_v60 = vpop.permute.xlu1 %1741  ;;  %v2116_v42 = vrot.slane %v2114_v34, 1  ;;  %v2119_v51 = vrot.slane %v2117_v10, 2 }
 0x23b   : > { %v2007_v9 = vsel %vm11666_vm7, %v1974_v16, %v1742_v60 }
 0x23c   : > { %v2040_v5 = vsel %vm11665_vm1, %v2007_v9, %v1777_v20  ;;  %v2120_v13 = vor.u32 %v2119_v51, %v2116_v42  ;;  %v1844_v20 = vsel %vm1822_vm13, %v1811_v37, %v8003_v21 }
 0x23d   : > { %v2121_v31 = vshrl.u32 %v2040_v5, 16  ;;  %v2124_v27 = vshll.u32 %v2040_v5, 16  ;;  %v1697_v26 = vpop.permute.xlu0 %1696  ;;  %v1877_v52 = vsel %vm1855_vm4, %v1844_v20, %v8045_v48  ;;  %v1912_v48 = vsel %vm11669_vm0, %v1879_v36, %v1630_v56 }
 0x23e   : > { %v8091_v28 = vpop.permute.xlu1 %1586  ;;  %v1910_v61 = vsel %vm11669_vm0, %v1877_v52, %v1628_v32  ;;  %v1945_v32 = vsel %vm11668_vm3, %v1912_v48, %v8058_v39 }
 0x23f   : > { %v2123_v15 = vrot.slane %v2121_v31, 1  ;;  %v2126_v1 = vrot.slane %v2124_v27, 2  ;;  %v1943_v6 = vsel %vm11668_vm3, %v1910_v61, %v1663_v54 }
 0x240   : > { %v1976_v21 = vsel %vm11667_vm10, %v1943_v6, %v1697_v26  ;;  %v1815_v26 = vsel %vm12021_vm5, %v7368_v57, %v8063_v50 }
 0x241   : > { %v2127_v58 = vor.u32 %v2126_v1, %v2123_v15  ;;  %v8093_v22 = vpop.permute.xlu0 %1554 }
 0x242   : > { %v1699_v59 = vpop.permute.xlu1 %1698 }
 0x243   : > { %v2128_v55 = vsel %vm2053_vm14, %v2120_v13, %v2127_v58  ;;  %v1978_v54 = vsel %vm11667_vm10, %v1945_v32, %v1699_v59  ;;  %v1848_v13 = vsel %vm1822_vm13, %v1815_v26, %v8052_v19  ;;  %v1817_v59 = vsel %vm12033_vm15, %v7758_v47, %v8073_v11  ;;  %vm12035_vm15 = vmmov %vm12021_vm5 }
 0x244   : > { %6111 = vmatprep.mubr.msk.bf16.mxu0 %vm11664_vm6, %v2128_v55  ;;  %v1881_v58 = vsel %vm1855_vm4, %v1848_v13, %v8086_v49  ;;  %v1850_v57 = vsel %vm1822_vm13, %v1817_v59, %v8056_v40  ;;  %v459_v13 = vld [vmem:[%s6628_s16 + $0x8] sm:$0xff] }
 0x245   : > { %v1667_v62 = vpop.permute.xlu0 %1666 }
 0x246   : > { %v8097_v35 = vpop.permute.xlu1 %1556 }
 0x249   : > { %v1779_v63 = vpop.permute.xlu0 %1778 }
 0x24a   : > { %v1669_v24 = vpop.permute.xlu1 %1668 }
 0x24d   : > { %v1482_v12 = vpop.permute.xlu0 %1481 }
 0x24e   : > { %v1781_v45 = vpop.permute.xlu1 %1780  ;;  %v1819_v11 = vsel %vm12034_vm11, %v7440_v29, %v1482_v12  ;;  %vm12036_vm11 = vmmov %vm12021_vm5 }
 0x251   : > { %v1632_v0 = vpop.permute.xlu0 %1631 }
 0x252   : > { %v1484_v38 = vpop.permute.xlu1 %1483  ;;  %v1914_v55 = vsel %vm11669_vm0, %v1881_v58, %v1632_v0 }
 0x253   : > { %v1947_v50 = vsel %vm11668_vm3, %v1914_v55, %v1667_v62  ;;  %v1821_v29 = vsel %vm12021_vm5, %v7841_v41, %v1484_v38 }
 0x255   : > { %v1744_v30 = vpop.permute.xlu0 %1743 }
 0x256   : > { %v2009_v33 = vsel %vm11666_vm7, %v1976_v21, %v1744_v30  ;;  %v1634_v43 = vpop.permute.xlu1 %1633 }
 0x257   : > { %v2042_v53 = vsel %vm11665_vm1, %v2009_v33, %v1779_v63 }
 0x258   : > { %v2129_v3 = vshrl.u32 %v2042_v53, 16  ;;  %v2132_v8 = vshll.u32 %v2042_v53, 16 }
 0x259   : > { %v1589_v14 = vpop.permute.xlu0 %1588 }
 0x25a   : > { %v1746_v46 = vpop.permute.xlu1 %1745  ;;  %v2131_v17 = vrot.slane %v2129_v3, 1  ;;  %v2134_v56 = vrot.slane %v2132_v8, 2  ;;  %v1854_v8 = vsel %vm1822_vm13, %v1821_v29, %v8097_v35  ;;  %v6328_v29 = vld [vmem:[%s6628_s16 + $0x78] sm:$0xff] }
 0x25b   : > { %v2011_v4 = vsel %vm11666_vm7, %v1978_v54, %v1746_v46 }
 0x25c   : > { %v2044_v25 = vsel %vm11665_vm1, %v2011_v4, %v1781_v45  ;;  %v2135_v42 = vor.u32 %v2134_v56, %v2131_v17  ;;  %v1883_v45 = vsel %vm1855_vm4, %v1850_v57, %v8091_v28  ;;  %v1852_v28 = vsel %vm1822_vm13, %v1819_v11, %v8093_v22  ;;  %v460_v57 = vld [vmem:[%s6628_s16 + $0x10] sm:$0xff] }
 0x25d   : > { %v2136_v34 = vshrl.u32 %v2044_v25, 16  ;;  %v2139_v10 = vshll.u32 %v2044_v25, 16  ;;  %v1701_v16 = vpop.permute.xlu0 %1700  ;;  %v1916_v49 = vsel %vm11669_vm0, %v1883_v45, %v1634_v43  ;;  %v1885_v36 = vsel %vm1855_vm4, %v1852_v28, %v1589_v14 }
 0x25e   : > { %v1591_v60 = vpop.permute.xlu1 %1590  ;;  %v1980_v19 = vsel %vm11667_vm10, %v1947_v50, %v1701_v16  ;;  %v1949_v40 = vsel %vm11668_vm3, %v1916_v49, %v1669_v24  ;;  %v6316_v50 = vld [vmem:[%s6628_s16 + $0x18] sm:$0xff] }
 0x25f   : > { %v2138_v9 = vrot.slane %v2136_v34, 1  ;;  %v2141_v5 = vrot.slane %v2139_v10, 2  ;;  %v1887_v54 = vsel %vm1855_vm4, %v1854_v8, %v1591_v60  ;;  %v2343_v45 = vpack.c.bf16 %v6316_v50, %v460_v57  ;;  %v6335_v8 = vld [vmem:[%s6628_s16 + $0xb0] sm:$0xff]  ;;  %v8275_v50 = vld [vmem:[%s11540_s8] ss:$0 sm:$0xff] }
 0x261   : > { %v2142_v39 = vor.u32 %v2141_v5, %v2138_v9  ;;  %v1671_v51 = vpop.permute.xlu0 %1670 }
 0x262   : > { %v1703_v31 = vpop.permute.xlu1 %1702 }
 0x263   : > { %v2143_v27 = vsel %vm2053_vm14, %v2135_v42, %v2142_v39  ;;  %v1982_v2 = vsel %vm11667_vm10, %v1949_v40, %v1703_v31  ;;  %v6322_v40 = vld [vmem:[%s6628_s16 + $0x48] sm:$0xff] }
 0x264   : > { %6112 = vmatmul.mubr.msk.bf16.gmra.mxu0 %vm11664_vm6, %v2143_v27 }
 0x265   : > { %v1783_v15 = vpop.permute.xlu0 %1782 }
 0x266   : > { %v1673_v1 = vpop.permute.xlu1 %1672 }
 0x269   : > { %v1636_v63 = vpop.permute.xlu0 %1635 }
 0x26a   : > { %v1785_v37 = vpop.permute.xlu1 %1784  ;;  %v1918_v12 = vsel %vm11669_vm0, %v1885_v36, %v1636_v63 }
 0x26b   : > { %v1951_v14 = vsel %vm11668_vm3, %v1918_v12, %v1671_v51 }
 0x26d   : > { %v1748_v20 = vpop.permute.xlu0 %1747 }
 0x26e   : > { %v2013_v52 = vsel %vm11666_vm7, %v1980_v19, %v1748_v20  ;;  %v1638_v47 = vpop.permute.xlu1 %1637  ;;  %v6317_v19 = vld [vmem:[%s6628_s16 + $0x20] sm:$0xff]  ;;  %v6318_v20 = vld [vmem:[%s6628_s16 + $0x28] sm:$0xff] }
 0x26f   : > { %v2046_v18 = vsel %vm11665_vm1, %v2013_v52, %v1783_v15  ;;  %v1920_v25 = vsel %vm11669_vm0, %v1887_v54, %v1638_v47  ;;  %v458_v15 = vld [vmem:[%s6628_s16] sm:$0xff]  ;;  %v2344_v49 = vpack.c.bf16 %v6318_v20, %v6317_v19  ;;  %v6319_v52 = vld [vmem:[%s6628_s16 + $0x30] sm:$0xff]  ;;  %v6320_v47 = vld [vmem:[%s6628_s16 + $0x38] sm:$0xff] }
 0x270   : > { %v2144_v61 = vshrl.u32 %v2046_v18, 16  ;;  %v2147_v62 = vshll.u32 %v2046_v18, 16  ;;  %v1953_v10 = vsel %vm11668_vm3, %v1920_v25, %v1673_v1  ;;  %v2342_v63 = vpack.c.bf16 %v459_v13, %v458_v15  ;;  %v6321_v18 = vld [vmem:[%s6628_s16 + $0x40] sm:$0xff] }
 0x271   : > { %v1705_v0 = vpop.permute.xlu0 %1704  ;;  %v2345_v11 = vpack.c.bf16 %v6320_v47, %v6319_v52  ;;  %vm12083_vm3 = vcmask 31744  }
 0x272   : > { %v1750_v6 = vpop.permute.xlu1 %1749  ;;  %v2146_v30 = vrot.slane %v2144_v61, 1  ;;  %v2149_v48 = vrot.slane %v2147_v62, 2  ;;  %v1984_v38 = vsel %vm11667_vm10, %v1951_v14, %v1705_v0  ;;  %v2346_v61 = vpack.c.bf16 %v6322_v40, %v6321_v18  ;;  %v6323_v62 = vld [vmem:[%s6628_s16 + $0x50] sm:$0xff]  ;;  %v6324_v0 = vld [vmem:[%s6628_s16 + $0x58] sm:$0xff] }
 0x273   : > { %v2015_v21 = vsel %vm11666_vm7, %v1982_v2, %v1750_v6  ;;  %v2347_v28 = vpack.c.bf16 %v6324_v0, %v6323_v62  ;;  %v6325_v2 = vld [vmem:[%s6628_s16 + $0x60] sm:$0xff]  ;;  %v6326_v6 = vld [vmem:[%s6628_s16 + $0x68] sm:$0xff]  ;;  %v6336_v14 = vld [vmem:[%s6628_s16 + $0xb8] sm:$0xff] }
 0x274   : > { %v2048_v24 = vsel %vm11665_vm1, %v2015_v21, %v1785_v37  ;;  %v2150_v41 = vor.u32 %v2149_v48, %v2146_v30  ;;  %v2348_v36 = vpack.c.bf16 %v6326_v6, %v6325_v2  ;;  %v6327_v21 = vld [vmem:[%s6628_s16 + $0x70] sm:$0xff]  ;;  %v6330_v30 = vld [vmem:[%s6628_s16 + $0x88] sm:$0xff]  ;;  %v2353_v54 = vpack.c.bf16 %v6336_v14, %v6335_v8 }
 0x275   : > { %v2151_v33 = vshrl.u32 %v2048_v24, 16  ;;  %v2154_v43 = vshll.u32 %v2048_v24, 16  ;;  %v1787_v53 = vpop.permute.xlu0 %1786  ;;  %v2349_v12 = vpack.c.bf16 %v6328_v29, %v6327_v21  ;;  %v6329_v24 = vld [vmem:[%s6628_s16 + $0x80] sm:$0xff] }
 0x276   : > { %v1707_v22 = vpop.permute.xlu1 %1706  ;;  %v2350_v48 = vpack.c.bf16 %v6330_v30, %v6329_v24 }
 0x277   : > { %v2153_v32 = vrot.slane %v2151_v33, 1  ;;  %v2156_v3 = vrot.slane %v2154_v43, 2  ;;  %v1986_v9 = vsel %vm11667_vm10, %v1953_v10, %v1707_v22  ;;  %v6331_v33 = vld [vmem:[%s6628_s16 + $0x90] sm:$0xff]  ;;  %v6332_v43 = vld [vmem:[%s6628_s16 + $0x98] sm:$0xff]  ;;  %v6333_v22 = vld [vmem:[%s6628_s16 + $0xa0] sm:$0xff] }
 0x279   : > { %v2157_v46 = vor.u32 %v2156_v3, %v2153_v32  ;;  %v1752_v4 = vpop.permute.xlu0 %1751  ;;  %v6334_v32 = vld [vmem:[%s6628_s16 + $0xa8] sm:$0xff] }
 0x27a   : > { %v2017_v17 = vsel %vm11666_vm7, %v1984_v38, %v1752_v4  ;;  %v1789_v56 = vpop.permute.xlu1 %1788  ;;  %v2352_v3 = vpack.c.bf16 %v6334_v32, %v6333_v22 }
 0x27b   : > { %v2050_v34 = vsel %vm11665_vm1, %v2017_v17, %v1787_v53  ;;  %v2158_v35 = vsel %vm2053_vm14, %v2150_v41, %v2157_v46  ;;  %v2351_v53 = vpack.c.bf16 %v6332_v43, %v6331_v33  ;;  %v8210_v41 = vpop.f32.mrf.mxu0 }
 0x27c   : > { %6115 = vmatprep.mubr.msk.bf16.mxu0 %vm11664_vm6, %v2158_v35  ;;  %v2159_v16 = vshrl.u32 %v2050_v34, 16  ;;  %v2162_v60 = vshll.u32 %v2050_v34, 16  ;;  %12045 = vst [vmem:[#allocation39_spill] sm:$0xff] %v8210_v41 }
 0x27d   : > { %v8212_v38 = vpop.f32.mrf.mxu0 }
 0x27e   : > { %v1754_v5 = vpop.permute.xlu1 %1753  ;;  %v2161_v51 = vrot.slane %v2159_v16, 1  ;;  %v2164_v31 = vrot.slane %v2162_v60, 2  ;;  %12046 = vst [vmem:[#allocation45_spill] sm:$0xff] %v8212_v38 }
 0x27f   : > { %v2019_v42 = vsel %vm11666_vm7, %v1986_v9, %v1754_v5  ;;  %v8214_v46 = vpop.f32.mrf.mxu0 }
 0x280   : > { %v2052_v39 = vsel %vm11665_vm1, %v2019_v42, %v1789_v56  ;;  %v2165_v59 = vor.u32 %v2164_v31, %v2161_v51  ;;  %vm12042_vm1 = vmmov %vm12021_vm5  ;;  %12047 = vst [vmem:[#allocation26_spill] sm:$0xff] %v8214_v46 }
 0x281   : > { %v2166_v27 = vshrl.u32 %v2052_v39, 16  ;;  %v2169_v26 = vshll.u32 %v2052_v39, 16  ;;  %v8216_v4 = vpop.f32.mrf.mxu0 }
 0x282   : > { %12048 = vst [vmem:[#allocation31_spill] sm:$0xff] %v8216_v4 }
 0x283   : > { %v2168_v1 = vrot.slane %v2166_v27, 1  ;;  %v2171_v58 = vrot.slane %v2169_v26, 2  ;;  %v8218_v25 = vpop.f32.mrf.mxu0 }
 0x284   : > { %12049 = vst [vmem:[#allocation60_spill] sm:$0xff] %v8218_v25 }
 0x285   : > { %v2172_v55 = vor.u32 %v2171_v58, %v2168_v1  ;;  %v8220_v17 = vpop.f32.mrf.mxu0 }
 0x286   : > { %12050 = vst [vmem:[#allocation36_spill] sm:$0xff] %v8220_v17 }
 0x287   : > { %v2173_v37 = vsel %vm2053_vm14, %v2165_v59, %v2172_v55  ;;  %v8222_v56 = vpop.f32.mrf.mxu0  ;;  %v8262_v55 = vstv %s608_s1  ;;  %s11676_s1 = smov 56  }
 0x288   : > { %6116 = vmatmul.mubr.msk.bf16.gmra.mxu0 %vm11664_vm6, %v2173_v37  ;;  %vm12038_vm6 = vmmov %vm12021_vm5  ;;  %12051 = vst [vmem:[#allocation38_spill] sm:$0xff] %v8222_v56  ;;  %v611_v29 = vadd.s32 2, %v8262_v55 }
 0x289   : > { %6121 = vmatprep.mubr.msk.bf16.mxu0 %vm12035_vm15, %v2342_v63  ;;  %vm12037_vm15 = vmmov %vm12021_vm5  ;;  %v8224_v34 = vpop.f32.mrf.mxu0 }
 0x28a   : > { %12052 = vst [vmem:[#allocation57_spill] sm:$0xff] %v8224_v34  ;;  %vm635_vm7 = vcmp.lt.s32.totalorder %v611_v29, 16 }
 0x28b   : > { %v8226_v35 = vpop.f32.mrf.mxu0 }
 0x28c   : > { %12053 = vst [vmem:[#allocation73_spill] sm:$0xff] %v8226_v35 }
 0x28d   : > { %v8228_v10 = vpop.f32.mrf.mxu0 }
 0x28e   : > { %12054 = vst [vmem:[#allocation74_spill] sm:$0xff] %v8228_v10 }
 0x28f   : > { %v8230_v16 = vpop.f32.mrf.mxu0 }
 0x290   : > { %6122 = vmatmul.mubr.msk.bf16.vlgmr.msra.gmra.mxu0 %vm12036_vm11, %v2343_v45  ;;  %vm12039_vm11 = vmmov %vm12021_vm5  ;;  %12055 = vst [vmem:[#allocation75_spill] sm:$0xff] %v8230_v16 }
 0x291   : > { %6125 = vmatprep.mubr.msk.bf16.mxu0 %vm12021_vm5, %v2344_v49  ;;  %v8232_v60 = vpop.f32.mrf.mxu0 }
 0x292   : > { %12056 = vst [vmem:[#allocation76_spill] sm:$0xff] %v8232_v60 }
 0x298   : > { %6126 = vmatmul.mubr.msk.bf16.gmra.mxu0 %vm12037_vm15, %v2345_v11  ;;  %vm12041_vm15 = vmmov %vm12021_vm5 }
 0x299   : > { %6129 = vmatprep.mubr.msk.bf16.mxu0 %vm12038_vm6, %v2346_v61  ;;  %vm12040_vm6 = vmmov %vm12021_vm5 }
 0x2a0   : > { %6130 = vmatmul.mubr.msk.bf16.gmra.mxu0 %vm12039_vm11, %v2347_v28  ;;  %vm12043_vm11 = vmmov %vm12042_vm1 }
 0x2a1   : > { %6133 = vmatprep.mubr.msk.bf16.mxu0 %vm12021_vm5, %v2348_v36  ;;  %vm12044_vm5 = vmmov %vm12042_vm1  ;;  %v610_v36 = vadd.s32 1, %v8262_v55 }
 0x2a4   : > { %v8234_v9 = vpop.f32.mrf.mxu0 }
 0x2a5   : > { %12057 = vst [vmem:[#allocation77_spill] sm:$0xff] %v8234_v9 }
 0x2a6   : > { %v8236_v5 = vpop.f32.mrf.mxu0 }
 0x2a7   : > { %12058 = vst [vmem:[#allocation78_spill] sm:$0xff] %v8236_v5 }
 0x2a8   : > { %6134 = vmatmul.mubr.msk.bf16.gmra.mxu0 %vm12040_vm6, %v2349_v12  ;;  %v8238_v42 = vpop.f32.mrf.mxu0  ;;  %vm633_vm6 = vcmp.lt.s32.totalorder %v8262_v55, 16 }
 0x2a9   : > { %6137 = vmatprep.mubr.msk.bf16.mxu0 %vm12041_vm15, %v2350_v48  ;;  %12059 = vst [vmem:[#allocation79_spill] sm:$0xff] %v8238_v42 }
 0x2aa   : > { %v8240_v39 = vpop.f32.mrf.mxu0 }
 0x2ab   : > { %12060 = vst [vmem:[#allocation80_spill] sm:$0xff] %v8240_v39 }
 0x2b0   : > { %6138 = vmatmul.mubr.msk.bf16.gmra.mxu0 %vm12042_vm1, %v2351_v53  ;;  %vm621_vm1 = vcmp.ge.s32.totalorder %v8262_v55, 0 }
 0x2b1   : > { %6141 = vmatprep.mubr.msk.bf16.mxu0 %vm12043_vm11, %v2352_v3  ;;  %vm8277_vm15 = vmand %vm621_vm1, %vm633_vm6  ;;  %vm12076_vm11 = vcmp.lt.s32.totalorder %v6854_v23, 16  ;;  %vm12078_vm1 = vcmp.ge.s32.totalorder %v6812_v7, 0 }
 0x2b2   : > { %vm657_vm6 = vmand %vm8277_vm15, %vm12078_vm1  ;;  %vm623_vm1 = vcmp.ge.s32.totalorder %v611_v29, 0 }
 0x2b3   : > { %vm8323_vm10 = vmand %vm623_vm1, %vm635_vm7  ;;  %vm12086_vm7 = vcmask 1045504  }
 0x2b8   : > { %6142 = vmatmul.mubr.msk.bf16.gmra.mxu0 %vm12044_vm5, %v2353_v54  ;;  %vm695_vm5 = vmand %vm8277_vm15, %vm12076_vm11  ;;  %vm622_vm11 = vcmp.ge.s32.totalorder %v610_v36, 0 }
 0x2e4   : > { %v8242_v51 = vpop.f32.mrf.mxu0 }
 0x2e5   : > { %12061 = vst [vmem:[#allocation81_spill] sm:$0xff] %v8242_v51 }
 0x2e6   : > { %v8244_v31 = vpop.f32.mrf.mxu0 }
 0x2e7   : > { %12062 = vst [vmem:[#allocation82_spill] sm:$0xff] %v8244_v31 }
 0x2e8   : > { %v8246_v27 = vpop.f32.mrf.mxu0 }
 0x2e9   : > { %12063 = vst [vmem:[#allocation83_spill] sm:$0xff] %v8246_v27 }
 0x2ea   : > { %v8248_v26 = vpop.f32.mrf.mxu0 }
 0x2eb   : > { %12064 = vst [vmem:[#allocation84_spill] sm:$0xff] %v8248_v26 }
 0x324   : > { %v8250_v15 = vpop.f32.mrf.mxu0 }
 0x325   : > { %12065 = vst [vmem:[#allocation85_spill] sm:$0xff] %v8250_v15 }
 0x326   : > { %v8252_v13 = vpop.f32.mrf.mxu0 }
 0x327   : > { %12066 = vst [vmem:[#allocation86_spill] sm:$0xff] %v8252_v13 }
 0x328   : > { %v8254_v1 = vpop.f32.mrf.mxu0 }
 0x329   : > { %12067 = vst [vmem:[#allocation87_spill] sm:$0xff] %v8254_v1 }
 0x32a   : > { %v8258_v58 = vpop.f32.mrf.mxu0 }
 0x32b   : > { %12069 = vst [vmem:[#allocation88_spill] sm:$0xff] %v8258_v58 }
 0x348   : > { %v8260_v59 = vpop.f32.mrf.mxu0 }
 0x349   : > { %12070 = vst [vmem:[#allocation89_spill] sm:$0xff] %v8260_v59 }
 0x34a   : > { %v8264_v63 = vpop.f32.mrf.mxu0 }
 0x34b   : > { %12071 = vst [vmem:[#allocation90_spill] sm:$0xff] %v8264_v63 }
 0x34c   : > { %v8266_v37 = vpop.f32.mrf.mxu0 }
 0x34d   : > { %12072 = vst [vmem:[#allocation91_spill] sm:$0xff] %v8266_v37 }
 0x34e   : > { %v8270_v57 = vpop.f32.mrf.mxu0 }
 0x34f   : > { %12073 = vst [vmem:[#allocation92_spill] sm:$0xff] %v8270_v57 }
 0x350   : > { %v6123_v19 = vpop.f32.mrf.mxu0 }
 0x351   : > { %v2468_v20 = vadd.f32 %v6123_v19, %v8275_v50 }
 0x352   : > { %v2459_v49 = vpop.f32.mrf.mxu0 }
 0x353   : > { %v2604_v52 = vmax.f32 %v2468_v20, 0.0  ;;  %v2460_v47 = vadd.f32 %v8275_v50, %v2459_v49 }
 0x354   : > { %v6124_v11 = vpop.f32.mrf.mxu0 }
 0x355   : > { %v2712_v18 = vsel %vm695_vm5, %v2604_v52, 0.0  ;;  %v2602_v62 = vmax.f32 %v2460_v47, 0.0  ;;  %vm634_vm5 = vcmp.lt.s32.totalorder %v610_v36, 16  ;;  %v2471_v3 = vadd.f32 %v6124_v11, %v8275_v50  ;;  %v6337_v52 = vld [vmem:[%s6628_s16 + $0xc0] sm:$0xff]  ;;  %v6338_v47 = vld [vmem:[%s6628_s16 + $0xc8] sm:$0xff] }
 0x356   : > { %v8287_v40 = vpack.c.bf16 %v2712_v18, %v2712_v18  ;;  %v2462_v61 = vpop.f32.mrf.mxu0  ;;  %v2354_v18 = vpack.c.bf16 %v6338_v47, %v6337_v52 }
 0x357   : > { %v2463_v0 = vadd.f32 %v8275_v50, %v2462_v61  ;;  %v2710_v30 = vsel %vm657_vm6, %v2602_v62, 0.0  ;;  %vm12080_vm6 = vcmask 1046528   ;;  %v2605_v36 = vmax.f32 %v2471_v3, 0.0 }
 0x358   : > { %12077 = vst [vmem:[#allocation93_spill] sm:$0xff] %v8287_v40  ;;  %v6127_v28 = vpop.f32.mrf.mxu0  ;;  %v2939_v2 = vrot.slane %v8287_v40, 1  ;;  %v2778_v6 = vshll.u32 %v8287_v40, 16  ;;  %v2782_v24 = vshrl.u32 %v8287_v40, 16  ;;  %v3084_v32 = vrot.slane %v8287_v40, 2  ;;  %6145 = vmatprep.mubr.msk.bf16.mxu0 %vm12083_vm3, %v2354_v18 }
 0x359   : > { %v2603_v21 = vmax.f32 %v2463_v0, 0.0  ;;  %v2484_v8 = vadd.f32 %v6127_v28, %v8275_v50 }
 0x35a   : > { %2964 = vrot.lane.b32.xlu1 %v2939_v2, %s12001_s0  ;;  %v2475_v12 = vpop.f32.mrf.mxu0  ;;  %v8302_v33 = vrot.slane %v2778_v6, 1  ;;  %v2997_v45 = vrot.slane %v2782_v24, 1  ;;  %v2998_v49 = vrot.slane %v2778_v6, 2 }
 0x35b   : > { %v2711_v48 = vsel %vm8277_vm15, %v2603_v21, 0.0  ;;  %v2476_v53 = vadd.f32 %v8275_v50, %v2475_v12  ;;  %vm646_vm15 = vmand %vm622_vm11, %vm634_vm5  ;;  %vm12084_vm11 = vcmp.lt.s32.totalorder %v6854_v23, 16 }
 0x35c   : > { %v8304_v43 = vpack.c.bf16 %v2711_v48, %v2710_v30  ;;  %v6128_v22 = vpop.f32.mrf.mxu0  ;;  %v2784_v20 = vor.u32 %v2782_v24, %v8302_v33  ;;  %vm698_vm5 = vmand %vm646_vm15, %vm12084_vm11  ;;  %v2999_v24 = vor.u32 %v2998_v49, %v2997_v45 }
 0x35d   : > { %v2606_v11 = vmax.f32 %v2476_v53, 0.0  ;;  %v2487_v61 = vadd.f32 %v6128_v22, %v8275_v50 }
 0x35e   : > { %12079 = vst [vmem:[#allocation94_spill] sm:$0xff] %v8304_v43  ;;  %3109 = vrot.lane.b32.xlu1 %v3084_v32, %s11972_s30  ;;  %v2478_v14 = vpop.f32.mrf.mxu0  ;;  %v2938_v54 = vrot.slane %v8304_v43, 1  ;;  %v3083_v0 = vrot.slane %v8304_v43, 2 }
 0x35f   : > { %v2479_v19 = vadd.f32 %v8275_v50, %v2478_v14  ;;  %v2714_v21 = vsel %vm646_vm15, %v2606_v11, 0.0  ;;  %v2609_v29 = vmax.f32 %v2487_v61, 0.0 }
 0x360   : > { %v2940_v62 = vsel %vm12080_vm6, %v2938_v54, %v2939_v2  ;;  %vm12085_vm6 = vcmp.ge.s32.totalorder %v6812_v7, 0  ;;  %v2608_v2 = vmax.f32 %v2484_v8, 0.0  ;;  %v3085_v12 = vsel %vm12086_vm7, %v3083_v0, %v3084_v32  ;;  %v8350_v14 = vpop.f32.mrf.mxu0 }
 0x361   : > { %v2607_v6 = vmax.f32 %v2479_v19, 0.0  ;;  %2962 = vrot.lane.b32.xlu0 %v2940_v62, %s12001_s0  ;;  %vm660_vm0 = vmand %vm646_vm15, %vm12085_vm6  ;;  %v2717_v3 = vsel %vm8323_vm10, %v2609_v29, 0.0  ;;  %v2773_v32 = vshll.u32 %v8304_v43, 16  ;;  %v2771_v19 = vshrl.u32 %v8304_v43, 16  ;;  %v6340_v29 = vld [vmem:[%s6628_s16 + $0xd8] sm:$0xff] }
 0x362   : > { %2892 = vrot.lane.b32.xlu1 %v2784_v20, %s11966_s24  ;;  %vm12087_vm1 = vmmov %vm12085_vm6  ;;  %v2713_v48 = vsel %vm660_vm0, %v2605_v36, 0.0  ;;  %v2491_v49 = vpop.f32.mrf.mxu0  ;;  %vm12091_vm0 = vsmask.f32 7424 }
 0x363   : > { %vm663_vm3 = vmand %vm8323_vm10, %vm12087_vm1  ;;  %v2715_v30 = vsel %vm698_vm5, %v2607_v6, 0.0  ;;  %v8341_v53 = vpack.c.bf16 %v2714_v21, %v2713_v48  ;;  %v2775_v20 = vrot.slane %v2773_v32, 1  ;;  %v2994_v18 = vrot.slane %v2771_v19, 1  ;;  %v6339_v21 = vld [vmem:[%s6628_s16 + $0xd0] sm:$0xff] }
 0x364   : > { %v2716_v22 = vsel %vm663_vm3, %v2608_v2, 0.0  ;;  %v8345_v8 = vpack.c.bf16 %v2715_v30, %v2715_v30  ;;  %v2995_v11 = vrot.slane %v2773_v32, 2  ;;  %v2492_v61 = vadd.f32 %v8275_v50, %v2491_v49  ;;  %vm12092_vm15 = vmmov %vm12084_vm11  ;;  %v6342_v30 = vld [vmem:[%s6628_s16 + $0xe8] sm:$0xff] }
 0x365   : > { %3107 = vrot.lane.b32.xlu0 %v3085_v12, %s11972_s30  ;;  %12088 = vst [vmem:[#allocation95_spill] sm:$0xff] %v8341_v53  ;;  %v8354_v54 = vpack.c.bf16 %v2717_v3, %v2716_v22  ;;  %v2776_v47 = vor.u32 %v2775_v20, %v2771_v19  ;;  %vm701_vm11 = vmand %vm8323_vm10, %vm12092_vm15  ;;  %v6341_v12 = vld [vmem:[%s6628_s16 + $0xe0] sm:$0xff]  ;;  %v2941_v28 = vrot.slane %v8341_v53, 1  ;;  %vm12093_vm10 = vcmask 31744   ;;  %v6343_v19 = vld [vmem:[%s6628_s16 + $0xf0] sm:$0xff] }
 0x366   : > { %3052 = vrot.lane.b32.xlu1 %v2999_v24, %s11939_s23  ;;  %12089 = vst [vmem:[#allocation96_spill] sm:$0xff] %v8345_v8  ;;  %v2942_v45 = vrot.slane %v8345_v8, 1  ;;  %v3087_v52 = vrot.slane %v8345_v8, 2  ;;  %v2996_v0 = vor.u32 %v2995_v11, %v2994_v18  ;;  %v2610_v6 = vmax.f32 %v2492_v61, 0.0  ;;  %vm12096_vm6 = vmmov %vm12093_vm10  ;;  %v6344_v20 = vld [vmem:[%s6628_s16 + $0xf8] sm:$0xff] }
 0x367   : > { %12090 = vst [vmem:[#allocation97_spill] sm:$0xff] %v8354_v54  ;;  %v2781_v62 = vsel %vm12091_vm0, %v2776_v47, %v8302_v33  ;;  %v2355_v33 = vpack.c.bf16 %v6340_v29, %v6339_v21  ;;  %v2356_v48 = vpack.c.bf16 %v6342_v30, %v6341_v12  ;;  %vm12095_vm5 = vcmask 1046528   ;;  %vm12097_vm1 = vmmov %vm12096_vm6 }
 0x368   : > { %v3000_v36 = vsel %vm2053_vm14, %v2996_v0, %v2999_v24  ;;  %v2718_v2 = vsel %vm701_vm11, %v2610_v6, 0.0  ;;  %v2943_v24 = vsel %vm12095_vm5, %v2941_v28, %v2942_v45  ;;  %v2793_v3 = vshll.u32 %v8345_v8, 16  ;;  %v6132_v0 = vpop.f32.mrf.mxu0 }
 0x369   : > { %3141 = vrot.lane.b32.xlu0 %v8341_v53, %s11954_s20  ;;  %6146 = vmatmul.mubr.msk.bf16.gmra.mxu0 %vm12093_vm10, %v2355_v33  ;;  %v8383_v22 = vpack.c.bf16 %v2718_v2, %v2718_v2  ;;  %v3086_v32 = vrot.slane %v8341_v53, 2  ;;  %v2357_v49 = vpack.c.bf16 %v6344_v20, %v6343_v19  ;;  %v2788_v11 = vshll.u32 %v8341_v53, 16 }
 0x36a   : > { %3143 = vrot.lane.b32.xlu1 %v8345_v8, %s11954_s20  ;;  %6149 = vmatprep.mubr.msk.bf16.mxu0 %vm12096_vm6, %v2356_v48  ;;  %v2795_v18 = vrot.slane %v2793_v3, 1  ;;  %v612_v61 = vadd.s32 3, %v8262_v55  ;;  %v3005_v21 = vrot.slane %v2793_v3, 2  ;;  %v2503_v29 = vadd.f32 %v6132_v0, %v8275_v50  ;;  %v6345_v0 = vld [vmem:[%s6628_s16 + $0x100] sm:$0xff] }
 0x36b   : > { %12094 = vst [vmem:[#allocation98_spill] sm:$0xff] %v8383_v22  ;;  %v3088_v47 = vsel %vm12086_vm7, %v3086_v32, %v3087_v52  ;;  %v2945_v6 = vrot.slane %v8383_v22, 1  ;;  %vm12100_vm11 = vsmask.f32 7424  ;;  %vm12101_vm10 = vcmp.lt.s32.totalorder %v6854_v23, 16 }
 0x36c   : > { %vm624_vm3 = vcmp.ge.s32.totalorder %v612_v61, 0  ;;  %vm636_vm0 = vcmp.lt.s32.totalorder %v612_v61, 16  ;;  %v2613_v28 = vmax.f32 %v2503_v29, 0.0  ;;  %v2944_v32 = vrot.slane %v8354_v54, 1 }
 0x36d   : > { %3145 = vrot.lane.b32.xlu0 %v8354_v54, %s11954_s20  ;;  %vm8409_vm15 = vmand %vm624_vm3, %vm636_vm0  ;;  %v3002_v20 = vrot.slane %v2788_v11, 2  ;;  %vm12102_vm6 = vcmask 1046528   ;;  %vm12104_vm0 = vcmp.ge.s32.totalorder %v6812_v7, 0 }
 0x36e   : > { %2968 = vrot.lane.b32.xlu1 %v2942_v45, %s12001_s0  ;;  %vm704_vm5 = vmand %vm8409_vm15, %vm12101_vm10 }
 0x36f   : > { %v2721_v3 = vsel %vm704_vm5, %v2613_v28, 0.0  ;;  %vm12103_vm3 = vmmov %vm12097_vm1 }
 0x371   : > { %3331 = vrot.lane.b32.xlu0 %v8354_v54, %s11672_s5  ;;  %6150 = vmatmul.mubr.msk.bf16.gmra.mxu0 %vm12097_vm1, %v2357_v49  ;;  %v8424_v49 = vpack.c.bf16 %v2721_v3, %v2721_v3 }
 0x372   : > { %3113 = vrot.lane.b32.xlu1 %v3087_v52, %s11972_s30 }
 0x373   : > { %v2948_v12 = vrot.slane %v8424_v49, 1  ;;  %v2827_v16 = vshrl.u32 %v8424_v49, 16  ;;  %v2823_v35 = vshll.u32 %v8424_v49, 16 }
 0x375   : > { %2890 = vrot.lane.b32.xlu0 %v2781_v62, %s11966_s24  ;;  %v3019_v46 = vrot.slane %v2823_v35, 2  ;;  %v3018_v41 = vrot.slane %v2827_v16, 1  ;;  %v2825_v10 = vrot.slane %v2823_v35, 1 }
 0x376   : > { %3225 = vrot.lane.b32.xlu1 %v2942_v45, %s11977_s25  ;;  %v2797_v45 = vshrl.u32 %v8345_v8, 16 }
 0x378   : > { %v2799_v62 = vor.u32 %v2797_v45, %v2795_v18  ;;  %v3004_v2 = vrot.slane %v2797_v45, 1 }
 0x379   : > { %3050 = vrot.lane.b32.xlu0 %v3000_v36, %s11939_s23  ;;  %v2786_v36 = vshrl.u32 %v8341_v53, 16 }
 0x37a   : > { %3299 = vrot.lane.b32.xlu1 %v3087_v52, %s11670_s7  ;;  %v2790_v52 = vrot.slane %v2788_v11, 1  ;;  %v3006_v48 = vor.u32 %v3005_v21, %v3004_v2  ;;  %v3089_v11 = vrot.slane %v8354_v54, 2  ;;  %v492_v2 = vld [vmem:[%s6628_s16 + $0x110] sm:$0xff]  ;;  %v493_v21 = vld [vmem:[%s6628_s16 + $0x118] sm:$0xff] }
 0x37b   : > { %v3001_v19 = vrot.slane %v2786_v36, 1  ;;  %v2359_v29 = vpack.c.bf16 %v493_v21, %v492_v2 }
 0x37c   : > { %v2791_v33 = vor.u32 %v2790_v52, %v2786_v36  ;;  %v491_v52 = vld [vmem:[%s6628_s16 + $0x108] sm:$0xff] }
 0x37d   : > { %2966 = vrot.lane.b32.xlu0 %v2943_v24, %s12001_s0  ;;  %v2358_v36 = vpack.c.bf16 %v491_v52, %v6345_v0  ;;  %v613_v52 = vadd.s32 4, %v8262_v55 }
 0x37e   : > { %3147 = vrot.lane.b32.xlu1 %v8383_v22, %s11954_s20  ;;  %v2796_v30 = vsel %vm12100_vm11, %v2791_v33, %v2795_v18  ;;  %v3003_v18 = vor.u32 %v3002_v20, %v3001_v19  ;;  %v2500_v33 = vadd.f32 %v8350_v14, %v8275_v50  ;;  %vm666_vm11 = vmand %vm8409_vm15, %vm12104_vm0  ;;  %v2808_v19 = vshll.u32 %v8383_v22, 16 }
 0x37f   : > { %6153 = vmatprep.mubr.msk.bf16.mxu0 %vm12097_vm1, %v2358_v36  ;;  %vm625_vm10 = vcmp.ge.s32.totalorder %v613_v52, 0  ;;  %vm637_vm5 = vcmp.lt.s32.totalorder %v613_v52, 16  ;;  %vm12110_vm1 = vcmp.lt.s32.totalorder %v6854_v23, 16  ;;  %vm12114_vm0 = vcmask 1045504  }
 0x380   : > { %v3007_v45 = vsel %vm2053_vm14, %v3003_v18, %v3006_v48  ;;  %6154 = vmatmul.mubr.msk.bf16.gmra.mxu0 %vm12103_vm3, %v2359_v29  ;;  %v2810_v18 = vrot.slane %v2808_v19, 1  ;;  %v3012_v0 = vrot.slane %v2808_v19, 2 }
 0x381   : > { %3111 = vrot.lane.b32.xlu0 %v3088_v47, %s11972_s30 }
 0x382   : > { %3333 = vrot.lane.b32.xlu1 %v8383_v22, %s11672_s5 }
 0x385   : > { %3223 = vrot.lane.b32.xlu0 %v2943_v24, %s11977_s25  ;;  %v3090_v24 = vrot.slane %v8383_v22, 2 }
 0x386   : > { %2896 = vrot.lane.b32.xlu1 %v2799_v62, %s11966_s24 }
 0x387   : > { %v3091_v61 = vsel %vm12086_vm7, %v3089_v11, %v3090_v24  ;;  %vm8494_vm7 = vmand %vm625_vm10, %vm637_vm5 }
 0x388   : > { %vm707_vm3 = vmand %vm8494_vm7, %vm12110_vm1 }
 0x389   : > { %3297 = vrot.lane.b32.xlu0 %v3088_v47, %s11670_s7  ;;  %v2946_v47 = vsel %vm12102_vm6, %v2944_v32, %v2945_v6  ;;  %vm12154_vm5 = vmmov %vm12102_vm6 }
 0x38a   : > { %2972 = vrot.lane.b32.xlu1 %v2945_v6, %s12001_s0 }
 0x38d   : > { %2894 = vrot.lane.b32.xlu0 %v2796_v30, %s11966_s24 }
 0x38e   : > { %3056 = vrot.lane.b32.xlu1 %v3006_v48, %s11939_s23 }
 0x391   : > { %3188 = vrot.lane.b32.xlu0 %v2796_v30, %s11993_s17 }
 0x392   : > { %3117 = vrot.lane.b32.xlu1 %v3090_v24, %s11972_s30 }
 0x395   : > { %2970 = vrot.lane.b32.xlu0 %v2946_v47, %s12001_s0 }
 0x396   : > { %3151 = vrot.lane.b32.xlu1 %v8424_v49, %s11954_s20 }
 0x399   : > { %3054 = vrot.lane.b32.xlu0 %v3007_v45, %s11939_s23 }
 0x39a   : > { %3190 = vrot.lane.b32.xlu1 %v2799_v62, %s11993_s17  ;;  %v2494_v62 = vpop.f32.mrf.mxu0 }
 0x39b   : > { %v2495_v30 = vadd.f32 %v8275_v50, %v2494_v62 }
 0x39c   : > { %v6135_v21 = vpop.f32.mrf.mxu0 }
 0x39d   : > { %3115 = vrot.lane.b32.xlu0 %v3091_v61, %s11972_s30  ;;  %v2611_v28 = vmax.f32 %v2495_v30, 0.0 }
 0x39e   : > { %3229 = vrot.lane.b32.xlu1 %v2945_v6, %s11977_s25 }
 0x39f   : > { %v2719_v3 = vsel %vm666_vm11, %v2611_v28, 0.0 }
 0x3a1   : > { %3227 = vrot.lane.b32.xlu0 %v2946_v47, %s11977_s25 }
 0x3a2   : > { %3264 = vrot.lane.b32.xlu1 %v3006_v48, %s11998_s3  ;;  %v2612_v48 = vmax.f32 %v2500_v33, 0.0  ;;  %v2516_v33 = vadd.f32 %v6135_v21, %v8275_v50 }
 0x3a4   : > { %v2720_v14 = vsel %vm8409_vm15, %v2612_v48, 0.0  ;;  %vm12105_vm15 = vsmask.f32 7424  ;;  %v2616_v19 = vmax.f32 %v2516_v33, 0.0 }
 0x3a5   : > { %3262 = vrot.lane.b32.xlu0 %v3007_v45, %s11998_s3  ;;  %v8463_v32 = vpack.c.bf16 %v2720_v14, %v2719_v3  ;;  %vm12132_vm11 = vmmov %vm12105_vm15 }
 0x3a6   : > { %3303 = vrot.lane.b32.xlu1 %v3090_v24, %s11670_s7 }
 0x3a7   : > { %v2947_v36 = vrot.slane %v8463_v32, 1 }
 0x3a9   : > { %3301 = vrot.lane.b32.xlu0 %v3091_v61, %s11670_s7  ;;  %s11674_s7 = smov 60   ;;  %v2949_v48 = vsel %vm12102_vm6, %v2947_v36, %v2948_v12  ;;  %vm12157_vm6 = vmmov %vm12114_vm0 }
 0x3aa   : > { %3337 = vrot.lane.b32.xlu1 %v8424_v49, %s11672_s5 }
 0x3ad   : > { %3413 = vrot.lane.b32.xlu0 %v2946_v47, %s11681_s4  ;;  %v3093_v47 = vrot.slane %v8424_v49, 2 }
 0x3ae   : > { %3415 = vrot.lane.b32.xlu1 %v2945_v6, %s11681_s4  ;;  %v2803_v6 = vshll.u32 %v8354_v54, 16 }
 0x3b0   : > { %v2805_v20 = vrot.slane %v2803_v6, 1  ;;  %v3009_v62 = vrot.slane %v2803_v6, 2 }
 0x3b1   : > { %3487 = vrot.lane.b32.xlu0 %v3091_v61, %s11676_s1  ;;  %v2812_v61 = vshrl.u32 %v8383_v22, 16 }
 0x3b2   : > { %3489 = vrot.lane.b32.xlu1 %v3090_v24, %s11676_s1  ;;  %v2801_v24 = vshrl.u32 %v8354_v54, 16 }
 0x3b3   : > { %v3011_v2 = vrot.slane %v2812_v61, 1 }
 0x3b4   : > { %v2806_v45 = vor.u32 %v2805_v20, %v2801_v24  ;;  %v3008_v29 = vrot.slane %v2801_v24, 1  ;;  %v2814_v24 = vor.u32 %v2812_v61, %v2810_v18  ;;  %v3092_v20 = vrot.slane %v8463_v32, 2 }
 0x3b5   : > { %3149 = vrot.lane.b32.xlu0 %v8463_v32, %s11954_s20  ;;  %v3013_v28 = vor.u32 %v3012_v0, %v3011_v2 }
 0x3b6   : > { %3523 = vrot.lane.b32.xlu1 %v8424_v49, %s11674_s7  ;;  %v2811_v11 = vsel %vm12105_vm15, %v2806_v45, %v2810_v18  ;;  %v3010_v3 = vor.u32 %v3009_v62, %v3008_v29  ;;  %v2724_v45 = vsel %vm707_vm3, %v2616_v19, 0.0  ;;  %v3094_v0 = vsel %vm12114_vm0, %v3092_v20, %v3093_v47 }
 0x3b7   : > { %v8516_v36 = vpack.c.bf16 %v2724_v45, %v2724_v45  ;;  %v2816_v20 = vshrl.u32 %v8463_v32, 16  ;;  %vm12142_vm15 = vcmp.ge.s32.totalorder %v6812_v7, 0 }
 0x3b8   : > { %vm669_vm10 = vmand %vm8494_vm7, %vm12142_vm15 }
 0x3b9   : > { %3335 = vrot.lane.b32.xlu0 %v8463_v32, %s11672_s5  ;;  %s12106_s5 = smov 36   ;;  %v3015_v56 = vrot.slane %v2816_v20, 1  ;;  %v8655_v54 = vshll.u32 %v8516_v36, 16  ;;  %vm12167_vm0 = vmmov %vm12142_vm15 }
 0x3ba   : > { %2976 = vrot.lane.b32.xlu1 %v2948_v12, %s12001_s0 }
 0x3bd   : > { %3521 = vrot.lane.b32.xlu0 %v8463_v32, %s11674_s7  ;;  %s11678_s7 = smov 44  }
 0x3be   : > { %3121 = vrot.lane.b32.xlu1 %v3093_v47, %s11972_s30 }
 0x3c1   : > { %2898 = vrot.lane.b32.xlu0 %v2811_v11, %s11966_s24 }
 0x3c2   : > { %3233 = vrot.lane.b32.xlu1 %v2948_v12, %s11977_s25 }
 0x3c5   : > { %3192 = vrot.lane.b32.xlu0 %v2811_v11, %s11993_s17 }
 0x3c6   : > { %3307 = vrot.lane.b32.xlu1 %v3093_v47, %s12106_s5 }
 0x3c9   : > { %3378 = vrot.lane.b32.xlu0 %v2811_v11, %s11678_s7  ;;  %s11689_s7 = smov 52  }
 0x3ca   : > { %3419 = vrot.lane.b32.xlu1 %v2948_v12, %s11681_s4  ;;  %v3014_v12 = vsel %vm2053_vm14, %v3010_v3, %v3013_v28  ;;  %v2818_v3 = vshll.u32 %v8463_v32, 16 }
 0x3cc   : > { %v8491_v30 = vpop.permute.xlu1 %2964  ;;  %v2820_v60 = vrot.slane %v2818_v3, 1  ;;  %v3016_v38 = vrot.slane %v2818_v3, 2 }
 0x3cd   : > { %12107 = vst [vmem:[#allocation99_spill] sm:$0xff] %v8491_v30  ;;  %2974 = vrot.lane.b32.xlu0 %v2949_v48, %s12001_s0 }
 0x3ce   : > { %3493 = vrot.lane.b32.xlu1 %v3093_v47, %s11676_s1  ;;  %s12123_s1 = smov 40   ;;  %v2821_v4 = vor.u32 %v2820_v60, %v2816_v20  ;;  %v3017_v34 = vor.u32 %v3016_v38, %v3015_v56  ;;  %v2507_v60 = vpop.f32.mrf.mxu0 }
 0x3d0   : > { %v8504_v6 = vpop.permute.xlu1 %3109 }
 0x3d1   : > { %12111 = vst [vmem:[#allocation100_spill] sm:$0xff] %v8504_v6  ;;  %3058 = vrot.lane.b32.xlu0 %v3014_v12, %s11939_s23 }
 0x3d2   : > { %2900 = vrot.lane.b32.xlu1 %v2814_v24, %s11966_s24 }
 0x3d3   : > { %v8510_v11 = vpop.permute.xlu0 %2962 }
 0x3d4   : > { %12112 = vst [vmem:[#allocation101_spill] sm:$0xff] %v8510_v11  ;;  %v8512_v52 = vpop.permute.xlu1 %2892 }
 0x3d5   : > { %12113 = vst [vmem:[#allocation102_spill] sm:$0xff] %v8512_v52  ;;  %3119 = vrot.lane.b32.xlu0 %v3094_v0, %s11972_s30 }
 0x3d6   : > { %3060 = vrot.lane.b32.xlu1 %v3013_v28, %s11939_s23 }
 0x3d7   : > { %v8519_v18 = vpop.permute.xlu0 %3107 }
 0x3d8   : > { %12115 = vst [vmem:[#allocation103_spill] sm:$0xff] %v8519_v18  ;;  %v8521_v61 = vpop.permute.xlu1 %3052 }
 0x3d9   : > { %12116 = vst [vmem:[#allocation104_spill] sm:$0xff] %v8521_v61  ;;  %3231 = vrot.lane.b32.xlu0 %v2949_v48, %s11977_s25 }
 0x3da   : > { %3155 = vrot.lane.b32.xlu1 %v8516_v36, %s11954_s20 }
 0x3db   : > { %v8526_v2 = vpop.permute.xlu0 %3141 }
 0x3dc   : > { %12117 = vst [vmem:[#allocation105_spill] sm:$0xff] %v8526_v2  ;;  %v8528_v21 = vpop.permute.xlu1 %3143 }
 0x3dd   : > { %12118 = vst [vmem:[#allocation106_spill] sm:$0xff] %v8528_v21  ;;  %3266 = vrot.lane.b32.xlu0 %v3014_v12, %s11998_s3 }
 0x3de   : > { %3194 = vrot.lane.b32.xlu1 %v2814_v24, %s11993_s17 }
 0x3df   : > { %v8532_v47 = vpop.permute.xlu0 %3145 }
 0x3e0   : > { %12119 = vst [vmem:[#allocation107_spill] sm:$0xff] %v8532_v47  ;;  %v8534_v29 = vpop.permute.xlu1 %2968 }
 0x3e1   : > { %12120 = vst [vmem:[#allocation108_spill] sm:$0xff] %v8534_v29  ;;  %3305 = vrot.lane.b32.xlu0 %v3094_v0, %s12106_s5 }
 0x3e2   : > { %3268 = vrot.lane.b32.xlu1 %v3013_v28, %s11998_s3 }
 0x3e3   : > { %v8538_v62 = vpop.permute.xlu0 %3331 }
 0x3e4   : > { %12121 = vst [vmem:[#allocation109_spill] sm:$0xff] %v8538_v62  ;;  %v8540_v33 = vpop.permute.xlu1 %3113  ;;  %v3020_v62 = vor.u32 %v3019_v46, %v3018_v41  ;;  %v2951_v46 = vrot.slane %v8516_v36, 1 }
 0x3e5   : > { %12122 = vst [vmem:[#allocation110_spill] sm:$0xff] %v8540_v33  ;;  %3417 = vrot.lane.b32.xlu0 %v2949_v48, %s11681_s4  ;;  %s12129_s4 = smov 56  }
 0x3e6   : > { %3341 = vrot.lane.b32.xlu1 %v8516_v36, %s12123_s1  ;;  %v3021_v35 = vsel %vm2053_vm14, %v3017_v34, %v3020_v62  ;;  %v2508_v34 = vadd.f32 %v8275_v50, %v2507_v60 }
 0x3e7   : > { %v8546_v19 = vpop.permute.xlu0 %2890 }
 0x3e8   : > { %12124 = vst [vmem:[#allocation111_spill] sm:$0xff] %v8546_v19  ;;  %v8549_v45 = vpop.permute.xlu1 %3225 }
 0x3e9   : > { %12125 = vst [vmem:[#allocation112_spill] sm:$0xff] %v8549_v45  ;;  %3452 = vrot.lane.b32.xlu0 %v3014_v12, %s11689_s7 }
 0x3ea   : > { %3380 = vrot.lane.b32.xlu1 %v2814_v24, %s12126_s19  ;;  %v2826_v24 = vsel %vm12132_vm11, %v2821_v4, %v2825_v10  ;;  %v6136_v4 = vpop.f32.mrf.mxu0 }
 0x3eb   : > { %v8555_v48 = vpop.permute.xlu0 %3050 }
 0x3ec   : > { %12127 = vst [vmem:[#allocation113_spill] sm:$0xff] %v8555_v48  ;;  %v8557_v25 = vpop.permute.xlu1 %3299  ;;  %v2510_v56 = vpop.f32.mrf.mxu0 }
 0x3ed   : > { %12128 = vst [vmem:[#allocation114_spill] sm:$0xff] %v8557_v25  ;;  %3491 = vrot.lane.b32.xlu0 %v3094_v0, %s12129_s4  ;;  %v2614_v25 = vmax.f32 %v2508_v34, 0.0 }
 0x3ee   : > { %3454 = vrot.lane.b32.xlu1 %v3013_v28, %s11689_s7  ;;  %v2829_v28 = vor.u32 %v2827_v16, %v2825_v10  ;;  %v2511_v10 = vadd.f32 %v8275_v50, %v2510_v56 }
 0x3ef   : > { %v8561_v17 = vpop.permute.xlu0 %2966  ;;  %v2722_v56 = vsel %vm669_vm10, %v2614_v25, 0.0 }
 0x3f0   : > { %12130 = vst [vmem:[#allocation115_spill] sm:$0xff] %v8561_v17  ;;  %v8563_v12 = vpop.permute.xlu1 %3147  ;;  %v2615_v47 = vmax.f32 %v2511_v10, 0.0 }
 0x3f1   : > { %12131 = vst [vmem:[#allocation116_spill] sm:$0xff] %v8563_v12  ;;  %2902 = vrot.lane.b32.xlu0 %v2826_v24, %s11966_s24 }
 0x3f2   : > { %3527 = vrot.lane.b32.xlu1 %v8516_v36, %s12133_s14  ;;  %v2723_v34 = vsel %vm8494_vm7, %v2615_v47, 0.0 }
 0x3f3   : > { %v8569_v3 = vpop.permute.xlu0 %3111 }
 0x3f4   : > { %12134 = vst [vmem:[#allocation117_spill] sm:$0xff] %v8569_v3  ;;  %v8571_v0 = vpop.permute.xlu1 %3333  ;;  %v3096_v3 = vrot.slane %v8516_v36, 2 }
 0x3f5   : > { %12135 = vst [vmem:[#allocation118_spill] sm:$0xff] %v8571_v0  ;;  %3062 = vrot.lane.b32.xlu0 %v3021_v35, %s11939_s23 }
 0x3f6   : > { %2904 = vrot.lane.b32.xlu1 %v2829_v28, %s11966_s24 }
 0x3f7   : > { %v8576_v38 = vpop.permute.xlu0 %3223 }
 0x3f8   : > { %12136 = vst [vmem:[#allocation119_spill] sm:$0xff] %v8576_v38  ;;  %v8578_v41 = vpop.permute.xlu1 %2896 }
 0x3f9   : > { %12137 = vst [vmem:[#allocation120_spill] sm:$0xff] %v8578_v41  ;;  %3196 = vrot.lane.b32.xlu0 %v2826_v24, %s11993_s17 }
 0x3fa   : > { %2980 = vrot.lane.b32.xlu1 %v2951_v46, %s12001_s0 }
 0x3fb   : > { %v8583_v20 = vpop.permute.xlu0 %3297 }
 0x3fc   : > { %12138 = vst [vmem:[#allocation121_spill] sm:$0xff] %v8583_v20  ;;  %v8587_v16 = vpop.permute.xlu1 %2972  ;;  %v8610_v20 = vpack.c.bf16 %v2723_v34, %v2722_v56 }
 0x3fd   : > { %12139 = vst [vmem:[#allocation122_spill] sm:$0xff] %v8587_v16  ;;  %3270 = vrot.lane.b32.xlu0 %v3021_v35, %s11998_s3 }
 0x3fe   : > { %3064 = vrot.lane.b32.xlu1 %v3020_v62, %s11939_s23  ;;  %12145 = vst [vmem:[#allocation127_spill] sm:$0xff] %v8610_v20 }
 0x3ff   : > { %v8591_v0 = vpop.permute.xlu0 %2894 }
 0x400   : > { %12140 = vst [vmem:[#allocation123_spill] sm:$0xff] %v8591_v0  ;;  %v8593_v45 = vpop.permute.xlu1 %3056  ;;  %v8886_v0 = vld [vmem:[%s11540_s8] ss:$0 sm:$0xff] }
 0x401   : > { %12141 = vst [vmem:[#allocation124_spill] sm:$0xff] %v8593_v45  ;;  %3382 = vrot.lane.b32.xlu0 %v2826_v24, %s12126_s19 }
 0x402   : > { %3125 = vrot.lane.b32.xlu1 %v3096_v3, %s11972_s30 }
 0x403   : > { %v8602_v60 = vpop.permute.xlu0 %3188 }
 0x404   : > { %12143 = vst [vmem:[#allocation125_spill] sm:$0xff] %v8602_v60  ;;  %v8606_v10 = vpop.permute.xlu1 %3117 }
 0x405   : > { %12144 = vst [vmem:[#allocation126_spill] sm:$0xff] %v8606_v10  ;;  %3456 = vrot.lane.b32.xlu0 %v3021_v35, %s11689_s7  ;;  %v2950_v35 = vrot.slane %v8610_v20, 1  ;;  %v3095_v10 = vrot.slane %v8610_v20, 2 }
 0x406   : > { %3198 = vrot.lane.b32.xlu1 %v2829_v28, %s11993_s17 }
 0x407   : > { %v8612_v38 = vpop.permute.xlu0 %2970 }
 0x408   : > { %12146 = vst [vmem:[#allocation128_spill] sm:$0xff] %v8612_v38  ;;  %v8614_v12 = vpop.permute.xlu1 %3151  ;;  %v3097_v38 = vsel %vm12157_vm6, %v3095_v10, %v3096_v3  ;;  %vm12176_vm6 = vmmov %vm12167_vm0 }
 0x409   : > { %12147 = vst [vmem:[#allocation129_spill] sm:$0xff] %v8614_v12  ;;  %3153 = vrot.lane.b32.xlu0 %v8610_v20, %s11954_s20  ;;  %v2952_v12 = vsel %vm12154_vm5, %v2950_v35, %v2951_v46 }
 0x40a   : > { %3237 = vrot.lane.b32.xlu1 %v2951_v46, %s11977_s25 }
 0x40b   : > { %v8619_v25 = vpop.permute.xlu0 %3054 }
 0x40c   : > { %12148 = vst [vmem:[#allocation130_spill] sm:$0xff] %v8619_v25  ;;  %v8621_v14 = vpop.permute.xlu1 %3190  ;;  %v3026_v25 = vrot.slane %v8655_v54, 2 }
 0x40d   : > { %12149 = vst [vmem:[#allocation131_spill] sm:$0xff] %v8621_v14  ;;  %3339 = vrot.lane.b32.xlu0 %v8610_v20, %s12123_s1 }
 0x40e   : > { %3272 = vrot.lane.b32.xlu1 %v3020_v62, %s11998_s3 }
 0x40f   : > { %v8626_v47 = vpop.permute.xlu0 %3115 }
 0x410   : > { %12150 = vst [vmem:[#allocation132_spill] sm:$0xff] %v8626_v47  ;;  %v8628_v24 = vpop.permute.xlu1 %3229 }
 0x411   : > { %12151 = vst [vmem:[#allocation133_spill] sm:$0xff] %v8628_v24  ;;  %3525 = vrot.lane.b32.xlu0 %v8610_v20, %s12133_s14 }
 0x412   : > { %3311 = vrot.lane.b32.xlu1 %v3096_v3, %s12106_s5 }
 0x413   : > { %v8634_v56 = vpop.permute.xlu0 %3227 }
 0x414   : > { %12152 = vst [vmem:[#allocation134_spill] sm:$0xff] %v8634_v56  ;;  %v8636_v34 = vpop.permute.xlu1 %3264  ;;  %v614_v56 = vadd.s32 5, %v8262_v55 }
 0x415   : > { %12153 = vst [vmem:[#allocation135_spill] sm:$0xff] %v8636_v34  ;;  %2978 = vrot.lane.b32.xlu0 %v2952_v12, %s12001_s0  ;;  %v6139_v34 = vpop.f32.mrf.mxu0 }
 0x416   : > { %3384 = vrot.lane.b32.xlu1 %v2829_v28, %s12126_s19  ;;  %vm626_vm7 = vcmp.ge.s32.totalorder %v614_v56, 0  ;;  %vm638_vm1 = vcmp.lt.s32.totalorder %v614_v56, 16  ;;  %v2519_v28 = vadd.f32 %v6136_v4, %v8275_v50 }
 0x417   : > { %v8642_v47 = vpop.permute.xlu0 %3262  ;;  %v2523_v10 = vpop.f32.mrf.mxu0  ;;  %vm8667_vm3 = vmand %vm626_vm7, %vm638_vm1  ;;  %vm12182_vm1 = vcmp.lt.s32.totalorder %v6854_v23, 16 }
 0x418   : > { %12155 = vst [vmem:[#allocation136_spill] sm:$0xff] %v8642_v47  ;;  %v8644_v24 = vpop.permute.xlu1 %3303  ;;  %v2617_v4 = vmax.f32 %v2519_v28, 0.0  ;;  %vm672_vm11 = vmand %vm8667_vm3, %vm12167_vm0 }
 0x419   : > { %12156 = vst [vmem:[#allocation137_spill] sm:$0xff] %v8644_v24  ;;  %3123 = vrot.lane.b32.xlu0 %v3097_v38, %s11972_s30  ;;  %v2524_v24 = vadd.f32 %v8275_v50, %v2523_v10  ;;  %v6140_v17 = vpop.f32.mrf.mxu0  ;;  %vm710_vm0 = vmand %vm8667_vm3, %vm12182_vm1 }
 0x41a   : > { %3458 = vrot.lane.b32.xlu1 %v3020_v62, %s11689_s7  ;;  %v2725_v28 = vsel %vm672_vm11, %v2617_v4, 0.0  ;;  %v2532_v4 = vadd.f32 %v6139_v34, %v8275_v50  ;;  %vm4100_vm11 = vsmask.f32 256 }
 0x41b   : > { %v8650_v35 = vpop.permute.xlu0 %3301 }
 0x41c   : > { %12158 = vst [vmem:[#allocation138_spill] sm:$0xff] %v8650_v35  ;;  %v8652_v16 = vpop.permute.xlu1 %3337  ;;  %v11685_v35 = vrot.slane %v8655_v54, 1 }
 0x41d   : > { %12159 = vst [vmem:[#allocation139_spill] sm:$0xff] %v8652_v16  ;;  %3235 = vrot.lane.b32.xlu0 %v2952_v12, %s11977_s25 }
 0x41e   : > { %3423 = vrot.lane.b32.xlu1 %v2951_v46, %s12160_s18  ;;  %v2842_v46 = vshrl.u32 %v8516_v36, 16 }
 0x41f   : > { %v8660_v62 = vpop.permute.xlu0 %3413 }
 0x420   : > { %12161 = vst [vmem:[#allocation140_spill] sm:$0xff] %v8660_v62  ;;  %v8663_v47 = vpop.permute.xlu1 %3415  ;;  %v2618_v62 = vmax.f32 %v2524_v24, 0.0  ;;  %v2844_v10 = vor.u32 %v2842_v46, %v11685_v35 }
 0x421   : > { %12162 = vst [vmem:[#allocation141_spill] sm:$0xff] %v8663_v47  ;;  %3309 = vrot.lane.b32.xlu0 %v3097_v38, %s12106_s5  ;;  %v3025_v47 = vrot.slane %v2842_v46, 1 }
 0x422   : > { %3497 = vrot.lane.b32.xlu1 %v3096_v3, %s12129_s4  ;;  %v615_v3 = vadd.s32 6, %v8262_v55  ;;  %v2726_v35 = vsel %vm8667_vm3, %v2618_v62, 0.0  ;;  %v2535_v62 = vadd.f32 %v6140_v17, %v8275_v50  ;;  %v2526_v17 = vpop.f32.mrf.mxu0  ;;  %vm12190_vm3 = vsmask.f32 7424 }
 0x423   : > { %v8673_v56 = vpop.permute.xlu0 %3487 }
 0x424   : > { %12165 = vst [vmem:[#allocation142_spill] sm:$0xff] %v8673_v56  ;;  %v8675_v14 = vpop.permute.xlu1 %3489  ;;  %v8693_v56 = vor.u32 %v3026_v25, %v3025_v47  ;;  %vm627_vm15 = vcmp.ge.s32.totalorder %v615_v3, 0  ;;  %vm639_vm10 = vcmp.lt.s32.totalorder %v615_v3, 16  ;;  %v2620_v47 = vmax.f32 %v2532_v4, 0.0 }
 0x425   : > { %12166 = vst [vmem:[#allocation143_spill] sm:$0xff] %v8675_v14  ;;  %3421 = vrot.lane.b32.xlu0 %v2952_v12, %s12160_s18  ;;  %v8698_v12 = vpack.c.bf16 %v2726_v35, %v2725_v28  ;;  %vm8708_vm5 = vmand %vm627_vm15, %vm639_vm10  ;;  %v2621_v35 = vmax.f32 %v2535_v62, 0.0  ;;  %v2831_v28 = vshrl.u32 %v8610_v20, 16 }
 0x426   : > { %2908 = vrot.lane.b32.xlu1 %v2844_v10, %s11966_s24  ;;  %vm675_vm7 = vmand %vm8708_vm5, %vm12176_vm6  ;;  %vm12206_vm6 = vcmask 1046528  }
 0x427   : > { %v8687_v24 = vpop.permute.xlu0 %3149  ;;  %12170 = vst [vmem:[#allocation146_spill] sm:$0xff] %v8698_v12  ;;  %v2728_v4 = vsel %vm675_vm7, %v2620_v47, 0.0  ;;  %v2729_v62 = vsel %vm8708_vm5, %v2621_v35, 0.0  ;;  %v2833_v47 = vshll.u32 %v8610_v20, 16  ;;  %v3022_v2 = vrot.slane %v2831_v28, 1  ;;  %vm12203_vm15 = vmmov %vm12182_vm1 }
 0x428   : > { %12168 = vst [vmem:[#allocation144_spill] sm:$0xff] %v8687_v24  ;;  %v8691_v14 = vpop.permute.xlu1 %3523  ;;  %vm713_vm10 = vmand %vm8708_vm5, %vm12203_vm15  ;;  %vm12209_vm5 = vcmask 1045504  }
 0x429   : > { %12169 = vst [vmem:[#allocation145_spill] sm:$0xff] %v8691_v14  ;;  %3495 = vrot.lane.b32.xlu0 %v3097_v38, %s12129_s4  ;;  %v2527_v14 = vadd.f32 %v8275_v50, %v2526_v17 }
 0x42a   : > { %3068 = vrot.lane.b32.xlu1 %v8693_v56, %s11939_s23 }
 0x42b   : > { %v8700_v60 = vpop.permute.xlu0 %3335  ;;  %v2619_v35 = vmax.f32 %v2527_v14, 0.0  ;;  %v2835_v14 = vrot.slane %v2833_v47, 1 }
 0x42c   : > { %12171 = vst [vmem:[#allocation147_spill] sm:$0xff] %v8700_v60  ;;  %v8704_v24 = vpop.permute.xlu1 %2976  ;;  %v4103_v60 = vrot.slane %v2842_v46, 7 }
 0x42d   : > { %3157 = vrot.lane.b32.xlu0 %v8698_v12, %s11954_s20 }
 0x42e   : > { %3202 = vrot.lane.b32.xlu1 %v2844_v10, %s11993_s17  ;;  %v4104_v17 = vor.u32 %v4103_v60, %v8655_v54 }
 0x42f   : > { %v8713_v25 = vpop.permute.xlu0 %3521 }
 0x430   : > { %12174 = vst [vmem:[#allocation148_spill] sm:$0xff] %v8713_v25  ;;  %v8715_v3 = vpop.permute.xlu1 %3121 }
 0x431   : > { %12175 = vst [vmem:[#allocation149_spill] sm:$0xff] %v8715_v3  ;;  %3343 = vrot.lane.b32.xlu0 %v8698_v12, %s12123_s1  ;;  %v8736_v3 = vpack.c.bf16 %v2729_v62, %v2728_v4  ;;  %v2727_v62 = vsel %vm710_vm0, %v2619_v35, 0.0 }
 0x432   : > { %3276 = vrot.lane.b32.xlu1 %v8693_v56, %s11998_s3  ;;  %v8761_v16 = vpack.c.bf16 %v2727_v62, %v2727_v62 }
 0x433   : > { %v8725_v34 = vpop.permute.xlu0 %2898  ;;  %12179 = vst [vmem:[#allocation152_spill] sm:$0xff] %v8736_v3  ;;  %v8899_v18 = vshrl.u32 %v8736_v3, 16  ;;  %v3101_v43 = vrot.slane %v8736_v3, 2 }
 0x434   : > { %12177 = vst [vmem:[#allocation150_spill] sm:$0xff] %v8725_v34  ;;  %v8730_v25 = vpop.permute.xlu1 %3233  ;;  %v4101_v34 = vrot.slane %v2831_v28, 7  ;;  %12185 = vst [vmem:[#allocation157_spill] sm:$0xff] %v8761_v16 }
 0x435   : > { %12178 = vst [vmem:[#allocation151_spill] sm:$0xff] %v8730_v25  ;;  %3529 = vrot.lane.b32.xlu0 %v8698_v12, %s12133_s14 }
 0x436   : > { %3388 = vrot.lane.b32.xlu1 %v2844_v10, %s12126_s19  ;;  %v4102_v10 = vor.u32 %v4101_v34, %v2833_v47  ;;  %v4105_v60 = vsel %vm4100_vm11, %v4101_v34, %v4104_v17  ;;  %v12189_v17 = vrot.slane %v8655_v54, 1 }
 0x437   : > { %v8738_v21 = vpop.permute.xlu0 %3192 }
 0x438   : > { %12180 = vst [vmem:[#allocation153_spill] sm:$0xff] %v8738_v21  ;;  %v8740_v22 = vpop.permute.xlu1 %3307  ;;  %v2836_v21 = vor.u32 %v2835_v14, %v2831_v28 }
 0x439   : > { %12181 = vst [vmem:[#allocation154_spill] sm:$0xff] %v8740_v22  ;;  %3161 = vrot.lane.b32.xlu0 %v8736_v3, %s11954_s20 }
 0x43a   : > { %3462 = vrot.lane.b32.xlu1 %v8693_v56, %s11689_s7 }
 0x43b   : > { %v8752_v46 = vpop.permute.xlu0 %3378 }
 0x43c   : > { %12183 = vst [vmem:[#allocation155_spill] sm:$0xff] %v8752_v46  ;;  %v8754_v4 = vpop.permute.xlu1 %3419  ;;  %v3023_v46 = vrot.slane %v2833_v47, 2 }
 0x43d   : > { %12184 = vst [vmem:[#allocation156_spill] sm:$0xff] %v8754_v4  ;;  %4151 = vrot.lane.b32.xlu0 %v4102_v10, %s11972_s30  ;;  %v2841_v10 = vsel %vm12190_vm3, %v2836_v21, %v12189_v17  ;;  %v2954_v21 = vrot.slane %v8761_v16, 1  ;;  %v8801_v17 = vpop.f32.mrf.mxu0  ;;  %vm12214_vm3 = vmmov %vm12203_vm15 }
 0x43e   : > { %4153 = vrot.lane.b32.xlu1 %v4105_v60, %s11972_s30  ;;  %v3024_v62 = vor.u32 %v3023_v46, %v3022_v2 }
 0x43f   : > { %v8759_v22 = vpop.permute.xlu0 %2974 }
 0x440   : > { %v8763_v25 = vpop.permute.xlu1 %3493  ;;  %v3028_v14 = vsel %vm2053_vm14, %v3024_v62, %v8693_v56  ;;  %v3099_v56 = vrot.slane %v8761_v16, 2 }
 0x441   : > { %12186 = vst [vmem:[#allocation158_spill] sm:$0xff] %v8763_v25  ;;  %3533 = vrot.lane.b32.xlu0 %v8736_v3, %s12133_s14  ;;  %v8807_v25 = vshrl.u32 %v8698_v12, 16 }
 0x442   : > { %3159 = vrot.lane.b32.xlu1 %v8761_v16, %s11954_s20 }
 0x443   : > { %v8769_v35 = vpop.permute.xlu0 %3058 }
 0x444   : > { %12187 = vst [vmem:[#allocation159_spill] sm:$0xff] %v8769_v35  ;;  %v8771_v34 = vpop.permute.xlu1 %2900 }
 0x445   : > { %12188 = vst [vmem:[#allocation160_spill] sm:$0xff] %v8771_v34  ;;  %2906 = vrot.lane.b32.xlu0 %v2841_v10, %s11966_s24 }
 0x446   : > { %3345 = vrot.lane.b32.xlu1 %v8761_v16, %s12123_s1 }
 0x447   : > { %v8779_v28 = vpop.permute.xlu0 %3119 }
 0x448   : > { %12191 = vst [vmem:[#allocation161_spill] sm:$0xff] %v8779_v28  ;;  %v8781_v47 = vpop.permute.xlu1 %3060  ;;  %v2539_v28 = vpop.f32.mrf.mxu0 }
 0x449   : > { %12192 = vst [vmem:[#allocation162_spill] sm:$0xff] %v8781_v47  ;;  %3066 = vrot.lane.b32.xlu0 %v3028_v14, %s11939_s23  ;;  %v2953_v47 = vrot.slane %v8698_v12, 1 }
 0x44a   : > { %3531 = vrot.lane.b32.xlu1 %v8761_v16, %s12133_s14  ;;  %v6144_v34 = vpop.f32.mrf.mxu0 }
 0x44b   : > { %v8788_v54 = vpop.permute.xlu0 %3231  ;;  %v2551_v45 = vadd.f32 %v8886_v0, %v6144_v34 }
 0x44c   : > { %12193 = vst [vmem:[#allocation163_spill] sm:$0xff] %v8788_v54  ;;  %v8790_v2 = vpop.permute.xlu1 %3155 }
 0x44d   : > { %12194 = vst [vmem:[#allocation164_spill] sm:$0xff] %v8790_v2  ;;  %3200 = vrot.lane.b32.xlu0 %v2841_v10, %s11993_s17  ;;  %v2625_v30 = vmax.f32 %v2551_v45, 0.0 }
 0x44e   : > { %2984 = vrot.lane.b32.xlu1 %v2954_v21, %s12001_s0 }
 0x44f   : > { %v8795_v46 = vpop.permute.xlu0 %3266 }
 0x450   : > { %12195 = vst [vmem:[#allocation165_spill] sm:$0xff] %v8795_v46  ;;  %v8797_v60 = vpop.permute.xlu1 %3194  ;;  %v11687_v46 = vrot.slane %v8807_v25, 7 }
 0x451   : > { %12196 = vst [vmem:[#allocation166_spill] sm:$0xff] %v8797_v60  ;;  %3274 = vrot.lane.b32.xlu0 %v3028_v14, %s11998_s3  ;;  %v2540_v60 = vadd.f32 %v8275_v50, %v2539_v28 }
 0x452   : > { %3129 = vrot.lane.b32.xlu1 %v3099_v56, %s11972_s30 }
 0x453   : > { %v8804_v62 = vpop.permute.xlu0 %3305 }
 0x454   : > { %12197 = vst [vmem:[#allocation167_spill] sm:$0xff] %v8804_v62  ;;  %v8809_v4 = vpop.permute.xlu1 %3268  ;;  %v8821_v62 = vshll.u32 %v8698_v12, 16 }
 0x455   : > { %12198 = vst [vmem:[#allocation168_spill] sm:$0xff] %v8809_v4  ;;  %3386 = vrot.lane.b32.xlu0 %v2841_v10, %s12126_s19 }
 0x456   : > { %3241 = vrot.lane.b32.xlu1 %v2954_v21, %s11977_s25  ;;  %v4107_v10 = vor.u32 %v11687_v46, %v8821_v62  ;;  %v3098_v46 = vrot.slane %v8698_v12, 2 }
 0x457   : > { %v8813_v54 = vpop.permute.xlu0 %3417 }
 0x458   : > { %12199 = vst [vmem:[#allocation169_spill] sm:$0xff] %v8813_v54  ;;  %v8816_v35 = vpop.permute.xlu1 %3341 }
 0x459   : > { %12200 = vst [vmem:[#allocation170_spill] sm:$0xff] %v8816_v35  ;;  %3460 = vrot.lane.b32.xlu0 %v3028_v14, %s11689_s7  ;;  %v2622_v35 = vmax.f32 %v2540_v60, 0.0  ;;  %v2955_v14 = vsel %vm12206_vm6, %v2953_v47, %v2954_v21  ;;  %v8847_v60 = vshll.u32 %v8761_v16, 16  ;;  %v8861_v47 = vshrl.u32 %v8761_v16, 16 }
 0x45a   : > { %3315 = vrot.lane.b32.xlu1 %v3099_v56, %s12106_s5 }
 0x45b   : > { %v8824_v4 = vpop.permute.xlu0 %3452  ;;  %v3033_v53 = vrot.slane %v8847_v60, 2 }
 0x45c   : > { %12201 = vst [vmem:[#allocation171_spill] sm:$0xff] %v8824_v4  ;;  %v8829_v54 = vpop.permute.xlu1 %3380  ;;  %v2730_v4 = vsel %vm713_vm10, %v2622_v35, 0.0  ;;  %v2855_v35 = vrot.slane %v8847_v60, 1  ;;  %vm12221_vm10 = vsmask.f32 7424 }
 0x45d   : > { %12202 = vst [vmem:[#allocation172_spill] sm:$0xff] %v8829_v54  ;;  %4155 = vrot.lane.b32.xlu0 %v4107_v10, %s11972_s30  ;;  %v8851_v10 = vpack.c.bf16 %v2730_v4, %v2730_v4 }
 0x45e   : > { %3427 = vrot.lane.b32.xlu1 %v2954_v21, %s12160_s18 }
 0x45f   : > { %v8838_v50 = vpop.permute.xlu0 %3491  ;;  %12207 = vst [vmem:[#allocation175_spill] sm:$0xff] %v8851_v10  ;;  %v8880_v6 = vrot.slane %v8851_v10, 1  ;;  %v8915_v8 = vrot.slane %v8851_v10, 2  ;;  %v2868_v59 = vshll.u32 %v8851_v10, 16 }
 0x460   : > { %12204 = vst [vmem:[#allocation173_spill] sm:$0xff] %v8838_v50  ;;  %v8840_v28 = vpop.permute.xlu1 %3454  ;;  %v3100_v50 = vsel %vm12209_vm5, %v3098_v46, %v3099_v56 }
 0x461   : > { %12205 = vst [vmem:[#allocation174_spill] sm:$0xff] %v8840_v28  ;;  %2982 = vrot.lane.b32.xlu0 %v2955_v14, %s12001_s0  ;;  %v616_v28 = vadd.s32 7, %v8262_v55  ;;  %v2870_v57 = vrot.slane %v2868_v59, 1  ;;  %v3040_v1 = vrot.slane %v2868_v59, 2 }
 0x462   : > { %3501 = vrot.lane.b32.xlu1 %v3099_v56, %s12129_s4  ;;  %v3032_v56 = vrot.slane %v8861_v47, 1 }
 0x463   : > { %v8849_v38 = vpop.permute.xlu0 %2902  ;;  %vm628_vm7 = vcmp.ge.s32.totalorder %v616_v28, 0  ;;  %vm640_vm1 = vcmp.lt.s32.totalorder %v616_v28, 16 }
 0x464   : > { %v8853_v54 = vpop.permute.xlu1 %3527  ;;  %vm8892_vm0 = vmand %vm628_vm7, %vm640_vm1  ;;  %v3034_v29 = vor.u32 %v3033_v53, %v3032_v56  ;;  %v2850_v53 = vrot.slane %v8821_v62, 1  ;;  %vm12240_vm7 = vcmp.ge.s32.totalorder %v6812_v7, 0 }
 0x465   : > { %12208 = vst [vmem:[#allocation176_spill] sm:$0xff] %v8853_v54  ;;  %3127 = vrot.lane.b32.xlu0 %v3100_v50, %s11972_s30  ;;  %v8869_v54 = vor.u32 %v8861_v47, %v2855_v35  ;;  %vm716_vm15 = vmand %vm8892_vm0, %vm12214_vm3 }
 0x466   : > { %3163 = vrot.lane.b32.xlu1 %v8851_v10, %s11954_s20  ;;  %v2733_v45 = vsel %vm716_vm15, %v2625_v30, 0.0  ;;  %v2851_v30 = vor.u32 %v2850_v53, %v8807_v25  ;;  %vm678_vm1 = vmand %vm8892_vm0, %vm12240_vm7  ;;  %vm12254_vm7 = vcmask 1046528  }
 0x467   : > { %v8863_v21 = vpop.permute.xlu0 %3062  ;;  %v8929_v41 = vpack.c.bf16 %v2733_v45, %v2733_v45 }
 0x468   : > { %v8866_v4 = vpop.permute.xlu1 %2904 }
 0x469   : > { %3239 = vrot.lane.b32.xlu0 %v2955_v14, %s11977_s25 }
 0x46a   : > { %2912 = vrot.lane.b32.xlu1 %v8869_v54, %s11966_s24 }
 0x46b   : > { %v8874_v46 = vpop.permute.xlu0 %3196 }
 0x46c   : > { %12210 = vst [vmem:[#allocation177_spill] sm:$0xff] %v8874_v46  ;;  %v8877_v33 = vpop.permute.xlu1 %2980 }
 0x46d   : > { %3313 = vrot.lane.b32.xlu0 %v3100_v50, %s12106_s5 }
 0x46e   : > { %2988 = vrot.lane.b32.xlu1 %v8880_v6, %s12001_s0 }
 0x46f   : > { %v8896_v46 = vpop.permute.xlu0 %3270 }
 0x470   : > { %12213 = vst [vmem:[#allocation178_spill] sm:$0xff] %v8896_v46  ;;  %v8901_v61 = vpop.permute.xlu1 %3064  ;;  %v11694_v46 = vrot.slane %v8899_v18, 7 }
 0x471   : > { %3425 = vrot.lane.b32.xlu0 %v2955_v14, %s12160_s18  ;;  %v8920_v14 = vshll.u32 %v8736_v3, 16 }
 0x472   : > { %3072 = vrot.lane.b32.xlu1 %v3034_v29, %s11939_s23 }
 0x473   : > { %v8909_v34 = vpop.permute.xlu0 %3382 }
 0x474   : > { %12215 = vst [vmem:[#allocation179_spill] sm:$0xff] %v8909_v34  ;;  %v8912_v48 = vpop.permute.xlu1 %3125  ;;  %v4112_v34 = vor.u32 %v11694_v46, %v8920_v14 }
 0x475   : > { %12216 = vst [vmem:[#allocation180_spill] sm:$0xff] %v8912_v48  ;;  %3499 = vrot.lane.b32.xlu0 %v3100_v50, %s12129_s4 }
 0x476   : > { %3133 = vrot.lane.b32.xlu1 %v8915_v8, %s11972_s30 }
 0x477   : > { %v8924_v56 = vpop.permute.xlu0 %3456 }
 0x478   : > { %12217 = vst [vmem:[#allocation181_spill] sm:$0xff] %v8924_v56  ;;  %v8931_v11 = vpop.permute.xlu1 %3198  ;;  %v2856_v56 = vsel %vm12221_vm10, %v2851_v30, %v2855_v35  ;;  %v2956_v35 = vrot.slane %v8736_v3, 1  ;;  %v3029_v30 = vrot.slane %v8807_v25, 1  ;;  %vm12248_vm10 = vcmp.lt.s32.totalorder %v6854_v23, 16 }
 0x479   : > { %12218 = vst [vmem:[#allocation182_spill] sm:$0xff] %v8931_v11  ;;  %4159 = vrot.lane.b32.xlu0 %v4112_v34, %s11972_s30  ;;  %v3030_v11 = vrot.slane %v8821_v62, 2 }
 0x47a   : > { %3167 = vrot.lane.b32.xlu1 %v8929_v41, %s11954_s20  ;;  %v8967_v52 = vsel %vm12206_vm6, %v2956_v35, %v8880_v6  ;;  %v4108_v35 = vrot.slane %v8861_v47, 7 }
 0x47b   : > { %v8937_v50 = vpop.permute.xlu0 %3153 }
 0x47c   : > { %12219 = vst [vmem:[#allocation183_spill] sm:$0xff] %v8937_v50  ;;  %v8939_v40 = vpop.permute.xlu1 %3237 }
 0x47d   : > { %12220 = vst [vmem:[#allocation184_spill] sm:$0xff] %v8939_v40  ;;  %2910 = vrot.lane.b32.xlu0 %v2856_v56, %s11966_s24 }
 0x47e   : > { %3206 = vrot.lane.b32.xlu1 %v8869_v54, %s11993_s17 }
 0x47f   : > { %v8945_v45 = vpop.permute.xlu0 %3339 }
 0x480   : > { %12222 = vst [vmem:[#allocation185_spill] sm:$0xff] %v8945_v45  ;;  %v8947_v46 = vpop.permute.xlu1 %3272 }
 0x481   : > { %12223 = vst [vmem:[#allocation186_spill] sm:$0xff] %v8947_v46  ;;  %3204 = vrot.lane.b32.xlu0 %v2856_v56, %s11993_s17 }
 0x482   : > { %3245 = vrot.lane.b32.xlu1 %v8880_v6, %s11977_s25 }
 0x483   : > { %v8952_v34 = vpop.permute.xlu0 %3525 }
 0x484   : > { %12224 = vst [vmem:[#allocation187_spill] sm:$0xff] %v8952_v34  ;;  %v8954_v53 = vpop.permute.xlu1 %3311  ;;  %v3031_v34 = vor.u32 %v3030_v11, %v3029_v30 }
 0x485   : > { %12225 = vst [vmem:[#allocation188_spill] sm:$0xff] %v8954_v53  ;;  %3390 = vrot.lane.b32.xlu0 %v2856_v56, %s12126_s19 }
 0x486   : > { %3280 = vrot.lane.b32.xlu1 %v3034_v29, %s11998_s3  ;;  %v3035_v53 = vsel %vm2053_vm14, %v3031_v34, %v3034_v29  ;;  %v4109_v34 = vor.u32 %v4108_v35, %v8847_v60  ;;  %v2548_v60 = vadd.f32 %v8886_v0, %v8801_v17  ;;  %v9023_v17 = vrot.slane %v8929_v41, 2 }
 0x487   : > { %v8961_v45 = vpop.permute.xlu0 %2978 }
 0x488   : > { %12226 = vst [vmem:[#allocation189_spill] sm:$0xff] %v8961_v45  ;;  %v8963_v46 = vpop.permute.xlu1 %3384  ;;  %12239 = vst [vmem:[#allocation200_spill] sm:$0xff] %v9023_v17 }
 0x489   : > { %12227 = vst [vmem:[#allocation190_spill] sm:$0xff] %v8963_v46  ;;  %2986 = vrot.lane.b32.xlu0 %v8967_v52, %s12001_s0  ;;  %v8989_v46 = vsel %vm12209_vm5, %v3101_v43, %v8915_v8  ;;  %vm12250_vm5 = vsmask.f32 7424 }
 0x48a   : > { %3319 = vrot.lane.b32.xlu1 %v8915_v8, %s12106_s5  ;;  %12232 = vst [vmem:[#allocation195_spill] sm:$0xff] %v8989_v46 }
 0x48b   : > { %v8973_v62 = vpop.permute.xlu0 %3123 }
 0x48c   : > { %12228 = vst [vmem:[#allocation191_spill] sm:$0xff] %v8973_v62  ;;  %v8975_v56 = vpop.permute.xlu1 %3458 }
 0x48d   : > { %12229 = vst [vmem:[#allocation192_spill] sm:$0xff] %v8975_v56  ;;  %3070 = vrot.lane.b32.xlu0 %v3035_v53, %s11939_s23 }
 0x48e   : > { %3392 = vrot.lane.b32.xlu1 %v8869_v54, %s12126_s19  ;;  %v2542_v54 = vpop.f32.mrf.mxu0 }
 0x48f   : > { %v8983_v11 = vpop.permute.xlu0 %3235 }
 0x490   : > { %12230 = vst [vmem:[#allocation193_spill] sm:$0xff] %v8983_v11  ;;  %v8985_v30 = vpop.permute.xlu1 %3423  ;;  %v6147_v63 = vpop.f32.mrf.mxu0 }
 0x491   : > { %12231 = vst [vmem:[#allocation194_spill] sm:$0xff] %v8985_v30  ;;  %3131 = vrot.lane.b32.xlu0 %v8989_v46, %s11972_s30  ;;  %v12236_v30 = vrot.slane %v8807_v25, 7  ;;  %v2564_v28 = vadd.f32 %v8886_v0, %v6147_v63 }
 0x492   : > { %3466 = vrot.lane.b32.xlu1 %v3034_v29, %s12233_s27  ;;  %v2543_v29 = vadd.f32 %v8886_v0, %v2542_v54  ;;  %v617_v54 = vadd.s32 8, %v8262_v55 }
 0x493   : > { %v8995_v56 = vpop.permute.xlu0 %3309  ;;  %v4110_v43 = vsel %vm4100_vm11, %v12236_v30, %v4109_v34  ;;  %v2624_v30 = vmax.f32 %v2548_v60, 0.0  ;;  %v2628_v63 = vmax.f32 %v2564_v28, 0.0 }
 0x494   : > { %12234 = vst [vmem:[#allocation196_spill] sm:$0xff] %v8995_v56  ;;  %v8997_v47 = vpop.permute.xlu1 %3497  ;;  %v2623_v34 = vmax.f32 %v2543_v29, 0.0  ;;  %v2865_v56 = vrot.slane %v8920_v14, 1  ;;  %vm629_vm3 = vcmp.ge.s32.totalorder %v617_v54, 0  ;;  %vm641_vm15 = vcmp.lt.s32.totalorder %v617_v54, 16 }
 0x495   : > { %12235 = vst [vmem:[#allocation197_spill] sm:$0xff] %v8997_v47  ;;  %3243 = vrot.lane.b32.xlu0 %v8967_v52, %s11977_s25  ;;  %v9013_v47 = vrot.slane %v8929_v41, 1  ;;  %v2732_v29 = vsel %vm8892_vm0, %v2624_v30, 0.0  ;;  %vm9053_vm0 = vmand %vm629_vm3, %vm641_vm15  ;;  %vm12280_vm15 = vcmp.ge.s32.totalorder %v6812_v7, 0 }
 0x496   : > { %4157 = vrot.lane.b32.xlu1 %v4110_v43, %s11972_s30  ;;  %v2866_v15 = vor.u32 %v2865_v56, %v8899_v18  ;;  %vm719_vm6 = vmand %vm9053_vm0, %vm12248_vm10 }
 0x497   : > { %v9005_v19 = vpop.permute.xlu0 %3421  ;;  %v2736_v28 = vsel %vm719_vm6, %v2628_v63, 0.0  ;;  %vm12272_vm3 = vmmov %vm12250_vm5 }
 0x498   : > { %12237 = vst [vmem:[#allocation198_spill] sm:$0xff] %v9005_v19  ;;  %v9010_v35 = vpop.permute.xlu1 %2908  ;;  %v9071_v54 = vsel %vm12250_vm5, %v2866_v15, %v2870_v57  ;;  %v9090_v62 = vpack.c.bf16 %v2736_v28, %v2736_v28  ;;  %vm681_vm10 = vmand %vm9053_vm0, %vm12280_vm15  ;;  %vm12298_vm15 = vcmask 1045504  }
 0x499   : > { %3278 = vrot.lane.b32.xlu0 %v3035_v53, %s11998_s3  ;;  %vm12292_vm5 = vmmov %vm12254_vm7 }
 0x49a   : > { %2992 = vrot.lane.b32.xlu1 %v9013_v47, %s12001_s0  ;;  %12253 = vst [vmem:[#allocation209_spill] sm:$0xff] %v9090_v62 }
 0x49b   : > { %v9018_v25 = vpop.permute.xlu0 %3495 }
 0x49c   : > { %12238 = vst [vmem:[#allocation199_spill] sm:$0xff] %v9018_v25  ;;  %v9020_v43 = vpop.permute.xlu1 %3068  ;;  %v2731_v25 = vsel %vm678_vm1, %v2623_v34, 0.0  ;;  %vm12259_vm1 = vcmask 1045504  }
 0x49d   : > { %3317 = vrot.lane.b32.xlu0 %v8989_v46, %s12106_s5  ;;  %v9045_v37 = vpack.c.bf16 %v2732_v29, %v2731_v25 }
 0x49e   : > { %3137 = vrot.lane.b32.xlu1 %v9023_v17, %s11972_s30 }
 0x49f   : > { %v9034_v60 = vpop.permute.xlu0 %3157  ;;  %v2959_v15 = vrot.slane %v9045_v37, 1  ;;  %v3104_v31 = vrot.slane %v9045_v37, 2  ;;  %v9149_v5 = vshrl.u32 %v9045_v37, 16 }
 0x4a0   : > { %12241 = vst [vmem:[#allocation201_spill] sm:$0xff] %v9034_v60  ;;  %v9038_v19 = vpop.permute.xlu1 %3202  ;;  %v2555_v60 = vpop.f32.mrf.mxu0 }
 0x4a1   : > { %12242 = vst [vmem:[#allocation202_spill] sm:$0xff] %v9038_v19  ;;  %3464 = vrot.lane.b32.xlu0 %v3035_v53, %s12233_s27  ;;  %v2872_v53 = vshrl.u32 %v8851_v10, 16  ;;  %v3043_v20 = vrot.slane %v9149_v5, 1 }
 0x4a2   : > { %3249 = vrot.lane.b32.xlu1 %v9013_v47, %s11977_s25 }
 0x4a3   : > { %v9048_v30 = vpop.permute.xlu0 %3343  ;;  %v9073_v29 = vor.u32 %v2872_v53, %v2870_v57  ;;  %v3036_v57 = vrot.slane %v8899_v18, 1 }
 0x4a4   : > { %12243 = vst [vmem:[#allocation203_spill] sm:$0xff] %v9048_v30  ;;  %v9050_v34 = vpop.permute.xlu1 %3276  ;;  %v3039_v30 = vrot.slane %v2872_v53, 1 }
 0x4a5   : > { %12244 = vst [vmem:[#allocation204_spill] sm:$0xff] %v9050_v34  ;;  %3165 = vrot.lane.b32.xlu0 %v9045_v37, %s11954_s20 }
 0x4a6   : > { %3323 = vrot.lane.b32.xlu1 %v9023_v17, %s12106_s5  ;;  %v9083_v51 = vor.u32 %v3040_v1, %v3039_v30  ;;  %v9100_v1 = vsel %vm12254_vm7, %v2959_v15, %v9013_v47 }
 0x4a7   : > { %v9062_v25 = vpop.permute.xlu0 %3529 }
 0x4a8   : > { %12247 = vst [vmem:[#allocation205_spill] sm:$0xff] %v9062_v25  ;;  %v9068_v56 = vpop.permute.xlu1 %3388 }
 0x4a9   : > { %12249 = vst [vmem:[#allocation206_spill] sm:$0xff] %v9068_v56  ;;  %2914 = vrot.lane.b32.xlu0 %v9071_v54, %s11966_s24  ;;  %v3037_v56 = vrot.slane %v8920_v14, 2 }
 0x4aa   : > { %2916 = vrot.lane.b32.xlu1 %v9073_v29, %s11966_s24 }
 0x4ab   : > { %v9079_v25 = vpop.permute.xlu0 %3161  ;;  %v3038_v30 = vor.u32 %v3037_v56, %v3036_v57  ;;  %v4113_v56 = vrot.slane %v2872_v53, 7 }
 0x4ac   : > { %12251 = vst [vmem:[#allocation207_spill] sm:$0xff] %v9079_v25  ;;  %v9081_v13 = vpop.permute.xlu1 %3462 }
 0x4ad   : > { %12252 = vst [vmem:[#allocation208_spill] sm:$0xff] %v9081_v13  ;;  %3208 = vrot.lane.b32.xlu0 %v9071_v54, %s11993_s17  ;;  %v9112_v13 = vsel %vm2053_vm14, %v3038_v30, %v9083_v51  ;;  %v9128_v30 = vshll.u32 %v8929_v41, 16  ;;  %v4114_v27 = vor.u32 %v4113_v56, %v2868_v59  ;;  %v2887_v59 = vshrl.u32 %v8929_v41, 16 }
 0x4ae   : > { %3076 = vrot.lane.b32.xlu1 %v9083_v51, %s11939_s23 }
 0x4af   : > { %v9094_v63 = vpop.permute.xlu0 %4151  ;;  %v3046_v39 = vrot.slane %v2887_v59, 1  ;;  %v3047_v25 = vrot.slane %v9128_v30, 2 }
 0x4b0   : > { %v9096_v58 = vpop.permute.xlu1 %4153 }
 0x4b1   : > { %2990 = vrot.lane.b32.xlu0 %v9100_v1, %s12001_s0 }
 0x4b2   : > { %3171 = vrot.lane.b32.xlu1 %v9090_v62, %s11954_s20 }
 0x4b3   : > { %v9106_v14 = vpop.permute.xlu0 %3533 }
 0x4b4   : > { %12255 = vst [vmem:[#allocation210_spill] sm:$0xff] %v9106_v14  ;;  %v9108_v28 = vpop.permute.xlu1 %3159  ;;  %v9125_v14 = vsel %vm12259_vm1, %v3104_v31, %v9023_v17  ;;  %v12263_v31 = vrot.slane %v8899_v18, 7  ;;  %v2878_v18 = vshll.u32 %v9045_v37, 16 }
 0x4b5   : > { %12256 = vst [vmem:[#allocation211_spill] sm:$0xff] %v9108_v28  ;;  %3074 = vrot.lane.b32.xlu0 %v9112_v13, %s11939_s23  ;;  %12260 = vst [vmem:[#allocation214_spill] sm:$0xff] %v9125_v14 }
 0x4b6   : > { %3210 = vrot.lane.b32.xlu1 %v9073_v29, %s11993_s17  ;;  %v4115_v26 = vsel %vm4100_vm11, %v12263_v31, %v4114_v27  ;;  %v2880_v16 = vrot.slane %v2878_v18, 1 }
 0x4b7   : > { %v9119_v15 = vpop.permute.xlu0 %2906 }
 0x4b8   : > { %12257 = vst [vmem:[#allocation212_spill] sm:$0xff] %v9119_v15  ;;  %v9121_v57 = vpop.permute.xlu1 %3345  ;;  %v2881_v34 = vor.u32 %v2880_v16, %v9149_v5 }
 0x4b9   : > { %12258 = vst [vmem:[#allocation213_spill] sm:$0xff] %v9121_v57  ;;  %3135 = vrot.lane.b32.xlu0 %v9125_v14, %s11972_s30  ;;  %v2885_v57 = vrot.slane %v9128_v30, 1 }
 0x4ba   : > { %3284 = vrot.lane.b32.xlu1 %v9083_v51, %s11998_s3 }
 0x4bb   : > { %v9134_v53 = vpop.permute.xlu0 %3066 }
 0x4bc   : > { %12261 = vst [vmem:[#allocation215_spill] sm:$0xff] %v9134_v53  ;;  %v9136_v9 = vpop.permute.xlu1 %3531 }
 0x4bd   : > { %12262 = vst [vmem:[#allocation216_spill] sm:$0xff] %v9136_v9  ;;  %3247 = vrot.lane.b32.xlu0 %v9100_v1, %s11977_s25  ;;  %v9153_v9 = vor.u32 %v2887_v59, %v2885_v57 }
 0x4be   : > { %4161 = vrot.lane.b32.xlu1 %v4115_v26, %s11972_s30  ;;  %v4116_v26 = vrot.slane %v9149_v5, 7 }
 0x4bf   : > { %v9146_v56 = vpop.permute.xlu0 %3200 }
 0x4c0   : > { %12264 = vst [vmem:[#allocation217_spill] sm:$0xff] %v9146_v56  ;;  %v9151_v42 = vpop.permute.xlu1 %2984  ;;  %v4117_v53 = vor.u32 %v4116_v26, %v2878_v18 }
 0x4c1   : > { %12265 = vst [vmem:[#allocation218_spill] sm:$0xff] %v9151_v42  ;;  %3282 = vrot.lane.b32.xlu0 %v9112_v13, %s11998_s3  ;;  %v9166_v42 = vor.u32 %v3047_v25, %v3046_v39  ;;  %v6148_v39 = vpop.f32.mrf.mxu0 }
 0x4c2   : > { %2920 = vrot.lane.b32.xlu1 %v9153_v9, %s11966_s24 }
 0x4c3   : > { %v9161_v27 = vpop.permute.xlu0 %3274  ;;  %v2558_v5 = vpop.f32.mrf.mxu0 }
 0x4c4   : > { %12266 = vst [vmem:[#allocation219_spill] sm:$0xff] %v9161_v27  ;;  %v9164_v31 = vpop.permute.xlu1 %3129 }
 0x4c5   : > { %12267 = vst [vmem:[#allocation220_spill] sm:$0xff] %v9164_v31  ;;  %3321 = vrot.lane.b32.xlu0 %v9125_v14, %s12106_s5  ;;  %v3044_v31 = vrot.slane %v2878_v18, 2  ;;  %v2556_v18 = vadd.f32 %v8886_v0, %v2555_v60  ;;  %v9214_v60 = vrot.slane %v9090_v62, 2 }
 0x4c6   : > { %3080 = vrot.lane.b32.xlu1 %v9166_v42, %s11939_s23 }
 0x4c7   : > { %v9172_v12 = vpop.permute.xlu0 %3386  ;;  %v3045_v16 = vor.u32 %v3044_v31, %v3043_v20  ;;  %12279 = vst [vmem:[#allocation231_spill] sm:$0xff] %v9214_v60 }
 0x4c8   : > { %12268 = vst [vmem:[#allocation221_spill] sm:$0xff] %v9172_v12  ;;  %v9174_v45 = vpop.permute.xlu1 %3241  ;;  %v9186_v12 = vsel %vm12272_vm3, %v2881_v34, %v2885_v57  ;;  %v2626_v57 = vmax.f32 %v2556_v18, 0.0 }
 0x4c9   : > { %12269 = vst [vmem:[#allocation222_spill] sm:$0xff] %v9174_v45  ;;  %4163 = vrot.lane.b32.xlu0 %v4117_v53, %s11972_s30  ;;  %v9189_v45 = vrot.slane %v9090_v62, 1  ;;  %v9203_v34 = vsel %vm2053_vm14, %v3045_v16, %v9166_v42  ;;  %v4118_v16 = vrot.slane %v2887_v59, 7  ;;  %v3185_v59 = vshrl.u32 %v9090_v62, 16 }
 0x4ca   : > { %3214 = vrot.lane.b32.xlu1 %v9153_v9, %s11993_s17  ;;  %12276 = vst [vmem:[#allocation228_spill] sm:$0xff] %v9203_v34 }
 0x4cb   : > { %v9181_v25 = vpop.permute.xlu0 %3460  ;;  %12273 = vst [vmem:[#allocation225_spill] sm:$0xff] %v9189_v45  ;;  %v3258_v48 = vrot.slane %v3185_v59, 1 }
 0x4cc   : > { %12270 = vst [vmem:[#allocation223_spill] sm:$0xff] %v9181_v25  ;;  %v9183_v14 = vpop.permute.xlu1 %3315  ;;  %v2559_v25 = vadd.f32 %v8886_v0, %v2558_v5 }
 0x4cd   : > { %12271 = vst [vmem:[#allocation224_spill] sm:$0xff] %v9183_v14  ;;  %2918 = vrot.lane.b32.xlu0 %v9186_v12, %s11966_s24 }
 0x4ce   : > { %3253 = vrot.lane.b32.xlu1 %v9189_v45, %s11977_s25  ;;  %v2627_v31 = vmax.f32 %v2559_v25, 0.0  ;;  %v2734_v25 = vsel %vm681_vm10, %v2626_v57, 0.0  ;;  %vm12300_vm10 = vcmp.ge.s32.totalorder %v6812_v7, 0 }
 0x4cf   : > { %v9195_v53 = vpop.permute.xlu0 %4155 }
 0x4d0   : > { %12274 = vst [vmem:[#allocation226_spill] sm:$0xff] %v9195_v53  ;;  %v9199_v14 = vpop.permute.xlu1 %3427  ;;  %v2735_v18 = vsel %vm9053_vm0, %v2627_v31, 0.0 }
 0x4d1   : > { %12275 = vst [vmem:[#allocation227_spill] sm:$0xff] %v9199_v14  ;;  %3078 = vrot.lane.b32.xlu0 %v9203_v34, %s11939_s23  ;;  %v9231_v14 = vshll.u32 %v9090_v62, 16 }
 0x4d2   : > { %3288 = vrot.lane.b32.xlu1 %v9166_v42, %s11998_s3 }
 0x4d3   : > { %v9209_v20 = vpop.permute.xlu0 %2982  ;;  %v3259_v31 = vrot.slane %v9231_v14, 2  ;;  %v11709_v15 = vrot.slane %v9231_v14, 1 }
 0x4d4   : > { %12277 = vst [vmem:[#allocation229_spill] sm:$0xff] %v9209_v20  ;;  %v9211_v53 = vpop.permute.xlu1 %3501  ;;  %v4119_v20 = vor.u32 %v4118_v16, %v9128_v30  ;;  %v6151_v16 = vpop.f32.mrf.mxu0 }
 0x4d5   : > { %12278 = vst [vmem:[#allocation230_spill] sm:$0xff] %v9211_v53  ;;  %3212 = vrot.lane.b32.xlu0 %v9186_v12, %s11993_s17  ;;  %v2580_v17 = vadd.f32 %v8886_v0, %v6151_v16 }
 0x4d6   : > { %3327 = vrot.lane.b32.xlu1 %v9214_v60, %s12106_s5  ;;  %v4120_v30 = vsel %vm4100_vm11, %v4116_v26, %v4119_v20  ;;  %v2571_v26 = vpop.f32.mrf.mxu0  ;;  %v619_v20 = vadd.s32 10, %v8262_v55 }
 0x4d7   : > { %v9224_v5 = vpop.permute.xlu0 %3127 }
 0x4d8   : > { %12281 = vst [vmem:[#allocation232_spill] sm:$0xff] %v9224_v5  ;;  %v9228_v53 = vpop.permute.xlu1 %3163  ;;  %v9239_v5 = vpack.c.bf16 %v2735_v18, %v2734_v25  ;;  %v618_v25 = vadd.s32 9, %v8262_v55  ;;  %vm631_vm1 = vcmp.ge.s32.totalorder %v619_v20, 0  ;;  %vm643_vm3 = vcmp.lt.s32.totalorder %v619_v20, 16 }
 0x4d9   : > { %12282 = vst [vmem:[#allocation233_spill] sm:$0xff] %v9228_v53  ;;  %3286 = vrot.lane.b32.xlu0 %v9203_v34, %s11998_s3 }
 0x4da   : > { %4071 = vrot.lane.b32.xlu1 %v9189_v45, %s12001_s0  ;;  %12283 = vst [vmem:[#allocation234_spill] sm:$0xff] %v9239_v5  ;;  %v3220_v46 = vrot.slane %v9239_v5, 1  ;;  %vm630_vm0 = vcmp.ge.s32.totalorder %v618_v25, 0  ;;  %vm642_vm6 = vcmp.lt.s32.totalorder %v618_v25, 16  ;;  %v4123_v25 = vrot.slane %v3185_v59, 7 }
 0x4db   : > { %v9241_v57 = vpop.permute.xlu0 %3239  ;;  %vm9281_vm7 = vmand %vm630_vm0, %vm642_vm6  ;;  %v3176_v40 = vshll.u32 %v9239_v5, 16 }
 0x4dc   : > { %12284 = vst [vmem:[#allocation235_spill] sm:$0xff] %v9241_v57  ;;  %v9244_v53 = vpop.permute.xlu1 %2912  ;;  %v9254_v57 = vor.u32 %v3259_v31, %v3258_v48  ;;  %v2567_v31 = vadd.f32 %v8886_v0, %v6148_v39  ;;  %vm684_vm0 = vmand %vm9281_vm7, %vm12300_vm10 }
 0x4dd   : > { %12285 = vst [vmem:[#allocation236_spill] sm:$0xff] %v9244_v53  ;;  %3169 = vrot.lane.b32.xlu0 %v9239_v5, %s11954_s20  ;;  %v9260_v53 = vor.u32 %v3185_v59, %v11709_v15  ;;  %vm9310_vm6 = vmand %vm631_vm1, %vm643_vm3  ;;  %vm12309_vm3 = vcmp.lt.s32.totalorder %v6854_v23, 16 }
 0x4de   : > { %4165 = vrot.lane.b32.xlu1 %v4120_v30, %s11972_s30  ;;  %12287 = vst [vmem:[#allocation238_spill] sm:$0xff] %v9254_v57  ;;  %v2572_v30 = vadd.f32 %v8886_v0, %v2571_v26  ;;  %v2629_v26 = vmax.f32 %v2567_v31, 0.0  ;;  %v4124_v31 = vor.u32 %v4123_v25, %v9231_v14  ;;  %v3178_v25 = vrot.slane %v3176_v40, 1 }
 0x4df   : > { %v9252_v18 = vpop.permute.xlu0 %3313  ;;  %12289 = vst [vmem:[#allocation240_spill] sm:$0xff] %v9260_v53 }
 0x4e0   : > { %12286 = vst [vmem:[#allocation237_spill] sm:$0xff] %v9252_v18  ;;  %v9256_v62 = vpop.permute.xlu1 %2988  ;;  %v9276_v18 = vsel %vm12292_vm5, %v3220_v46, %v9189_v45  ;;  %v3174_v46 = vshrl.u32 %v9239_v5, 16  ;;  %v2630_v45 = vmax.f32 %v2572_v30, 0.0  ;;  %vm12305_vm5 = vmmov %vm12300_vm10  ;;  %vm12314_vm10 = vsmask.f32 7424 }
 0x4e1   : > { %12288 = vst [vmem:[#allocation239_spill] sm:$0xff] %v9256_v62  ;;  %4090 = vrot.lane.b32.xlu0 %v9254_v57, %s11939_s23  ;;  %12293 = vst [vmem:[#allocation243_spill] sm:$0xff] %v9276_v18  ;;  %v3294_v62 = vrot.slane %v9239_v5, 2  ;;  %v2632_v5 = vmax.f32 %v2580_v17, 0.0 }
 0x4e2   : > { %3218 = vrot.lane.b32.xlu1 %v9260_v53, %s11993_s17  ;;  %v4121_v16 = vrot.slane %v3174_v46, 7  ;;  %vm687_vm1 = vmand %vm9310_vm6, %vm12305_vm5  ;;  %vm12335_vm5 = vcmask 1046528  }
 0x4e3   : > { %v9268_v48 = vpop.permute.xlu0 %3425  ;;  %v9294_v59 = vsel %vm12298_vm15, %v3294_v62, %v9214_v60  ;;  %v2737_v60 = vsel %vm684_vm0, %v2629_v26, 0.0  ;;  %vm722_vm15 = vmand %vm9281_vm7, %vm12309_vm3 }
 0x4e4   : > { %12290 = vst [vmem:[#allocation241_spill] sm:$0xff] %v9268_v48  ;;  %v9272_v15 = vpop.permute.xlu1 %3072  ;;  %v6152_v48 = vpop.f32.mrf.mxu0  ;;  %12299 = vst [vmem:[#allocation246_spill] sm:$0xff] %v9294_v59  ;;  %v4125_v20 = vsel %vm4100_vm11, %v4121_v16, %v4124_v31 }
 0x4e5   : > { %12291 = vst [vmem:[#allocation242_spill] sm:$0xff] %v9272_v15  ;;  %3251 = vrot.lane.b32.xlu0 %v9276_v18, %s11977_s25 }
 0x4e6   : > { %3292 = vrot.lane.b32.xlu1 %v9254_v57, %s11998_s3  ;;  %v2574_v30 = vpop.f32.mrf.mxu0 }
 0x4e7   : > { %v9287_v39 = vpop.permute.xlu0 %3499 }
 0x4e8   : > { %12296 = vst [vmem:[#allocation244_spill] sm:$0xff] %v9287_v39  ;;  %v9290_v15 = vpop.permute.xlu1 %3133  ;;  %v2583_v39 = vadd.f32 %v8886_v0, %v6152_v48  ;;  %v2738_v48 = vsel %vm9281_vm7, %v2630_v45, 0.0  ;;  %vm12323_vm7 = vmmov %vm12309_vm3 }
 0x4e9   : > { %12297 = vst [vmem:[#allocation245_spill] sm:$0xff] %v9290_v15  ;;  %3325 = vrot.lane.b32.xlu0 %v9294_v59, %s12106_s5  ;;  %v9329_v45 = vpack.c.bf16 %v2738_v48, %v2737_v60  ;;  %v9343_v60 = vpop.f32.mrf.mxu0  ;;  %vm725_vm0 = vmand %vm9310_vm6, %vm12323_vm7  ;;  %s5933_s5 = sshll.u32 %s6440_s29, 5 }
 0x4ea   : > { %4056 = vrot.lane.b32.xlu1 %v9260_v53, %s11966_s24  ;;  %v2633_v27 = vmax.f32 %v2583_v39, 0.0  ;;  %v2575_v53 = vadd.f32 %v8886_v0, %v2574_v30  ;;  %v4122_v39 = vor.u32 %v4121_v16, %v3176_v40  ;;  %v3179_v30 = vor.u32 %v3178_v25, %v3174_v46 }
 0x4eb   : > { %v9314_v15 = vpop.permute.xlu0 %4159  ;;  %12306 = vst [vmem:[#allocation249_spill] sm:$0xff] %v9329_v45  ;;  %v2587_v28 = vpop.f32.mrf.mxu0 }
 0x4ec   : > { %12303 = vst [vmem:[#allocation247_spill] sm:$0xff] %v9314_v15  ;;  %v9318_v59 = vpop.permute.xlu1 %3167  ;;  %v3256_v15 = vrot.slane %v3176_v40, 2  ;;  %v2741_v31 = vsel %vm9310_vm6, %v2633_v27, 0.0  ;;  %v2631_v34 = vmax.f32 %v2575_v53, 0.0  ;;  %v12313_v27 = vrot.slane %v9231_v14, 1  ;;  %vm12331_vm6 = vmmov %vm12314_vm10 }
 0x4ed   : > { %12304 = vst [vmem:[#allocation248_spill] sm:$0xff] %v9318_v59  ;;  %4069 = vrot.lane.b32.xlu0 %v9276_v18, %s12001_s0  ;;  %v3255_v59 = vrot.slane %v3174_v46, 1  ;;  %v2740_v18 = vsel %vm687_vm1, %v2632_v5, 0.0 }
 0x4ee   : > { %4169 = vrot.lane.b32.xlu1 %v4125_v20, %s11972_s30  ;;  %v9348_v40 = vpack.c.bf16 %v2741_v31, %v2740_v18  ;;  %v9355_v53 = vsel %vm12314_vm10, %v3179_v30, %v12313_v27  ;;  %v2739_v48 = vsel %vm722_vm15, %v2631_v34, 0.0  ;;  %v2588_v34 = vadd.f32 %v8886_v0, %v2587_v28  ;;  %vm12347_vm10 = vmmov %vm12323_vm7 }
 0x4ef   : > { %v9331_v26 = vpop.permute.xlu0 %2910  ;;  %12315 = vst [vmem:[#allocation255_spill] sm:$0xff] %v9355_v53  ;;  %v3257_v46 = vor.u32 %v3256_v15, %v3255_v59  ;;  %v9363_v18 = vpack.c.bf16 %v2739_v48, %v2739_v48  ;;  %v9393_v48 = vshll.u32 %v9329_v45, 16 }
 0x4f0   : > { %12307 = vst [vmem:[#allocation250_spill] sm:$0xff] %v9331_v26  ;;  %v9333_v17 = vpop.permute.xlu1 %3206  ;;  %12311 = vst [vmem:[#allocation253_spill] sm:$0xff] %v9348_v40  ;;  %v9372_v15 = vshrl.u32 %v9348_v40, 16  ;;  %v9402_v28 = vshll.u32 %v9348_v40, 16 }
 0x4f1   : > { %12308 = vst [vmem:[#allocation251_spill] sm:$0xff] %v9333_v17  ;;  %4185 = vrot.lane.b32.xlu0 %v9329_v45, %s11954_s20  ;;  %12317 = vst [vmem:[#allocation257_spill] sm:$0xff] %v9363_v18  ;;  %v9369_v14 = vsel %vm2053_vm14, %v3257_v46, %v9254_v57  ;;  %v9387_v31 = vrot.slane %v9363_v18, 1  ;;  %v2634_v46 = vmax.f32 %v2588_v34, 0.0  ;;  %v3368_v62 = vrot.slane %v9393_v48, 1 }
 0x4f2   : > { %4167 = vrot.lane.b32.xlu1 %v4122_v39, %s11972_s30  ;;  %12319 = vst [vmem:[#allocation259_spill] sm:$0xff] %v9369_v14  ;;  %v9382_v39 = vshrl.u32 %v9329_v45, 16 }
 0x4f3   : > { %v9346_v16 = vpop.permute.xlu0 %3204  ;;  %12322 = vst [vmem:[#allocation262_spill] sm:$0xff] %v9387_v31 }
 0x4f4   : > { %12310 = vst [vmem:[#allocation252_spill] sm:$0xff] %v9346_v16  ;;  %v9350_v5 = vpop.permute.xlu1 %3245  ;;  %v11728_v34 = vrot.slane %v9382_v39, 7 }
 0x4f5   : > { %12312 = vst [vmem:[#allocation254_spill] sm:$0xff] %v9350_v5  ;;  %3216 = vrot.lane.b32.xlu0 %v9355_v53, %s11993_s17 }
 0x4f6   : > { %4189 = vrot.lane.b32.xlu1 %v9348_v40, %s11954_s20 }
 0x4f7   : > { %v9361_v25 = vpop.permute.xlu0 %3390 }
 0x4f8   : > { %12316 = vst [vmem:[#allocation256_spill] sm:$0xff] %v9361_v25  ;;  %v9365_v20 = vpop.permute.xlu1 %3280 }
 0x4f9   : > { %12318 = vst [vmem:[#allocation258_spill] sm:$0xff] %v9365_v20  ;;  %3290 = vrot.lane.b32.xlu0 %v9369_v14, %s11998_s3 }
 0x4fa   : > { %4187 = vrot.lane.b32.xlu1 %v9363_v18, %s11954_s20 }
 0x4fb   : > { %v9379_v59 = vpop.permute.xlu0 %2986 }
 0x4fc   : > { %12320 = vst [vmem:[#allocation260_spill] sm:$0xff] %v9379_v59  ;;  %v9384_v30 = vpop.permute.xlu1 %3319  ;;  %v2742_v59 = vsel %vm725_vm0, %v2634_v46, 0.0  ;;  %vm12353_vm0 = vcmp.ge.s32.totalorder %v6812_v7, 0 }
 0x4fd   : > { %12321 = vst [vmem:[#allocation261_spill] sm:$0xff] %v9384_v30  ;;  %4054 = vrot.lane.b32.xlu0 %v9355_v53, %s11966_s24  ;;  %v12326_v30 = vrot.slane %v9372_v15, 7  ;;  %v3371_v53 = vshll.u32 %v9363_v18, 16 }
 0x4fe   : > { %4075 = vrot.lane.b32.xlu1 %v9387_v31, %s12001_s0 }
 0x4ff   : > { %v9404_v25 = vpop.permute.xlu0 %3070  ;;  %v4132_v57 = vor.u32 %v12326_v30, %v9402_v28  ;;  %v3369_v30 = vor.u32 %v3368_v62, %v9382_v39  ;;  %v3373_v46 = vrot.slane %v3371_v53, 1  ;;  %v3449_v20 = vrot.slane %v3371_v53, 2 }
 0x500   : > { %12324 = vst [vmem:[#allocation263_spill] sm:$0xff] %v9404_v25  ;;  %v9407_v27 = vpop.permute.xlu1 %3392  ;;  %v9422_v25 = vpack.c.bf16 %v2742_v59, %v2742_v59 }
 0x501   : > { %12325 = vst [vmem:[#allocation264_spill] sm:$0xff] %v9407_v27  ;;  %4088 = vrot.lane.b32.xlu0 %v9369_v14, %s11939_s23  ;;  %v4127_v27 = vor.u32 %v11728_v34, %v9393_v48  ;;  %v9438_v59 = vsel %vm12331_vm6, %v3369_v30, %v3373_v46  ;;  %v620_v30 = vadd.s32 11, %v8262_v55 }
 0x502   : > { %4175 = vrot.lane.b32.xlu1 %v4132_v57, %s11972_s30  ;;  %12328 = vst [vmem:[#allocation266_spill] sm:$0xff] %v9422_v25  ;;  %12332 = vst [vmem:[#allocation269_spill] sm:$0xff] %v9438_v59 }
 0x503   : > { %v9417_v5 = vpop.permute.xlu0 %3131  ;;  %vm632_vm1 = vcmp.ge.s32.totalorder %v620_v30, 0  ;;  %vm644_vm3 = vcmp.lt.s32.totalorder %v620_v30, 16 }
 0x504   : > { %12327 = vst [vmem:[#allocation265_spill] sm:$0xff] %v9417_v5  ;;  %v9424_v16 = vpop.permute.xlu1 %3466  ;;  %v3410_v5 = vrot.slane %v9329_v45, 1  ;;  %vm9475_vm15 = vmand %vm632_vm1, %vm644_vm3  ;;  %vm12361_vm1 = vsmask.f32 7424 }
 0x505   : > { %12329 = vst [vmem:[#allocation267_spill] sm:$0xff] %v9424_v16  ;;  %4171 = vrot.lane.b32.xlu0 %v4127_v27, %s11972_s30  ;;  %v3375_v27 = vshrl.u32 %v9363_v18, 16  ;;  %vm728_vm7 = vmand %vm9475_vm15, %vm12347_vm10 }
 0x506   : > { %4191 = vrot.lane.b32.xlu1 %v9422_v25, %s11954_s20  ;;  %v9449_v16 = vsel %vm12335_vm5, %v3410_v5, %v9387_v31  ;;  %v6156_v5 = vpop.f32.mrf.mxu0  ;;  %vm690_vm6 = vmand %vm9475_vm15, %vm12353_vm0 }
 0x507   : > { %v9430_v14 = vpop.permute.xlu0 %3243  ;;  %12336 = vst [vmem:[#allocation272_spill] sm:$0xff] %v9449_v16  ;;  %v3448_v45 = vrot.slane %v3375_v27, 1  ;;  %vm12370_vm3 = vmmov %vm12335_vm5 }
 0x508   : > { %12330 = vst [vmem:[#allocation268_spill] sm:$0xff] %v9430_v14  ;;  %v9432_v57 = vpop.permute.xlu1 %4157  ;;  %v9451_v14 = vor.u32 %v3375_v27, %v3373_v46 }
 0x509   : > { %4219 = vrot.lane.b32.xlu0 %v9387_v31, %s11977_s25  ;;  %v2599_v31 = vadd.f32 %v8886_v0, %v6156_v5  ;;  %v4067_v5 = vrot.slane %v9422_v25, 1 }
 0x50a   : > { %4058 = vrot.lane.b32.xlu1 %v9438_v59, %s11966_s24  ;;  %12337 = vst [vmem:[#allocation273_spill] sm:$0xff] %v9451_v14 }
 0x50b   : > { %v9443_v62 = vpop.permute.xlu0 %3278  ;;  %v2637_v30 = vmax.f32 %v2599_v31, 0.0 }
 0x50c   : > { %12333 = vst [vmem:[#allocation270_spill] sm:$0xff] %v9443_v62  ;;  %v9445_v34 = vpop.permute.xlu1 %2992 }
 0x50d   : > { %12334 = vst [vmem:[#allocation271_spill] sm:$0xff] %v9445_v34  ;;  %4217 = vrot.lane.b32.xlu0 %v9449_v16, %s11977_s25  ;;  %v9462_v34 = vor.u32 %v3449_v20, %v3448_v45  ;;  %v4128_v45 = vrot.slane %v3375_v27, 7  ;;  %v2590_v27 = vpop.f32.mrf.mxu0  ;;  %v2745_v23 = vsel %vm728_vm7, %v2637_v30, 0.0 }
 0x50e   : > { %4204 = vrot.lane.b32.xlu1 %v9451_v14, %s11993_s17 }
 0x50f   : > { %v9458_v18 = vpop.permute.xlu0 %3317  ;;  %12340 = vst [vmem:[#allocation276_spill] sm:$0xff] %v9462_v34 }
 0x510   : > { %12338 = vst [vmem:[#allocation274_spill] sm:$0xff] %v9458_v18  ;;  %v9460_v62 = vpop.permute.xlu1 %3137 }
 0x511   : > { %12339 = vst [vmem:[#allocation275_spill] sm:$0xff] %v9460_v62  ;;  %4073 = vrot.lane.b32.xlu0 %v9449_v16, %s12001_s0  ;;  %v3445_v16 = vrot.slane %v9382_v39, 1 }
 0x512   : > { %4238 = vrot.lane.b32.xlu1 %v9462_v34, %s11998_s3 }
 0x513   : > { %v9468_v46 = vpop.permute.xlu0 %3464 }
 0x514   : > { %12341 = vst [vmem:[#allocation277_spill] sm:$0xff] %v9468_v46  ;;  %v9471_v55 = vpop.permute.xlu1 %3249  ;;  %v4129_v46 = vor.u32 %v4128_v45, %v3371_v53  ;;  %v12350_v53 = vrot.slane %v9382_v39, 7 }
 0x515   : > { %12342 = vst [vmem:[#allocation278_spill] sm:$0xff] %v9471_v55  ;;  %4202 = vrot.lane.b32.xlu0 %v9438_v59, %s11993_s17  ;;  %v3446_v55 = vrot.slane %v9393_v48, 2  ;;  %v9507_v48 = vpack.c.bf16 %v2745_v23, %v2745_v23 }
 0x516   : > { %4094 = vrot.lane.b32.xlu1 %v9462_v34, %s11939_s23  ;;  %v4130_v45 = vsel %vm4100_vm11, %v12350_v53, %v4129_v46 }
 0x517   : > { %v9481_v62 = vpop.permute.xlu0 %3165 }
 0x518   : > { %12345 = vst [vmem:[#allocation279_spill] sm:$0xff] %v9481_v62  ;;  %v9483_v18 = vpop.permute.xlu1 %3323  ;;  %v2591_v62 = vadd.f32 %v8886_v0, %v2590_v27 }
 0x519   : > { %12346 = vst [vmem:[#allocation280_spill] sm:$0xff] %v9483_v18  ;;  %4060 = vrot.lane.b32.xlu0 %v9451_v14, %s11966_s24  ;;  %v2596_v18 = vadd.f32 %v8886_v0, %v9343_v60  ;;  %v3447_v14 = vor.u32 %v3446_v55, %v3445_v16  ;;  %v4066_v0 = vrot.slane %v9348_v40, 1  ;;  %v4044_v55 = vrot.slane %v9402_v28, 1 }
 0x51a   : > { %4223 = vrot.lane.b32.xlu1 %v4067_v5, %s11977_s25  ;;  %v2635_v60 = vmax.f32 %v2591_v62, 0.0 }
 0x51b   : > { %v9495_v31 = vpop.permute.xlu0 %2914  ;;  %v2636_v26 = vmax.f32 %v2596_v18, 0.0  ;;  %v9522_v16 = vsel %vm2053_vm14, %v3447_v14, %v9462_v34  ;;  %v4068_v46 = vsel %vm12335_vm5, %v4066_v0, %v4067_v5  ;;  %v4047_v14 = vshll.u32 %v9422_v25, 16  ;;  %vm12388_vm5 = vmmov %vm12361_vm1 }
 0x51c   : > { %12348 = vst [vmem:[#allocation281_spill] sm:$0xff] %v9495_v31  ;;  %v9500_v59 = vpop.permute.xlu1 %2916  ;;  %12354 = vst [vmem:[#allocation285_spill] sm:$0xff] %v9522_v16  ;;  %v2743_v62 = vsel %vm690_vm6, %v2635_v60, 0.0 }
 0x51d   : > { %12349 = vst [vmem:[#allocation282_spill] sm:$0xff] %v9500_v59  ;;  %4079 = vrot.lane.b32.xlu0 %v4067_v5, %s12001_s0  ;;  %v2744_v39 = vsel %vm9475_vm15, %v2636_v26, 0.0  ;;  %v4045_v26 = vor.u32 %v4044_v55, %v9372_v15  ;;  %v4049_v20 = vrot.slane %v4047_v14, 1  ;;  %vm12371_vm15 = vcmask 1041408  }
 0x51e   : > { %4173 = vrot.lane.b32.xlu1 %v4130_v45, %s11972_s30  ;;  %v2768_v27 = vpack.c.bf16 %v2744_v39, %v2743_v62  ;;  %v4215_v45 = vrot.slane %v9507_v48, 1  ;;  %v4051_v39 = vshrl.u32 %v9422_v25, 16  ;;  %vm12372_vm10 = vmmov %vm12371_vm15 }
 0x51f   : > { %v9509_v31 = vpop.permute.xlu0 %3208  ;;  %v4050_v0 = vsel %vm12361_vm1, %v4045_v26, %v4049_v20  ;;  %vm12384_vm0 = vmmov %vm12372_vm10 }
 0x520   : > { %12351 = vst [vmem:[#allocation283_spill] sm:$0xff] %v9509_v31  ;;  %v9511_v30 = vpop.permute.xlu1 %3076  ;;  %v4053_v55 = vor.u32 %v4051_v39, %v4049_v20  ;;  %v4084_v40 = vrot.slane %v4051_v39, 1  ;;  %v4133_v20 = vrot.slane %v4051_v39, 7  ;;  %vm12385_vm6 = vmmov %vm12384_vm0 }
 0x521   : > { %12352 = vst [vmem:[#allocation284_spill] sm:$0xff] %v9511_v30  ;;  %4195 = vrot.lane.b32.xlu0 %v9507_v48, %s11954_s20 }
 0x522   : > { %4236 = vrot.lane.b32.xlu1 %v9522_v16, %s11998_s3 }
 0x523   : > { %v9526_v18 = vpop.permute.xlu0 %2990 }
 0x524   : > { %12355 = vst [vmem:[#allocation286_spill] sm:$0xff] %v9526_v18  ;;  %v9530_v7 = vpop.permute.xlu1 %3171 }
 0x525   : > { %12356 = vst [vmem:[#allocation287_spill] sm:$0xff] %v9530_v7  ;;  %4077 = vrot.lane.b32.xlu0 %v4068_v46, %s12001_s0  ;;  %v4082_v7 = vrot.slane %v9402_v28, 2  ;;  %v4144_v28 = vshrl.u32 %v9507_v48, 16 }
 0x526   : > { %4092 = vrot.lane.b32.xlu1 %v9522_v16, %s11939_s23  ;;  %v4085_v16 = vrot.slane %v4047_v14, 2 }
 0x527   : > { %v9538_v23 = vpop.permute.xlu0 %3074 }
 0x528   : > { %12357 = vst [vmem:[#allocation288_spill] sm:$0xff] %v9538_v23  ;;  %v9540_v53 = vpop.permute.xlu1 %3210  ;;  %v4086_v25 = vor.u32 %v4085_v16, %v4084_v40  ;;  %v4214_v40 = vrot.slane %v2768_v27, 1  ;;  %v4134_v16 = vor.u32 %v4133_v20, %v4047_v14  ;;  %v4137_v20 = vshrl.u32 %v2768_v27, 16 }
 0x529   : > { %12358 = vst [vmem:[#allocation289_spill] sm:$0xff] %v9540_v53  ;;  %4193 = vrot.lane.b32.xlu0 %v2768_v27, %s11954_s20 }
 0x52a   : > { %4221 = vrot.lane.b32.xlu1 %v4068_v46, %s11977_s25 }
 0x52b   : > { %v9545_v5 = vpop.permute.xlu0 %3135 }
 0x52c   : > { %12359 = vst [vmem:[#allocation290_spill] sm:$0xff] %v9545_v5  ;;  %v9548_v60 = vpop.permute.xlu1 %3284  ;;  %v4081_v5 = vrot.slane %v9372_v15, 1 }
 0x52d   : > { %12360 = vst [vmem:[#allocation291_spill] sm:$0xff] %v9548_v60  ;;  %4227 = vrot.lane.b32.xlu0 %v4215_v45, %s11977_s25 }
 0x52e   : > { %4062 = vrot.lane.b32.xlu1 %v4050_v0, %s11966_s24  ;;  %v4083_v18 = vor.u32 %v4082_v7, %v4081_v5  ;;  %v6307_v7 = vld [vmem:[%s11541_s9 + $0x30] ss:$0 sps:$4 sm:$0x33]  }
 0x52f   : > { %v9554_v62 = vpop.permute.xlu0 %3247  ;;  %6211 = vmatprep.subr.msk.bf16.mxu1 %vm12371_vm15, %v6307_v7  ;;  %vm12394_vm15 = vcmask 1046528  }
 0x530   : > { %12362 = vst [vmem:[#allocation292_spill] sm:$0xff] %v9554_v62  ;;  %v9556_v46 = vpop.permute.xlu1 %4161  ;;  %v9569_v62 = vshll.u32 %v9507_v48, 16  ;;  %v4216_v48 = vsel %vm12370_vm3, %v4214_v40, %v4215_v45  ;;  %v4232_v40 = vrot.slane %v4144_v28, 1 }
 0x531   : > { %12363 = vst [vmem:[#allocation293_spill] sm:$0xff] %v9556_v46  ;;  %4064 = vrot.lane.b32.xlu0 %v4053_v55, %s11966_s24 }
 0x532   : > { %4206 = vrot.lane.b32.xlu1 %v4050_v0, %s11993_s17  ;;  %v4087_v0 = vsel %vm2053_vm14, %v4083_v18, %v4086_v25  ;;  %v4199_v39 = vrot.slane %v9569_v62, 1  ;;  %v4698_v18 = vsel %vm12372_vm10, %v6307_v7, 0  ;;  %v4233_v7 = vrot.slane %v9569_v62, 2 }
 0x533   : > { %v9562_v26 = vpop.permute.xlu0 %3282  ;;  %6158 = vmatpush3.bf16.msra.mxu1 %v4698_v18 }
 0x534   : > { %12364 = vst [vmem:[#allocation294_spill] sm:$0xff] %v9562_v26  ;;  %v9564_v34 = vpop.permute.xlu1 %2920  ;;  %v4140_v26 = vshll.u32 %v2768_v27, 16 }
 0x535   : > { %12365 = vst [vmem:[#allocation295_spill] sm:$0xff] %v9564_v34  ;;  %4098 = vrot.lane.b32.xlu0 %v4086_v25, %s11939_s23  ;;  %v6353_v34 = vld [vmem:[%s6628_s16 + $0x48] sm:$0xff] }
 0x536   : > { %4208 = vrot.lane.b32.xlu1 %v4053_v55, %s11993_s17 }
 0x537   : > { %v9571_v23 = vpop.permute.xlu0 %3321 }
 0x538   : > { %12366 = vst [vmem:[#allocation296_spill] sm:$0xff] %v9571_v23  ;;  %v9574_v60 = vpop.permute.xlu1 %3080  ;;  %v4146_v23 = vrot.slane %v4144_v28, 7 }
 0x539   : > { %12367 = vst [vmem:[#allocation297_spill] sm:$0xff] %v9574_v60  ;;  %4096 = vrot.lane.b32.xlu0 %v4087_v0, %s11939_s23  ;;  %v4201_v60 = vor.u32 %v4199_v39, %v4144_v28  ;;  %v4229_v28 = vrot.slane %v4137_v20, 1 }
 0x53a   : > { %4242 = vrot.lane.b32.xlu1 %v4086_v25, %s11998_s3  ;;  %v12373_v25 = vrot.slane %v9372_v15, 7  ;;  %v4149_v45 = vor.u32 %v9569_v62, %v4146_v23  ;;  %v4139_v15 = vrot.slane %v4137_v20, 7 }
 0x53b   : > { %v9582_v5 = vpop.permute.xlu0 %4163 }
 0x53c   : > { %12368 = vst [vmem:[#allocation298_spill] sm:$0xff] %v9582_v5  ;;  %v9585_v55 = vpop.permute.xlu1 %3214  ;;  %v4135_v14 = vsel %vm4100_vm11, %v12373_v25, %v4134_v16  ;;  %v4150_v18 = vsel %vm4100_vm11, %v4139_v15, %v4149_v45  ;;  %v4234_v25 = vor.u32 %v4233_v7, %v4232_v40  ;;  %v4142_v23 = vor.u32 %v4140_v26, %v4139_v15  ;;  %v12382_v45 = vld [vmem:[#allocation23_spill] sm:$0xff]  ;;  %v6308_v7 = vld [vmem:[%s11541_s9 + $0x28] sm:$0xff]  }
 0x53d   : > { %12369 = vst [vmem:[#allocation299_spill] sm:$0xff] %v9585_v55  ;;  %4225 = vrot.lane.b32.xlu0 %v4216_v48, %s11977_s25  ;;  %vm12383_vm11 = vnez %v12382_v45  ;;  %6159 = vmatprep.subr.bf16.mxu1 %v6308_v7  ;;  %v12389_v45 = vld [vmem:[#allocation34_spill] sm:$0xff] }
 0x53e   : > { %4177 = vrot.lane.b32.xlu1 %v4135_v14, %s11972_s30  ;;  %v4197_v14 = vrot.slane %v4140_v26, 1  ;;  %6160 = vmatpush3.bf16.msra.mxu1 %v6308_v7  ;;  %vm12390_vm1 = vnez %v12389_v45 }
 0x53f   : > { %v9595_v5 = vpop.permute.xlu0 %2918 }
 0x540   : > { %12374 = vst [vmem:[#allocation300_spill] sm:$0xff] %v9595_v5  ;;  %v9597_v55 = vpop.permute.xlu1 %3253  ;;  %v4198_v62 = vor.u32 %v4197_v14, %v4137_v20  ;;  %v6348_v5 = vld [vmem:[%s6628_s16 + $0x20] sm:$0xff] }
 0x541   : > { %12375 = vst [vmem:[#allocation301_spill] sm:$0xff] %v9597_v55  ;;  %4212 = vrot.lane.b32.xlu0 %v4201_v60, %s11993_s17  ;;  %v6347_v55 = vld [vmem:[%s6628_s16 + $0x18] sm:$0xff]  ;;  %v9620_v40 = vsel %vm12383_vm11, %v6348_v5, -inf }
 0x542   : > { %4240 = vrot.lane.b32.xlu1 %v4087_v0, %s11998_s3  ;;  %v4230_v0 = vrot.slane %v4140_v26, 2  ;;  %v5338_v26 = vld [vmem:[%s11543_s11] sm:$0x3]  ;;  %v4869_v15 = vrot.slane %v9620_v40, 1 }
 0x543   : > { %v9603_v16 = vpop.permute.xlu0 %3078  ;;  %6212 = vmatprep.subr.msk.bf16.mxu0 %vm12384_vm0, %v5338_v26  ;;  %v5371_v5 = vsel %vm12385_vm6, %v5338_v26, 0 }
 0x544   : > { %12376 = vst [vmem:[#allocation302_spill] sm:$0xff] %v9603_v16  ;;  %v9605_v48 = vpop.permute.xlu1 %3288  ;;  %v12380_v16 = vld [vmem:[#allocation24_spill] sm:$0xff]  ;;  %6188 = vmatpush3.bf16.msra.mxu0 %v5371_v5  ;;  %v4231_v14 = vor.u32 %v4230_v0, %v4229_v28  ;;  %v6351_v28 = vld [vmem:[%s6628_s16 + $0x28] sm:$0xff]  ;;  %v12395_v0 = vld [vmem:[#allocation27_spill] sm:$0xff] }
 0x545   : > { %12377 = vst [vmem:[#allocation303_spill] sm:$0xff] %v9605_v48  ;;  %4181 = vrot.lane.b32.xlu0 %v4150_v18, %s11972_s30  ;;  %vm12381_vm7 = vnez %v12380_v16  ;;  %v4200_v18 = vsel %vm12388_vm5, %v4198_v62, %v4199_v39  ;;  %v4958_v62 = vrot.slane %v9620_v40, 2  ;;  %vm12396_vm10 = vnez %v12395_v0 }
 0x546   : > { %4246 = vrot.lane.b32.xlu1 %v4234_v25, %s11998_s3  ;;  %v4813_v48 = vsel %vm12381_vm7, %v6347_v55, -inf  ;;  %v9659_v7 = vsel %vm12396_vm10, %v6351_v28, -inf  ;;  %vm12399_vm7 = vcmask 1045504  }
 0x547   : > { %v9610_v27 = vpop.permute.xlu0 %3212  ;;  %v4868_v20 = vrot.slane %v4813_v48, 1  ;;  %v4871_v45 = vrot.slane %v9659_v7, 1 }
 0x548   : > { %12378 = vst [vmem:[#allocation304_spill] sm:$0xff] %v9610_v27  ;;  %v9612_v60 = vpop.permute.xlu1 %3327  ;;  %v4957_v27 = vrot.slane %v4813_v48, 2 }
 0x549   : > { %12379 = vst [vmem:[#allocation305_spill] sm:$0xff] %v9612_v60  ;;  %4179 = vrot.lane.b32.xlu0 %v4142_v23, %s11972_s30  ;;  %v6349_v23 = vld [vmem:[%s6628_s16 + $0x30] sm:$0xff]  ;;  %v6350_v60 = vld [vmem:[%s6628_s16 + $0x38] sm:$0xff]  ;;  %v4870_v39 = vsel %vm12394_vm15, %v4868_v20, %v4869_v15 }
 0x54a   : > { %3535 = vrot.lane.b32.xlu1 %v8851_v10, %s12133_s14  ;;  %v9643_v26 = vsel %vm12390_vm1, %v6349_v23, -inf  ;;  %v4932_v20 = vmax.f32 %v4813_v48, %v4870_v39  ;;  %v4959_v0 = vsel %vm12399_vm7, %v4957_v27, %v4958_v62  ;;  %v6352_v48 = vld [vmem:[%s6628_s16 + $0x40] sm:$0xff]  ;;  %v12402_v39 = vld [vmem:[#allocation35_spill] sm:$0xff]  ;;  %vm12412_vm1 = vmmov %vm12399_vm7 }
 0x54b   : > { %v9633_v55 = vpop.permute.xlu0 %3286  ;;  %vm12403_vm11 = vnez %v12402_v39  ;;  %v12408_v39 = vld [vmem:[#allocation47_spill] sm:$0xff]  ;;  %vm12431_vm10 = vmmov %vm12412_vm1 }
 0x54c   : > { %12386 = vst [vmem:[#allocation24_spill] sm:$0xff] %v9633_v55  ;;  %v9636_v16 = vpop.permute.xlu1 %4071  ;;  %v12391_v55 = vld [vmem:[#allocation32_spill] sm:$0xff]  ;;  %v5021_v27 = vmax.f32 %v4932_v20, %v4959_v0  ;;  %vm12409_vm5 = vnez %v12408_v39 }
 0x54d   : > { %12387 = vst [vmem:[#allocation23_spill] sm:$0xff] %v9636_v16  ;;  %4210 = vrot.lane.b32.xlu0 %v4200_v18, %s11993_s17  ;;  %vm12392_vm3 = vnez %v12391_v55  ;;  %v4873_v55 = vrot.slane %v9643_v26, 1 }
 0x54e   : > { %v9648_v5 = vsel %vm12392_vm3, %v6350_v60, -inf  ;;  %3349 = vrot.lane.b32.xlu1 %v8851_v10, %s12123_s1  ;;  %v4235_v60 = vsel %vm2053_vm14, %v4231_v14, %v4234_v25  ;;  %vm12401_vm14 = vmmov %vm12394_vm15  ;;  %v4962_v14 = vrot.slane %v9643_v26, 2 }
 0x54f   : > { %v9652_v16 = vpop.permute.xlu0 %3169  ;;  %v11758_v23 = vrot.slane %v9648_v5, 1  ;;  %vm12404_vm0 = vmmov %vm12401_vm14 }
 0x550   : > { %12393 = vst [vmem:[#allocation34_spill] sm:$0xff] %v9652_v16  ;;  %v9661_v18 = vpop.permute.xlu1 %4165  ;;  %vm12414_vm3 = vmmov %vm12412_vm1 }
 0x551   : > { %12397 = vst [vmem:[#allocation32_spill] sm:$0xff] %v9661_v18  ;;  %4244 = vrot.lane.b32.xlu0 %v4235_v60, %s11998_s3  ;;  %v4875_v25 = vsel %vm12401_vm14, %v4873_v55, %v11758_v23  ;;  %v4872_v55 = vsel %vm12404_vm0, %v4869_v15, %v4871_v45  ;;  %v4960_v23 = vrot.slane %v9659_v7, 2  ;;  %v12406_v18 = vld [vmem:[#allocation52_spill] sm:$0xff]  ;;  %v12411_v15 = vrot.slane %v9648_v5, 2  ;;  %vm12423_vm15 = vmmov %vm12404_vm0  ;;  %s6472_s3 = smov [#allocation2]  }
 0x552   : > { %3353 = vrot.lane.b32.xlu1 %v8929_v41, %s12123_s1  ;;  %v4935_v60 = vmax.f32 %v9643_v26, %v4875_v25  ;;  %vm12407_vm6 = vnez %v12406_v18  ;;  %v6356_v18 = vld [vmem:[%s6628_s16 + $0x68] sm:$0xff]  ;;  %v4933_v39 = vmax.f32 %v9620_v40, %v4872_v55  ;;  %vm12436_vm14 = vmmov %vm12404_vm0  ;;  %s6364_s20 = sshll.u32 %s6472_s3, 4  ;;  %s6365_s20 = int_to_ptr.vmem [resolvable:$false] %s6364_s20 }
 0x553   : > { %v9670_v28 = vpop.permute.xlu0 %4090  ;;  %v9697_v30 = vsel %vm12407_vm6, %v6353_v34, -inf  ;;  %v9709_v20 = vsel %vm12412_vm1, %v4962_v14, %v12411_v15  ;;  %v6309_v14 = vld [vmem:[%s11541_s9 + $0x20] sm:$0xff]   ;;  %v4961_v44 = vsel %vm12414_vm3, %v4958_v62, %v4960_v23  ;;  %v4934_v62 = vmax.f32 %v9659_v7, %v4871_v45  ;;  %v12417_v15 = vld [vmem:[#allocation54_spill] sm:$0xff] }
 0x554   : > { %12398 = vst [vmem:[#allocation27_spill] sm:$0xff] %v9670_v28  ;;  %v9673_v16 = vpop.permute.xlu1 %3218  ;;  %v9685_v28 = vsel %vm12403_vm11, %v6352_v48, -inf  ;;  %v6354_v48 = vld [vmem:[%s6628_s16 + $0x50] sm:$0xff]  ;;  %v4878_v31 = vrot.slane %v9697_v30, 1  ;;  %6161 = vmatprep.subr.bf16.mxu1 %v6309_v14  ;;  %vm12438_vm11 = vmmov %vm12412_vm1 }
 0x555   : > { %12400 = vst [vmem:[#allocation306_spill] sm:$0xff] %v9673_v16  ;;  %3347 = vrot.lane.b32.xlu0 %v8736_v3, %s12123_s1  ;;  %v9702_v53 = vsel %vm12409_vm5, %v6354_v48, -inf  ;;  %v9712_v0 = vrot.slane %v9685_v28, 1  ;;  %v9722_v48 = vsel %vm7292_vm8, %v6356_v18, -inf  ;;  %6162 = vmatpush3.bf16.msra.mxu1 %v6309_v14  ;;  %vm12418_vm8 = vnez %v12417_v15 }
 0x556   : > { %3396 = vrot.lane.b32.xlu1 %v9073_v29, %s12126_s19  ;;  %v12430_v46 = vrot.slane %v9722_v48, 2 }
 0x557   : > { %v9691_v16 = vpop.permute.xlu0 %3251 }
 0x558   : > { %12405 = vst [vmem:[#allocation35_spill] sm:$0xff] %v9691_v16  ;;  %v9704_v29 = vpop.permute.xlu1 %3292  ;;  %v6355_v16 = vld [vmem:[%s6628_s16 + $0x60] sm:$0xff] }
 0x559   : > { %12410 = vst [vmem:[#allocation52_spill] sm:$0xff] %v9704_v29  ;;  %v9717_v34 = vsel %vm7315_vm12, %v6355_v16, -inf  ;;  %3351 = vrot.lane.b32.xlu0 %v9045_v37, %s12123_s1  ;;  %v5045_v16 = vmax.f32 %v5021_v27, %v9643_v26  ;;  %v5024_v29 = vmax.f32 %v4935_v60, %v9709_v20  ;;  %v9746_v26 = vrot.slane %v9685_v28, 2  ;;  %v6357_v60 = vld [vmem:[%s6628_s16 + $0x58] sm:$0xff]  ;;  %vm12420_vm12 = vmmov %vm12404_vm0 }
 0x55a   : > { %3400 = vrot.lane.b32.xlu1 %v9153_v9, %s12126_s19  ;;  %v4883_v3 = vrot.slane %v9717_v34, 1  ;;  %v4937_v9 = vmax.f32 %v9685_v28, %v9712_v0  ;;  %v9751_v27 = vmax.f32 %v4933_v39, %v4961_v44  ;;  %v9756_v40 = vsel %vm12418_vm8, %v6357_v60, -inf  ;;  %v6358_v60 = vld [vmem:[%s6628_s16 + $0x70] sm:$0xff] }
 0x55b   : > { %v9736_v18 = vpop.permute.xlu0 %3325  ;;  %v9760_v14 = vmax.f32 %v5045_v16, %v4875_v25  ;;  %v5048_v39 = vmax.f32 %v5024_v29, %v9697_v30  ;;  %v12422_v44 = vrot.slane %v9722_v48, 1  ;;  %v9788_v29 = vsel %vm7341_vm9, %v6358_v60, -inf  ;;  %vm12427_vm9 = vmmov %vm12412_vm1 }
 0x55c   : > { %12415 = vst [vmem:[#allocation47_spill] sm:$0xff] %v9736_v18  ;;  %v9741_v55 = vpop.permute.xlu1 %4056  ;;  %v12419_v18 = vrot.slane %v9702_v53, 1  ;;  %v12426_v60 = vrot.slane %v9702_v53, 2  ;;  %vm12443_vm0 = vcmask 130048   ;;  %vm12448_vm1 = vcmask 162816  }
 0x55d   : > { %12416 = vst [vmem:[#allocation66_spill] sm:$0xff] %v9741_v55  ;;  %3394 = vrot.lane.b32.xlu0 %v9071_v54, %s12126_s19  ;;  %v4967_v54 = vrot.slane %v9697_v30, 2  ;;  %v9775_v15 = vsel %vm12423_vm15, %v4883_v3, %v12422_v44  ;;  %v5023_v3 = vmax.f32 %v4934_v62, %v4960_v23  ;;  %v5046_v44 = vmax.f32 %v9751_v27, %v9648_v5  ;;  %v6359_v23 = vld [vmem:[%s6628_s16 + $0x88] sm:$0xff]  ;;  %vm12444_vm6 = vmmov %vm12443_vm0  ;;  %s6366_s16 = scalar_lea.vmem %s6365_s20, 4096 }
 0x55e   : > { %3431 = vrot.lane.b32.xlu1 %v8880_v6, %s12160_s18  ;;  %v9765_v55 = vsel %vm12420_vm12, %v4878_v31, %v12419_v18  ;;  %v4972_v6 = vrot.slane %v9717_v34, 2  ;;  %v5026_v31 = vmax.f32 %v4937_v9, %v9746_v26  ;;  %v9783_v18 = vrot.slane %v9756_v40, 1  ;;  %vm12449_vm3 = vmmov %vm12448_vm1 }
 0x55f   : > { %v9769_v45 = vpop.permute.xlu0 %4069  ;;  %v4938_v25 = vmax.f32 %v9697_v30, %v9765_v55  ;;  %v4941_v7 = vmax.f32 %v9717_v34, %v9775_v15  ;;  %v9810_v27 = vsel %vm7490_vm2, %v6359_v23, -inf  ;;  %v9828_v23 = vrot.slane %v9756_v40, 2 }
 0x560   : > { %12421 = vst [vmem:[#allocation54_spill] sm:$0xff] %v9769_v45  ;;  %v9779_v16 = vpop.permute.xlu1 %4169  ;;  %v4940_v9 = vmax.f32 %v9756_v40, %v9783_v18  ;;  %v9820_v10 = vsel %vm12431_vm10, %v4972_v6, %v12430_v46  ;;  %v5050_v62 = vmax.f32 %v5026_v31, %v9756_v40  ;;  %vm12433_vm2 = vcmask 31744  }
 0x561   : > { %12424 = vst [vmem:[#allocation307_spill] sm:$0xff] %v9779_v16  ;;  %3398 = vrot.lane.b32.xlu0 %v9186_v12, %s12126_s19  ;;  %v9805_v12 = vsel %vm12427_vm9, %v4967_v54, %v12426_v60  ;;  %v5083_v16 = vmax.f32 %v5048_v39, %v9765_v55  ;;  %v9823_v54 = vrot.slane %v9788_v29, 1  ;;  %vm12434_vm7 = vmmov %vm12433_vm2  ;;  %v12435_v46 = vrot.slane %v9648_v5, 1 }
 0x562   : > { %3435 = vrot.lane.b32.xlu1 %v9013_v47, %s12160_s18  ;;  %v3566_v47 = vsel %vm12433_vm2, %v8463_v32, %v8849_v38  ;;  %v3568_v39 = vsel %vm12434_vm7, %v8424_v49, %v8866_v4  ;;  %v5027_v31 = vmax.f32 %v4938_v25, %v9805_v12  ;;  %v12437_v49 = vrot.slane %v9648_v5, 2  ;;  %vm12446_vm5 = vmmov %vm12433_vm2 }
 0x563   : > { %v9812_v45 = vpop.permute.xlu0 %4185  ;;  %v4877_v6 = vsel %vm12436_vm14, %v12435_v46, %v9712_v0  ;;  %v5029_v38 = vmax.f32 %v4940_v9, %v9828_v23  ;;  %v5030_v4 = vmax.f32 %v4941_v7, %v9820_v10  ;;  %v4943_v25 = vmax.f32 %v9788_v29, %v9823_v54  ;;  %vm12456_vm9 = vmmov %vm12443_vm0 }
 0x564   : > { %12429 = vst [vmem:[#allocation67_spill] sm:$0xff] %v9812_v45  ;;  %v9825_v60 = vpop.permute.xlu1 %4167  ;;  %v5047_v45 = vmax.f32 %v5023_v3, %v9685_v28  ;;  %v9854_v32 = vsel %vm12438_vm11, %v12437_v49, %v9746_v26  ;;  %v3598_v3 = vsel %vm1822_vm13, %v3566_v47, %v8759_v22  ;;  %v3600_v46 = vsel %vm1822_vm13, %v3568_v39, %v8704_v24  ;;  %vm12461_vm2 = vmmov %vm12438_vm11 }
 0x565   : > { %12432 = vst [vmem:[#allocation18_spill] sm:$0xff] %v9825_v60  ;;  %3429 = vrot.lane.b32.xlu0 %v8967_v52, %s12160_s18  ;;  %v9846_v60 = vrot.slane %v9810_v27, 1  ;;  %v9857_v52 = vrot.slane %v9788_v29, 2  ;;  %v5085_v9 = vmax.f32 %v5050_v62, %v9783_v18  ;;  %v5115_v7 = vmax.f32 %v5083_v16, %v9805_v12  ;;  %v12445_v62 = vld [vmem:[#allocation21_spill] sm:$0xff]  ;;  %vm12468_vm11 = vmmov %vm12448_vm1 }
 0x566   : > { %3470 = vrot.lane.b32.xlu1 %v9083_v51, %s12233_s27  ;;  %v9881_v59 = vsel %vm1855_vm4, %v3600_v46, %v8901_v61  ;;  %v5051_v22 = vmax.f32 %v5027_v31, %v9717_v34  ;;  %v9887_v24 = vrot.slane %v9810_v27, 2  ;;  %v6310_v61 = vld [vmem:[%s11541_s9 + $0x18] sm:$0xff]   ;;  %v5053_v47 = vmax.f32 %v5029_v38, %v9788_v29 }
 0x567   : > { %v9861_v28 = vpop.permute.xlu0 %3216  ;;  %v4946_v51 = vmax.f32 %v9810_v27, %v9846_v60  ;;  %12442 = vst [vmem:[#allocation311_spill] sm:$0xff] %v9881_v59  ;;  %v5054_v39 = vmax.f32 %v5030_v4, %v12445_v62  ;;  %6163 = vmatprep.subr.bf16.mxu1 %v6310_v61  ;;  %vm12450_vm8 = vcmask 195584   ;;  %v12452_v4 = vld [vmem:[#allocation25_spill] sm:$0xff]  ;;  %vm12457_vm10 = vcmask 228352  }
 0x568   : > { %12439 = vst [vmem:[#allocation308_spill] sm:$0xff] %v9861_v28  ;;  %v9871_v49 = vpop.permute.xlu1 %4189  ;;  %v9877_v28 = vsel %vm1855_vm4, %v3598_v3, %v8863_v21  ;;  %v4287_v21 = vsel %vm12444_vm6, %v9881_v59, %v9096_v58  ;;  %v4936_v58 = vmax.f32 %v9648_v5, %v4877_v6  ;;  %v9909_v3 = vmax.f32 %v5046_v44, %v4877_v6  ;;  %vm12455_vm15 = vmmov %vm12450_vm8 }
 0x569   : > { %12440 = vst [vmem:[#allocation309_spill] sm:$0xff] %v9871_v49  ;;  %12441 = vst [vmem:[#allocation310_spill] sm:$0xff] %v9877_v28  ;;  %3433 = vrot.lane.b32.xlu0 %v9100_v1, %s12160_s18  ;;  %v4285_v16 = vsel %vm12443_vm0, %v9877_v28, %v9094_v63  ;;  %v5082_v1 = vmax.f32 %v5047_v45, %v9712_v0  ;;  %v3572_v63 = vsel %vm12446_vm5, %v8516_v36, %v9010_v35  ;;  %vm12463_vm7 = vcmask 261120   ;;  %v12500_v28 = vld [vmem:[#allocation33_spill] sm:$0xff]  ;;  %v12522_v49 = vld [vmem:[#allocation247_spill] sm:$0xff] }
 0x56a   : > { %3474 = vrot.lane.b32.xlu1 %v9166_v42, %s12233_s27  ;;  %v5032_v42 = vmax.f32 %v4943_v25, %v9857_v52  ;;  %v5035_v46 = vmax.f32 %v4946_v51, %v9887_v24  ;;  %v5139_v0 = vmax.f32 %v5115_v7, %v9717_v34  ;;  %v4316_v45 = vsel %vm12448_vm1, %v4285_v16, %v8937_v50  ;;  %v12454_v7 = vld [vmem:[#allocation40_spill] sm:$0xff]  ;;  %vm12466_vm14 = vmmov %vm12457_vm10 }
 0x56b   : > { %v9906_v31 = vpop.permute.xlu0 %3290  ;;  %v4317_v36 = vsel %vm12449_vm3, %v4287_v21, %v8790_v2  ;;  %6164 = vmatpush3.bf16.msra.mxu1 %v6310_v61  ;;  %v5086_v35 = vmax.f32 %v5051_v22, %v9775_v15  ;;  %v5117_v5 = vmax.f32 %v5085_v9, %v9828_v23  ;;  %v3604_v44 = vsel %vm1822_vm13, %v3572_v63, %v8877_v33  ;;  %v12458_v63 = vld [vmem:[#allocation228_spill] sm:$0xff]  ;;  %vm12475_vm0 = vmmov %vm12446_vm5  ;;  %v12492_v2 = vld [vmem:[#allocation250_spill] sm:$0xff] }
 0x56c   : > { %12447 = vst [vmem:[#allocation21_spill] sm:$0xff] %v9906_v31  ;;  %v9913_v59 = vpop.permute.xlu1 %4187  ;;  %v4338_v34 = vsel %vm12450_vm8, %v4316_v45, %v9146_v56  ;;  %v12451_v6 = vrot.slane %v9722_v48, 1  ;;  %v5089_v25 = vmax.f32 %v5054_v39, %v12452_v4  ;;  %v9940_v51 = vsel %vm1855_vm4, %v3604_v44, %v9020_v43  ;;  %vm12476_vm6 = vmmov %vm12450_vm8  ;;  %v12496_v56 = vld [vmem:[#allocation46_spill] sm:$0xff]  ;;  %v12536_v31 = vld [vmem:[#allocation293_spill] sm:$0xff] }
 0x56d   : > { %3468 = vrot.lane.b32.xlu0 %v9112_v13, %s12233_s27  ;;  %v5088_v13 = vmax.f32 %v5053_v47, %v9823_v54  ;;  %12453 = vst [vmem:[#allocation25_spill] sm:$0xff] %v9940_v51  ;;  %v5056_v9 = vmax.f32 %v5032_v42, %v9810_v27  ;;  %v4339_v22 = vsel %vm12455_vm15, %v4317_v36, %v9038_v19  ;;  %v12467_v36 = vld [vmem:[#allocation211_spill] sm:$0xff]  ;;  %vm12478_vm5 = vmmov %vm12463_vm7  ;;  %v12485_v19 = vld [vmem:[#allocation214_spill] sm:$0xff] }
 0x56e   : > { %3505 = vrot.lane.b32.xlu1 %v8915_v8, %s12129_s4  ;;  %v9934_v38 = vsel %vm12420_vm12, %v12451_v6, %v9823_v54  ;;  %v5059_v8 = vmax.f32 %v5035_v46, %v12454_v7  ;;  %v4291_v16 = vsel %vm12456_vm9, %v9940_v51, %v9432_v57  ;;  %v9954_v61 = vmax.f32 %v4936_v58, %v9854_v32  ;;  %v12469_v6 = vld [vmem:[#allocation30_spill] sm:$0xff]  ;;  %vm12484_vm1 = vmmov %vm12457_vm10 }
 0x56f   : > { %v9942_v33 = vpop.permute.xlu0 %4054  ;;  %v5114_v43 = vmax.f32 %v5082_v1, %v9746_v26  ;;  %v5174_v47 = vmax.f32 %v5139_v0, %v9775_v15  ;;  %v4360_v39 = vsel %vm12457_vm10, %v4338_v34, %v8983_v11  ;;  %v12459_v42 = vmax.f32 %v9760_v14, %v9709_v20  ;;  %v12462_v15 = vld [vmem:[#allocation219_spill] sm:$0xff]  ;;  %v12464_v0 = vld [vmem:[#allocation200_spill] sm:$0xff]  ;;  %vm12491_vm3 = vmmov %vm12456_vm9 }
 0x570   : > { %v9951_v21 = vpop.permute.xlu1 %4075  ;;  %v12460_v58 = vrot.slane %v9722_v48, 2  ;;  %v5141_v26 = vmax.f32 %v5117_v5, %v9788_v29  ;;  %v4382_v1 = vsel %vm12463_vm7, %v4360_v39, %v12462_v15  ;;  %v4942_v45 = vmax.f32 %v9722_v48, %v9934_v38  ;;  %v12465_v20 = vld [vmem:[#allocation184_spill] sm:$0xff]  ;;  %vm12494_vm8 = vmmov %vm12475_vm0 }
 0x571   : > { %3472 = vrot.lane.b32.xlu0 %v12458_v63, %s12233_s27  ;;  %v9966_v57 = vmax.f32 %v12459_v42, %v9697_v30  ;;  %v5118_v30 = vmax.f32 %v5086_v35, %v9820_v10  ;;  %v4361_v14 = vsel %vm12466_vm14, %v4339_v22, %v12465_v20  ;;  %v4319_v44 = vsel %vm12468_vm11, %v4291_v16, %v12467_v36  ;;  %v12470_v63 = vld [vmem:[#allocation42_spill] sm:$0xff]  ;;  %v12474_v20 = vld [vmem:[#allocation127_spill] sm:$0xff]  ;;  %vm12499_vm12 = vmmov %vm12478_vm5 }
 0x572   : > { %v9972_v46 = vsel %vm12461_vm2, %v12460_v58, %v9857_v52  ;;  %3509 = vrot.lane.b32.xlu1 %v12464_v0, %s12129_s4  ;;  %v5091_v29 = vmax.f32 %v5056_v9, %v9846_v60  ;;  %v5120_v5 = vmax.f32 %v5088_v13, %v9857_v52  ;;  %v5121_v39 = vmax.f32 %v5089_v25, %v12469_v6  ;;  %v12472_v9 = vld [vmem:[#allocation195_spill] sm:$0xff]  ;;  %v12473_v25 = vld [vmem:[#allocation212_spill] sm:$0xff]  ;;  %v12480_v35 = vld [vmem:[#allocation50_spill] sm:$0xff] }
 0x573   : > { %v9986_v34 = vpop.permute.xlu0 %4088  ;;  %v5094_v42 = vmax.f32 %v5059_v8, %v12470_v63  ;;  %v9997_v22 = vmax.f32 %v5114_v43, %v9756_v40  ;;  %v10000_v16 = vmax.f32 %v5174_v47, %v9820_v10  ;;  %v4406_v0 = vshll.u32 %v4382_v1, 16  ;;  %v12477_v40 = vld [vmem:[#allocation204_spill] sm:$0xff]  ;;  %v12482_v47 = vld [vmem:[#allocation189_spill] sm:$0xff]  ;;  %vm12502_vm15 = vmmov %vm12468_vm11 }
 0x574   : > { %v9992_v58 = vpop.permute.xlu1 %4175  ;;  %v5176_v13 = vmax.f32 %v5141_v26, %v9823_v54  ;;  %v3570_v8 = vsel %vm12475_vm0, %v12474_v20, %v12473_v25  ;;  %v4341_v15 = vsel %vm12476_vm6, %v4319_v44, %v9333_v17  ;;  %v4383_v10 = vsel %vm12478_vm5, %v4361_v14, %v12477_v40  ;;  %vm12505_vm9 = vmmov %vm12475_vm0  ;;  %v12506_v36 = vld [vmem:[#allocation229_spill] sm:$0xff] }
 0x575   : > { %12471 = vst [vmem:[#allocation40_spill] sm:$0xff] %v9992_v58  ;;  %3503 = vrot.lane.b32.xlu0 %v12472_v9, %s12129_s4  ;;  %v10019_v54 = vmax.f32 %v4942_v45, %v9972_v46  ;;  %v10022_v26 = vmax.f32 %v5118_v30, %v12445_v62  ;;  %v10027_v44 = vmax.f32 %v5120_v5, %v9810_v27  ;;  %v12479_v9 = vld [vmem:[#allocation28_spill] sm:$0xff]  ;;  %v4408_v11 = vrot.slane %v4406_v0, 1  ;;  %v12483_v62 = vld [vmem:[#allocation222_spill] sm:$0xff]  ;;  %v12488_v0 = vld [vmem:[#allocation209_spill] sm:$0xff] }
 0x576   : > { %3539 = vrot.lane.b32.xlu1 %v8929_v41, %s12133_s14  ;;  %v10030_v25 = vmax.f32 %v5121_v39, %v12479_v9  ;;  %v5123_v14 = vmax.f32 %v5091_v29, %v9887_v24  ;;  %v5126_v43 = vmax.f32 %v5094_v42, %v12480_v35  ;;  %v3602_v45 = vsel %vm1822_vm13, %v3570_v8, %v12482_v47  ;;  %v12486_v42 = vld [vmem:[#allocation215_spill] sm:$0xff]  ;;  %v12490_v47 = vld [vmem:[#allocation226_spill] sm:$0xff]  ;;  %vm12508_vm10 = vmmov %vm12476_vm6 }
 0x577   : > { %v10024_v20 = vpop.permute.xlu0 %4171  ;;  %v4363_v30 = vsel %vm12484_vm1, %v4341_v15, %v12483_v62  ;;  %v4410_v27 = vshll.u32 %v4383_v10, 16  ;;  %v5173_v5 = vmax.f32 %v9997_v22, %v9783_v18  ;;  %v10046_v39 = vmax.f32 %v5176_v13, %v9857_v52  ;;  %v12489_v15 = vld [vmem:[#allocation22_spill] sm:$0xff]  ;;  %v12504_v62 = vld [vmem:[#allocation157_spill] sm:$0xff]  ;;  %vm12523_vm7 = vmmov %vm12491_vm3 }
 0x578   : > { %v10034_v40 = vpop.permute.xlu1 %4191  ;;  %v10050_v9 = vsel %vm1855_vm4, %v3602_v45, %v12486_v42  ;;  %v12493_v29 = vld [vmem:[#allocation146_spill] sm:$0xff]  ;;  %v10067_v42 = vmax.f32 %v5123_v14, %v12454_v7  ;;  %v10070_v50 = vmax.f32 %v5126_v43, %v12496_v56  ;;  %v12501_v14 = vld [vmem:[#allocation201_spill] sm:$0xff]  ;;  %vm12519_vm2 = vsmask.f32 7424  ;;  %vm12525_vm14 = vmmov %vm12484_vm1 }
 0x579   : > { %12481 = vst [vmem:[#allocation228_spill] sm:$0xff] %v10034_v40  ;;  %3507 = vrot.lane.b32.xlu0 %v12485_v19, %s12129_s4  ;;  %12487 = vst [vmem:[#allocation200_spill] sm:$0xff] %v10050_v9  ;;  %v4404_v19 = vshrl.u32 %v4382_v1, 16  ;;  %v4289_v22 = vsel %vm12491_vm3, %v10050_v9, %v12490_v47  ;;  %v3574_v52 = vsel %vm12494_vm8, %v12493_v29, %v12492_v2  ;;  %v12498_v8 = vld [vmem:[#allocation258_spill] sm:$0xff]  ;;  %v4412_v56 = vrot.slane %v4410_v27, 1  ;;  %v12509_v27 = vld [vmem:[#allocation263_spill] sm:$0xff] }
 0x57a   : > { %3543 = vrot.lane.b32.xlu1 %v12488_v0, %s12133_s14  ;;  %v4385_v47 = vsel %vm12499_vm12, %v4363_v30, %v12498_v8  ;;  %v6311_v2 = vld [vmem:[%s11541_s9 + $0x10] sm:$0xff]   ;;  %v4318_v30 = vsel %vm12502_vm15, %v4289_v22, %v12501_v14  ;;  %v12503_v8 = vld [vmem:[#allocation236_spill] sm:$0xff]  ;;  %v3606_v29 = vsel %vm1822_vm13, %v3574_v52, %v12506_v36  ;;  %v4414_v22 = vshrl.u32 %v4383_v10, 16  ;;  %v12513_v52 = vld [vmem:[#allocation71_spill] sm:$0xff] }
 0x57b   : > { %v10062_v13 = vpop.permute.xlu0 %4219  ;;  %v4409_v7 = vor.u32 %v4408_v11, %v4404_v19  ;;  %v3576_v17 = vsel %vm12505_vm9, %v12504_v62, %v12503_v8  ;;  %6165 = vmatprep.subr.bf16.mxu1 %v6311_v2  ;;  %v12507_v11 = vld [vmem:[#allocation252_spill] sm:$0xff]  ;;  %v10099_v45 = vsel %vm1855_vm4, %v3606_v29, %v12509_v27  ;;  %v4423_v14 = vshll.u32 %v4385_v47, 16  ;;  %v12514_v9 = vld [vmem:[#allocation13_spill] sm:$0xff]  ;;  %v12517_v27 = vld [vmem:[#allocation218_spill] sm:$0xff] }
 0x57c   : > { %12495 = vst [vmem:[#allocation30_spill] sm:$0xff] %v10062_v13  ;;  %v10072_v1 = vpop.permute.xlu1 %4058  ;;  %v4340_v19 = vsel %vm12508_vm10, %v4318_v30, %v12507_v11  ;;  %12510 = vst [vmem:[#allocation195_spill] sm:$0xff] %v10099_v45  ;;  %6166 = vmatpush3.bf16.msra.mxu1 %v6311_v2  ;;  %v12512_v36 = vld [vmem:[#allocation48_spill] sm:$0xff]  ;;  %v3608_v58 = vsel %vm1822_vm13, %v3576_v17, %v12517_v27  ;;  %v12518_v10 = vld [vmem:[#allocation234_spill] sm:$0xff]  ;;  %v10116_v2 = vor.u32 %v4414_v22, %v4412_v56  ;;  %vm12528_vm11 = vcmask 1046528  }
 0x57d   : > { %12497 = vst [vmem:[#allocation42_spill] sm:$0xff] %v10072_v1  ;;  %3537 = vrot.lane.b32.xlu0 %v9045_v37, %s12133_s14  ;;  %v12516_v11 = vld [vmem:[#allocation12_spill] sm:$0xff]  ;;  %v10119_v62 = vsel %vm12519_vm2, %v4409_v7, %v4412_v56  ;;  %v12520_v8 = vld [vmem:[#allocation242_spill] sm:$0xff]  ;;  %v12524_v29 = vld [vmem:[#allocation235_spill] sm:$0xff]  ;;  %v12527_v22 = vrot.slane %v9702_v53, 1  ;;  %vm12540_vm1 = vcmask 1045504  }
 0x57e   : > { %3357 = vrot.lane.b32.xlu1 %v12488_v0, %s12123_s1  ;;  %v10123_v51 = vsel %vm1855_vm4, %v3608_v58, %v12520_v8  ;;  %v4362_v40 = vsel %vm12525_vm14, %v4340_v19, %v12524_v29  ;;  %v12526_v17 = vld [vmem:[#allocation257_spill] sm:$0xff]  ;;  %v12529_v56 = vld [vmem:[#allocation270_spill] sm:$0xff]  ;;  %vm12530_vm0 = vmmov %vm12478_vm5  ;;  %v10142_v8 = vrot.slane %v4423_v14, 1  ;;  %v12532_v19 = vmax.f32 %v9954_v61, %v9702_v53 }
 0x57f   : > { %v10101_v43 = vpop.permute.xlu0 %4217  ;;  %12521 = vst [vmem:[#allocation28_spill] sm:$0xff] %v10123_v51  ;;  %v4882_v7 = vsel %vm12528_vm11, %v12527_v22, %v9783_v18  ;;  %v10138_v27 = vsel %vm12530_vm0, %v4362_v40, %v12529_v56  ;;  %v12534_v13 = vld [vmem:[#allocation175_spill] sm:$0xff]  ;;  %vm12535_vm6 = vmmov %vm12494_vm8  ;;  %v12539_v14 = vrot.slane %v9702_v53, 2  ;;  %v5205_v56 = vmax.f32 %v5173_v5, %v9828_v23  ;;  %v12549_v5 = vld [vmem:[#allocation152_spill] sm:$0xff] }
 0x580   : > { %12511 = vst [vmem:[#allocation212_spill] sm:$0xff] %v10101_v43  ;;  %v10109_v30 = vpop.permute.xlu1 %4204  ;;  %v4293_v43 = vsel %vm12523_vm7, %v10099_v45, %v12522_v49  ;;  %v4427_v49 = vshrl.u32 %v4385_v47, 16  ;;  %v5084_v29 = vmax.f32 %v12532_v19, %v4882_v7  ;;  %v12533_v45 = vld [vmem:[#allocation282_spill] sm:$0xff]  ;;  %vm12537_vm5 = vmmov %vm12491_vm3  ;;  %v4939_v40 = vmax.f32 %v9702_v53, %v4882_v7 }
 0x581   : > { %12515 = vst [vmem:[#allocation127_spill] sm:$0xff] %v10109_v30  ;;  %3541 = vrot.lane.b32.xlu0 %v12518_v10, %s12133_s14  ;;  %v3580_v1 = vsel %vm12535_vm6, %v12534_v13, %v12533_v45  ;;  %v4295_v18 = vsel %vm12537_vm5, %v10123_v51, %v12536_v31  ;;  %v4971_v47 = vsel %vm12540_vm1, %v12539_v14, %v9828_v23  ;;  %v4419_v14 = vshll.u32 %v10138_v27, 16  ;;  %vm12544_vm3 = vmmov %vm12502_vm15 }
 0x582   : > { %3361 = vrot.lane.b32.xlu1 %v12526_v17, %s12123_s1  ;;  %v5116_v61 = vmax.f32 %v5084_v29, %v4971_v47  ;;  %v12541_v13 = vmax.f32 %v9909_v3, %v9854_v32  ;;  %v12542_v31 = vmax.f32 %v9966_v57, %v9765_v55  ;;  %v12545_v29 = vld [vmem:[#allocation240_spill] sm:$0xff]  ;;  %v5028_v30 = vmax.f32 %v4939_v40, %v4971_v47  ;;  %v12546_v32 = vld [vmem:[#allocation233_spill] sm:$0xff]  ;;  %vm12547_vm8 = vmmov %vm12544_vm3 }
 0x583   : > { %v10140_v58 = vpop.permute.xlu0 %4073  ;;  %v10182_v55 = vor.u32 %v4427_v49, %v10142_v8  ;;  %v12548_v57 = vld [vmem:[#allocation281_spill] sm:$0xff]  ;;  %vm12550_vm12 = vmmov %vm12535_vm6  ;;  %v12553_v40 = vld [vmem:[#allocation239_spill] sm:$0xff] }
 0x584   : > { %12531 = vst [vmem:[#allocation50_spill] sm:$0xff] %v10140_v58  ;;  %v10153_v22 = vpop.permute.xlu1 %4238  ;;  %v5137_v45 = vmax.f32 %v12541_v13, %v9702_v53  ;;  %v5203_v19 = vmax.f32 %v12542_v31, %v9805_v12  ;;  %v4321_v53 = vsel %vm12547_vm8, %v4295_v18, %v12546_v32  ;;  %v5140_v12 = vmax.f32 %v5116_v61, %v9722_v48  ;;  %vm12552_vm15 = vmmov %vm12508_vm10  ;;  %v12554_v49 = vld [vmem:[#allocation249_spill] sm:$0xff] }
 0x585   : > { %12538 = vst [vmem:[#allocation189_spill] sm:$0xff] %v10153_v22  ;;  %3355 = vrot.lane.b32.xlu0 %v12518_v10, %s12123_s1  ;;  %v12543_v22 = vld [vmem:[#allocation207_spill] sm:$0xff]  ;;  %v10188_v13 = vsel %vm12550_vm12, %v12549_v5, %v12548_v57  ;;  %v5052_v51 = vmax.f32 %v5028_v30, %v9722_v48  ;;  %v5261_v32 = vrot.slane %v5205_v56, 3  ;;  %v12555_v57 = vld [vmem:[#allocation289_spill] sm:$0xff]  ;;  %vm12556_vm9 = vmmov %vm12508_vm10  ;;  %vm5257_vm10 = vcmask 1044480  }
 0x586   : > { %v4320_v58 = vsel %vm12544_vm3, %v4293_v43, %v12543_v22  ;;  %3404 = vrot.lane.b32.xlu1 %v12545_v29, %s12126_s19  ;;  %v5172_v23 = vmax.f32 %v5137_v45, %v4882_v7  ;;  %v12551_v43 = vld [vmem:[#allocation283_spill] sm:$0xff]  ;;  %v3612_v29 = vsel %vm1822_vm13, %v3580_v1, %v12553_v40  ;;  %v5175_v7 = vmax.f32 %v5140_v12, %v9934_v38  ;;  %vm12559_vm2 = vmmov %vm12528_vm11  ;;  %v12560_v40 = vld [vmem:[#allocation284_spill] sm:$0xff] }
 0x587   : > { %v10179_v3 = vpop.permute.xlu0 %4202  ;;  %v4342_v31 = vsel %vm12552_vm15, %v4320_v58, %v12551_v43  ;;  %v5258_v45 = vrot.slane %v5203_v19, 3  ;;  %v4343_v5 = vsel %vm12556_vm9, %v4321_v53, %v12555_v57  ;;  %v12557_v58 = vld [vmem:[#allocation273_spill] sm:$0xff]  ;;  %v12558_v1 = vrot.slane %v12489_v15, 1  ;;  %vm12563_vm7 = vmmov %vm12525_vm14  ;;  %v12570_v22 = vld [vmem:[#allocation32_spill] sm:$0xff] }
 0x588   : > { %v10194_v18 = vpop.permute.xlu1 %4094  ;;  %v5204_v61 = vmax.f32 %v5172_v23, %v4971_v47  ;;  %v5087_v30 = vmax.f32 %v5052_v51, %v9934_v38  ;;  %v10211_v12 = vsel %vm1855_vm4, %v3612_v29, %v12560_v40  ;;  %v5207_v19 = vmax.f32 %v5175_v7, %v9972_v46  ;;  %vm12566_vm14 = vmmov %vm12540_vm1 }
 0x589   : > { %3359 = vrot.lane.b32.xlu0 %v12554_v49, %s12123_s1  ;;  %v4892_v48 = vsel %vm12559_vm2, %v12558_v1, %v9846_v60  ;;  %v12561_v53 = vmax.f32 %v10019_v54, %v12489_v15  ;;  %v12565_v51 = vrot.slane %v12489_v15, 2  ;;  %v12567_v1 = vld [vmem:[#allocation254_spill] sm:$0xff]  ;;  %vm12568_vm11 = vmmov %vm12563_vm7  ;;  %v12569_v54 = vld [vmem:[#allocation255_spill] sm:$0xff]  ;;  %vm12587_vm8 = vcmask 261120   ;;  %s5937_s1 = sshll.u32 %s6436_s28, 4 }
 0x58a   : > { %3408 = vrot.lane.b32.xlu1 %v12557_v58, %s12126_s19  ;;  %v5259_v56 = vrot.slane %v5204_v61, 3  ;;  %v12562_v58 = vld [vmem:[#allocation268_spill] sm:$0xff]  ;;  %v4945_v38 = vmax.f32 %v12489_v15, %v4892_v48  ;;  %v5119_v61 = vmax.f32 %v5087_v30, %v9972_v46  ;;  %v4365_v7 = vsel %vm12568_vm11, %v4343_v5, %v12567_v1  ;;  %vm12571_vm0 = vmmov %vm12537_vm5  ;;  %v12572_v46 = vld [vmem:[#allocation225_spill] sm:$0xff] }
 0x58b   : > { %v10213_v47 = vpop.permute.xlu0 %4060  ;;  %v5090_v23 = vmax.f32 %v12561_v53, %v4892_v48  ;;  %v4364_v57 = vsel %vm12563_vm7, %v4342_v31, %v12562_v58  ;;  %v4981_v29 = vsel %vm12566_vm14, %v12565_v51, %v9887_v24  ;;  %v5264_v53 = vrot.slane %v5207_v19, 3  ;;  %v6312_v58 = vld [vmem:[%s11541_s9 + $0x8] sm:$0xff]   ;;  %vm12579_vm5 = vmmov %vm12535_vm6 }
 0x58c   : > { %v10221_v43 = vpop.permute.xlu1 %4223  ;;  %v5260_v40 = vsel %vm5257_vm10, %v5258_v45, %v5259_v56  ;;  %v5262_v31 = vsel %vm5257_vm10, %v5259_v56, %v5261_v32  ;;  %v4299_v51 = vsel %vm12571_vm0, %v10211_v12, %v12570_v22  ;;  %v5034_v30 = vmax.f32 %v4945_v38, %v4981_v29  ;;  %6167 = vmatprep.subr.bf16.mxu1 %v6312_v58  ;;  %vm12581_vm1 = vmmov %vm12544_vm3 }
 0x58d   : > { %12564 = vst [vmem:[#allocation214_spill] sm:$0xff] %v10221_v43  ;;  %3402 = vrot.lane.b32.xlu0 %v12569_v54, %s12126_s19  ;;  %v5330_v5 = vpack.c.bf16 %v5262_v31, %v5260_v40  ;;  %v5122_v1 = vmax.f32 %v5090_v23, %v4981_v29  ;;  %v12573_v45 = vrot.slane %v10000_v16, 3  ;;  %v12574_v56 = vrot.slane %v10046_v39, 3  ;;  %v12576_v31 = vld [vmem:[#allocation29_spill] sm:$0xff]  ;;  %6168 = vmatpush3.bf16.msra.mxu1 %v6312_v58  ;;  %vm12584_vm3 = vmmov %vm12559_vm2 }
 0x58e   : > { %3439 = vrot.lane.b32.xlu1 %v12572_v46, %s12160_s18  ;;  %v5143_v43 = vmax.f32 %v5119_v61, %v12489_v15  ;;  %v12575_v22 = vmax.f32 %v10022_v26, %v12452_v4  ;;  %v10256_v38 = vrot.slane %v4419_v14, 1  ;;  %v5058_v46 = vmax.f32 %v5034_v30, %v12576_v31  ;;  %v12578_v15 = vld [vmem:[#allocation295_spill] sm:$0xff]  ;;  %v12582_v14 = vld [vmem:[#allocation269_spill] sm:$0xff]  ;;  %vm12588_vm12 = vmmov %vm12579_vm5 }
 0x58f   : > { %v10243_v54 = vpop.permute.xlu0 %4079  ;;  %v5265_v32 = vsel %vm5257_vm10, %v12573_v45, %v5264_v53  ;;  %v5267_v19 = vsel %vm5257_vm10, %v5264_v53, %v12574_v56  ;;  %6189 = vmatprep.mubr.msk.bf16.mxu0 %vm12535_vm6, %v5330_v5  ;;  %v12577_v39 = vmax.f32 %v10027_v44, %v9846_v60  ;;  %v3584_v4 = vsel %vm12579_vm5, %v8929_v41, %v12578_v15  ;;  %v12585_v60 = vld [vmem:[#allocation262_spill] sm:$0xff]  ;;  %vm12590_vm15 = vmmov %vm12566_vm14 }
 0x590   : > { %v5209_v40 = vmax.f32 %v12575_v22, %v12469_v6  ;;  %v10258_v23 = vpop.permute.xlu1 %4173  ;;  %v5331_v16 = vpack.c.bf16 %v5267_v19, %v5265_v32  ;;  %v12580_v6 = vld [vmem:[#allocation248_spill] sm:$0xff]  ;;  %v5178_v61 = vmax.f32 %v5143_v43, %v4892_v48  ;;  %v12583_v5 = vrot.slane %v12576_v31, 1  ;;  %vm12593_vm9 = vmmov %vm12587_vm8 }
 0x591   : > { %v5211_v53 = vmax.f32 %v12577_v39, %v9887_v24  ;;  %v4323_v26 = vsel %vm12581_vm1, %v4299_v51, %v12580_v6  ;;  %3406 = vrot.lane.b32.xlu0 %v12582_v14, %s12126_s19  ;;  %v12586_v24 = vld [vmem:[#allocation291_spill] sm:$0xff]  ;;  %v12589_v43 = vrot.slane %v12576_v31, 2  ;;  %v5146_v19 = vmax.f32 %v5122_v1, %v12576_v31  ;;  %v12591_v22 = vld [vmem:[#allocation260_spill] sm:$0xff]  ;;  %v12597_v1 = vld [vmem:[#allocation37_spill] sm:$0xff] }
 0x592   : > { %v4897_v30 = vsel %vm12584_vm3, %v12583_v5, %v12470_v63  ;;  %3443 = vrot.lane.b32.xlu1 %v12585_v60, %s12160_s18  ;;  %v10281_v44 = vsel %vm12587_vm8, %v4365_v7, %v12586_v24  ;;  %6190 = vmatmul.mubr.msk.bf16.vlgmr.msra.gmra.mxu0 %vm12588_vm12, %v5331_v16  ;;  %v5268_v41 = vrot.slane %v5209_v40, 3  ;;  %v5210_v45 = vmax.f32 %v5178_v61, %v4981_v29  ;;  %v12592_v16 = vld [vmem:[#allocation294_spill] sm:$0xff]  ;;  %v12594_v39 = vld [vmem:[#allocation299_spill] sm:$0xff]  ;;  %v12600_v60 = vld [vmem:[#allocation288_spill] sm:$0xff] }
 0x593   : > { %v4948_v58 = vmax.f32 %v12576_v31, %v4897_v30  ;;  %v4986_v48 = vsel %vm12590_vm15, %v12589_v43, %v12480_v35  ;;  %v10289_v51 = vpop.permute.xlu0 %4195  ;;  %v5271_v32 = vrot.slane %v5211_v53, 3  ;;  %v5093_v56 = vmax.f32 %v5058_v46, %v4897_v30  ;;  %v12596_v29 = vld [vmem:[#allocation243_spill] sm:$0xff]  ;;  %vm12604_vm7 = vmmov %vm12579_vm5 }
 0x594   : > { %v3610_v7 = vsel %vm1822_vm13, %v10188_v13, %v12591_v22  ;;  %v10297_v40 = vsel %vm12593_vm9, %v4364_v57, %v12592_v16  ;;  %vm12595_vm2 = vcmask 195584   ;;  %v10301_v14 = vpop.permute.xlu1 %4236  ;;  %v5269_v46 = vrot.slane %v5210_v45, 3  ;;  %v12603_v22 = vld [vmem:[#allocation300_spill] sm:$0xff]  ;;  %vm12607_vm14 = vmmov %vm12568_vm11 }
 0x595   : > { %v4345_v15 = vsel %vm12595_vm2, %v4323_v26, %v12594_v39  ;;  %v5037_v5 = vmax.f32 %v4948_v58, %v4986_v48  ;;  %3437 = vrot.lane.b32.xlu0 %v12596_v29, %s12160_s18  ;;  %v5125_v53 = vmax.f32 %v5093_v56, %v4986_v48  ;;  %v12598_v31 = vmax.f32 %v10030_v25, %v12500_v28  ;;  %v12602_v58 = vld [vmem:[#allocation271_spill] sm:$0xff]  ;;  %v12605_v56 = vld [vmem:[#allocation238_spill] sm:$0xff]  ;;  %vm12613_vm11 = vmmov %vm12571_vm0 }
 0x596   : > { %v12599_v57 = vmax.f32 %v10067_v42, %v12470_v63  ;;  %v10315_v26 = vsel %vm1855_vm4, %v3610_v7, %v12600_v60  ;;  %v3616_v43 = vsel %vm1822_vm13, %v3584_v4, %v12602_v58  ;;  %v3582_v45 = vsel %vm12604_vm7, %v9045_v37, %v12603_v22  ;;  %3478 = vrot.lane.b32.xlu1 %v12605_v56, %s12233_s27  ;;  %v12606_v25 = vld [vmem:[#allocation278_spill] sm:$0xff]  ;;  %v12610_v60 = vld [vmem:[#allocation41_spill] sm:$0xff]  ;;  %vm12617_vm0 = vmmov %vm12587_vm8 }
 0x597   : > { %v5212_v13 = vmax.f32 %v12598_v31, %v12597_v1  ;;  %12601 = vst [vmem:[#allocation215_spill] sm:$0xff] %v10315_v26  ;;  %v4436_v28 = vshll.u32 %v10281_v44, 16  ;;  %v4367_v63 = vsel %vm12607_vm14, %v4345_v15, %v12606_v25  ;;  %v5270_v42 = vsel %vm5257_vm10, %v5268_v41, %v5269_v46  ;;  %v12608_v1 = vld [vmem:[#allocation297_spill] sm:$0xff]  ;;  %v12611_v15 = vld [vmem:[#allocation272_spill] sm:$0xff]  ;;  %vm12618_vm6 = vmmov %vm12579_vm5 }
 0x598   : > { %v5214_v61 = vmax.f32 %v12599_v57, %v12480_v35  ;;  %v10327_v35 = vpop.permute.xlu0 %4077  ;;  %v5272_v7 = vsel %vm5257_vm10, %v5269_v46, %v5271_v32  ;;  %v5181_v29 = vmax.f32 %v5146_v19, %v4897_v30  ;;  %v10334_v37 = vsel %vm1855_vm4, %v3616_v43, %v12608_v1  ;;  %v10336_v31 = vpop.permute.xlu1 %4092  ;;  %v12612_v30 = vld [vmem:[#allocation298_spill] sm:$0xff]  ;;  %v12620_v1 = vld [vmem:[#allocation51_spill] sm:$0xff]  ;;  %vm12626_vm1 = vmmov %vm12613_vm11 }
 0x599   : > { %12609 = vst [vmem:[#allocation209_spill] sm:$0xff] %v10334_v37  ;;  %v5332_v57 = vpack.c.bf16 %v5272_v7, %v5270_v42  ;;  %v5061_v58 = vmax.f32 %v5037_v5, %v12610_v60  ;;  %3441 = vrot.lane.b32.xlu0 %v12611_v15, %s12160_s18  ;;  %v5273_v56 = vrot.slane %v5212_v13, 3  ;;  %v5149_v32 = vmax.f32 %v5125_v53, %v12610_v60  ;;  %v12614_v46 = vld [vmem:[#allocation286_spill] sm:$0xff]  ;;  %v12615_v42 = vld [vmem:[#allocation276_spill] sm:$0xff]  ;;  %v12616_v7 = vld [vmem:[#allocation303_spill] sm:$0xff]  ;;  %s6471_s18 = smov 64  }
 0x59a   : > { %v5213_v22 = vmax.f32 %v5181_v29, %v4986_v48  ;;  %v5276_v41 = vrot.slane %v5214_v61, 3  ;;  %v10345_v19 = vsel %vm12613_vm11, %v10315_v26, %v12612_v30  ;;  %v3614_v43 = vsel %vm1822_vm13, %v3582_v45, %v12614_v46  ;;  %3482 = vrot.lane.b32.xlu1 %v12615_v42, %s12233_s27  ;;  %v12619_v53 = vld [vmem:[#allocation66_spill] sm:$0xff]  ;;  %v12621_v60 = vld [vmem:[#allocation55_spill] sm:$0xff]  ;;  %v12622_v15 = vld [vmem:[#allocation44_spill] sm:$0xff] }
 0x59b   : > { %v10351_v5 = vrot.slane %v4436_v28, 1  ;;  %v10355_v48 = vsel %vm12617_vm0, %v4367_v63, %v12616_v7  ;;  %6193 = vmatprep.mubr.msk.bf16.mxu0 %vm12618_vm6, %v5332_v57  ;;  %v4251_v13 = vsel %vm12579_vm5, %v12488_v0, %v12619_v53  ;;  %v5184_v45 = vmax.f32 %v5149_v32, %v12620_v1  ;;  %v12623_v30 = vld [vmem:[#allocation43_spill] sm:$0xff]  ;;  %v12627_v57 = vld [vmem:[#allocation49_spill] sm:$0xff]  ;;  %v12629_v7 = vld [vmem:[#allocation68_spill] sm:$0xff] }
 0x59c   : > { %v10361_v61 = vpop.permute.xlu0 %4193  ;;  %v5274_v29 = vrot.slane %v5213_v22, 3  ;;  %v12624_v28 = vmax.f32 %v12622_v15, %v12623_v30  ;;  %v12625_v42 = vld [vmem:[#allocation307_spill] sm:$0xff]  ;;  %v10371_v4 = vpop.permute.xlu1 %4221  ;;  %v12628_v0 = vmax.f32 %v10070_v50, %v12512_v36  ;;  %v5096_v22 = vmax.f32 %v5061_v58, %v12620_v1  ;;  %v12631_v25 = vld [vmem:[#allocation58_spill] sm:$0xff]  ;;  %v12636_v58 = vld [vmem:[#allocation65_spill] sm:$0xff] }
 0x59d   : > { %v4303_v63 = vsel %vm12626_vm1, %v10334_v37, %v12625_v42  ;;  %v12630_v32 = vld [vmem:[#allocation59_spill] sm:$0xff]  ;;  %vm12640_vm3 = vcmask 162816   ;;  %vm12647_vm8 = vmmov %vm12579_vm5 }
 0x59e   : > { %v5215_v46 = vmax.f32 %v12624_v28, %v12621_v60  ;;  %v5217_v53 = vmax.f32 %v12628_v0, %v12627_v57  ;;  %v12632_v26 = vmax.f32 %v12630_v32, %v12631_v25  ;;  %v12633_v60 = vld [vmem:[#allocation259_spill] sm:$0xff]  ;;  %v5275_v15 = vsel %vm5257_vm10, %v5273_v56, %v5274_v29  ;;  %v12634_v28 = vld [vmem:[#allocation53_spill] sm:$0xff]  ;;  %4510 = vrot.lane.b32.xlu1 %v10116_v2, %s6471_s18  ;;  %v6313_v56 = vld [vmem:[%s11541_s9] sm:$0xff]  }
 0x59f   : > { %3476 = vrot.lane.b32.xlu0 %v12633_v60, %s12233_s27  ;;  %v5277_v30 = vsel %vm5257_vm10, %v5274_v29, %v5276_v41  ;;  %v5216_v42 = vmax.f32 %v5184_v45, %v12634_v28  ;;  %v5128_v25 = vmax.f32 %v5096_v22, %v12634_v28  ;;  %v12639_v41 = vld [vmem:[#allocation287_spill] sm:$0xff]  ;;  %v12641_v2 = vld [vmem:[#allocation70_spill] sm:$0xff]  ;;  %v12642_v0 = vld [vmem:[#allocation20_spill] sm:$0xff]  ;;  %6169 = vmatprep.subr.bf16.mxu1 %v6313_v56 }
 0x5a0   : > { %v10382_v39 = vmax.f32 %v12632_v26, %v12629_v7  ;;  %v5278_v37 = vrot.slane %v5215_v46, 3  ;;  %v5333_v50 = vpack.c.bf16 %v5277_v30, %v5275_v15  ;;  %v5281_v36 = vrot.slane %v5217_v53, 3  ;;  %v12635_v26 = vld [vmem:[#allocation62_spill] sm:$0xff]  ;;  %v12637_v7 = vld [vmem:[#allocation61_spill] sm:$0xff]  ;;  %v10401_v45 = vpop.permute.xlu0 %4227  ;;  %v12645_v60 = vld [vmem:[#allocation72_spill] sm:$0xff]  ;;  %6170 = vmatpush3.bf16.msra.mxu1 %v6313_v56 }
 0x5a1   : > { %v12638_v1 = vmax.f32 %v12636_v58, %v12637_v7  ;;  %v4325_v29 = vsel %vm12640_vm3, %v4303_v63, %v12639_v41  ;;  %v5279_v46 = vrot.slane %v5216_v42, 3  ;;  %v12643_v53 = vld [vmem:[#allocation69_spill] sm:$0xff]  ;;  %v5291_v15 = vrot.slane %v12645_v60, 3  ;;  %v12646_v30 = vld [vmem:[#allocation302_spill] sm:$0xff]  ;;  %v12648_v63 = vld [vmem:[#allocation56_spill] sm:$0xff] }
 0x5a2   : > { %v12644_v32 = vmax.f32 %v12642_v0, %v12643_v53  ;;  %v10410_v28 = vsel %vm1855_vm4, %v3614_v43, %v12646_v30  ;;  %v4449_v58 = vshll.u32 %v10355_v48, 16  ;;  %6194 = vmatmul.mubr.msk.bf16.gmra.mxu0 %vm12647_vm8, %v5333_v50  ;;  %v5152_v7 = vmax.f32 %v5128_v25, %v12648_v63  ;;  %v12649_v42 = vld [vmem:[#allocation14_spill] sm:$0xff]  ;;  %v12650_v41 = vld [vmem:[#allocation23_spill] sm:$0xff]  ;;  %v12651_v0 = vld [vmem:[#allocation285_spill] sm:$0xff] }
 0x5a3   : > { %v5220_v57 = vmax.f32 %v12638_v1, %v12635_v26  ;;  %v10412_v26 = vpop.permute.xlu1 %4062  ;;  %v5294_v1 = vrot.slane %v12649_v42, 3  ;;  %3480 = vrot.lane.b32.xlu0 %v12651_v0, %s12233_s27  ;;  %v5280_v43 = vsel %vm5257_vm10, %v5278_v37, %v5279_v46  ;;  %v5282_v53 = vsel %vm5257_vm10, %v5279_v46, %v5281_v36  ;;  %v12652_v60 = vld [vmem:[#allocation306_spill] sm:$0xff]  ;;  %vm12653_vm12 = vmmov %vm12595_vm2  ;;  %v12654_v25 = vld [vmem:[#allocation231_spill] sm:$0xff] }
 0x5a4   : > { %v5222_v22 = vmax.f32 %v12644_v32, %v12641_v2  ;;  %v4263_v2 = vsel %vm1822_vm13, %v4251_v13, %v12650_v41  ;;  %v4347_v50 = vsel %vm12653_vm12, %v4325_v29, %v12652_v60  ;;  %3513 = vrot.lane.b32.xlu1 %v12654_v25, %s12129_s4  ;;  %v5334_v30 = vpack.c.bf16 %v5282_v53, %v5280_v43  ;;  %v12655_v63 = vld [vmem:[#allocation63_spill] sm:$0xff]  ;;  %v10434_v0 = vpop.permute.xlu0 %4064  ;;  %vm12659_vm15 = vmmov %vm12579_vm5 }
 0x5a5   : > { %v5187_v42 = vmax.f32 %v5152_v7, %v12655_v63  ;;  %v12656_v13 = vrot.slane %v12514_v9, 3  ;;  %v5283_v37 = vrot.slane %v10382_v39, 3  ;;  %v12657_v36 = vrot.slane %v12513_v52, 3  ;;  %v12660_v9 = vld [vmem:[#allocation64_spill] sm:$0xff]  ;;  %vm12663_vm9 = vmmov %vm12640_vm3 }
 0x5a6   : > { %v5289_v32 = vrot.slane %v5222_v22, 3  ;;  %v12658_v46 = vrot.slane %v12516_v11, 3  ;;  %6197 = vmatprep.mubr.msk.bf16.mxu0 %vm12659_vm15, %v5334_v30  ;;  %v5286_v53 = vrot.slane %v5220_v57, 3  ;;  %v12661_v39 = vshrl.u32 %v10138_v27, 16  ;;  %vm12665_vm2 = vmmov %vm12626_vm1  ;;  %v12666_v30 = vld [vmem:[#allocation246_spill] sm:$0xff] }
 0x5a7   : > { %v10432_v41 = vsel %vm5257_vm10, %v12656_v13, %v5294_v1  ;;  %v10446_v7 = vpop.permute.xlu1 %4206  ;;  %v5219_v43 = vmax.f32 %v5187_v42, %v12660_v9  ;;  %3511 = vrot.lane.b32.xlu0 %v12666_v30, %s12129_s4  ;;  %v4440_v57 = vshrl.u32 %v10281_v44, 16  ;;  %v12667_v42 = vshll.u32 %v10297_v40, 16  ;;  %vm12669_vm7 = vmmov %vm12653_vm12 }
 0x5a8   : > { %v5290_v56 = vsel %vm5257_vm10, %v12657_v36, %v5289_v32  ;;  %v5292_v29 = vsel %vm5257_vm10, %v5289_v32, %v5291_v15  ;;  %v10444_v22 = vsel %vm5257_vm10, %v5294_v1, %v12658_v46  ;;  %v4422_v15 = vor.u32 %v10256_v38, %v12661_v39  ;;  %v12662_v32 = vld [vmem:[#allocation279_spill] sm:$0xff]  ;;  %v12664_v1 = vld [vmem:[#allocation18_spill] sm:$0xff]  ;;  %v12668_v36 = vld [vmem:[#allocation304_spill] sm:$0xff]  ;;  %4514 = vrot.lane.b32.xlu1 %v10182_v55, %s6471_s18  ;;  %v10477_v9 = vpop.permute.xlu0 %4098 }
 0x5a9   : > { %v5336_v25 = vpack.c.bf16 %v5292_v29, %v5290_v56  ;;  %v5337_v52 = vpack.c.bf16 %v10444_v22, %v10432_v41  ;;  %v4322_v11 = vsel %vm12663_vm9, %v10345_v19, %v12662_v32  ;;  %v4301_v63 = vsel %vm12665_vm2, %v10410_v28, %v12664_v1  ;;  %v12670_v38 = vld [vmem:[#allocation301_spill] sm:$0xff]  ;;  %vm12671_vm11 = vmmov %vm12579_vm5  ;;  %v12672_v46 = vld [vmem:[#allocation27_spill] sm:$0xff] }
 0x5aa   : > { %v4434_v13 = vrot.slane %v12667_v42, 1  ;;  %v4344_v27 = vsel %vm12669_vm7, %v4322_v11, %v12668_v36  ;;  %v4369_v56 = vsel %vm12607_vm14, %v4347_v50, %v12670_v38  ;;  %v5284_v19 = vrot.slane %v5219_v43, 3  ;;  %v12673_v11 = vld [vmem:[#allocation34_spill] sm:$0xff]  ;;  %vm12674_vm0 = vmmov %vm12640_vm3 }
 0x5ab   : > { %v4249_v29 = vsel %vm12671_vm11, %v12518_v10, %v9942_v33  ;;  %v4275_v44 = vsel %vm1855_vm4, %v4263_v2, %v12672_v46  ;;  %v4442_v39 = vor.u32 %v4440_v57, %v10351_v5  ;;  %v10480_v1 = vrot.slane %v4449_v58, 1  ;;  %vm12675_vm6 = vmmov %vm12626_vm1  ;;  %v4209_v43 = vpop.permute.xlu1 %4208  ;;  %v12676_v2 = vld [vmem:[#allocation292_spill] sm:$0xff]  ;;  %4508 = vrot.lane.b32.xlu0 %v10119_v62, %s6471_s18  ;;  %v12720_v22 = vld [vmem:[#allocation214_spill] sm:$0xff] }
 0x5ac   : > { %v4324_v50 = vsel %vm12674_vm0, %v4301_v63, %v12673_v11  ;;  %v4307_v55 = vsel %vm12675_vm6, %v4275_v44, %v10258_v23  ;;  %v5285_v30 = vsel %vm5257_vm10, %v5283_v37, %v5284_v19  ;;  %v5287_v33 = vsel %vm5257_vm10, %v5284_v19, %v5286_v53  ;;  %vm12677_vm5 = vmmov %vm12607_vm14  ;;  %v12678_v58 = vld [vmem:[#allocation52_spill] sm:$0xff]  ;;  %v12682_v44 = vld [vmem:[#allocation54_spill] sm:$0xff] }
 0x5ad   : > { %v4430_v10 = vshrl.u32 %v10297_v40, 16  ;;  %v4366_v42 = vsel %vm12677_vm5, %v4344_v27, %v12676_v2  ;;  %vm12679_vm1 = vcmask 261120   ;;  %v5335_v63 = vpack.c.bf16 %v5287_v33, %v5285_v30  ;;  %v12680_v46 = vld [vmem:[#allocation24_spill] sm:$0xff]  ;;  %vm12683_vm10 = vmmov %vm12647_vm8  ;;  %4518 = vrot.lane.b32.xlu1 %v4442_v39, %s6471_s18  ;;  %v10510_v33 = vpop.permute.xlu0 %4096 }
 0x5ae   : > { %v4391_v57 = vsel %vm12679_vm1, %v4369_v56, %v12678_v58  ;;  %vm12681_vm3 = vmmov %vm12679_vm1  ;;  %v4261_v37 = vsel %vm1822_vm13, %v4249_v29, %v12682_v44  ;;  %v4255_v40 = vsel %vm12683_vm10, %v12526_v17, %v10213_v47  ;;  %v4453_v53 = vshrl.u32 %v10355_v48, 16  ;;  %v12684_v62 = vld [vmem:[#allocation308_spill] sm:$0xff] }
 0x5af   : > { %v4388_v23 = vsel %vm12681_vm3, %v4366_v42, %v12680_v46  ;;  %v4435_v27 = vor.u32 %v4434_v13, %v4430_v10  ;;  %vm12685_vm8 = vmmov %vm12669_vm7  ;;  %v4273_v56 = vsel %vm1855_vm4, %v4261_v37, %v9986_v34  ;;  %v10515_v29 = vpop.permute.xlu1 %4242  ;;  %v4462_v39 = vshll.u32 %v4391_v57, 16 }
 0x5b0   : > { %v4346_v19 = vsel %vm12685_vm8, %v4324_v50, %v12684_v62  ;;  %vm12686_vm12 = vmmov %vm12674_vm0  ;;  %v4455_v13 = vor.u32 %v4453_v53, %v10480_v1  ;;  %v4445_v34 = vshll.u32 %v4388_v23, 16  ;;  %v12691_v50 = vld [vmem:[#allocation35_spill] sm:$0xff]  ;;  %v3484_v37 = vrot.slane %v12554_v49, 2 }
 0x5b1   : > { %v4329_v30 = vsel %vm12686_vm12, %v4307_v55, %v9913_v59  ;;  %vm12687_vm15 = vmmov %vm12683_vm10  ;;  %v4267_v59 = vsel %vm1822_vm13, %v4255_v40, %v9951_v21  ;;  %v10534_v44 = vpop.permute.xlu0 %4225  ;;  %v12700_v40 = vld [vmem:[#allocation42_spill] sm:$0xff] }
 0x5b2   : > { %6198 = vmatmul.mubr.msk.bf16.gmra.mxu0 %vm12687_vm15, %v5335_v63  ;;  %vm12688_vm9 = vmmov %vm12665_vm2  ;;  %vm12689_vm2 = vsmask.f32 7424  ;;  %4522 = vrot.lane.b32.xlu1 %v4455_v13, %s6471_s18  ;;  %v12703_v13 = vld [vmem:[#allocation50_spill] sm:$0xff] }
 0x5b3   : > { %v4305_v47 = vsel %vm12688_vm9, %v4273_v56, %v10024_v20  ;;  %v4426_v48 = vsel %vm12689_vm2, %v4422_v15, %v10142_v8  ;;  %vm12690_vm7 = vmmov %vm12683_vm10  ;;  %v12693_v20 = vld [vmem:[#allocation127_spill] sm:$0xff]  ;;  %v3485_v8 = vrot.slane %v12526_v17, 2  ;;  %v12695_v15 = vld [vmem:[#allocation21_spill] sm:$0xff]  ;;  %v4178_v56 = vpop.permute.xlu1 %4177 }
 0x5b4   : > { %6201 = vmatprep.mubr.msk.bf16.mxu0 %vm12690_vm7, %v5336_v25  ;;  %4512 = vrot.lane.b32.xlu0 %v4426_v48, %s6471_s18  ;;  %vm12692_vm14 = vmmov %vm12677_vm5  ;;  %v12697_v25 = vld [vmem:[#allocation67_spill] sm:$0xff]  ;;  %v10546_v48 = vrot.slane %v4462_v39, 1  ;;  %v4466_v39 = vshrl.u32 %v4391_v57, 16 }
 0x5b5   : > { %v4368_v55 = vsel %vm12692_vm14, %v4346_v19, %v12691_v50  ;;  %vm12694_vm11 = vmmov %vm12685_vm8 }
 0x5b6   : > { %v4351_v10 = vsel %vm12694_vm11, %v4329_v30, %v12693_v20  ;;  %vm12696_vm0 = vmmov %vm12679_vm1  ;;  %v4279_v30 = vsel %vm1855_vm4, %v4267_v59, %v10194_v18  ;;  %3517 = vrot.lane.b32.xlu1 %v3485_v8, %s12129_s4 }
 0x5b7   : > { %v4390_v42 = vsel %vm12696_vm0, %v4368_v55, %v12695_v15  ;;  %vm12698_vm6 = vmmov %vm12686_vm12 }
 0x5b8   : > { %v4327_v63 = vsel %vm12698_vm6, %v4305_v47, %v12697_v25  ;;  %vm12699_vm5 = vmmov %vm12689_vm2  ;;  %v4447_v47 = vrot.slane %v4445_v34, 1  ;;  %v4458_v25 = vshll.u32 %v4390_v42, 16  ;;  %v12709_v34 = vld [vmem:[#allocation212_spill] sm:$0xff] }
 0x5b9   : > { %v4439_v21 = vsel %vm12699_vm5, %v4435_v27, %v10351_v5  ;;  %vm12701_vm1 = vmmov %vm12690_vm7  ;;  %v12704_v5 = vld [vmem:[#allocation30_spill] sm:$0xff]  ;;  %vm12714_vm7 = vcmask 1045504  }
 0x5ba   : > { %v4253_v53 = vsel %vm12701_vm1, %v12554_v49, %v12700_v40  ;;  %vm12702_vm3 = vmmov %vm12685_vm8  ;;  %4516 = vrot.lane.b32.xlu0 %v4439_v21, %s6471_s18  ;;  %v12711_v40 = vld [vmem:[#allocation266_spill] sm:$0xff]  ;;  %v4213_v21 = vpop.permute.xlu0 %4212 }
 0x5bb   : > { %v4349_v19 = vsel %vm12702_vm3, %v4327_v63, %v10179_v3  ;;  %v4265_v55 = vsel %vm1822_vm13, %v4253_v53, %v12703_v13  ;;  %vm12705_vm10 = vmmov %vm12692_vm14  ;;  %v12707_v63 = vld [vmem:[#allocation228_spill] sm:$0xff]  ;;  %v12717_v13 = vld [vmem:[#allocation189_spill] sm:$0xff] }
 0x5bc   : > { %v4373_v27 = vsel %vm12705_vm10, %v4351_v10, %v12704_v5  ;;  %vm12706_vm8 = vmmov %vm12688_vm9  ;;  %v4277_v3 = vsel %vm1855_vm4, %v4265_v55, %v10336_v31  ;;  %v4443_v31 = vshrl.u32 %v4388_v23, 16  ;;  %v12718_v55 = vld [vmem:[#allocation40_spill] sm:$0xff]  ;;  %v12722_v23 = vld [vmem:[#allocation253_spill] sm:$0xff] }
 0x5bd   : > { %v4311_v20 = vsel %vm12706_vm8, %v4279_v30, %v4178_v56  ;;  %vm12708_vm12 = vmmov %vm12698_vm6  ;;  %v3486_v56 = vsel %vm12714_vm7, %v3484_v37, %v3485_v8  ;;  %v4241_v30 = vpop.permute.xlu1 %4240  ;;  %v4460_v37 = vrot.slane %v4458_v25, 1  ;;  %v4257_v5 = vsel %vm12701_vm1, %v12722_v23, %v10412_v26  ;;  %v12723_v25 = vld [vmem:[#allocation309_spill] sm:$0xff] }
 0x5be   : > { %v4333_v18 = vsel %vm12708_vm12, %v4311_v20, %v12707_v63  ;;  %vm12710_vm15 = vmmov %vm12705_vm10  ;;  %3515 = vrot.lane.b32.xlu0 %v3486_v56, %s12129_s4  ;;  %v4448_v8 = vor.u32 %v4447_v47, %v4443_v31  ;;  %v4182_v20 = vpop.permute.xlu0 %4181  ;;  %v4456_v47 = vshrl.u32 %v4390_v42, 16 }
 0x5bf   : > { %v4371_v59 = vsel %vm12710_vm15, %v4349_v19, %v12709_v34  ;;  %vm12712_vm9 = vmmov %vm12701_vm1  ;;  %v4468_v19 = vor.u32 %v4466_v39, %v10546_v48 }
 0x5c0   : > { %v4259_v10 = vsel %vm12712_vm9, %v12711_v40, %v10434_v0  ;;  %vm12713_vm2 = vmmov %vm12702_vm3  ;;  %v4395_v0 = vsel %vm12696_vm0, %v4373_v27, %v12717_v13  ;;  %v4461_v42 = vor.u32 %v4460_v37, %v4456_v47 }
 0x5c1   : > { %v4355_v53 = vsel %vm12713_vm2, %v4333_v18, %v4209_v43  ;;  %vm12715_vm14 = vmmov %vm12701_vm1  ;;  %v4271_v41 = vsel %vm1822_vm13, %v4259_v10, %v10243_v54  ;;  %4526 = vrot.lane.b32.xlu1 %v4468_v19, %s6471_s18  ;;  %v4247_v18 = vpop.permute.xlu1 %4246 }
 0x5c2   : > { %6202 = vmatmul.mubr.msk.bf16.gmra.mxu0 %vm12715_vm14, %v5337_v52  ;;  %vm12716_vm11 = vmmov %vm12696_vm0  ;;  %v4283_v27 = vsel %vm1855_vm4, %v4271_v41, %v10477_v9 }
 0x5c3   : > { %v4393_v57 = vsel %vm12716_vm11, %v4371_v59, %v10301_v14  ;;  %vm12719_vm6 = vmmov %vm12706_vm8  ;;  %vm12726_vm8 = vsmask.f32 7424  ;;  %v4269_v59 = vsel %vm1822_vm13, %v4257_v5, %v10327_v35 }
 0x5c4   : > { %v4309_v43 = vsel %vm12719_vm6, %v4277_v3, %v12718_v55  ;;  %vm12721_vm5 = vmmov %vm12705_vm10  ;;  %v4471_v14 = vshll.u32 %v4393_v57, 16  ;;  %v4475_v3 = vshll.u32 %v4395_v0, 16  ;;  %v4452_v39 = vsel %vm12726_vm8, %v4448_v8, %v10480_v1 }
 0x5c5   : > { %v4377_v52 = vsel %vm12721_vm5, %v4355_v53, %v12720_v22  ;;  %vm12724_vm3 = vmmov %vm12708_vm12  ;;  %4520 = vrot.lane.b32.xlu0 %v4452_v39, %s6471_s18  ;;  %3547 = vrot.lane.b32.xlu1 %v12526_v17, %s12133_s14  ;;  %v4180_v53 = vpop.permute.xlu0 %4179  ;;  %v10612_v35 = vpop.permute.xlu1 %3535  ;;  %v4469_v19 = vshrl.u32 %v4393_v57, 16 }
 0x5c6   : > { %v4331_v63 = vsel %vm12724_vm3, %v4309_v43, %v12723_v25  ;;  %vm12725_vm10 = vmmov %vm12719_vm6  ;;  %v4473_v1 = vrot.slane %v4471_v14, 1  ;;  %v4477_v56 = vrot.slane %v4475_v3, 1 }
 0x5c7   : > { %v4315_v54 = vsel %vm12725_vm10, %v4283_v27, %v4182_v20  ;;  %vm12727_vm12 = vmmov %vm12713_vm2 }
 0x5c8   : > { %v4353_v34 = vsel %vm12727_vm12, %v4331_v63, %v10446_v7  ;;  %vm12728_vm15 = vmmov %vm12724_vm3  ;;  %v4281_v7 = vsel %vm1855_vm4, %v4269_v59, %v10510_v33  ;;  %v4479_v33 = vshrl.u32 %v4395_v0, 16  ;;  %v12740_v63 = vld [vmem:[#allocation80_spill] sm:$0xff]  ;;  %v12741_v59 = vld [vmem:[#allocation79_spill] sm:$0xff] }
 0x5c9   : > { %v4337_v26 = vsel %vm12728_vm15, %v4315_v54, %v10289_v51  ;;  %vm12729_vm9 = vmmov %vm12696_vm0  ;;  %3545 = vrot.lane.b32.xlu0 %v12554_v49, %s12133_s14  ;;  %3551 = vrot.lane.b32.xlu1 %v12711_v40, %s12133_s14  ;;  %v4211_v55 = vpop.permute.xlu0 %4210  ;;  %v10625_v41 = vpop.permute.xlu1 %3349 }
 0x5ca   : > { %v4399_v9 = vsel %vm12729_vm9, %v4377_v52, %v10515_v29  ;;  %v4359_v10 = vsel %vm12713_vm2, %v4337_v26, %v4213_v21  ;;  %vm12730_vm7 = vmmov %vm12721_vm5  ;;  %v4481_v57 = vor.u32 %v4479_v33, %v4477_v56  ;;  %v12746_v33 = vld [vmem:[#allocation77_spill] sm:$0xff] }
 0x5cb   : > { %v4381_v51 = vsel %vm12730_vm7, %v4359_v10, %v10401_v45  ;;  %vm12731_vm14 = vmmov %vm12721_vm5  ;;  %v4488_v21 = vshll.u32 %v4399_v9, 16  ;;  %v4474_v45 = vor.u32 %v4473_v1, %v4469_v19  ;;  %v4492_v40 = vshrl.u32 %v4399_v9, 16 }
 0x5cc   : > { %v4375_v29 = vsel %vm12731_vm14, %v4353_v34, %v10371_v4  ;;  %vm12732_vm11 = vmmov %vm12719_vm6 }
 0x5cd   : > { %v4313_v31 = vsel %vm12732_vm11, %v4281_v7, %v4180_v53  ;;  %v4397_v17 = vsel %vm12696_vm0, %v4375_v29, %v4241_v30  ;;  %vm12733_vm6 = vmmov %vm12696_vm0  ;;  %v4490_v49 = vrot.slane %v4488_v21, 1  ;;  %4530 = vrot.lane.b32.xlu1 %v4481_v57, %s6471_s18  ;;  %v4245_v0 = vpop.permute.xlu0 %4244  ;;  %v10633_v5 = vpop.permute.xlu1 %3353  ;;  %v12744_v21 = vld [vmem:[#allocation84_spill] sm:$0xff] }
 0x5ce   : > { %v4403_v13 = vsel %vm12733_vm6, %v4381_v51, %v4247_v18  ;;  %vm12734_vm5 = vmmov %vm12724_vm3  ;;  %v4484_v8 = vshll.u32 %v4397_v17, 16  ;;  %v4482_v3 = vshrl.u32 %v4397_v17, 16 }
 0x5cf   : > { %v4335_v4 = vsel %vm12734_vm5, %v4313_v31, %v10361_v61  ;;  %vm12735_vm1 = vmmov %vm12726_vm8  ;;  %v4501_v30 = vshll.u32 %v4403_v13, 16  ;;  %v4494_v27 = vor.u32 %v4492_v40, %v4490_v49  ;;  %v4505_v47 = vshrl.u32 %v4403_v13, 16 }
 0x5d0   : > { %v4465_v43 = vsel %vm12735_vm1, %v4461_v42, %v10546_v48  ;;  %vm12736_vm3 = vmmov %vm12713_vm2  ;;  %v4486_v48 = vrot.slane %v4484_v8, 1 }
 0x5d1   : > { %v4357_v37 = vsel %vm12736_vm3, %v4335_v4, %v4211_v55  ;;  %4524 = vrot.lane.b32.xlu0 %v4465_v43, %s6471_s18  ;;  %vm12737_vm10 = vmmov %vm12730_vm7  ;;  %v4503_v52 = vrot.slane %v4501_v30, 1  ;;  %4534 = vrot.lane.b32.xlu1 %v4494_v27, %s6471_s18  ;;  %v10642_v25 = vpop.permute.xlu0 %3347  ;;  %v10646_v26 = vpop.permute.xlu1 %3396  ;;  %v12747_v43 = vld [vmem:[#allocation83_spill] sm:$0xff]  ;;  %v12755_v27 = vld [vmem:[#allocation88_spill] sm:$0xff] }
 0x5d2   : > { %v4379_v61 = vsel %vm12737_vm10, %v4357_v37, %v10534_v44  ;;  %vm12738_vm8 = vmmov %vm12735_vm1  ;;  %v10640_v44 = vld [vmem:[%s11538_s6] ss:$0 sm:$0xff]  ;;  %v4487_v18 = vor.u32 %v4486_v48, %v4482_v3  ;;  %v12754_v48 = vld [vmem:[#allocation82_spill] sm:$0xff] }
 0x5d3   : > { %v4478_v22 = vsel %vm12738_vm8, %v4474_v45, %v4477_v56  ;;  %vm12739_vm12 = vmmov %vm12696_vm0  ;;  %v2267_v54 = vadd.f32 %v10640_v44, %v12740_v63  ;;  %v4507_v39 = vor.u32 %v4505_v47, %v4503_v52  ;;  %v2275_v10 = vadd.f32 %v12741_v59, %v10640_v44  ;;  %v12743_v56 = vld [vmem:[#allocation78_spill] sm:$0xff]  ;;  %v12748_v37 = vld [vmem:[#allocation220_spill] sm:$0xff] }
 0x5d4   : > { %v4401_v14 = vsel %vm12739_vm12, %v4379_v61, %v4245_v0  ;;  %vm12742_vm15 = vmmov %vm12735_vm1  ;;  %v2283_v19 = vadd.f32 %v10640_v44, %v12744_v21  ;;  %v2272_v45 = vadd.f32 %v12746_v33, %v10640_v44  ;;  %v2291_v57 = vadd.f32 %v12747_v43, %v10640_v44  ;;  %v12751_v61 = vld [vmem:[#allocation232_spill] sm:$0xff]  ;;  %v12752_v0 = vld [vmem:[#allocation195_spill] sm:$0xff] }
 0x5d5   : > { %v4497_v20 = vshll.u32 %v4401_v14, 16  ;;  %4528 = vrot.lane.b32.xlu0 %v4478_v22, %s6471_s18  ;;  %v4495_v9 = vshrl.u32 %v4401_v14, 16  ;;  %4538 = vrot.lane.b32.xlu1 %v4507_v39, %s6471_s18  ;;  %v10651_v42 = vpop.permute.xlu0 %3351  ;;  %v2327_v1 = vmax.f32 %v2267_v54, 0.0  ;;  %v10655_v51 = vpop.permute.xlu1 %3400  ;;  %v4491_v53 = vsel %vm12742_vm15, %v4487_v18, %v4490_v49  ;;  %vm12745_vm9 = vmmov %vm12735_vm1  ;;  %v12749_v49 = vld [vmem:[#allocation28_spill] sm:$0xff]  ;;  %v12756_v63 = vld [vmem:[#allocation191_spill] sm:$0xff] }
 0x5d6   : > { %v2329_v31 = vmax.f32 %v2275_v10, 0.0  ;;  %v2331_v8 = vmax.f32 %v2283_v19, 0.0  ;;  %vm12750_vm2 = vmmov %vm12732_vm11  ;;  %v2328_v14 = vmax.f32 %v2272_v45, 0.0  ;;  %v2333_v47 = vmax.f32 %v2291_v57, 0.0  ;;  %v12757_v54 = vld [vmem:[#allocation200_spill] sm:$0xff]  ;;  %v12759_v39 = vld [vmem:[#allocation207_spill] sm:$0xff] }
 0x5d7   : > { %v4499_v34 = vrot.slane %v4497_v20, 1  ;;  %v3672_v40 = vsel %vm12750_vm2, %v12749_v49, %v12748_v37  ;;  %vm12753_vm7 = vmmov %vm12750_vm2  ;;  %v2299_v20 = vadd.f32 %v10640_v44, %v12755_v27  ;;  %v12768_v19 = vld [vmem:[#allocation86_spill] sm:$0xff]  ;;  %v12769_v33 = vld [vmem:[#allocation87_spill] sm:$0xff]  ;;  %vm12783_vm15 = vcmask 228352  }
 0x5d8   : > { %v3670_v22 = vsel %vm12753_vm7, %v12752_v0, %v12751_v61  ;;  %vm12758_vm14 = vmmov %vm12750_vm2  ;;  %v2307_v45 = vadd.f32 %v12769_v33, %v10640_v44  ;;  %v12771_v43 = vld [vmem:[#allocation25_spill] sm:$0xff]  ;;  %v12773_v37 = vld [vmem:[#allocation92_spill] sm:$0xff] }
 0x5d9   : > { %3549 = vrot.lane.b32.xlu0 %v12722_v23, %s12133_s14  ;;  %v4500_v7 = vor.u32 %v4499_v34, %v4495_v9  ;;  %5504 = vrot.lane.b32.xlu1 %v2327_v1, %s12001_s0  ;;  %v2264_v23 = vadd.f32 %v10640_v44, %v12743_v56  ;;  %v10662_v29 = vpop.permute.xlu0 %3394  ;;  %v10666_v17 = vpop.permute.xlu1 %3431  ;;  %v3666_v18 = vsel %vm12758_vm14, %v12757_v54, %v12756_v63  ;;  %vm12760_vm11 = vmmov %vm12734_vm5  ;;  %v12761_v9 = vld [vmem:[#allocation233_spill] sm:$0xff]  ;;  %v12780_v27 = vld [vmem:[#allocation252_spill] sm:$0xff]  ;;  %vm3841_vm14 = vcmask 326656  }
 0x5da   : > { %v3702_v34 = vsel %vm12760_vm11, %v3670_v22, %v12759_v39  ;;  %vm12762_vm0 = vmmov %vm12734_vm5  ;;  %v12763_v1 = vld [vmem:[#allocation81_spill] sm:$0xff]  ;;  %v2315_v49 = vadd.f32 %v10640_v44, %v12773_v37  ;;  %v12782_v54 = vld [vmem:[#allocation254_spill] sm:$0xff] }
 0x5db   : > { %v4504_v13 = vsel %vm12745_vm9, %v4500_v7, %v4503_v52  ;;  %v2326_v4 = vmax.f32 %v2264_v23, 0.0  ;;  %v2280_v52 = vadd.f32 %v10640_v44, %v12754_v48  ;;  %v3704_v59 = vsel %vm12762_vm0, %v3672_v40, %v12761_v9  ;;  %vm12765_vm6 = vmmov %vm12736_vm3  ;;  %v12766_v23 = vld [vmem:[#allocation289_spill] sm:$0xff]  ;;  %v12774_v40 = vld [vmem:[#allocation211_spill] sm:$0xff] }
 0x5dc   : > { %v2288_v7 = vadd.f32 %v12763_v1, %v10640_v44  ;;  %vm12767_vm5 = vmmov %vm12736_vm3  ;;  %v12776_v0 = vld [vmem:[#allocation201_spill] sm:$0xff]  ;;  %v12796_v37 = vld [vmem:[#allocation270_spill] sm:$0xff] }
 0x5dd   : > { %4532 = vrot.lane.b32.xlu0 %v4491_v53, %s6471_s18  ;;  %5508 = vrot.lane.b32.xlu1 %v2329_v31, %s12001_s0  ;;  %v10673_v55 = vpop.permute.xlu0 %3398  ;;  %v10677_v30 = vpop.permute.xlu1 %3435  ;;  %v12764_v53 = vld [vmem:[#allocation283_spill] sm:$0xff]  ;;  %v3736_v31 = vsel %vm12767_vm5, %v3704_v59, %v12766_v23  ;;  %v2330_v21 = vmax.f32 %v2280_v52, 0.0  ;;  %vm12772_vm1 = vmmov %vm12750_vm2  ;;  %vm12786_vm2 = vcmask 261120   ;;  %v12788_v1 = vld [vmem:[#allocation85_spill] sm:$0xff] }
 0x5de   : > { %v3734_v56 = vsel %vm12765_vm6, %v3702_v34, %v12764_v53  ;;  %vm12775_vm3 = vmmov %vm12762_vm0  ;;  %v12778_v52 = vld [vmem:[#allocation251_spill] sm:$0xff]  ;;  %v2332_v9 = vmax.f32 %v2288_v7, 0.0  ;;  %v2304_v53 = vadd.f32 %v12788_v1, %v10640_v44  ;;  %v12790_v7 = vld [vmem:[#allocation222_spill] sm:$0xff] }
 0x5df   : > { %vm12777_vm10 = vmmov %vm12762_vm0 }
 0x5e0   : > { %v3698_v22 = vsel %vm12777_vm10, %v3666_v18, %v12776_v0  ;;  %vm12779_vm8 = vmmov %vm12767_vm5  ;;  %vm3874_vm10 = vcmask 359424  }
 0x5e1   : > { %4536 = vrot.lane.b32.xlu0 %v4504_v13, %s6471_s18  ;;  %5512 = vrot.lane.b32.xlu1 %v2331_v8, %s12001_s0  ;;  %v10691_v3 = vpop.permute.xlu0 %3429  ;;  %v10700_v10 = vpop.permute.xlu1 %3470  ;;  %v2296_v13 = vadd.f32 %v10640_v44, %v12768_v19  ;;  %v2335_v8 = vmax.f32 %v2299_v20, 0.0  ;;  %vm12781_vm12 = vmmov %vm12767_vm5  ;;  %v12784_v20 = vld [vmem:[#allocation268_spill] sm:$0xff]  ;;  %v2337_v19 = vmax.f32 %v2307_v45, 0.0  ;;  %v12798_v45 = vld [vmem:[#allocation261_spill] sm:$0xff]  ;;  %s5756_s18 = sadd.s32 %s5937_s1, %s5933_s5 }
 0x5e2   : > { %v3730_v63 = vsel %vm12781_vm12, %v3698_v22, %v12780_v27  ;;  %vm12785_vm9 = vmmov %vm12783_vm15  ;;  %vm3940_vm12 = vcmask 424960   ;;  %v12802_v27 = vld [vmem:[#allocation224_spill] sm:$0xff]  ;;  %s5934_s29 = sshll.u32 %s5756_s18, 7 }
 0x5e3   : > { %v3766_v39 = vsel %vm12785_vm9, %v3734_v56, %v12784_v20  ;;  %vm12787_vm7 = vmmov %vm12786_vm2  ;;  %v2334_v23 = vmax.f32 %v2296_v13, 0.0  ;;  %v2339_v56 = vmax.f32 %v2315_v49, 0.0  ;;  %s11473_s4 = scalar_lea.hbm %s11545_s13, %s5934_s29 }
 0x5e4   : > { %v3798_v18 = vsel %vm12787_vm7, %v3766_v39, %v12592_v16  ;;  %vm12791_vm11 = vmmov %vm12785_vm9  ;;  %vm12807_vm7 = vcmask 130048  }
 0x5e5   : > { %5502 = vrot.lane.b32.xlu0 %v2326_v4, %s12001_s0  ;;  %v12770_v4 = vld [vmem:[#allocation180_spill] sm:$0xff]  ;;  %5516 = vrot.lane.b32.xlu1 %v2333_v47, %s12001_s0  ;;  %v3434_v48 = vpop.permute.xlu0 %3433  ;;  %v3768_v47 = vsel %vm12783_vm15, %v3736_v31, %v12782_v54  ;;  %v3475_v34 = vpop.permute.xlu1 %3474  ;;  %v12789_v31 = vld [vmem:[#allocation91_spill] sm:$0xff]  ;;  %vm12793_vm0 = vmmov %vm12785_vm9  ;;  %vm3973_vm15 = vcmask 457728  }
 0x5e6   : > { %v3668_v57 = vsel %vm12772_vm1, %v12771_v43, %v12770_v4  ;;  %v3800_v59 = vsel %vm12786_vm2, %v3768_v47, %v12586_v24  ;;  %v2323_v33 = vadd.f32 %v12789_v31, %v10640_v44  ;;  %v12792_v4 = vld [vmem:[#allocation235_spill] sm:$0xff]  ;;  %vm12795_vm6 = vmmov %vm12786_vm2  ;;  %vm12799_vm1 = vcmask 293888   ;;  %v12804_v54 = vld [vmem:[#allocation237_spill] sm:$0xff] }
 0x5e7   : > { %v3700_v61 = vsel %vm12775_vm3, %v3668_v57, %v12774_v40  ;;  %v3762_v16 = vsel %vm12793_vm0, %v3730_v63, %v12792_v4  ;;  %vm12797_vm5 = vmmov %vm12786_vm2  ;;  %v3832_v40 = vsel %vm12799_vm1, %v3800_v59, %v12798_v45  ;;  %vm12809_vm0 = vcmask 162816   ;;  %v12811_v4 = vld [vmem:[#allocation209_spill] sm:$0xff]  ;;  %v12817_v45 = vld [vmem:[#allocation215_spill] sm:$0xff] }
 0x5e8   : > { %v3794_v13 = vsel %vm12797_vm5, %v3762_v16, %v12796_v37  ;;  %vm12801_vm3 = vmmov %vm12799_vm1  ;;  %v3865_v0 = vsel %vm3841_vm14, %v3832_v40, %v10633_v5  ;;  %vm12814_vm5 = vcmask 195584  }
 0x5e9   : > { %5506 = vrot.lane.b32.xlu0 %v2328_v14, %s12001_s0  ;;  %v3732_v14 = vsel %vm12779_vm8, %v3700_v61, %v12778_v52  ;;  %5520 = vrot.lane.b32.xlu1 %v2335_v8, %s12001_s0  ;;  %v3469_v43 = vpop.permute.xlu0 %3468  ;;  %v12800_v61 = vld [vmem:[#allocation274_spill] sm:$0xff]  ;;  %v3506_v49 = vpop.permute.xlu1 %3505  ;;  %vm3907_vm8 = vcmask 392192   ;;  %v3898_v52 = vsel %vm3874_vm10, %v3865_v0, %v10655_v51  ;;  %vm12803_vm9 = vmmov %vm12799_vm1 }
 0x5ea   : > { %v3764_v24 = vsel %vm12791_vm11, %v3732_v14, %v12790_v7  ;;  %v3830_v8 = vsel %vm12801_vm3, %v3798_v18, %v12800_v61  ;;  %vm12805_vm2 = vmmov %vm12799_vm1  ;;  %v12806_v18 = vld [vmem:[#allocation245_spill] sm:$0xff]  ;;  %vm4006_vm11 = vcmask 490496   ;;  %v12819_v61 = vld [vmem:[#allocation278_spill] sm:$0xff]  ;;  %vm12820_vm3 = vcmask 228352  }
 0x5eb   : > { %v3863_v22 = vsel %vm3841_vm14, %v3830_v8, %v10651_v42  ;;  %v3826_v5 = vsel %vm12805_vm2, %v3794_v13, %v12804_v54  ;;  %v3931_v42 = vsel %vm3907_vm8, %v3898_v52, %v10677_v30  ;;  %v3676_v1 = vsel %vm12807_vm7, %v10211_v12, %v12806_v18  ;;  %v12808_v12 = vld [vmem:[#allocation90_spill] sm:$0xff]  ;;  %v12816_v13 = vld [vmem:[#allocation265_spill] sm:$0xff] }
 0x5ec   : > { %v3896_v14 = vsel %vm3874_vm10, %v3863_v22, %v10673_v55  ;;  %v3859_v55 = vsel %vm3841_vm14, %v3826_v5, %v10642_v25  ;;  %v3964_v39 = vsel %vm3940_vm12, %v3931_v42, %v3475_v34  ;;  %v2336_v25 = vmax.f32 %v2304_v53, 0.0 }
 0x5ed   : > { %5510 = vrot.lane.b32.xlu0 %v2330_v21, %s12001_s0  ;;  %v12794_v21 = vld [vmem:[#allocation258_spill] sm:$0xff]  ;;  %5524 = vrot.lane.b32.xlu1 %v2337_v19, %s12001_s0  ;;  %v3929_v47 = vsel %vm3907_vm8, %v3896_v14, %v3434_v48  ;;  %v3473_v20 = vpop.permute.xlu0 %3472  ;;  %v3510_v59 = vpop.permute.xlu1 %3509  ;;  %v3892_v48 = vsel %vm3874_vm10, %v3859_v55, %v10662_v29  ;;  %v2312_v31 = vadd.f32 %v10640_v44, %v12808_v12  ;;  %v12823_v14 = vld [vmem:[#allocation303_spill] sm:$0xff]  ;;  %vm12824_vm2 = vcmask 261120  }
 0x5ee   : > { %v3796_v57 = vsel %vm12795_vm6, %v3764_v24, %v12794_v21  ;;  %v3925_v19 = vsel %vm3907_vm8, %v3892_v48, %v10691_v3  ;;  %v3708_v53 = vsel %vm12809_vm0, %v3676_v1, %v12580_v6  ;;  %vm12812_vm6 = vmmov %vm12807_vm7  ;;  %v12815_v6 = vld [vmem:[#allocation89_spill] sm:$0xff]  ;;  %v12841_v12 = vld [vmem:[#allocation111_spill] sm:$0xff] }
 0x5ef   : > { %v3828_v63 = vsel %vm12803_vm9, %v3796_v57, %v12802_v27  ;;  %v3958_v7 = vsel %vm3940_vm12, %v3925_v19, %v3469_v43  ;;  %v2320_v43 = vadd.f32 %v12815_v6, %v10640_v44  ;;  %v2338_v57 = vmax.f32 %v2312_v31, 0.0  ;;  %vm12818_vm1 = vmmov %vm12812_vm6  ;;  %v12842_v31 = vld [vmem:[#allocation94_spill] sm:$0xff] }
 0x5f0   : > { %v3861_v51 = vsel %vm3841_vm14, %v3828_v63, %v10625_v41  ;;  %v3997_v41 = vsel %vm3973_vm15, %v3964_v39, %v3510_v59  ;;  %v3674_v40 = vsel %vm12818_vm1, %v12817_v45, %v12816_v13  ;;  %vm12822_vm9 = vmmov %vm12809_vm0  ;;  %vm12829_vm1 = vcmask 293888   ;;  %v12856_v45 = vld [vmem:[#allocation108_spill] sm:$0xff] }
 0x5f1   : > { %5514 = vrot.lane.b32.xlu0 %v2332_v9, %s12001_s0  ;;  %v3962_v9 = vsel %vm3940_vm12, %v3929_v47, %v3473_v20  ;;  %v3894_v30 = vsel %vm3874_vm10, %v3861_v51, %v10646_v26  ;;  %5528 = vrot.lane.b32.xlu1 %v2339_v56, %s12001_s0  ;;  %v2341_v26 = vmax.f32 %v2323_v33, 0.0  ;;  %v3504_v24 = vpop.permute.xlu0 %3503  ;;  %v12810_v56 = vld [vmem:[#allocation275_spill] sm:$0xff]  ;;  %vm12825_vm7 = vmmov %vm12814_vm5  ;;  %v2340_v54 = vmax.f32 %v2320_v43, 0.0 }
 0x5f2   : > { %v3927_v34 = vsel %vm3907_vm8, %v3894_v30, %v10666_v17  ;;  %v3991_v3 = vsel %vm3973_vm15, %v3958_v7, %v3504_v24  ;;  %v3680_v16 = vsel %vm12812_vm6, %v12811_v4, %v12810_v56  ;;  %v12813_v33 = vld [vmem:[#allocation299_spill] sm:$0xff]  ;;  %v3706_v5 = vsel %vm12809_vm0, %v3674_v40, %v12662_v32  ;;  %vm12826_vm6 = vmmov %vm12814_vm5  ;;  %v12831_v32 = vld [vmem:[#allocation290_spill] sm:$0xff] }
 0x5f3   : > { %v3960_v29 = vsel %vm3940_vm12, %v3927_v34, %v10700_v10  ;;  %v3740_v21 = vsel %vm12814_vm5, %v3708_v53, %v12813_v33  ;;  %v3738_v47 = vsel %vm12826_vm6, %v3706_v5, %v12668_v36  ;;  %vm12827_vm5 = vmmov %vm12820_vm3  ;;  %v12845_v24 = vld [vmem:[#allocation102_spill] sm:$0xff]  ;;  %v12846_v53 = vld [vmem:[#allocation93_spill] sm:$0xff] }
 0x5f4   : > { %v3993_v17 = vsel %vm3973_vm15, %v3960_v29, %v3506_v49  ;;  %v3772_v8 = vsel %vm12820_vm3, %v3740_v21, %v12819_v61  ;;  %v12821_v49 = vld [vmem:[#allocation287_spill] sm:$0xff]  ;;  %vm12830_vm3 = vmmov %vm12824_vm2  ;;  %v12850_v56 = vld [vmem:[#allocation96_spill] sm:$0xff] }
 0x5f5   : > { %5518 = vrot.lane.b32.xlu0 %v2334_v23, %s12001_s0  ;;  %v3540_v23 = vpop.permute.xlu1 %3539  ;;  %5532 = vrot.lane.b32.xlu1 %v2341_v26, %s12001_s0  ;;  %v3508_v37 = vpop.permute.xlu0 %3507  ;;  %v3712_v0 = vsel %vm12822_vm9, %v3680_v16, %v12821_v49  ;;  %v3804_v27 = vsel %vm12824_vm2, %v3772_v8, %v12823_v14  ;;  %vm12832_vm9 = vcmask 130048   ;;  %vm12833_vm2 = vmmov %vm12827_vm5  ;;  %v12852_v16 = vld [vmem:[#allocation47_spill] sm:$0xff]  ;;  %v12854_v21 = vld [vmem:[#allocation113_spill] sm:$0xff] }
 0x5f6   : > { %v10805_v10 = vsel %vm4006_vm11, %v3993_v17, %v3540_v23  ;;  %v3995_v22 = vsel %vm3973_vm15, %v3962_v9, %v3508_v37  ;;  %v3744_v44 = vsel %vm12825_vm7, %v3712_v0, %v12652_v60  ;;  %v12828_v60 = vld [vmem:[#allocation280_spill] sm:$0xff]  ;;  %v3678_v36 = vsel %vm12832_vm9, %v10410_v28, %v12831_v32  ;;  %vm12834_vm7 = vmmov %vm12809_vm0  ;;  %v12848_v17 = vld [vmem:[#allocation101_spill] sm:$0xff] }
 0x5f7   : > { %v3776_v20 = vsel %vm12827_vm5, %v3744_v44, %v12670_v38  ;;  %v3836_v55 = vsel %vm12829_vm1, %v3804_v27, %v12828_v60  ;;  %v3770_v38 = vsel %vm12833_vm2, %v3738_v47, %v12676_v2  ;;  %v3710_v18 = vsel %vm12834_vm7, %v3678_v36, %v12673_v11  ;;  %vm12835_vm0 = vmmov %vm12830_vm3  ;;  %v12839_v2 = vld [vmem:[#allocation296_spill] sm:$0xff]  ;;  %v12855_v37 = vld [vmem:[#allocation99_spill] sm:$0xff] }
 0x5f8   : > { %v3808_v9 = vsel %vm12830_vm3, %v3776_v20, %v12678_v58  ;;  %v3802_v30 = vsel %vm12835_vm0, %v3770_v38, %v12680_v46  ;;  %v3742_v58 = vsel %vm12826_vm6, %v3710_v18, %v12684_v62  ;;  %vm12837_vm5 = vmmov %vm12829_vm1  ;;  %vm12843_vm9 = vcmask 31744   ;;  %v12849_v23 = vld [vmem:[#allocation120_spill] sm:$0xff]  ;;  %v12858_v49 = vld [vmem:[#allocation103_spill] sm:$0xff] }
 0x5f9   : > { %5522 = vrot.lane.b32.xlu0 %v2336_v25, %s12001_s0  ;;  %v3544_v52 = vpop.permute.xlu1 %3543  ;;  %v3538_v42 = vpop.permute.xlu0 %3537  ;;  %vm12838_vm1 = vmmov %vm12833_vm2  ;;  %v3554_v62 = vsel %vm12843_vm9, %v12842_v31, %v12841_v12  ;;  %v12857_v61 = vld [vmem:[#allocation104_spill] sm:$0xff]  ;;  %v12861_v27 = vld [vmem:[#allocation123_spill] sm:$0xff] }
 0x5fa   : > { %v10824_v63 = vsel %vm4006_vm11, %v3997_v41, %v3544_v52  ;;  %v10834_v51 = vsel %vm4006_vm11, %v3991_v3, %v3538_v42  ;;  %v12836_v41 = vld [vmem:[#allocation305_spill] sm:$0xff]  ;;  %v3774_v11 = vsel %vm12838_vm1, %v3742_v58, %v12691_v50  ;;  %vm12840_vm3 = vmmov %vm12837_vm5  ;;  %v3586_v3 = vsel %vm1822_vm13, %v3554_v62, %v12848_v17  ;;  %v12862_v44 = vld [vmem:[#allocation95_spill] sm:$0xff] }
 0x5fb   : > { %v3840_v25 = vsel %vm12837_vm5, %v3808_v9, %v12836_v41  ;;  %v3834_v19 = vsel %vm12840_vm3, %v3802_v30, %v12839_v2  ;;  %vm12844_vm2 = vmmov %vm12835_vm0  ;;  %v3618_v6 = vsel %vm1855_vm4, %v3586_v3, %v12854_v21  ;;  %vm12859_vm5 = vcmask 130048   ;;  %v12864_v42 = vld [vmem:[#allocation100_spill] sm:$0xff]  ;;  %v12866_v20 = vld [vmem:[#allocation110_spill] sm:$0xff] }
 0x5fc   : > { %v3806_v26 = vsel %vm12844_vm2, %v3774_v11, %v12695_v15  ;;  %vm12847_vm7 = vmmov %vm12843_vm9  ;;  %v3650_v0 = vsel %vm12859_vm5, %v3618_v6, %v12858_v49  ;;  %vm12869_vm2 = vcmask 162816   ;;  %v12870_v9 = vld [vmem:[#allocation160_spill] sm:$0xff]  ;;  %v12871_v32 = vld [vmem:[#allocation98_spill] sm:$0xff] }
 0x5fd   : > { %5526 = vrot.lane.b32.xlu0 %v2338_v57, %s12001_s0  ;;  %v3358_v39 = vpop.permute.xlu1 %3357  ;;  %v3542_v1 = vpop.permute.xlu0 %3541  ;;  %v3556_v50 = vsel %vm12847_vm7, %v12846_v53, %v12845_v24  ;;  %vm12851_vm0 = vmmov %vm12847_vm7  ;;  %v12873_v38 = vld [vmem:[#allocation106_spill] sm:$0xff]  ;;  %v12877_v58 = vld [vmem:[#allocation115_spill] sm:$0xff] }
 0x5fe   : > { %v10841_v59 = vsel %vm3841_vm14, %v3836_v55, %v3358_v39  ;;  %v10856_v48 = vsel %vm4006_vm11, %v3995_v22, %v3542_v1  ;;  %v3560_v4 = vsel %vm12851_vm0, %v12850_v56, %v12849_v23  ;;  %vm12853_vm6 = vmmov %vm12840_vm3  ;;  %v3588_v13 = vsel %vm1822_vm13, %v3556_v50, %v12855_v37  ;;  %v12860_v22 = vld [vmem:[#allocation124_spill] sm:$0xff]  ;;  %v12868_v55 = vld [vmem:[#allocation105_spill] sm:$0xff] }
 0x5ff   : > { %v3838_v33 = vsel %vm12853_vm6, %v3806_v26, %v12852_v16  ;;  %v3592_v40 = vsel %vm1822_vm13, %v3560_v4, %v12856_v45  ;;  %v3620_v8 = vsel %vm1855_vm4, %v3588_v13, %v12857_v61  ;;  %vm12863_vm1 = vmmov %vm12851_vm0  ;;  %v3682_v39 = vsel %vm12869_vm2, %v3650_v0, %v12868_v55  ;;  %v12875_v1 = vld [vmem:[#allocation125_spill] sm:$0xff]  ;;  %v12879_v2 = vld [vmem:[#allocation131_spill] sm:$0xff] }
 0x600   : > { %v3624_v52 = vsel %vm1855_vm4, %v3592_v40, %v12860_v22  ;;  %vm12865_vm3 = vmmov %vm12859_vm5  ;;  %vm12876_vm6 = vcmask 195584   ;;  %v12882_v12 = vld [vmem:[#allocation97_spill] sm:$0xff]  ;;  %v12883_v26 = vld [vmem:[#allocation122_spill] sm:$0xff] }
 0x601   : > { %5530 = vrot.lane.b32.xlu0 %v2340_v54, %s12001_s0  ;;  %v3362_v28 = vpop.permute.xlu1 %3361  ;;  %v3356_v46 = vpop.permute.xlu0 %3355  ;;  %v3558_v54 = vsel %vm12863_vm1, %v12862_v44, %v12861_v27  ;;  %v3652_v47 = vsel %vm12865_vm3, %v3620_v8, %v12864_v42  ;;  %vm12867_vm9 = vmmov %vm12865_vm3  ;;  %v3714_v30 = vsel %vm12876_vm6, %v3682_v39, %v12875_v1  ;;  %v12884_v53 = vld [vmem:[#allocation116_spill] sm:$0xff]  ;;  %v12886_v17 = vld [vmem:[#allocation119_spill] sm:$0xff] }
 0x602   : > { %v10861_v34 = vsel %vm3841_vm14, %v3840_v25, %v3362_v28  ;;  %v10873_v29 = vsel %vm3841_vm14, %v3834_v19, %v3356_v46  ;;  %v3656_v60 = vsel %vm12867_vm9, %v3624_v52, %v12866_v20  ;;  %vm12872_vm7 = vmmov %vm12851_vm0  ;;  %v3590_v41 = vsel %vm1822_vm13, %v3558_v54, %v12877_v58  ;;  %v12878_v28 = vld [vmem:[#allocation130_spill] sm:$0xff]  ;;  %v12893_v21 = vld [vmem:[#allocation112_spill] sm:$0xff] }
 0x603   : > { %v3564_v36 = vsel %vm12872_vm7, %v12871_v32, %v12870_v9  ;;  %vm12874_vm0 = vmmov %vm12869_vm2  ;;  %v3622_v11 = vsel %vm1855_vm4, %v3590_v41, %v12878_v28  ;;  %v12881_v46 = vld [vmem:[#allocation150_spill] sm:$0xff]  ;;  %vm12887_vm9 = vcmask 228352   ;;  %vm12892_vm7 = vcmask 130048   ;;  %v12895_v37 = vld [vmem:[#allocation136_spill] sm:$0xff] }
 0x604   : > { %v3684_v18 = vsel %vm12874_vm0, %v3652_v47, %v12873_v38  ;;  %vm12880_vm5 = vmmov %vm12876_vm6  ;;  %v3562_v31 = vsel %vm12863_vm1, %v12882_v12, %v12881_v46  ;;  %v3596_v24 = vsel %vm1822_vm13, %v3564_v36, %v12883_v26  ;;  %v3746_v3 = vsel %vm12887_vm9, %v3714_v30, %v12886_v17  ;;  %v12888_v23 = vld [vmem:[#allocation162_spill] sm:$0xff]  ;;  %v12897_v45 = vld [vmem:[#allocation128_spill] sm:$0xff] }
 0x605   : > { %v10875_v7 = vpop.permute.xlu1 %3404  ;;  %v3360_v15 = vpop.permute.xlu0 %3359  ;;  %v3716_v19 = vsel %vm12880_vm5, %v3684_v18, %v12879_v2  ;;  %vm12885_vm3 = vmmov %vm12874_vm0  ;;  %v3628_v56 = vsel %vm1855_vm4, %v3596_v24, %v12888_v23  ;;  %v12889_v4 = vld [vmem:[#allocation166_spill] sm:$0xff]  ;;  %vm12896_vm6 = vcmask 261120   ;;  %v3594_v40 = vsel %vm1822_vm13, %v3562_v31, %v12897_v45  ;;  %v12898_v8 = vld [vmem:[#allocation135_spill] sm:$0xff] }
 0x606   : > { %v10890_v43 = vsel %vm3841_vm14, %v3838_v33, %v3360_v15  ;;  %v3688_v50 = vsel %vm12885_vm3, %v3656_v60, %v12884_v53  ;;  %vm12890_vm2 = vmmov %vm12880_vm5  ;;  %v12891_v33 = vld [vmem:[#allocation117_spill] sm:$0xff]  ;;  %v3778_v13 = vsel %vm12896_vm6, %v3746_v3, %v12895_v37  ;;  %v12900_v0 = vld [vmem:[#allocation159_spill] sm:$0xff] }
 0x607   : > { %v3720_v16 = vsel %vm12890_vm2, %v3688_v50, %v12889_v4  ;;  %v3654_v15 = vsel %vm12892_vm7, %v3622_v11, %v12891_v33  ;;  %vm12894_vm0 = vmmov %vm12887_vm9  ;;  %v3626_v22 = vsel %vm1855_vm4, %v3594_v40, %v12900_v0  ;;  %v12901_v27 = vld [vmem:[#allocation126_spill] sm:$0xff]  ;;  %v12903_v54 = vld [vmem:[#allocation133_spill] sm:$0xff]  ;;  %vm12906_vm9 = vcmask 293888  }
 0x608   : > { %v3748_v6 = vsel %vm12894_vm0, %v3716_v19, %v12893_v21  ;;  %vm12899_vm5 = vmmov %vm12896_vm6  ;;  %v12905_v47 = vld [vmem:[#allocation121_spill] sm:$0xff]  ;;  %v12907_v60 = vld [vmem:[#allocation107_spill] sm:$0xff]  ;;  %vm12908_vm2 = vcmask 162816   ;;  %vm12914_vm4 = vcmask 195584  }
 0x609   : > { %v10892_v57 = vpop.permute.xlu1 %3408  ;;  %v10904_v14 = vpop.permute.xlu0 %3402  ;;  %v3780_v49 = vsel %vm12899_vm5, %v3748_v6, %v12898_v8  ;;  %vm12902_vm1 = vmmov %vm12892_vm7  ;;  %v3810_v20 = vsel %vm12906_vm9, %v3778_v13, %v12905_v47  ;;  %v3686_v55 = vsel %vm12908_vm2, %v3654_v15, %v12907_v60  ;;  %v12909_v39 = vld [vmem:[#allocation168_spill] sm:$0xff]  ;;  %v12911_v32 = vld [vmem:[#allocation114_spill] sm:$0xff] }
 0x60a   : > { %v3660_v44 = vsel %vm12902_vm1, %v3628_v56, %v12901_v27  ;;  %vm12904_vm3 = vmmov %vm12894_vm0  ;;  %v12913_v38 = vld [vmem:[#allocation153_spill] sm:$0xff]  ;;  %v12915_v1 = vld [vmem:[#allocation132_spill] sm:$0xff] }
 0x60b   : > { %v3752_v42 = vsel %vm12904_vm3, %v3720_v16, %v12903_v54  ;;  %vm12910_vm7 = vmmov %vm12899_vm5  ;;  %v3718_v18 = vsel %vm12914_vm4, %v3686_v55, %v12913_v38  ;;  %v12917_v41 = vld [vmem:[#allocation129_spill] sm:$0xff]  ;;  %v12922_v31 = vld [vmem:[#allocation182_spill] sm:$0xff] }
 0x60c   : > { %v3784_v9 = vsel %vm12910_vm7, %v3752_v42, %v12909_v39  ;;  %vm12912_vm0 = vmmov %vm12906_vm9  ;;  %v12919_v2 = vld [vmem:[#allocation109_spill] sm:$0xff]  ;;  %v12924_v24 = vld [vmem:[#allocation155_spill] sm:$0xff]  ;;  %vm12926_vm9 = vcmask 228352  }
 0x60d   : > { %v10909_v5 = vpop.permute.xlu1 %3439  ;;  %v10926_v25 = vpop.permute.xlu0 %3406  ;;  %v3812_v36 = vsel %vm12912_vm0, %v3780_v49, %v12911_v32  ;;  %vm12916_vm6 = vmmov %vm12902_vm1  ;;  %v3843_v19 = vsel %vm3841_vm14, %v3810_v20, %v12919_v2  ;;  %v12920_v46 = vld [vmem:[#allocation137_spill] sm:$0xff]  ;;  %v12925_v50 = vld [vmem:[#allocation134_spill] sm:$0xff] }
 0x60e   : > { %v3658_v30 = vsel %vm12916_vm6, %v3626_v22, %v12915_v1  ;;  %vm12918_vm5 = vmmov %vm12908_vm2  ;;  %v3876_v53 = vsel %vm3874_vm10, %v3843_v19, %v12924_v24  ;;  %v3750_v17 = vsel %vm12926_vm9, %v3718_v18, %v12925_v50  ;;  %v12927_v3 = vld [vmem:[#allocation118_spill] sm:$0xff]  ;;  %v12928_v56 = vld [vmem:[#allocation144_spill] sm:$0xff] }
 0x60f   : > { %v3692_v28 = vsel %vm12918_vm5, %v3660_v44, %v12917_v41  ;;  %vm12921_vm1 = vmmov %vm12912_vm0  ;;  %v3845_v23 = vsel %vm3841_vm14, %v3812_v36, %v12927_v3  ;;  %v3690_v4 = vsel %vm12908_vm2, %v3658_v30, %v12928_v56  ;;  %v12929_v16 = vld [vmem:[#allocation165_spill] sm:$0xff]  ;;  %v12930_v15 = vld [vmem:[#allocation172_spill] sm:$0xff] }
 0x610   : > { %v3816_v12 = vsel %vm12921_vm1, %v3784_v9, %v12920_v46  ;;  %vm12923_vm3 = vmmov %vm12914_vm4  ;;  %v3782_v33 = vsel %vm12910_vm7, %v3750_v17, %v12929_v16  ;;  %v3878_v21 = vsel %vm3874_vm10, %v3845_v23, %v12930_v15  ;;  %v12931_v6 = vld [vmem:[#allocation177_spill] sm:$0xff]  ;;  %v12933_v45 = vld [vmem:[#allocation151_spill] sm:$0xff] }
 0x611   : > { %v10935_v62 = vpop.permute.xlu1 %3443  ;;  %v10955_v61 = vpop.permute.xlu0 %3437  ;;  %v3724_v26 = vsel %vm12923_vm3, %v3692_v28, %v12922_v31  ;;  %vm12932_vm0 = vmmov %vm12923_vm3  ;;  %v12935_v8 = vld [vmem:[#allocation139_spill] sm:$0xff]  ;;  %v12936_v22 = vld [vmem:[#allocation140_spill] sm:$0xff]  ;;  %vm12949_vm3 = vcmask 130048  }
 0x612   : > { %v3722_v37 = vsel %vm12932_vm0, %v3690_v4, %v12931_v6  ;;  %vm12934_vm4 = vmmov %vm12926_vm9  ;;  %v3849_v49 = vsel %vm3841_vm14, %v3816_v12, %v12935_v8  ;;  %v3909_v27 = vsel %vm3907_vm8, %v3876_v53, %v12936_v22  ;;  %v12937_v44 = vld [vmem:[#allocation186_spill] sm:$0xff]  ;;  %v12942_v55 = vld [vmem:[#allocation171_spill] sm:$0xff] }
 0x613   : > { %v3756_v40 = vsel %vm12934_vm4, %v3724_v26, %v12933_v45  ;;  %vm12938_vm6 = vmmov %vm12910_vm7  ;;  %v12939_v42 = vld [vmem:[#allocation190_spill] sm:$0xff]  ;;  %v3942_v39 = vsel %vm3940_vm12, %v3909_v27, %v12942_v55  ;;  %v12943_v9 = vld [vmem:[#allocation141_spill] sm:$0xff]  ;;  %vm12956_vm7 = vcmask 162816  }
 0x614   : > { %v3788_v54 = vsel %vm12938_vm6, %v3756_v40, %v12937_v44  ;;  %v3882_v47 = vsel %vm3874_vm10, %v3849_v49, %v12939_v42  ;;  %v12940_v20 = vld [vmem:[#allocation138_spill] sm:$0xff]  ;;  %vm12941_vm5 = vmmov %vm12921_vm1  ;;  %v3911_v32 = vsel %vm3907_vm8, %v3878_v21, %v12943_v9  ;;  %v12944_v36 = vld [vmem:[#allocation163_spill] sm:$0xff] }
 0x615   : > { %v10961_v52 = vpop.permute.xlu1 %3478  ;;  %v10979_v58 = vpop.permute.xlu0 %3441  ;;  %v3814_v60 = vsel %vm12941_vm5, %v3782_v33, %v12940_v20  ;;  %vm12945_vm1 = vmmov %vm12934_vm4  ;;  %v12946_v18 = vld [vmem:[#allocation174_spill] sm:$0xff]  ;;  %v12947_v30 = vld [vmem:[#allocation161_spill] sm:$0xff]  ;;  %vm12963_vm4 = vcmask 195584  }
 0x616   : > { %v3754_v38 = vsel %vm12945_vm1, %v3722_v37, %v12944_v36  ;;  %v3944_v1 = vsel %vm3940_vm12, %v3911_v32, %v12946_v18  ;;  %v12948_v41 = vld [vmem:[#allocation310_spill] sm:$0xff]  ;;  %vm12951_vm9 = vmmov %vm12938_vm6  ;;  %v12952_v46 = vld [vmem:[#allocation149_spill] sm:$0xff] }
 0x617   : > { %v3662_v28 = vsel %vm12949_vm3, %v12948_v41, %v12947_v30  ;;  %v12950_v2 = vld [vmem:[#allocation178_spill] sm:$0xff]  ;;  %v12953_v12 = vld [vmem:[#allocation311_spill] sm:$0xff]  ;;  %vm12954_vm2 = vmmov %vm12949_vm3  ;;  %vm4540_vm3 = vcmask 523264  }
 0x618   : > { %v3786_v19 = vsel %vm12951_vm9, %v3754_v38, %v12950_v2  ;;  %v3664_v31 = vsel %vm12954_vm2, %v12953_v12, %v12952_v46  ;;  %v12955_v24 = vld [vmem:[#allocation183_spill] sm:$0xff]  ;;  %v12957_v50 = vld [vmem:[#allocation154_spill] sm:$0xff]  ;;  %vm12958_vm0 = vmmov %vm12941_vm5  ;;  %vm12978_vm9 = vcmask 228352   ;;  %vm12980_vm2 = vcmask 261120  }
 0x619   : > { %v10983_v11 = vpop.permute.xlu1 %3482  ;;  %v11005_v13 = vpop.permute.xlu0 %3476  ;;  %v3694_v53 = vsel %vm12956_vm7, %v3662_v28, %v12955_v24  ;;  %v3820_v17 = vsel %vm12958_vm0, %v3788_v54, %v12957_v50  ;;  %v12959_v3 = vld [vmem:[#allocation156_spill] sm:$0xff]  ;;  %v12960_v4 = vld [vmem:[#allocation147_spill] sm:$0xff]  ;;  %v12962_v21 = vld [vmem:[#allocation217_spill] sm:$0xff] }
 0x61a   : > { %v3915_v23 = vsel %vm3907_vm8, %v3882_v47, %v12959_v3  ;;  %v3847_v16 = vsel %vm3841_vm14, %v3814_v60, %v12960_v4  ;;  %v12961_v33 = vld [vmem:[#allocation192_spill] sm:$0xff]  ;;  %v3726_v6 = vsel %vm12963_vm4, %v3694_v53, %v12962_v21  ;;  %v12964_v37 = vld [vmem:[#allocation142_spill] sm:$0xff]  ;;  %v12965_v40 = vld [vmem:[#allocation143_spill] sm:$0xff] }
 0x61b   : > { %v3948_v15 = vsel %vm3940_vm12, %v3915_v23, %v12961_v33  ;;  %v3975_v45 = vsel %vm3973_vm15, %v3942_v39, %v12964_v37  ;;  %v3977_v8 = vsel %vm3973_vm15, %v3944_v1, %v12965_v40  ;;  %v12966_v49 = vld [vmem:[#allocation167_spill] sm:$0xff]  ;;  %vm12967_vm6 = vmmov %vm12958_vm0  ;;  %v12968_v27 = vld [vmem:[#allocation164_spill] sm:$0xff] }
 0x61c   : > { %v3818_v22 = vsel %vm12967_vm6, %v3786_v19, %v12966_v49  ;;  %vm12969_vm5 = vmmov %vm12956_vm7  ;;  %v12970_v54 = vld [vmem:[#allocation179_spill] sm:$0xff]  ;;  %v12971_v47 = vld [vmem:[#allocation202_spill] sm:$0xff] }
 0x61d   : > { %v4511_v0 = vpop.permute.xlu1 %4510  ;;  %v11035_v26 = vpop.permute.xlu0 %3480  ;;  %v3696_v44 = vsel %vm12969_vm5, %v3664_v31, %v12968_v27  ;;  %v3880_v42 = vsel %vm3874_vm10, %v3847_v16, %v12970_v54  ;;  %vm12972_vm1 = vmmov %vm12963_vm4  ;;  %v12973_v60 = vld [vmem:[#allocation170_spill] sm:$0xff]  ;;  %v12974_v9 = vld [vmem:[#allocation185_spill] sm:$0xff] }
 0x61e   : > { %v3728_v20 = vsel %vm12972_vm1, %v3696_v44, %v12971_v47  ;;  %v3853_v55 = vsel %vm3841_vm14, %v3820_v17, %v12973_v60  ;;  %v3851_v32 = vsel %vm3841_vm14, %v3818_v22, %v12974_v9  ;;  %v12975_v36 = vld [vmem:[#allocation158_spill] sm:$0xff]  ;;  %v12977_v30 = vld [vmem:[#allocation193_spill] sm:$0xff]  ;;  %v12979_v2 = vld [vmem:[#allocation219_spill] sm:$0xff]  ;;  %vm13003_vm1 = vcmask 1046528  }
 0x61f   : > { %v3981_v38 = vsel %vm3973_vm15, %v3948_v15, %v12975_v36  ;;  %v12976_v18 = vld [vmem:[#allocation206_spill] sm:$0xff]  ;;  %v3758_v41 = vsel %vm12978_vm9, %v3726_v6, %v12977_v30  ;;  %v12981_v46 = vld [vmem:[#allocation221_spill] sm:$0xff]  ;;  %v12984_v17 = vld [vmem:[#allocation184_spill] sm:$0xff] }
 0x620   : > { %v3886_v1 = vsel %vm3874_vm10, %v3853_v55, %v12976_v18  ;;  %v3790_v19 = vsel %vm12980_vm2, %v3758_v41, %v12979_v2  ;;  %v3884_v12 = vsel %vm3874_vm10, %v3851_v32, %v12981_v46  ;;  %v12982_v31 = vld [vmem:[#allocation145_spill] sm:$0xff]  ;;  %vm12985_vm7 = vmmov %vm12978_vm9  ;;  %v12986_v4 = vld [vmem:[#allocation148_spill] sm:$0xff] }
 0x621   : > { %v11043_v56 = vpop.permute.xlu1 %3513  ;;  %v11065_v39 = vpop.permute.xlu0 %3511  ;;  %v4010_v24 = vsel %vm4006_vm11, %v3977_v8, %v12982_v31  ;;  %v12983_v53 = vld [vmem:[#allocation169_spill] sm:$0xff]  ;;  %v3760_v3 = vsel %vm12985_vm7, %v3728_v20, %v12984_v17  ;;  %v4008_v16 = vsel %vm4006_vm11, %v3975_v45, %v12986_v4  ;;  %v12988_v21 = vld [vmem:[#allocation204_spill] sm:$0xff]  ;;  %vm12989_vm0 = vmmov %vm12980_vm2 }
 0x622   : > { %v3913_v50 = vsel %vm3907_vm8, %v3880_v42, %v12983_v53  ;;  %v4544_v23 = vsel %vm4540_vm3, %v4010_v24, %v4511_v0  ;;  %v12987_v33 = vld [vmem:[#allocation181_spill] sm:$0xff]  ;;  %v3792_v6 = vsel %vm12989_vm0, %v3760_v3, %v12988_v21  ;;  %v12990_v37 = vld [vmem:[#allocation194_spill] sm:$0xff]  ;;  %v12991_v8 = vld [vmem:[#allocation176_spill] sm:$0xff] }
 0x623   : > { %v3946_v15 = vsel %vm3940_vm12, %v3913_v50, %v12987_v33  ;;  %v3919_v40 = vsel %vm3907_vm8, %v3886_v1, %v12990_v37  ;;  %v4014_v49 = vsel %vm4006_vm11, %v3981_v38, %v12991_v8  ;;  %v12992_v27 = vld [vmem:[#allocation208_spill] sm:$0xff]  ;;  %vm12994_vm4 = vmmov %vm12967_vm6  ;;  %v12995_v45 = vld [vmem:[#allocation198_spill] sm:$0xff]  ;;  %v4590_v9 = vrot.slane %v4544_v23, 1 }
 0x624   : > { %v3952_v44 = vsel %vm3940_vm12, %v3919_v40, %v12992_v27  ;;  %v12993_v0 = vld [vmem:[#allocation196_spill] sm:$0xff]  ;;  %v3917_v42 = vsel %vm3907_vm8, %v3884_v12, %v12995_v45  ;;  %v12996_v60 = vld [vmem:[#allocation223_spill] sm:$0xff]  ;;  %vm4672_vm6 = vcmask 818176   ;;  %v12997_v36 = vld [vmem:[#allocation173_spill] sm:$0xff] }
 0x625   : > { %v4515_v28 = vpop.permute.xlu1 %4514  ;;  %v4509_v22 = vpop.permute.xlu0 %4508  ;;  %v3822_v54 = vsel %vm12994_vm4, %v3790_v19, %v12993_v0  ;;  %v3950_v55 = vsel %vm3940_vm12, %v3917_v42, %v12996_v60  ;;  %v3979_v38 = vsel %vm3973_vm15, %v3946_v15, %v12997_v36  ;;  %v12998_v18 = vld [vmem:[#allocation188_spill] sm:$0xff]  ;;  %vm12999_vm5 = vmmov %vm12994_vm4  ;;  %v13000_v41 = vld [vmem:[#allocation187_spill] sm:$0xff] }
 0x626   : > { %v4542_v47 = vsel %vm4540_vm3, %v4008_v16, %v4509_v22  ;;  %v3824_v1 = vsel %vm12999_vm5, %v3792_v6, %v12998_v18  ;;  %v4548_v30 = vsel %vm4540_vm3, %v4014_v49, %v4515_v28  ;;  %v4012_v2 = vsel %vm4006_vm11, %v3979_v38, %v13000_v41  ;;  %v13001_v19 = vld [vmem:[#allocation213_spill] sm:$0xff]  ;;  %v13004_v50 = vld [vmem:[#allocation216_spill] sm:$0xff]  ;;  %v13005_v3 = vld [vmem:[#allocation199_spill] sm:$0xff] }
 0x627   : > { %v4589_v32 = vrot.slane %v4542_v47, 1  ;;  %v3857_v46 = vsel %vm3841_vm14, %v3824_v1, %v13001_v19  ;;  %v13002_v12 = vld [vmem:[#allocation197_spill] sm:$0xff]  ;;  %v3983_v23 = vsel %vm3973_vm15, %v3950_v55, %v13005_v3  ;;  %v13006_v4 = vld [vmem:[#allocation203_spill] sm:$0xff]  ;;  %v13007_v15 = vld [vmem:[#allocation256_spill] sm:$0xff]  ;;  %v4593_v40 = vrot.slane %v4548_v30, 1 }
 0x628   : > { %v3985_v31 = vsel %vm3973_vm15, %v3952_v44, %v13002_v12  ;;  %v3855_v28 = vsel %vm3841_vm14, %v3822_v54, %v13006_v4  ;;  %v13008_v6 = vld [vmem:[#allocation264_spill] sm:$0xff]  ;;  %vm13009_vm9 = vmmov %vm13003_vm1  ;;  %v13010_v27 = vld [vmem:[#allocation205_spill] sm:$0xff] }
 0x629   : > { %v4519_v20 = vpop.permute.xlu1 %4518  ;;  %v4513_v24 = vpop.permute.xlu0 %4512  ;;  %v4591_v53 = vsel %vm13003_vm1, %v4589_v32, %v4590_v9  ;;  %v4018_v17 = vsel %vm4006_vm11, %v3985_v31, %v13004_v50  ;;  %v3888_v21 = vsel %vm3874_vm10, %v3855_v28, %v13007_v15  ;;  %v3890_v37 = vsel %vm3874_vm10, %v3857_v46, %v13008_v6  ;;  %v13011_v54 = vld [vmem:[#allocation227_spill] sm:$0xff]  ;;  %v13012_v42 = vld [vmem:[#allocation241_spill] sm:$0xff]  ;;  %vm13015_vm14 = vmmov %vm13003_vm1 }
 0x62a   : > { %v4546_v16 = vsel %vm4540_vm3, %v4012_v2, %v4513_v24  ;;  %6171 = vmatprep.mubr.msk.bf16.mxu1 %vm4672_vm6, %v4591_v53  ;;  %v4552_v49 = vsel %vm4540_vm3, %v4018_v17, %v4519_v20  ;;  %v4016_v44 = vsel %vm4006_vm11, %v3983_v23, %v13010_v27  ;;  %v3923_v45 = vsel %vm3907_vm8, %v3890_v37, %v13011_v54  ;;  %v13013_v9 = vld [vmem:[#allocation267_spill] sm:$0xff]  ;;  %v13014_v32 = vld [vmem:[#allocation277_spill] sm:$0xff]  ;;  %v13016_v41 = vld [vmem:[#allocation244_spill] sm:$0xff] }
 0x62b   : > { %v4592_v8 = vrot.slane %v4546_v16, 1  ;;  %v3921_v47 = vsel %vm3907_vm8, %v3888_v21, %v13012_v42  ;;  %v3956_v20 = vsel %vm3940_vm12, %v3923_v45, %v13013_v9  ;;  %v4596_v38 = vrot.slane %v4552_v49, 1  ;;  %v13017_v19 = vld [vmem:[#allocation230_spill] sm:$0xff]  ;;  %vm13019_vm2 = vmmov %vm13003_vm1 }
 0x62c   : > { %v3954_v36 = vsel %vm3940_vm12, %v3921_v47, %v13014_v32  ;;  %v3989_v46 = vsel %vm3973_vm15, %v3956_v20, %v13017_v19  ;;  %v13018_v53 = vld [vmem:[#allocation210_spill] sm:$0xff]  ;;  %vm13020_vm7 = vmmov %vm13003_vm1  ;;  %v3904_v9 = vsel %vm3874_vm10, %v10890_v43, %v10926_v25 }
 0x62d   : > { %v4523_v33 = vpop.permute.xlu1 %4522  ;;  %v4594_v22 = vsel %vm13009_vm9, %v4592_v8, %v4593_v40  ;;  %v4517_v0 = vpop.permute.xlu0 %4516  ;;  %v3987_v2 = vsel %vm3973_vm15, %v3954_v36, %v13016_v41  ;;  %v4022_v31 = vsel %vm4006_vm11, %v3989_v46, %v10612_v35  ;;  %vm13021_vm0 = vmmov %vm13003_vm1  ;;  %v3937_v20 = vsel %vm3907_vm8, %v3904_v9, %v10979_v58 }
 0x62e   : > { %v4550_v60 = vsel %vm4540_vm3, %v4016_v44, %v4517_v0  ;;  %6172 = vmatmul.mubr.msk.bf16.vlgmr.msra.gmra.mxu1 %vm4672_vm6, %v4594_v22  ;;  %v4556_v24 = vsel %vm4540_vm3, %v4022_v31, %v4523_v33  ;;  %v4020_v50 = vsel %vm4006_vm11, %v3987_v2, %v13018_v53  ;;  %v3970_v36 = vsel %vm3940_vm12, %v3937_v20, %v11035_v26 }
 0x62f   : > { %v4595_v18 = vrot.slane %v4550_v60, 1  ;;  %v4599_v4 = vrot.slane %v4556_v24, 1 }
 0x631   : > { %v3518_v55 = vpop.permute.xlu1 %3517  ;;  %v3516_v1 = vpop.permute.xlu0 %3515  ;;  %v4597_v30 = vsel %vm13015_vm14, %v4595_v18, %v4596_v38  ;;  %v13022_v18 = vld [vmem:[#allocation57_spill] sm:$0xff] }
 0x632   : > { %6175 = vmatprep.mubr.msk.bf16.mxu1 %vm4672_vm6, %v4597_v30  ;;  %v4003_v58 = vsel %vm3973_vm15, %v3970_v36, %v3516_v1 }
 0x635   : > { %v4527_v12 = vpop.permute.xlu1 %4526 }
 0x636   : > { %v4560_v35 = vsel %vm4540_vm3, %v10805_v10, %v4527_v12  ;;  %v3902_v10 = vsel %vm3874_vm10, %v10841_v59, %v10875_v7 }
 0x637   : > { %v4521_v17 = vpop.permute.xlu0 %4520  ;;  %v4602_v40 = vrot.slane %v4560_v35, 1  ;;  %v3935_v45 = vsel %vm3907_vm8, %v3902_v10, %v10909_v5  ;;  %v3906_v5 = vsel %vm3874_vm10, %v10861_v34, %v10892_v57 }
 0x638   : > { %v4554_v3 = vsel %vm4540_vm3, %v4020_v50, %v4521_v17  ;;  %v3968_v42 = vsel %vm3940_vm12, %v3935_v45, %v10961_v52  ;;  %v3939_v52 = vsel %vm3907_vm8, %v3906_v5, %v10935_v62 }
 0x639   : > { %v3548_v23 = vpop.permute.xlu1 %3547  ;;  %v4598_v28 = vrot.slane %v4554_v3, 1  ;;  %v4001_v59 = vsel %vm3973_vm15, %v3968_v42, %v11043_v56  ;;  %v3972_v34 = vsel %vm3940_vm12, %v3939_v52, %v10983_v11  ;;  %v11212_v11 = vld [vmem:[%s11534_s2] ss:$0 sm:$0xff] }
 0x63a   : > { %v4005_v62 = vsel %vm3973_vm15, %v3972_v34, %v3518_v55  ;;  %v909_v30 = vadd.f32 %v11212_v11, %v13022_v18  ;;  %v13025_v3 = vld [vmem:[#allocation36_spill] sm:$0xff] }
 0x63b   : > { %v3546_v16 = vpop.permute.xlu0 %3545  ;;  %v4600_v15 = vsel %vm13019_vm2, %v4598_v28, %v4599_v4 }
 0x63c   : > { %6176 = vmatmul.mubr.msk.bf16.gmra.mxu1 %vm4672_vm6, %v4600_v15  ;;  %v957_v24 = vmax.f32 %v909_v30, 0.0 }
 0x63d   : > { %v3552_v21 = vpop.permute.xlu1 %3551 }
 0x63e   : > { %v4038_v43 = vsel %vm4006_vm11, %v4005_v62, %v3552_v21 }
 0x641   : > { %v4531_v37 = vpop.permute.xlu1 %4530 }
 0x642   : > { %v4564_v49 = vsel %vm4540_vm3, %v10824_v63, %v4531_v37  ;;  %v3900_v63 = vsel %vm3874_vm10, %v10873_v29, %v10904_v14  ;;  %v4034_v14 = vsel %vm4006_vm11, %v4001_v59, %v3548_v23  ;;  %vm13023_vm10 = vmmov %vm13021_vm0  ;;  %v906_v23 = vadd.f32 %v11212_v11, %v13025_v3 }
 0x643   : > { %v4525_v6 = vpop.permute.xlu0 %4524  ;;  %v3933_v60 = vsel %vm3907_vm8, %v3900_v63, %v10955_v61  ;;  %vm13024_vm8 = vmmov %vm13021_vm0 }
 0x644   : > { %v4558_v33 = vsel %vm4540_vm3, %v10834_v51, %v4525_v6  ;;  %v4605_v51 = vrot.slane %v4564_v49, 1  ;;  %v3966_v29 = vsel %vm3940_vm12, %v3933_v60, %v11005_v13  ;;  %v13026_v6 = vld [vmem:[#allocation74_spill] sm:$0xff]  ;;  %vm13032_vm12 = vcmask 130048  }
 0x645   : > { %v4601_v8 = vrot.slane %v4558_v33, 1  ;;  %v4535_v0 = vpop.permute.xlu1 %4534  ;;  %v3999_v61 = vsel %vm3973_vm15, %v3966_v29, %v11065_v39  ;;  %v922_v33 = vadd.f32 %v11212_v11, %v13026_v6  ;;  %vm13034_vm15 = vcmask 195584  }
 0x646   : > { %v4568_v56 = vsel %vm4540_vm3, %v4034_v14, %v4535_v0  ;;  %v4032_v57 = vsel %vm4006_vm11, %v3999_v61, %v3546_v16  ;;  %v956_v16 = vmax.f32 %v906_v23, 0.0  ;;  %v13028_v14 = vld [vmem:[#allocation16_spill] sm:$0xff] }
 0x647   : > { %v4529_v22 = vpop.permute.xlu0 %4528  ;;  %v4603_v27 = vsel %vm13020_vm7, %v4601_v8, %v4602_v40  ;;  %v4608_v25 = vrot.slane %v4568_v56, 1  ;;  %v11247_v40 = vld [vmem:[%s11544_s12] ss:$0 sm:$0xff]  ;;  %v13027_v8 = vld [vmem:[#allocation19_spill] sm:$0xff]  ;;  %v938_v52 = vadd.f32 %v11212_v11, %v13028_v14 }
 0x648   : > { %v4562_v44 = vsel %vm4540_vm3, %v10856_v48, %v4529_v22  ;;  %6179 = vmatprep.mubr.msk.bf16.mxu1 %vm4672_vm6, %v4603_v27  ;;  %v941_v49 = vadd.f32 %v11212_v11, %v13027_v8 }
 0x649   : > { %v4604_v54 = vrot.slane %v4562_v44, 1  ;;  %v4539_v7 = vpop.permute.xlu1 %4538  ;;  %v964_v34 = vmax.f32 %v938_v52, 0.0 }
 0x64a   : > { %v4572_v55 = vsel %vm4540_vm3, %v4038_v43, %v4539_v7  ;;  %v965_v45 = vmax.f32 %v941_v49, 0.0 }
 0x64b   : > { %v3550_v48 = vpop.permute.xlu0 %3549  ;;  %v4606_v47 = vsel %vm13021_vm0, %v4604_v54, %v4605_v51  ;;  %v4611_v12 = vrot.slane %v4572_v55, 1  ;;  %v960_v51 = vmax.f32 %v922_v33, 0.0 }
 0x64c   : > { %6180 = vmatmul.mubr.msk.bf16.gmra.mxu1 %vm4672_vm6, %v4606_v47  ;;  %v4036_v41 = vsel %vm4006_vm11, %v4003_v58, %v3550_v48  ;;  %vm13035_vm11 = vcmask 261120  }
 0x64d   : > { %v11204_v39 = vpop.permute.xlu1 %5504  ;;  %vm13041_vm1 = vmmov %vm13035_vm11 }
 0x64e   : > { %vm13042_vm9 = vmmov %vm13041_vm1 }
 0x64f   : > { %v4533_v13 = vpop.permute.xlu0 %4532  ;;  %vm13046_vm7 = vmmov %vm13041_vm1 }
 0x650   : > { %v4566_v32 = vsel %vm4540_vm3, %v4032_v57, %v4533_v13 }
 0x651   : > { %v4607_v38 = vrot.slane %v4566_v32, 1  ;;  %v11221_v46 = vpop.permute.xlu1 %5508 }
 0x652   : > { %v6191_v37 = vpop.f32.mrf.mxu0 }
 0x653   : > { %v4537_v2 = vpop.permute.xlu0 %4536  ;;  %v4609_v26 = vsel %vm13023_vm10, %v4607_v38, %v4608_v25  ;;  %v5416_v0 = vadd.f32 %v6191_v37, %v11247_v40 }
 0x654   : > { %v4570_v19 = vsel %vm4540_vm3, %v4036_v41, %v4537_v2  ;;  %6183 = vmatprep.mubr.msk.bf16.mxu1 %vm4672_vm6, %v4609_v26  ;;  %v5407_v44 = vpop.f32.mrf.mxu0  ;;  %vm13036_vm3 = vmmov %vm13032_vm12 }
 0x655   : > { %v4610_v31 = vrot.slane %v4570_v19, 1  ;;  %v5513_v50 = vpop.permute.xlu1 %5512  ;;  %v5408_v10 = vadd.f32 %v11247_v40, %v5407_v44  ;;  %v5472_v7 = vmax.f32 %v5416_v0, 0.0  ;;  %vm13037_vm4 = vmmov %vm13036_vm3 }
 0x656   : > { %v11229_v17 = vsel %vm1822_vm13, %v957_v24, %v5513_v50  ;;  %v6192_v54 = vpop.f32.mrf.mxu0  ;;  %vm13043_vm14 = vmmov %vm13036_vm3 }
 0x657   : > { %v11224_v1 = vpop.permute.xlu0 %5502  ;;  %v4612_v53 = vsel %vm13024_vm8, %v4610_v31, %v4611_v12  ;;  %v5470_v42 = vmax.f32 %v5408_v10, 0.0  ;;  %v5419_v5 = vadd.f32 %v6192_v54, %v11247_v40  ;;  %vm13047_vm0 = vmmov %vm13036_vm3 }
 0x658   : > { %6184 = vmatmul.mubr.msk.bf16.gmra.mxu1 %vm4672_vm6, %v4612_v53  ;;  %v5410_v60 = vpop.f32.mrf.mxu0  ;;  %vm13039_vm6 = vmmov %vm13034_vm15 }
 0x659   : > { %v11235_v28 = vpop.permute.xlu1 %5516  ;;  %v5411_v29 = vadd.f32 %v11247_v40, %v5410_v60  ;;  %5630 = vrot.lane.b32.xlu0 %v5470_v42, %s11993_s17  ;;  %v5473_v9 = vmax.f32 %v5419_v5, 0.0  ;;  %vm13040_vm5 = vmmov %vm13039_vm6 }
 0x65a   : > { %vm13045_vm2 = vmmov %vm13040_vm5 }
 0x65b   : > { %v11233_v4 = vpop.permute.xlu0 %5506  ;;  %v5471_v56 = vmax.f32 %v5411_v29, 0.0  ;;  %vm13048_vm10 = vmmov %vm13045_vm2 }
 0x65c   : > { %vm13049_vm8 = vmmov %vm13041_vm1 }
 0x65d   : > { %v11240_v35 = vpop.permute.xlu1 %5520  ;;  %5632 = vrot.lane.b32.xlu1 %v5471_v56, %s11993_s17  ;;  %5634 = vrot.lane.b32.xlu0 %v5472_v7, %s11993_s17 }
 0x65f   : > { %v5511_v15 = vpop.permute.xlu0 %5510 }
 0x660   : > { %v11238_v21 = vsel %vm1822_vm13, %v956_v16, %v5511_v15 }
 0x661   : > { %v11253_v27 = vpop.permute.xlu1 %5524  ;;  %5636 = vrot.lane.b32.xlu1 %v5473_v9, %s11993_s17 }
 0x662   : > { %v6195_v20 = vpop.f32.mrf.mxu0 }
 0x663   : > { %v11251_v22 = vpop.permute.xlu0 %5514  ;;  %v5432_v32 = vadd.f32 %v6195_v20, %v11247_v40 }
 0x664   : > { %v5423_v62 = vpop.f32.mrf.mxu0 }
 0x665   : > { %v5529_v47 = vpop.permute.xlu1 %5528  ;;  %v5424_v36 = vadd.f32 %v11247_v40, %v5423_v62  ;;  %v5476_v58 = vmax.f32 %v5432_v32, 0.0 }
 0x666   : > { %v11261_v59 = vsel %vm1822_vm13, %v965_v45, %v5529_v47  ;;  %v6196_v43 = vpop.f32.mrf.mxu0  ;;  %v5905_v45 = vld [vmem:[%s11542_s10] ss:$0 sm:$0xff] }
 0x667   : > { %v5519_v63 = vpop.permute.xlu0 %5518  ;;  %v5474_v25 = vmax.f32 %v5424_v36, 0.0  ;;  %v5435_v55 = vadd.f32 %v6196_v43, %v11247_v40 }
 0x668   : > { %v11258_v48 = vsel %vm1822_vm13, %v960_v51, %v5519_v63  ;;  %v5426_v38 = vpop.f32.mrf.mxu0 }
 0x669   : > { %v5427_v18 = vadd.f32 %v11247_v40, %v5426_v38  ;;  %5638 = vrot.lane.b32.xlu0 %v5474_v25, %s11993_s17  ;;  %v5477_v41 = vmax.f32 %v5435_v55, 0.0 }
 0x66b   : > { %v11268_v61 = vpop.permute.xlu0 %5522  ;;  %v5475_v30 = vmax.f32 %v5427_v18, 0.0 }
 0x66d   : > { %5640 = vrot.lane.b32.xlu1 %v5475_v30, %s11993_s17  ;;  %5642 = vrot.lane.b32.xlu0 %v5476_v58, %s11993_s17 }
 0x66f   : > { %v5527_v57 = vpop.permute.xlu0 %5526 }
 0x670   : > { %v11273_v13 = vsel %vm1822_vm13, %v964_v34, %v5527_v57 }
 0x671   : > { %5644 = vrot.lane.b32.xlu1 %v5477_v41, %s11993_s17 }
 0x672   : > { %v6199_v2 = vpop.f32.mrf.mxu0 }
 0x673   : > { %v5448_v19 = vadd.f32 %v6199_v2, %v11247_v40 }
 0x674   : > { %v5439_v26 = vpop.f32.mrf.mxu0 }
 0x675   : > { %v5440_v12 = vadd.f32 %v11247_v40, %v5439_v26  ;;  %v5480_v50 = vmax.f32 %v5448_v19, 0.0 }
 0x676   : > { %v6200_v31 = vpop.f32.mrf.mxu0 }
 0x677   : > { %v5478_v24 = vmax.f32 %v5440_v12, 0.0  ;;  %v5451_v3 = vadd.f32 %v6200_v31, %v11247_v40 }
 0x678   : > { %v5442_v53 = vpop.f32.mrf.mxu0 }
 0x679   : > { %v5443_v23 = vadd.f32 %v11247_v40, %v5442_v53  ;;  %5646 = vrot.lane.b32.xlu0 %v5478_v24, %s11993_s17  ;;  %v5481_v37 = vmax.f32 %v5451_v3, 0.0 }
 0x67b   : > { %v5479_v15 = vmax.f32 %v5443_v23, 0.0 }
 0x67d   : > { %5648 = vrot.lane.b32.xlu1 %v5479_v15, %s11993_s17  ;;  %5650 = vrot.lane.b32.xlu0 %v5480_v50, %s11993_s17 }
 0x681   : > { %5652 = vrot.lane.b32.xlu1 %v5481_v37, %s11993_s17 }
 0x682   : > { %v6203_v16 = vpop.f32.mrf.mxu0 }
 0x683   : > { %v11290_v6 = vadd.f32 %v6203_v16, %v11247_v40 }
 0x684   : > { %v5455_v33 = vpop.f32.mrf.mxu0 }
 0x685   : > { %v5456_v8 = vadd.f32 %v11247_v40, %v5455_v33 }
 0x686   : > { %v6204_v49 = vpop.f32.mrf.mxu0 }
 0x687   : > { %v5482_v44 = vmax.f32 %v5456_v8, 0.0  ;;  %v11296_v0 = vadd.f32 %v6204_v49, %v11247_v40 }
 0x688   : > { %v5458_v10 = vpop.f32.mrf.mxu0 }
 0x689   : > { %v5459_v51 = vadd.f32 %v11247_v40, %v5458_v10  ;;  %5654 = vrot.lane.b32.xlu0 %v5482_v44, %s11993_s17 }
 0x68b   : > { %v5483_v54 = vmax.f32 %v5459_v51, 0.0 }
 0x68d   : > { %5656 = vrot.lane.b32.xlu1 %v5483_v54, %s11993_s17 }
 0x6ee   : > { %v6173_v63 = vpop.f32.mrf.mxu1 }
 0x6ef   : > { %v4743_v42 = vadd.f32 %v6173_v63, %v5905_v45 }
 0x6f0   : > { %v4734_v47 = vpop.f32.mrf.mxu1 }
 0x6f1   : > { %v4799_v60 = vmax.f32 %v4743_v42, 0.0  ;;  %v4735_v7 = vadd.f32 %v5905_v45, %v4734_v47  ;;  %v5484_v42 = vmax.f32 %v11290_v6, 0.0 }
 0x6f2   : > { %v6174_v5 = vpop.f32.mrf.mxu1 }
 0x6f3   : > { %v4746_v29 = vadd.f32 %v6174_v5, %v5905_v45  ;;  %5570 = vrot.lane.b32.xlu0 %v4799_v60, %s11972_s30  ;;  %v4797_v14 = vmax.f32 %v4735_v7, 0.0  ;;  %v5485_v60 = vmax.f32 %v11296_v0, 0.0  ;;  %v11325_v7 = vpop.permute.xlu0 %5530  ;;  %v11327_v5 = vpop.permute.xlu1 %5532 }
 0x6f4   : > { %v4737_v40 = vpop.f32.mrf.mxu1 }
 0x6f5   : > { %v4800_v52 = vmax.f32 %v4746_v29, 0.0  ;;  %v4738_v56 = vadd.f32 %v5905_v45, %v4737_v40 }
 0x6f7   : > { %5572 = vrot.lane.b32.xlu1 %v4800_v52, %s11972_s30  ;;  %5566 = vrot.lane.b32.xlu0 %v4797_v14, %s11972_s30  ;;  %v4798_v9 = vmax.f32 %v4738_v56, 0.0  ;;  %v5633_v29 = vpop.permute.xlu1 %5632 }
 0x6fb   : > { %5568 = vrot.lane.b32.xlu1 %v4798_v9, %s11972_s30  ;;  %v5637_v14 = vpop.permute.xlu1 %5636 }
 0x6fc   : > { %v6177_v34 = vpop.f32.mrf.mxu1 }
 0x6fd   : > { %v4759_v57 = vadd.f32 %v6177_v34, %v5905_v45 }
 0x6fe   : > { %v4750_v20 = vpop.f32.mrf.mxu1 }
 0x6ff   : > { %v4803_v62 = vmax.f32 %v4759_v57, 0.0  ;;  %v4751_v32 = vadd.f32 %v5905_v45, %v4750_v20  ;;  %v11329_v52 = vpop.permute.xlu1 %5640 }
 0x700   : > { %v6178_v36 = vpop.f32.mrf.mxu1 }
 0x701   : > { %v4762_v43 = vadd.f32 %v6178_v36, %v5905_v45  ;;  %5578 = vrot.lane.b32.xlu0 %v4803_v62, %s11972_s30  ;;  %v4801_v38 = vmax.f32 %v4751_v32, 0.0  ;;  %v13029_v62 = vld [vmem:[#allocation39_spill] sm:$0xff] }
 0x702   : > { %v4753_v25 = vpop.f32.mrf.mxu1  ;;  %v898_v32 = vadd.f32 %v13029_v62, %v11212_v11 }
 0x703   : > { %v4804_v58 = vmax.f32 %v4762_v43, 0.0  ;;  %v4754_v55 = vadd.f32 %v5905_v45, %v4753_v25  ;;  %v5645_v9 = vpop.permute.xlu1 %5644  ;;  %v13030_v25 = vld [vmem:[#allocation45_spill] sm:$0xff] }
 0x704   : > { %v954_v43 = vmax.f32 %v898_v32, 0.0 }
 0x705   : > { %5580 = vrot.lane.b32.xlu1 %v4804_v58, %s11972_s30  ;;  %5574 = vrot.lane.b32.xlu0 %v4801_v38, %s11972_s30  ;;  %v4802_v18 = vmax.f32 %v4754_v55, 0.0  ;;  %v890_v38 = vadd.f32 %v11212_v11, %v13030_v25  ;;  %v13031_v58 = vld [vmem:[#allocation26_spill] sm:$0xff] }
 0x706   : > { %v901_v55 = vadd.f32 %v13031_v58, %v11212_v11 }
 0x707   : > { %v11333_v0 = vpop.permute.xlu1 %5648 }
 0x709   : > { %5576 = vrot.lane.b32.xlu1 %v4802_v18, %s11972_s30 }
 0x70b   : > { %v11337_v20 = vpop.permute.xlu1 %5652 }
 0x70c   : > { %v6181_v30 = vpop.f32.mrf.mxu1 }
 0x70d   : > { %v4775_v41 = vadd.f32 %v6181_v30, %v5905_v45  ;;  %v5680_v30 = vsel %vm1822_vm13, %v954_v43, %v11233_v4 }
 0x70e   : > { %v4766_v2 = vpop.f32.mrf.mxu1 }
 0x70f   : > { %v4807_v26 = vmax.f32 %v4775_v41, 0.0  ;;  %v4767_v19 = vadd.f32 %v5905_v45, %v4766_v2  ;;  %v11350_v18 = vpop.permute.xlu1 %5656 }
 0x710   : > { %v6182_v12 = vpop.f32.mrf.mxu1 }
 0x711   : > { %v4778_v31 = vadd.f32 %v6182_v12, %v5905_v45  ;;  %5586 = vrot.lane.b32.xlu0 %v4807_v26, %s11972_s30  ;;  %v4805_v53 = vmax.f32 %v4767_v19, 0.0  ;;  %v952_v26 = vmax.f32 %v890_v38, 0.0  ;;  %v955_v19 = vmax.f32 %v901_v55, 0.0  ;;  %v13033_v12 = vld [vmem:[#allocation31_spill] sm:$0xff] }
 0x712   : > { %v4769_v24 = vpop.f32.mrf.mxu1  ;;  %v13058_v55 = vld [vmem:[#allocation75_spill] sm:$0xff] }
 0x713   : > { %v4808_v50 = vmax.f32 %v4778_v31, 0.0  ;;  %v4770_v3 = vadd.f32 %v5905_v45, %v4769_v24  ;;  %v893_v31 = vadd.f32 %v11212_v11, %v13033_v12  ;;  %v5681_v4 = vsel %vm1822_vm13, %v955_v19, %v11221_v46 }
 0x715   : > { %5588 = vrot.lane.b32.xlu1 %v4808_v50, %s11972_s30  ;;  %5582 = vrot.lane.b32.xlu0 %v4805_v53, %s11972_s30  ;;  %v4806_v23 = vmax.f32 %v4770_v3, 0.0  ;;  %v5678_v53 = vsel %vm1822_vm13, %v952_v26, %v11224_v1  ;;  %v13062_v26 = vld [vmem:[#allocation76_spill] sm:$0xff] }
 0x718   : > { %v6185_v16 = vpop.f32.mrf.mxu1 }
 0x719   : > { %v4791_v15 = vadd.f32 %v6185_v16, %v5905_v45  ;;  %5584 = vrot.lane.b32.xlu1 %v4806_v23, %s11972_s30 }
 0x71a   : > { %v4782_v33 = vpop.f32.mrf.mxu1 }
 0x71b   : > { %v4811_v37 = vmax.f32 %v4791_v15, 0.0  ;;  %v4783_v8 = vadd.f32 %v5905_v45, %v4782_v33  ;;  %v953_v15 = vmax.f32 %v893_v31, 0.0  ;;  %v13038_v33 = vld [vmem:[#allocation60_spill] sm:$0xff] }
 0x71c   : > { %v6186_v49 = vpop.f32.mrf.mxu1 }
 0x71d   : > { %v4794_v44 = vadd.f32 %v6186_v49, %v5905_v45  ;;  %5594 = vrot.lane.b32.xlu0 %v4811_v37, %s11972_s30  ;;  %v4809_v51 = vmax.f32 %v4783_v8, 0.0  ;;  %v914_v37 = vadd.f32 %v13038_v33, %v11212_v11  ;;  %v5679_v46 = vsel %vm1822_vm13, %v953_v15, %v11204_v39 }
 0x71e   : > { %v4785_v10 = vpop.f32.mrf.mxu1 }
 0x71f   : > { %v4812_v54 = vmax.f32 %v4794_v44, 0.0  ;;  %v4786_v63 = vadd.f32 %v5905_v45, %v4785_v10  ;;  %v5631_v45 = vpop.permute.xlu0 %5630  ;;  %v958_v10 = vmax.f32 %v914_v37, 0.0 }
 0x721   : > { %5596 = vrot.lane.b32.xlu1 %v4812_v54, %s11972_s30  ;;  %5590 = vrot.lane.b32.xlu0 %v4809_v51, %s11972_s30  ;;  %v4810_v47 = vmax.f32 %v4786_v63, 0.0  ;;  %v13044_v51 = vld [vmem:[#allocation38_spill] sm:$0xff] }
 0x722   : > { %v917_v54 = vadd.f32 %v13044_v51, %v11212_v11 }
 0x723   : > { %v5635_v40 = vpop.permute.xlu0 %5634 }
 0x724   : > { %v959_v39 = vmax.f32 %v917_v54, 0.0 }
 0x725   : > { %5592 = vrot.lane.b32.xlu1 %v4810_v47, %s11972_s30  ;;  %5658 = vrot.lane.b32.xlu0 %v5484_v42, %s11993_s17  ;;  %s445_s30 = sand.u32 1, %s6428_s26   ;;  %v5684_v42 = vsel %vm1822_vm13, %v958_v10, %v11251_v22  ;;  %v13052_v22 = vld [vmem:[#allocation73_spill] sm:$0xff] }
 0x726   : > { %v930_v43 = vadd.f32 %v13052_v22, %v11212_v11  ;;  %s11480_s27 = scalar_lea.sflag [#allocation3], %s445_s30 }
 0x727   : > { %v5639_v6 = vpop.permute.xlu0 %5638 }
 0x728   : > { %v962_v58 = vmax.f32 %v930_v43, 0.0 }
 0x729   : > { %5660 = vrot.lane.b32.xlu1 %v5485_v60, %s11993_s17  ;;  %s5842_s17 = sshll.u32 %s445_s30, 7 }
 0x72a   : > { %s11358_s25 = scalar_lea.vmem [#allocation2], %s5842_s17 }
 0x72b   : > { %v5643_v56 = vpop.permute.xlu0 %5642  ;;  %s5759_s28 = sshll.u32 %s11358_s25, 4  ;;  %s11467_s28 = int_to_ptr.vmem [resolvable:$true] %s5759_s28 }
 0x72c   : > { %s6360_s14 = scalar_lea.vmem %s11467_s28, 2048  ;;  %p6367_p2 = scmp.lt.s32.totalorder %s11467_s28, %s6365_s20 }
 0x72d   : > { %p6361_p13 = scmp.ne.s32.totalorder %s11467_s28, %s6360_s14  ;;  %p6368_p4 = scmp.lt.s32.totalorder %s6366_s16, %s6360_s14 }
 0x72f   : > { %v11331_v34 = vpop.permute.xlu0 %5646  ;;  %p6362_p0 = pnand %p6361_p13, %p6595_p3  ;;  %p6369_p5 = por %p6368_p4, %p6367_p2 }
 0x731   : > { %p6363_p1 = pneg %p6362_p0 }
 0x733   : > { %v11335_v57 = vpop.permute.xlu0 %5650  ;;  %p6370_p6 = pnand %p6369_p5, %p6363_p1 }
 0x737   : > { %v11341_v36 = vpop.permute.xlu0 %5654 }
 0x765   : > { %v5571_v41 = vpop.permute.xlu0 %5570 }
 0x766   : > { %v5696_v2 = vsel %vm13032_vm12, %v5680_v30, %v5571_v41  ;;  %vm13050_vm12 = vmmov %vm13047_vm0 }
 0x767   : > { %v5712_v24 = vsel %vm13034_vm15, %v5696_v2, %v5635_v40  ;;  %v5685_v40 = vsel %vm1822_vm13, %v959_v39, %v11235_v28  ;;  %vm13051_vm15 = vmmov %vm13047_vm0 }
 0x768   : > { %5728 = vst.msk [vmem:[%s11358_s25 + $0x10] sm:$0xff] %vm13035_vm11, %v5712_v24  ;;  %vm13053_vm11 = vmmov %vm13045_vm2 }
 0x769   : > { %v5573_v50 = vpop.permute.xlu1 %5572  ;;  %v5567_v3 = vpop.permute.xlu0 %5566 }
 0x76a   : > { %v5697_v23 = vsel %vm13036_vm3, %v5681_v4, %v5573_v50  ;;  %v5694_v16 = vsel %vm13037_vm4, %v5678_v53, %v5567_v3  ;;  %vm13054_vm3 = vmmov %vm13045_vm2 }
 0x76b   : > { %v5713_v8 = vsel %vm13039_vm6, %v5697_v23, %v5637_v14  ;;  %v5710_v49 = vsel %vm13040_vm5, %v5694_v16, %v5631_v45  ;;  %vm13055_vm4 = vmmov %vm13041_vm1  ;;  %v13072_v23 = vld [vmem:[#allocation15_spill] sm:$0xff] }
 0x76c   : > { %5729 = vst.msk [vmem:[%s11358_s25 + $0x18] sm:$0xff] %vm13041_vm1, %v5713_v8  ;;  %vm13056_vm6 = vmmov %vm13041_vm1 }
 0x76d   : > { %5726 = vst.msk [vmem:[%s11358_s25] sm:$0xff] %vm13042_vm9, %v5710_v49  ;;  %v5569_v1 = vpop.permute.xlu1 %5568  ;;  %vm13057_vm5 = vmmov %vm13047_vm0 }
 0x76e   : > { %v5695_v44 = vsel %vm13043_vm14, %v5679_v46, %v5569_v1  ;;  %vm13059_vm1 = vmmov %vm13045_vm2 }
 0x76f   : > { %v5711_v63 = vsel %vm13045_vm2, %v5695_v44, %v5633_v29  ;;  %vm13060_vm9 = vmmov %vm13055_vm4 }
 0x770   : > { %5727 = vst.msk [vmem:[%s11358_s25 + $0x8] sm:$0xff] %vm13046_vm7, %v5711_v63  ;;  %vm13061_vm14 = vmmov %vm13047_vm0 }
 0x771   : > { %vm13063_vm2 = vmmov %vm13059_vm1 }
 0x772   : > { %vm13064_vm7 = vmmov %vm13055_vm4 }
 0x773   : > { %v5579_v47 = vpop.permute.xlu0 %5578 }
 0x774   : > { %v5700_v60 = vsel %vm13047_vm0, %v5684_v42, %v5579_v47 }
 0x775   : > { %v5716_v45 = vsel %vm13048_vm10, %v5700_v60, %v5643_v56  ;;  %vm13065_vm10 = vmmov %vm13047_vm0 }
 0x776   : > { %5732 = vst.msk [vmem:[%s11358_s25 + $0x30] sm:$0xff] %vm13049_vm8, %v5716_v45  ;;  %vm13066_vm8 = vmmov %vm13059_vm1 }
 0x777   : > { %v5581_v29 = vpop.permute.xlu1 %5580  ;;  %v5575_v14 = vpop.permute.xlu0 %5574 }
 0x778   : > { %v5701_v62 = vsel %vm13050_vm12, %v5685_v40, %v5581_v29  ;;  %v5698_v32 = vsel %vm13051_vm15, %v11238_v21, %v5575_v14  ;;  %v933_v21 = vadd.f32 %v13058_v55, %v11212_v11  ;;  %vm13067_vm12 = vmmov %vm13059_vm1 }
 0x779   : > { %v5717_v25 = vsel %vm13053_vm11, %v5701_v62, %v5645_v9  ;;  %v5714_v56 = vsel %vm13054_vm3, %v5698_v32, %v5639_v6  ;;  %v5688_v6 = vsel %vm1822_vm13, %v962_v58, %v11268_v61  ;;  %vm13068_vm15 = vmmov %vm13055_vm4 }
 0x77a   : > { %5733 = vst.msk [vmem:[%s11358_s25 + $0x38] sm:$0xff] %vm13055_vm4, %v5717_v25  ;;  %v963_v2 = vmax.f32 %v933_v21, 0.0  ;;  %vm13069_vm11 = vmmov %vm13055_vm4 }
 0x77b   : > { %5730 = vst.msk [vmem:[%s11358_s25 + $0x20] sm:$0xff] %vm13056_vm6, %v5714_v56  ;;  %v5577_v28 = vpop.permute.xlu1 %5576  ;;  %vm13070_vm3 = vmmov %vm13047_vm0 }
 0x77c   : > { %v5699_v38 = vsel %vm13057_vm5, %v11229_v17, %v5577_v28  ;;  %v925_v17 = vadd.f32 %v11212_v11, %v13062_v26  ;;  %vm13071_vm4 = vmmov %vm13059_vm1 }
 0x77d   : > { %v5715_v30 = vsel %vm13059_vm1, %v5699_v38, %v11329_v52  ;;  %v5689_v52 = vsel %vm1822_vm13, %v963_v2, %v11253_v27  ;;  %vm13074_vm5 = vmmov %vm13047_vm0 }
 0x77e   : > { %5731 = vst.msk [vmem:[%s11358_s25 + $0x28] sm:$0xff] %vm13060_vm9, %v5715_v30  ;;  %v961_v4 = vmax.f32 %v925_v17, 0.0  ;;  %vm13075_vm9 = vmmov %vm13056_vm6 }
 0x780   : > { %v5687_v27 = vsel %vm1822_vm13, %v961_v4, %v11240_v35  ;;  %v13073_v35 = vld [vmem:[#allocation17_spill] sm:$0xff] }
 0x781   : > { %v949_v37 = vadd.f32 %v13073_v35, %v11212_v11 }
 0x783   : > { %v5587_v9 = vpop.permute.xlu0 %5586 }
 0x784   : > { %v5704_v41 = vsel %vm13061_vm14, %v5688_v6, %v5587_v9  ;;  %vm13076_vm14 = vmmov %vm13047_vm0 }
 0x785   : > { %v5720_v19 = vsel %vm13063_vm2, %v5704_v41, %v11335_v57  ;;  %vm13077_vm2 = vmmov %vm13047_vm0 }
 0x786   : > { %5736 = vst.msk [vmem:[%s11358_s25 + $0x50] sm:$0xff] %vm13064_vm7, %v5720_v19  ;;  %vm13078_vm7 = vmmov %vm13059_vm1 }
 0x787   : > { %v5589_v12 = vpop.permute.xlu1 %5588  ;;  %v5583_v61 = vpop.permute.xlu0 %5582 }
 0x788   : > { %v5705_v31 = vsel %vm13047_vm0, %v5689_v52, %v5589_v12  ;;  %v5702_v24 = vsel %vm13065_vm10, %v11258_v48, %v5583_v61  ;;  %vm13079_vm0 = vmmov %vm13059_vm1 }
 0x789   : > { %v5721_v53 = vsel %vm13066_vm8, %v5705_v31, %v11337_v20  ;;  %v5718_v57 = vsel %vm13067_vm12, %v5702_v24, %v11331_v34  ;;  %v946_v34 = vadd.f32 %v13072_v23, %v11212_v11  ;;  %v967_v11 = vmax.f32 %v949_v37, 0.0  ;;  %vm13080_vm10 = vmmov %vm13056_vm6 }
 0x78a   : > { %5737 = vst.msk [vmem:[%s11358_s25 + $0x58] sm:$0xff] %vm13068_vm15, %v5721_v53  ;;  %vm13081_vm8 = vmmov %vm13056_vm6 }
 0x78b   : > { %5734 = vst.msk [vmem:[%s11358_s25 + $0x40] sm:$0xff] %vm13069_vm11, %v5718_v57  ;;  %v5585_v50 = vpop.permute.xlu1 %5584  ;;  %v966_v33 = vmax.f32 %v946_v34, 0.0  ;;  %v5693_v10 = vsel %vm1822_vm13, %v967_v11, %v11327_v5  ;;  %vm13082_vm12 = vmmov %vm13077_vm2 }
 0x78c   : > { %v5703_v3 = vsel %vm13070_vm3, %v5687_v27, %v5585_v50  ;;  %vm13083_vm15 = vmmov %vm13079_vm0 }
 0x78d   : > { %v5719_v48 = vsel %vm13071_vm4, %v5703_v3, %v11333_v0  ;;  %v5692_v49 = vsel %vm1822_vm13, %v966_v33, %v11325_v7  ;;  %vm13084_vm11 = vmmov %vm13056_vm6 }
 0x78e   : > { %5735 = vst.msk [vmem:[%s11358_s25 + $0x48] sm:$0xff] %vm13056_vm6, %v5719_v48 }
 0x78f   : > { %v5595_v20 = vpop.permute.xlu0 %5594 }
 0x790   : > { %v5708_v46 = vsel %vm13076_vm14, %v5692_v49, %v5595_v20 }
 0x793   : > { %v5597_v16 = vpop.permute.xlu1 %5596  ;;  %v5591_v15 = vpop.permute.xlu0 %5590 }
 0x794   : > { %v5706_v8 = vsel %vm13074_vm5, %v11273_v13, %v5591_v15 }
 0x795   : > { %v5722_v0 = vsel %vm13059_vm1, %v5706_v8, %v11341_v36 }
 0x796   : > { %5738 = vst.msk [vmem:[%s11358_s25 + $0x60] sm:$0xff] %vm13075_vm9, %v5722_v0 }
 0x797   : > { %v5593_v1 = vpop.permute.xlu1 %5592  ;;  %v5659_v44 = vpop.permute.xlu0 %5658 }
 0x798   : > { %v5707_v13 = vsel %vm13077_vm2, %v11261_v59, %v5593_v1  ;;  %v5724_v36 = vsel %vm13078_vm7, %v5708_v46, %v5659_v44  ;;  %v5709_v59 = vsel %vm13082_vm12, %v5693_v10, %v5597_v16 }
 0x799   : > { %v5723_v7 = vsel %vm13079_vm0, %v5707_v13, %v11350_v18  ;;  %5740 = vst.msk [vmem:[%s11358_s25 + $0x70] sm:$0xff] %vm13080_vm10, %v5724_v36 }
 0x79a   : > { %5739 = vst.msk [vmem:[%s11358_s25 + $0x68] sm:$0xff] %vm13081_vm8, %v5723_v7 }
 0x79b   : > { %v5661_v51 = vpop.permute.xlu1 %5660 }
 0x79c   : > { %v5725_v18 = vsel %vm13083_vm15, %v5709_v59, %v5661_v51 }
 0x79d   : > { %5741 = vst.msk [vmem:[%s11358_s25 + $0x78] sm:$0xff] %vm13084_vm11, %v5725_v18 }
 0x79e   : > { %6373 = shalt.err (!%p6370_p6)
}
 0x79f   : > { %s6374_s24 = scalar_lea.hbm %s11473_s4, 2048  ;;  %s6378_s17 = scalar_lea.hbm %s11545_s13, 8192 }
 0x7a0   : > { %p6375_p7 = scmp.ne.s32.totalorder %s11473_s4, %s6374_s24  ;;  %p6379_p11 = scmp.lt.s32.totalorder %s11473_s4, %s11545_s13 }
 0x7a1   : > { %p6380_p12 = scmp.lt.s32.totalorder %s6378_s17, %s6374_s24 }
 0x7a2   : > { %p6376_p9 = pnand %p6375_p7, %p6595_p3 }
 0x7a3   : > { %p6381_p13 = por %p6380_p12, %p6379_p11 }
 0x7a4   : > { %p6377_p10 = pneg %p6376_p9 }
 0x7a6   : > { %p6382_p0 = pnand %p6381_p13, %p6377_p10 }
 0x7a8   : > { %6385 = shalt.err (!%p6382_p0)
}
 0x7a9   : > { %s6473_s5 = smov 128  }
 0x7aa   : > { %6214 = dma.vmem_to_hbm [thread:$0]  (%p6595_p3), %s11467_s28, 2048, %s11473_s4, %s11480_s27, %s6473_s5, %s6473_s5, %s12001_s0  }
 0x7ab PF: > { %s13085_s18 = sld [smem:[#allocation5_spill]]  ;;  %p6220_p1 = scmp.ge.s32.totalorder %s6452_s15, 2 }
 0x7ad   : > { %p6217_p2 = pnand %p6220_p1, %p6604_p8 }
 0x7af   : > { %p6218_p4 = pneg %p6217_p2 }
 0x7b1   : > { %s5774_s29 = sand.u32 1, %s13085_s18  }
 0x7b2   : > { %s5775_s19 = scalar_lea.sflag [#allocation3], %s5774_s29 }
 0x7b3   : > { %6419 = dma.done.wait (%p6218_p4), %s5775_s19, 2048  }
 0x7b4   : > { %6421 = vsyncadd (%p6218_p4), %s5775_s19, 4294965248  ;;  %s26_s15 = sadd.s32 1, %s6452_s15   ;;  %s13086_s21 = sld [smem:[#allocation6_spill]] }
 0x7b5   : > { %p23_p5 = scmp.ge.s32.totalorder %s26_s15, 6   ;;  %s13087_s27 = sld [smem:[#allocation11_spill]] }
 0x7b6   : > { %s13088_s28 = sld [smem:[#allocation7_spill]]  ;;  %s13092_s25 = smov %s6428_s26 }
 0x7b7   : > { %s13089_s29 = sld [smem:[#allocation8_spill]]  ;;  %25 = sbr.rel (!%p23_p5) target bundleno = 12 (0xc), region = 108 }
 0x7b8   : > { %s13090_s30 = sld [smem:[#allocation9_spill]] }
 0x7b9   : > { %s13091_s14 = sld [smem:[#allocation10_spill]] }
 0x7ba   : > { %s13093_s26 = smov %s13086_s21 }
 0x7bc   :  { %5780 = vsyncpa [#allocation3], 1 }
 0x7bd   :  { %5782 = vsyncpa [#allocation3 + $0x1], 1 }

</bundles_post_ra>
